<compile_context>
chip_gen: v7x
topology: tpu7x:2x2x1
jax: 0.10.0
libtpu: 0.0.40
codegen_flags: <defaults>
</compile_context>

<pallas_src>
import numpy as np
import jax
import jax.numpy as jnp
from jax.experimental import pallas as pl
from jax.experimental.pallas import tpu as pltpu

KH = KW = 3     # ConvLayer: kernel_size=3, padding=1, stride 1
LANE = 128      # TPU lane width


def _round_up(x, m):
    return (x + m - 1) // m * m


# --------------------------------------------------------------------------- #
# Fused kernel: conv1(+BN+ReLU) -> conv2(+BN+ReLU) -> 2x2 maxpool
# --------------------------------------------------------------------------- #
def _conv3x3_bias_relu(xp_ref, col_ref, w_ref, b_ref):
    """3x3 'SAME' conv over the zero-halo padded bf16 scratch, + bias + ReLU.

    Packs the 9 shifted taps into a (Nb, H, W, 9*Cp) bf16 im2col buffer (all
    tap writes lane-aligned since Cp % 128 == 0), then runs ONE bf16 MXU
    matmul with f32 accumulation.  Returns the (Nb*H*W, Cp) f32 activation.
    """
    Nb, Hp, Wp, Cp = xp_ref.shape
    H, W = Hp - 2, Wp - 2
    k = 0
    for dy in range(KH):
        for dx in range(KW):
            col_ref[:, :, :, k * Cp:(k + 1) * Cp] = xp_ref[:, dy:dy + H, dx:dx + W, :]
            k += 1
    patch = col_ref[...].reshape(Nb * H * W, KH * KW * Cp)          # bf16
    acc = jnp.dot(patch, w_ref[...], preferred_element_type=jnp.float32)
    return jnp.maximum(acc + b_ref[...], 0.0)                        # f32


def _conv_block_kernel(x_ref, w1_ref, b1_ref, w2_ref, b2_ref,
                       res_ref, out_ref, xp_ref, col_ref):
    Nb, H, W, Cp = x_ref.shape
    Ho, Wo = H // 2, W // 2

    # ---- zero only the 1-pixel halo ring (interior is always overwritten).
    # NOTE: not gated on program_id==0 -- scratches are per-core and the
    # parallel batch axis may be sharded across TensorCores (megacore), so a
    # core starting at pid!=0 would otherwise see a garbage halo.
    xp_ref[:, 0:1, :, :] = jnp.zeros((Nb, 1, W + 2, Cp), xp_ref.dtype)
    xp_ref[:, H + 1:H + 2, :, :] = jnp.zeros((Nb, 1, W + 2, Cp), xp_ref.dtype)
    xp_ref[:, 1:H + 1, 0:1, :] = jnp.zeros((Nb, H, 1, Cp), xp_ref.dtype)
    xp_ref[:, 1:H + 1, W + 1:W + 2, :] = jnp.zeros((Nb, H, 1, Cp), xp_ref.dtype)

    # ---- layer 1: input block (already bf16, lane-padded) into the interior.
    xp_ref[:, 1:H + 1, 1:W + 1, :] = x_ref[...]
    y1 = _conv3x3_bias_relu(xp_ref, col_ref, w1_ref, b1_ref)         # (M, Cp) f32

    # ---- layer 2: intermediate activation never leaves VMEM (same scratch).
    xp_ref[:, 1:H + 1, 1:W + 1, :] = y1.reshape(Nb, H, W, Cp).astype(xp_ref.dtype)
    y2 = _conv3x3_bias_relu(xp_ref, col_ref, w2_ref, b2_ref)         # (M, Cp) f32

    res_ref[...] = y2.reshape(Nb, H, W, Cp).astype(res_ref.dtype)

    # ---- fused 2x2 / stride-2 max pool, entirely on values ------------------
    # H-pairs: (Nb*H*W, Cp) -> (Nb*Ho, 2W, Cp) is a sublane half-split; rows
    # [0, W) are image row 2i, rows [W, 2W) are image row 2i+1.
    t = y2.reshape(Nb * Ho, 2 * W, Cp)
    hm = jnp.maximum(t[:, :W, :], t[:, W:, :])                       # (Nb*Ho, W, Cp)
    # W-pairs: split adjacent columns into a size-2 pair axis and max it.
    p = hm.reshape(Nb * Ho * Wo, 2, Cp)
    pooled = jnp.maximum(p[:, 0, :], p[:, 1, :])                     # (Nb*Ho*Wo, Cp)
    out_ref[...] = pooled.reshape(Nb, Ho, Wo, Cp).astype(out_ref.dtype)


# --------------------------------------------------------------------------- #
# Pallas wrapper
# --------------------------------------------------------------------------- #
def _pick_batch_block(N, H, W, Cp, col_budget_bytes=8 << 20):
    """Images per grid step: enlarge the MXU M dim, keep >=2 parallel steps
    (two v7x TensorCores), and keep the bf16 im2col scratch under budget."""
    nb = 1
    for cand in range(1, N + 1):
        if N % cand:
            continue
        if N >= 2 and N // cand < 2:
            break
        if cand * H * W * KH * KW * Cp * 2 > col_budget_bytes:
            break
        nb = cand
    return nb


def conv_block_nhwc(x_nhwc, params):
    """Fused ConvBlock forward in NHWC.  Returns (residual, pooled)."""
    N, H, W, cin = x_nhwc.shape
    cout = params["conv1"]["w_hwio"].shape[-1]
    assert H % 2 == 0 and W % 2 == 0, "MaxPool2d(2,2) path expects even H/W"
    Ho, Wo = H // 2, W // 2

    # Lane-pad channels to a multiple of 128: dense, unmasked loads/stores and
    # aligned im2col tap writes everywhere (padded channels are exact zeros).
    Cp = _round_up(max(cin, cout), LANE)
    Nb = _pick_batch_block(N, H, W, Cp)

    x_p = jnp.pad(x_nhwc.astype(jnp.bfloat16),
                  ((0, 0), (0, 0), (0, 0), (0, Cp - cin)))

    def pack_w(w_hwio, c_in):
        w = jnp.pad(w_hwio, ((0, 0), (0, 0), (0, Cp - c_in), (0, Cp - cout)))
        return w.reshape(KH * KW * Cp, Cp).astype(jnp.bfloat16)

    def pack_b(b):
        return jnp.pad(b, (0, Cp - cout)).reshape(1, Cp).astype(jnp.float32)

    # BN scale already folded into w_hwio; zero rows/cols for padded channels.
    w1 = pack_w(params["conv1"]["w_hwio"], cin)
    b1 = pack_b(params["conv1"]["bias"])
    w2 = pack_w(params["conv2"]["w_hwio"], cout)
    b2 = pack_b(params["conv2"]["bias"])

    res_p, out_p = pl.pallas_call(
        _conv_block_kernel,
        out_shape=(jax.ShapeDtypeStruct((N, H, W, Cp), jnp.float32),
                   jax.ShapeDtypeStruct((N, Ho, Wo, Cp), jnp.float32)),
        grid_spec=pltpu.PrefetchScalarGridSpec(
            num_scalar_prefetch=0,
            grid=(N // Nb,),
            in_specs=[
                pl.BlockSpec((Nb, H, W, Cp), lambda n: (n, 0, 0, 0)),
                pl.BlockSpec((KH * KW * Cp, Cp), lambda n: (0, 0)),
                pl.BlockSpec((1, Cp), lambda n: (0, 0)),
                pl.BlockSpec((KH * KW * Cp, Cp), lambda n: (0, 0)),
                pl.BlockSpec((1, Cp), lambda n: (0, 0)),
            ],
            out_specs=[
                pl.BlockSpec((Nb, H, W, Cp), lambda n: (n, 0, 0, 0)),
                pl.BlockSpec((Nb, Ho, Wo, Cp), lambda n: (n, 0, 0, 0)),
            ],
            scratch_shapes=[
                # one shared zero-halo padded activation buffer (bf16)
                pltpu.VMEM((Nb, H + 2, W + 2, Cp), jnp.bfloat16),
                # im2col buffer (bf16), shared by both convs
                pltpu.VMEM((Nb, H, W, KH * KW * Cp), jnp.bfloat16),
            ],
        ),
        compiler_params=pltpu.CompilerParams(
            dimension_semantics=("parallel",),
            vmem_limit_bytes=32 * 1024 * 1024),
    )(x_p, w1, b1, w2, b2)

    # Slice the lane padding back off (pure XLA, outside the kernel).
    # TODO(synk): residual stays f32 to match the PyTorch module; emit bf16
    #             here if the downstream consumer tolerates it (halves the
    #             largest HBM writeback stream).
    return res_p[..., :cout], out_p[..., :cout]


# --------------------------------------------------------------------------- #
# Parameters (BN folded into conv) + forward
# --------------------------------------------------------------------------- #
def _fold_bn_into_conv(w_hwio, conv_bias, gamma, beta, mean, var, eps=1e-5):
    scale = gamma / jnp.sqrt(var + eps)                 # (Cout,)
    w_folded = w_hwio * scale[None, None, None, :]
    bias = beta + (conv_bias - mean) * scale
    return w_folded, bias


def init_conv_block_params(key, in_channels, out_channels):
    """Deterministic parameter init matching the PyTorch module's shapes."""
    def layer(key, cin, cout):
        ks = jax.random.split(key, 6)
        w_oihw = 0.1 * jax.random.normal(ks[0], (cout, cin, KH, KW), jnp.float32)
        w_hwio = jnp.transpose(w_oihw, (2, 3, 1, 0))                # HWIO
        b = 0.1 * jax.random.normal(ks[1], (cout,), jnp.float32)    # bias=True
        gamma = jax.random.uniform(ks[2], (cout,), jnp.float32, 0.5, 1.5)
        beta = 0.1 * jax.random.normal(ks[3], (cout,), jnp.float32)
        mean = 0.1 * jax.random.normal(ks[4], (cout,), jnp.float32)
        var = jax.random.uniform(ks[5], (cout,), jnp.float32, 0.5, 1.5)
        w_folded, bias = _fold_bn_into_conv(w_hwio, b, gamma, beta, mean, var)
        return {"w_hwio": w_folded, "bias": bias}

    k1, k2 = jax.random.split(key)
    return {"conv1": layer(k1, in_channels, out_channels),
            "conv2": layer(k2, out_channels, out_channels)}


def conv_block_forward(params, x_nchw, down=True):
    """Forward pass of ConvBlock.  x_nchw: (N, C, H, W), float32."""
    # TODO(synk): boundary NCHW<->NHWC transposes remain at the module API;
    #             keep the surrounding network in NHWC to eliminate them.
    x = jnp.transpose(x_nchw, (0, 2, 3, 1))
    residual, pooled = conv_block_nhwc(x, params)
    residual = jnp.transpose(residual, (0, 3, 1, 2))
    if down:
        return residual, jnp.transpose(pooled, (0, 3, 1, 2))
    # TODO(synk): down=False reuses the fused kernel and discards the pooled
    #             output (tiny wasted compute; requires even H/W).
    return residual


# --------------------------------------------------------------------------- #
# Pure-JAX reference (correctness check only; same bf16 input rounding)
# --------------------------------------------------------------------------- #
def _ref_layer(x_nhwc, w_hwio, bias):
    y = jax.lax.conv_general_dilated(
        x_nhwc.astype(jnp.bfloat16), w_hwio.astype(jnp.bfloat16),
        window_strides=(1, 1), padding="SAME",
        dimension_numbers=("NHWC", "HWIO", "NHWC"),
        preferred_element_type=jnp.float32)
    return jnp.maximum(y + bias[None, None, None, :], 0.0)


def _ref_forward(params, x_nchw):
    x = jnp.transpose(x_nchw, (0, 2, 3, 1))
    x = _ref_layer(x, params["conv1"]["w_hwio"], params["conv1"]["bias"])
    residual = _ref_layer(x, params["conv2"]["w_hwio"], params["conv2"]["bias"])
    out = jax.lax.reduce_window(residual, -jnp.inf, jax.lax.max,
                                (1, 2, 2, 1), (1, 2, 2, 1), "VALID")
    return (jnp.transpose(residual, (0, 3, 1, 2)),
            jnp.transpose(out, (0, 3, 1, 2)))


# --------------------------------------------------------------------------- #
if __name__ == "__main__":
    N, C_IN, C_OUT, H, W = 2, 4, 8, 16, 16

    key = jax.random.PRNGKey(0)
    k_params, k_x = jax.random.split(key)
    params = init_conv_block_params(k_params, C_IN, C_OUT)
    x = jax.random.normal(k_x, (N, C_IN, H, W), jnp.float32)

    residual, out = conv_block_forward(params, x, down=True)
    residual = jax.block_until_ready(residual)
    out = jax.block_until_ready(out)

    assert residual.shape == (N, C_OUT, H, W)
    assert out.shape == (N, C_OUT, H // 2, W // 2)

    ref_res, ref_out = _ref_forward(params, x)
    np.testing.assert_allclose(np.asarray(residual), np.asarray(ref_res),
                               rtol=2e-3, atol=2e-3)
    np.testing.assert_allclose(np.asarray(out), np.asarray(ref_out),
                               rtol=2e-3, atol=2e-3)

    print("KERNEL_OK")
</pallas_src>

<mosaic_0001>
module attributes {stable_mosaic.version = 11 : i64} {
  func.func @_conv_block_kernel(%arg0: i32, %arg1: memref<1x16x16x128xbf16, #tpu.memory_space<vmem>>, %arg2: memref<1152x128xbf16, #tpu.memory_space<vmem>>, %arg3: memref<1x128xf32, #tpu.memory_space<vmem>>, %arg4: memref<1152x128xbf16, #tpu.memory_space<vmem>>, %arg5: memref<1x128xf32, #tpu.memory_space<vmem>>, %arg6: memref<1x16x16x128xf32, #tpu.memory_space<vmem>>, %arg7: memref<1x8x8x128xf32, #tpu.memory_space<vmem>>, %arg8: memref<1x18x18x128xbf16, #tpu.memory_space<vmem>>, %arg9: memref<1x16x16x1152xbf16, #tpu.memory_space<vmem>>) attributes {dimension_semantics = [#tpu.dimension_semantics<parallel>], iteration_bounds = array<i64: 2>, scalar_prefetch = 0 : i64, scratch_operands = 2 : i64, tpu.core_type = #tpu.core_type<tc>, window_params = [{transform_indices = @transform_0, window_bounds = array<i64: 1, 16, 16, 128>}, {pipeline_mode = #tpu.pipeline_mode<synchronous>, transform_indices = @transform_1, window_bounds = array<i64: 1152, 128>}, {pipeline_mode = #tpu.pipeline_mode<synchronous>, transform_indices = @transform_2, window_bounds = array<i64: 1, 128>}, {pipeline_mode = #tpu.pipeline_mode<synchronous>, transform_indices = @transform_3, window_bounds = array<i64: 1152, 128>}, {pipeline_mode = #tpu.pipeline_mode<synchronous>, transform_indices = @transform_4, window_bounds = array<i64: 1, 128>}, {transform_indices = @transform_5, window_bounds = array<i64: 1, 16, 16, 128>}, {transform_indices = @transform_6, window_bounds = array<i64: 1, 8, 8, 128>}]} {
    %cst = arith.constant 0.000000e+00 : bf16
    %0 = vector.broadcast %cst : bf16 to vector<1x1x18x128xbf16>
    %c0 = arith.constant 0 : index
    %c0_0 = arith.constant 0 : index
    %c0_1 = arith.constant 0 : index
    %c0_2 = arith.constant 0 : index
    %1 = vector.load %arg8[%c0, %c0_0, %c0_1, %c0_2] : memref<1x18x18x128xbf16, #tpu.memory_space<vmem>>, vector<1x1x18x128xbf16>
    tpu.vector_store %arg8[%c0, %c0_0, %c0_1, %c0_2], %0 {strides = array<i32>} : memref<1x18x18x128xbf16, #tpu.memory_space<vmem>>, vector<1x1x18x128xbf16>,
    %cst_3 = arith.constant 0.000000e+00 : bf16
    %2 = vector.broadcast %cst_3 : bf16 to vector<1x1x18x128xbf16>
    %c0_4 = arith.constant 0 : index
    %c17 = arith.constant 17 : index
    %c0_5 = arith.constant 0 : index
    %c0_6 = arith.constant 0 : index
    %3 = vector.load %arg8[%c0_4, %c17, %c0_5, %c0_6] : memref<1x18x18x128xbf16, #tpu.memory_space<vmem>>, vector<1x1x18x128xbf16>
    tpu.vector_store %arg8[%c0_4, %c17, %c0_5, %c0_6], %2 {strides = array<i32>} : memref<1x18x18x128xbf16, #tpu.memory_space<vmem>>, vector<1x1x18x128xbf16>,
    %cst_7 = arith.constant 0.000000e+00 : bf16
    %4 = vector.broadcast %cst_7 : bf16 to vector<1x16x1x128xbf16>
    %c0_8 = arith.constant 0 : index
    %c1 = arith.constant 1 : index
    %c0_9 = arith.constant 0 : index
    %c0_10 = arith.constant 0 : index
    %5 = vector.load %arg8[%c0_8, %c1, %c0_9, %c0_10] : memref<1x18x18x128xbf16, #tpu.memory_space<vmem>>, vector<1x16x1x128xbf16>
    tpu.vector_store %arg8[%c0_8, %c1, %c0_9, %c0_10], %4 {strides = array<i32>} : memref<1x18x18x128xbf16, #tpu.memory_space<vmem>>, vector<1x16x1x128xbf16>,
    %cst_11 = arith.constant 0.000000e+00 : bf16
    %6 = vector.broadcast %cst_11 : bf16 to vector<1x16x1x128xbf16>
    %c0_12 = arith.constant 0 : index
    %c1_13 = arith.constant 1 : index
    %c17_14 = arith.constant 17 : index
    %c0_15 = arith.constant 0 : index
    %7 = vector.load %arg8[%c0_12, %c1_13, %c17_14, %c0_15] : memref<1x18x18x128xbf16, #tpu.memory_space<vmem>>, vector<1x16x1x128xbf16>
    tpu.vector_store %arg8[%c0_12, %c1_13, %c17_14, %c0_15], %6 {strides = array<i32>} : memref<1x18x18x128xbf16, #tpu.memory_space<vmem>>, vector<1x16x1x128xbf16>,
    %c0_16 = arith.constant 0 : index
    %c0_17 = arith.constant 0 : index
    %c0_18 = arith.constant 0 : index
    %c0_19 = arith.constant 0 : index
    %8 = vector.load %arg1[%c0_16, %c0_17, %c0_18, %c0_19] : memref<1x16x16x128xbf16, #tpu.memory_space<vmem>>, vector<1x16x16x128xbf16>
    %c0_20 = arith.constant 0 : index
    %c1_21 = arith.constant 1 : index
    %c1_22 = arith.constant 1 : index
    %c0_23 = arith.constant 0 : index
    %9 = vector.load %arg8[%c0_20, %c1_21, %c1_22, %c0_23] : memref<1x18x18x128xbf16, #tpu.memory_space<vmem>>, vector<1x16x16x128xbf16>
    tpu.vector_store %arg8[%c0_20, %c1_21, %c1_22, %c0_23], %8 {strides = array<i32>} : memref<1x18x18x128xbf16, #tpu.memory_space<vmem>>, vector<1x16x16x128xbf16>,
    %c0_24 = arith.constant 0 : index
    %c0_25 = arith.constant 0 : index
    %c0_26 = arith.constant 0 : index
    %c0_27 = arith.constant 0 : index
    %10 = vector.load %arg8[%c0_24, %c0_25, %c0_26, %c0_27] : memref<1x18x18x128xbf16, #tpu.memory_space<vmem>>, vector<1x16x16x128xbf16>
    %c0_28 = arith.constant 0 : index
    %c0_29 = arith.constant 0 : index
    %c0_30 = arith.constant 0 : index
    %c0_31 = arith.constant 0 : index
    %11 = vector.load %arg9[%c0_28, %c0_29, %c0_30, %c0_31] : memref<1x16x16x1152xbf16, #tpu.memory_space<vmem>>, vector<1x16x16x128xbf16>
    tpu.vector_store %arg9[%c0_28, %c0_29, %c0_30, %c0_31], %10 {strides = array<i32>} : memref<1x16x16x1152xbf16, #tpu.memory_space<vmem>>, vector<1x16x16x128xbf16>,
    %c0_32 = arith.constant 0 : index
    %c0_33 = arith.constant 0 : index
    %c1_34 = arith.constant 1 : index
    %c0_35 = arith.constant 0 : index
    %12 = vector.load %arg8[%c0_32, %c0_33, %c1_34, %c0_35] : memref<1x18x18x128xbf16, #tpu.memory_space<vmem>>, vector<1x16x16x128xbf16>
    %c0_36 = arith.constant 0 : index
    %c0_37 = arith.constant 0 : index
    %c0_38 = arith.constant 0 : index
    %c128 = arith.constant 128 : index
    %13 = vector.load %arg9[%c0_36, %c0_37, %c0_38, %c128] : memref<1x16x16x1152xbf16, #tpu.memory_space<vmem>>, vector<1x16x16x128xbf16>
    tpu.vector_store %arg9[%c0_36, %c0_37, %c0_38, %c128], %12 {strides = array<i32>} : memref<1x16x16x1152xbf16, #tpu.memory_space<vmem>>, vector<1x16x16x128xbf16>,
    %c0_39 = arith.constant 0 : index
    %c0_40 = arith.constant 0 : index
    %c2 = arith.constant 2 : index
    %c0_41 = arith.constant 0 : index
    %14 = vector.load %arg8[%c0_39, %c0_40, %c2, %c0_41] : memref<1x18x18x128xbf16, #tpu.memory_space<vmem>>, vector<1x16x16x128xbf16>
    %c0_42 = arith.constant 0 : index
    %c0_43 = arith.constant 0 : index
    %c0_44 = arith.constant 0 : index
    %c256 = arith.constant 256 : index
    %15 = vector.load %arg9[%c0_42, %c0_43, %c0_44, %c256] : memref<1x16x16x1152xbf16, #tpu.memory_space<vmem>>, vector<1x16x16x128xbf16>
    tpu.vector_store %arg9[%c0_42, %c0_43, %c0_44, %c256], %14 {strides = array<i32>} : memref<1x16x16x1152xbf16, #tpu.memory_space<vmem>>, vector<1x16x16x128xbf16>,
    %c0_45 = arith.constant 0 : index
    %c1_46 = arith.constant 1 : index
    %c0_47 = arith.constant 0 : index
    %c0_48 = arith.constant 0 : index
    %16 = vector.load %arg8[%c0_45, %c1_46, %c0_47, %c0_48] : memref<1x18x18x128xbf16, #tpu.memory_space<vmem>>, vector<1x16x16x128xbf16>
    %c0_49 = arith.constant 0 : index
    %c0_50 = arith.constant 0 : index
    %c0_51 = arith.constant 0 : index
    %c384 = arith.constant 384 : index
    %17 = vector.load %arg9[%c0_49, %c0_50, %c0_51, %c384] : memref<1x16x16x1152xbf16, #tpu.memory_space<vmem>>, vector<1x16x16x128xbf16>
    tpu.vector_store %arg9[%c0_49, %c0_50, %c0_51, %c384], %16 {strides = array<i32>} : memref<1x16x16x1152xbf16, #tpu.memory_space<vmem>>, vector<1x16x16x128xbf16>,
    %c0_52 = arith.constant 0 : index
    %c1_53 = arith.constant 1 : index
    %c1_54 = arith.constant 1 : index
    %c0_55 = arith.constant 0 : index
    %18 = vector.load %arg8[%c0_52, %c1_53, %c1_54, %c0_55] : memref<1x18x18x128xbf16, #tpu.memory_space<vmem>>, vector<1x16x16x128xbf16>
    %c0_56 = arith.constant 0 : index
    %c0_57 = arith.constant 0 : index
    %c0_58 = arith.constant 0 : index
    %c512 = arith.constant 512 : index
    %19 = vector.load %arg9[%c0_56, %c0_57, %c0_58, %c512] : memref<1x16x16x1152xbf16, #tpu.memory_space<vmem>>, vector<1x16x16x128xbf16>
    tpu.vector_store %arg9[%c0_56, %c0_57, %c0_58, %c512], %18 {strides = array<i32>} : memref<1x16x16x1152xbf16, #tpu.memory_space<vmem>>, vector<1x16x16x128xbf16>,
    %c0_59 = arith.constant 0 : index
    %c1_60 = arith.constant 1 : index
    %c2_61 = arith.constant 2 : index
    %c0_62 = arith.constant 0 : index
    %20 = vector.load %arg8[%c0_59, %c1_60, %c2_61, %c0_62] : memref<1x18x18x128xbf16, #tpu.memory_space<vmem>>, vector<1x16x16x128xbf16>
    %c0_63 = arith.constant 0 : index
    %c0_64 = arith.constant 0 : index
    %c0_65 = arith.constant 0 : index
    %c640 = arith.constant 640 : index
    %21 = vector.load %arg9[%c0_63, %c0_64, %c0_65, %c640] : memref<1x16x16x1152xbf16, #tpu.memory_space<vmem>>, vector<1x16x16x128xbf16>
    tpu.vector_store %arg9[%c0_63, %c0_64, %c0_65, %c640], %20 {strides = array<i32>} : memref<1x16x16x1152xbf16, #tpu.memory_space<vmem>>, vector<1x16x16x128xbf16>,
    %c0_66 = arith.constant 0 : index
    %c2_67 = arith.constant 2 : index
    %c0_68 = arith.constant 0 : index
    %c0_69 = arith.constant 0 : index
    %22 = vector.load %arg8[%c0_66, %c2_67, %c0_68, %c0_69] : memref<1x18x18x128xbf16, #tpu.memory_space<vmem>>, vector<1x16x16x128xbf16>
    %c0_70 = arith.constant 0 : index
    %c0_71 = arith.constant 0 : index
    %c0_72 = arith.constant 0 : index
    %c768 = arith.constant 768 : index
    %23 = vector.load %arg9[%c0_70, %c0_71, %c0_72, %c768] : memref<1x16x16x1152xbf16, #tpu.memory_space<vmem>>, vector<1x16x16x128xbf16>
    tpu.vector_store %arg9[%c0_70, %c0_71, %c0_72, %c768], %22 {strides = array<i32>} : memref<1x16x16x1152xbf16, #tpu.memory_space<vmem>>, vector<1x16x16x128xbf16>,
    %c0_73 = arith.constant 0 : index
    %c2_74 = arith.constant 2 : index
    %c1_75 = arith.constant 1 : index
    %c0_76 = arith.constant 0 : index
    %24 = vector.load %arg8[%c0_73, %c2_74, %c1_75, %c0_76] : memref<1x18x18x128xbf16, #tpu.memory_space<vmem>>, vector<1x16x16x128xbf16>
    %c0_77 = arith.constant 0 : index
    %c0_78 = arith.constant 0 : index
    %c0_79 = arith.constant 0 : index
    %c896 = arith.constant 896 : index
    %25 = vector.load %arg9[%c0_77, %c0_78, %c0_79, %c896] : memref<1x16x16x1152xbf16, #tpu.memory_space<vmem>>, vector<1x16x16x128xbf16>
    tpu.vector_store %arg9[%c0_77, %c0_78, %c0_79, %c896], %24 {strides = array<i32>} : memref<1x16x16x1152xbf16, #tpu.memory_space<vmem>>, vector<1x16x16x128xbf16>,
    %c0_80 = arith.constant 0 : index
    %c2_81 = arith.constant 2 : index
    %c2_82 = arith.constant 2 : index
    %c0_83 = arith.constant 0 : index
    %26 = vector.load %arg8[%c0_80, %c2_81, %c2_82, %c0_83] : memref<1x18x18x128xbf16, #tpu.memory_space<vmem>>, vector<1x16x16x128xbf16>
    %c0_84 = arith.constant 0 : index
    %c0_85 = arith.constant 0 : index
    %c0_86 = arith.constant 0 : index
    %c1024 = arith.constant 1024 : index
    %27 = vector.load %arg9[%c0_84, %c0_85, %c0_86, %c1024] : memref<1x16x16x1152xbf16, #tpu.memory_space<vmem>>, vector<1x16x16x128xbf16>
    tpu.vector_store %arg9[%c0_84, %c0_85, %c0_86, %c1024], %26 {strides = array<i32>} : memref<1x16x16x1152xbf16, #tpu.memory_space<vmem>>, vector<1x16x16x128xbf16>,
    %c0_87 = arith.constant 0 : index
    %c0_88 = arith.constant 0 : index
    %c0_89 = arith.constant 0 : index
    %c0_90 = arith.constant 0 : index
    %28 = vector.load %arg9[%c0_87, %c0_88, %c0_89, %c0_90] : memref<1x16x16x1152xbf16, #tpu.memory_space<vmem>>, vector<1x16x16x1152xbf16>
    %29 = vector.shape_cast %28 : vector<1x16x16x1152xbf16> to vector<256x1152xbf16>
    %c0_91 = arith.constant 0 : index
    %c0_92 = arith.constant 0 : index
    %30 = vector.load %arg2[%c0_91, %c0_92] : memref<1152x128xbf16, #tpu.memory_space<vmem>>, vector<1152x128xbf16>
    %cst_93 = arith.constant dense<0.000000e+00> : vector<256x128xf32>
    %31 = tpu.matmul %29, %30, %cst_93 {dimension_numbers = #tpu.dot_dimension_numbers<[1], [0], [0], [1], [0, 0, 1, 1], [], []>} : vector<256x1152xbf16>, vector<1152x128xbf16>, vector<256x128xf32> -> vector<256x128xf32>
    %c0_94 = arith.constant 0 : index
    %c0_95 = arith.constant 0 : index
    %32 = vector.load %arg3[%c0_94, %c0_95] : memref<1x128xf32, #tpu.memory_space<vmem>>, vector<1x128xf32>
    %33 = vector.broadcast %32 : vector<1x128xf32> to vector<256x128xf32>
    %34 = arith.addf %31, %33 : vector<256x128xf32>
    %cst_96 = arith.constant 0.000000e+00 : f32
    %35 = vector.broadcast %cst_96 : f32 to vector<256x128xf32>
    %36 = arith.maximumf %34, %35 : vector<256x128xf32>
    %37 = vector.shape_cast %36 : vector<256x128xf32> to vector<1x16x16x128xf32>
    %38 = arith.truncf %37 : vector<1x16x16x128xf32> to vector<1x16x16x128xbf16>
    %c0_97 = arith.constant 0 : index
    %c1_98 = arith.constant 1 : index
    %c1_99 = arith.constant 1 : index
    %c0_100 = arith.constant 0 : index
    %39 = vector.load %arg8[%c0_97, %c1_98, %c1_99, %c0_100] : memref<1x18x18x128xbf16, #tpu.memory_space<vmem>>, vector<1x16x16x128xbf16>
    tpu.vector_store %arg8[%c0_97, %c1_98, %c1_99, %c0_100], %38 {strides = array<i32>} : memref<1x18x18x128xbf16, #tpu.memory_space<vmem>>, vector<1x16x16x128xbf16>,
    %c0_101 = arith.constant 0 : index
    %c0_102 = arith.constant 0 : index
    %c0_103 = arith.constant 0 : index
    %c0_104 = arith.constant 0 : index
    %40 = vector.load %arg8[%c0_101, %c0_102, %c0_103, %c0_104] : memref<1x18x18x128xbf16, #tpu.memory_space<vmem>>, vector<1x16x16x128xbf16>
    %c0_105 = arith.constant 0 : index
    %c0_106 = arith.constant 0 : index
    %c0_107 = arith.constant 0 : index
    %c0_108 = arith.constant 0 : index
    %41 = vector.load %arg9[%c0_105, %c0_106, %c0_107, %c0_108] : memref<1x16x16x1152xbf16, #tpu.memory_space<vmem>>, vector<1x16x16x128xbf16>
    tpu.vector_store %arg9[%c0_105, %c0_106, %c0_107, %c0_108], %40 {strides = array<i32>} : memref<1x16x16x1152xbf16, #tpu.memory_space<vmem>>, vector<1x16x16x128xbf16>,
    %c0_109 = arith.constant 0 : index
    %c0_110 = arith.constant 0 : index
    %c1_111 = arith.constant 1 : index
    %c0_112 = arith.constant 0 : index
    %42 = vector.load %arg8[%c0_109, %c0_110, %c1_111, %c0_112] : memref<1x18x18x128xbf16, #tpu.memory_space<vmem>>, vector<1x16x16x128xbf16>
    %c0_113 = arith.constant 0 : index
    %c0_114 = arith.constant 0 : index
    %c0_115 = arith.constant 0 : index
    %c128_116 = arith.constant 128 : index
    %43 = vector.load %arg9[%c0_113, %c0_114, %c0_115, %c128_116] : memref<1x16x16x1152xbf16, #tpu.memory_space<vmem>>, vector<1x16x16x128xbf16>
    tpu.vector_store %arg9[%c0_113, %c0_114, %c0_115, %c128_116], %42 {strides = array<i32>} : memref<1x16x16x1152xbf16, #tpu.memory_space<vmem>>, vector<1x16x16x128xbf16>,
    %c0_117 = arith.constant 0 : index
    %c0_118 = arith.constant 0 : index
    %c2_119 = arith.constant 2 : index
    %c0_120 = arith.constant 0 : index
    %44 = vector.load %arg8[%c0_117, %c0_118, %c2_119, %c0_120] : memref<1x18x18x128xbf16, #tpu.memory_space<vmem>>, vector<1x16x16x128xbf16>
    %c0_121 = arith.constant 0 : index
    %c0_122 = arith.constant 0 : index
    %c0_123 = arith.constant 0 : index
    %c256_124 = arith.constant 256 : index
    %45 = vector.load %arg9[%c0_121, %c0_122, %c0_123, %c256_124] : memref<1x16x16x1152xbf16, #tpu.memory_space<vmem>>, vector<1x16x16x128xbf16>
    tpu.vector_store %arg9[%c0_121, %c0_122, %c0_123, %c256_124], %44 {strides = array<i32>} : memref<1x16x16x1152xbf16, #tpu.memory_space<vmem>>, vector<1x16x16x128xbf16>,
    %c0_125 = arith.constant 0 : index
    %c1_126 = arith.constant 1 : index
    %c0_127 = arith.constant 0 : index
    %c0_128 = arith.constant 0 : index
    %46 = vector.load %arg8[%c0_125, %c1_126, %c0_127, %c0_128] : memref<1x18x18x128xbf16, #tpu.memory_space<vmem>>, vector<1x16x16x128xbf16>
    %c0_129 = arith.constant 0 : index
    %c0_130 = arith.constant 0 : index
    %c0_131 = arith.constant 0 : index
    %c384_132 = arith.constant 384 : index
    %47 = vector.load %arg9[%c0_129, %c0_130, %c0_131, %c384_132] : memref<1x16x16x1152xbf16, #tpu.memory_space<vmem>>, vector<1x16x16x128xbf16>
    tpu.vector_store %arg9[%c0_129, %c0_130, %c0_131, %c384_132], %46 {strides = array<i32>} : memref<1x16x16x1152xbf16, #tpu.memory_space<vmem>>, vector<1x16x16x128xbf16>,
    %c0_133 = arith.constant 0 : index
    %c1_134 = arith.constant 1 : index
    %c1_135 = arith.constant 1 : index
    %c0_136 = arith.constant 0 : index
    %48 = vector.load %arg8[%c0_133, %c1_134, %c1_135, %c0_136] : memref<1x18x18x128xbf16, #tpu.memory_space<vmem>>, vector<1x16x16x128xbf16>
    %c0_137 = arith.constant 0 : index
    %c0_138 = arith.constant 0 : index
    %c0_139 = arith.constant 0 : index
    %c512_140 = arith.constant 512 : index
    %49 = vector.load %arg9[%c0_137, %c0_138, %c0_139, %c512_140] : memref<1x16x16x1152xbf16, #tpu.memory_space<vmem>>, vector<1x16x16x128xbf16>
    tpu.vector_store %arg9[%c0_137, %c0_138, %c0_139, %c512_140], %48 {strides = array<i32>} : memref<1x16x16x1152xbf16, #tpu.memory_space<vmem>>, vector<1x16x16x128xbf16>,
    %c0_141 = arith.constant 0 : index
    %c1_142 = arith.constant 1 : index
    %c2_143 = arith.constant 2 : index
    %c0_144 = arith.constant 0 : index
    %50 = vector.load %arg8[%c0_141, %c1_142, %c2_143, %c0_144] : memref<1x18x18x128xbf16, #tpu.memory_space<vmem>>, vector<1x16x16x128xbf16>
    %c0_145 = arith.constant 0 : index
    %c0_146 = arith.constant 0 : index
    %c0_147 = arith.constant 0 : index
    %c640_148 = arith.constant 640 : index
    %51 = vector.load %arg9[%c0_145, %c0_146, %c0_147, %c640_148] : memref<1x16x16x1152xbf16, #tpu.memory_space<vmem>>, vector<1x16x16x128xbf16>
    tpu.vector_store %arg9[%c0_145, %c0_146, %c0_147, %c640_148], %50 {strides = array<i32>} : memref<1x16x16x1152xbf16, #tpu.memory_space<vmem>>, vector<1x16x16x128xbf16>,
    %c0_149 = arith.constant 0 : index
    %c2_150 = arith.constant 2 : index
    %c0_151 = arith.constant 0 : index
    %c0_152 = arith.constant 0 : index
    %52 = vector.load %arg8[%c0_149, %c2_150, %c0_151, %c0_152] : memref<1x18x18x128xbf16, #tpu.memory_space<vmem>>, vector<1x16x16x128xbf16>
    %c0_153 = arith.constant 0 : index
    %c0_154 = arith.constant 0 : index
    %c0_155 = arith.constant 0 : index
    %c768_156 = arith.constant 768 : index
    %53 = vector.load %arg9[%c0_153, %c0_154, %c0_155, %c768_156] : memref<1x16x16x1152xbf16, #tpu.memory_space<vmem>>, vector<1x16x16x128xbf16>
    tpu.vector_store %arg9[%c0_153, %c0_154, %c0_155, %c768_156], %52 {strides = array<i32>} : memref<1x16x16x1152xbf16, #tpu.memory_space<vmem>>, vector<1x16x16x128xbf16>,
    %c0_157 = arith.constant 0 : index
    %c2_158 = arith.constant 2 : index
    %c1_159 = arith.constant 1 : index
    %c0_160 = arith.constant 0 : index
    %54 = vector.load %arg8[%c0_157, %c2_158, %c1_159, %c0_160] : memref<1x18x18x128xbf16, #tpu.memory_space<vmem>>, vector<1x16x16x128xbf16>
    %c0_161 = arith.constant 0 : index
    %c0_162 = arith.constant 0 : index
    %c0_163 = arith.constant 0 : index
    %c896_164 = arith.constant 896 : index
    %55 = vector.load %arg9[%c0_161, %c0_162, %c0_163, %c896_164] : memref<1x16x16x1152xbf16, #tpu.memory_space<vmem>>, vector<1x16x16x128xbf16>
    tpu.vector_store %arg9[%c0_161, %c0_162, %c0_163, %c896_164], %54 {strides = array<i32>} : memref<1x16x16x1152xbf16, #tpu.memory_space<vmem>>, vector<1x16x16x128xbf16>,
    %c0_165 = arith.constant 0 : index
    %c2_166 = arith.constant 2 : index
    %c2_167 = arith.constant 2 : index
    %c0_168 = arith.constant 0 : index
    %56 = vector.load %arg8[%c0_165, %c2_166, %c2_167, %c0_168] : memref<1x18x18x128xbf16, #tpu.memory_space<vmem>>, vector<1x16x16x128xbf16>
    %c0_169 = arith.constant 0 : index
    %c0_170 = arith.constant 0 : index
    %c0_171 = arith.constant 0 : index
    %c1024_172 = arith.constant 1024 : index
    %57 = vector.load %arg9[%c0_169, %c0_170, %c0_171, %c1024_172] : memref<1x16x16x1152xbf16, #tpu.memory_space<vmem>>, vector<1x16x16x128xbf16>
    tpu.vector_store %arg9[%c0_169, %c0_170, %c0_171, %c1024_172], %56 {strides = array<i32>} : memref<1x16x16x1152xbf16, #tpu.memory_space<vmem>>, vector<1x16x16x128xbf16>,
    %c0_173 = arith.constant 0 : index
    %c0_174 = arith.constant 0 : index
    %c0_175 = arith.constant 0 : index
    %c0_176 = arith.constant 0 : index
    %58 = vector.load %arg9[%c0_173, %c0_174, %c0_175, %c0_176] : memref<1x16x16x1152xbf16, #tpu.memory_space<vmem>>, vector<1x16x16x1152xbf16>
    %59 = vector.shape_cast %58 : vector<1x16x16x1152xbf16> to vector<256x1152xbf16>
    %c0_177 = arith.constant 0 : index
    %c0_178 = arith.constant 0 : index
    %60 = vector.load %arg4[%c0_177, %c0_178] : memref<1152x128xbf16, #tpu.memory_space<vmem>>, vector<1152x128xbf16>
    %cst_179 = arith.constant dense<0.000000e+00> : vector<256x128xf32>
    %61 = tpu.matmul %59, %60, %cst_179 {dimension_numbers = #tpu.dot_dimension_numbers<[1], [0], [0], [1], [0, 0, 1, 1], [], []>} : vector<256x1152xbf16>, vector<1152x128xbf16>, vector<256x128xf32> -> vector<256x128xf32>
    %c0_180 = arith.constant 0 : index
    %c0_181 = arith.constant 0 : index
    %62 = vector.load %arg5[%c0_180, %c0_181] : memref<1x128xf32, #tpu.memory_space<vmem>>, vector<1x128xf32>
    %63 = vector.broadcast %62 : vector<1x128xf32> to vector<256x128xf32>
    %64 = arith.addf %61, %63 : vector<256x128xf32>
    %cst_182 = arith.constant 0.000000e+00 : f32
    %65 = vector.broadcast %cst_182 : f32 to vector<256x128xf32>
    %66 = arith.maximumf %64, %65 : vector<256x128xf32>
    %67 = vector.shape_cast %66 : vector<256x128xf32> to vector<1x16x16x128xf32>
    %c0_183 = arith.constant 0 : index
    %c0_184 = arith.constant 0 : index
    %c0_185 = arith.constant 0 : index
    %c0_186 = arith.constant 0 : index
    %68 = vector.load %arg6[%c0_183, %c0_184, %c0_185, %c0_186] : memref<1x16x16x128xf32, #tpu.memory_space<vmem>>, vector<1x16x16x128xf32>
    tpu.vector_store %arg6[%c0_183, %c0_184, %c0_185, %c0_186], %67 {strides = array<i32>} : memref<1x16x16x128xf32, #tpu.memory_space<vmem>>, vector<1x16x16x128xf32>,
    %69 = vector.shape_cast %66 : vector<256x128xf32> to vector<8x32x128xf32>
    %70 = vector.extract_strided_slice %69 {offsets = [0, 0, 0], sizes = [8, 16, 128], strides = [1, 1, 1]} : vector<8x32x128xf32> to vector<8x16x128xf32>
    %71 = vector.extract_strided_slice %69 {offsets = [0, 16, 0], sizes = [8, 16, 128], strides = [1, 1, 1]} : vector<8x32x128xf32> to vector<8x16x128xf32>
    %72 = arith.maximumf %70, %71 : vector<8x16x128xf32>
    %73 = vector.shape_cast %72 : vector<8x16x128xf32> to vector<64x2x128xf32>
    %74 = vector.extract_strided_slice %73 {offsets = [0, 0, 0], sizes = [64, 1, 128], strides = [1, 1, 1]} : vector<64x2x128xf32> to vector<64x1x128xf32>
    %75 = vector.shape_cast %74 : vector<64x1x128xf32> to vector<64x128xf32>
    %76 = vector.extract_strided_slice %73 {offsets = [0, 1, 0], sizes = [64, 1, 128], strides = [1, 1, 1]} : vector<64x2x128xf32> to vector<64x1x128xf32>
    %77 = vector.shape_cast %76 : vector<64x1x128xf32> to vector<64x128xf32>
    %78 = arith.maximumf %75, %77 : vector<64x128xf32>
    %79 = vector.shape_cast %78 : vector<64x128xf32> to vector<1x8x8x128xf32>
    %c0_187 = arith.constant 0 : index
    %c0_188 = arith.constant 0 : index
    %c0_189 = arith.constant 0 : index
    %c0_190 = arith.constant 0 : index
    %80 = vector.load %arg7[%c0_187, %c0_188, %c0_189, %c0_190] : memref<1x8x8x128xf32, #tpu.memory_space<vmem>>, vector<1x8x8x128xf32>
    tpu.vector_store %arg7[%c0_187, %c0_188, %c0_189, %c0_190], %79 {strides = array<i32>} : memref<1x8x8x128xf32, #tpu.memory_space<vmem>>, vector<1x8x8x128xf32>,
    return
  }
  func.func @transform_0(%arg0: i32) -> (i32, i32, i32, i32) {
    %c0_i32 = arith.constant 0 : i32
    %c0_i32_0 = arith.constant 0 : i32
    %c0_i32_1 = arith.constant 0 : i32
    %c0_i32_2 = arith.constant 0 : i32
    return %arg0, %c0_i32, %c0_i32_0, %c0_i32_1 : i32, i32, i32, i32
  }
  func.func @transform_1(%arg0: i32) -> (i32, i32) {
    %c0_i32 = arith.constant 0 : i32
    %c0_i32_0 = arith.constant 0 : i32
    %c0_i32_1 = arith.constant 0 : i32
    return %c0_i32, %c0_i32_0 : i32, i32
  }
  func.func @transform_2(%arg0: i32) -> (i32, i32) {
    %c0_i32 = arith.constant 0 : i32
    %c0_i32_0 = arith.constant 0 : i32
    %c0_i32_1 = arith.constant 0 : i32
    return %c0_i32, %c0_i32_0 : i32, i32
  }
  func.func @transform_3(%arg0: i32) -> (i32, i32) {
    %c0_i32 = arith.constant 0 : i32
    %c0_i32_0 = arith.constant 0 : i32
    %c0_i32_1 = arith.constant 0 : i32
    return %c0_i32, %c0_i32_0 : i32, i32
  }
  func.func @transform_4(%arg0: i32) -> (i32, i32) {
    %c0_i32 = arith.constant 0 : i32
    %c0_i32_0 = arith.constant 0 : i32
    %c0_i32_1 = arith.constant 0 : i32
    return %c0_i32, %c0_i32_0 : i32, i32
  }
  func.func @transform_5(%arg0: i32) -> (i32, i32, i32, i32) {
    %c0_i32 = arith.constant 0 : i32
    %c0_i32_0 = arith.constant 0 : i32
    %c0_i32_1 = arith.constant 0 : i32
    %c0_i32_2 = arith.constant 0 : i32
    return %arg0, %c0_i32, %c0_i32_0, %c0_i32_1 : i32, i32, i32, i32
  }
  func.func @transform_6(%arg0: i32) -> (i32, i32, i32, i32) {
    %c0_i32 = arith.constant 0 : i32
    %c0_i32_0 = arith.constant 0 : i32
    %c0_i32_1 = arith.constant 0 : i32
    %c0_i32_2 = arith.constant 0 : i32
    return %arg0, %c0_i32, %c0_i32_0, %c0_i32_1 : i32, i32, i32, i32
  }
}

</mosaic_0001>

<bundles_post_ra>
// kernel: tpu_custom_call.1
= control target key start
LH: loop header
LB: loop body
LE: loop exit
PB: predicated region body
PF: predicated region fallthrough
CT: control target
= control target key end

     0   :  { %12 = vsyncpa [#allocation5], 0  ;;  %s15073_s0 = inlined_call_operand.hbm [shape: bf16[2,16,16,128], index: 0, kind: input, shape index: {}]   ;;  %s15074_s1 = inlined_call_operand.hbm [shape: bf16[1152,128], index: 1, kind: input, shape index: {}]   ;;  %s15075_s2 = inlined_call_operand.vmem [shape: f32[1,128], index: 2, kind: input, shape index: {}]   ;;  %s15076_s3 = inlined_call_operand.hbm [shape: bf16[1152,128], index: 3, kind: input, shape index: {}]   ;;  %s15077_s4 = inlined_call_operand.vmem [shape: f32[1,128], index: 4, kind: input, shape index: {}]   ;;  %s15078_s5 = inlined_call_operand.hbm [shape: f32[2,16,16,128], index: 5, kind: output, shape index: {0}]   ;;  %s15079_s6 = inlined_call_operand.hbm [shape: f32[2,8,8,128], index: 6, kind: output, shape index: {1}]  }
   0x1   :  { %14 = vsyncpa [#allocation5 + $0x1], 0 }
   0x2   :  { %15 = vsyncpa [#allocation8], 0 }
   0x3   :  { %16 = vsyncpa [#allocation6], 0 }
   0x4   :  { %18 = vsyncpa [#allocation6 + $0x1], 0 }
   0x5   :  { %19 = vsyncpa [#allocation12], 0 }
   0x6   :  { %21 = vsyncpa [#allocation12 + $0x1], 0  ;;  %s13320_s21 = smov 0   ;;  %s13322_s22 = smov 0  }
   0x7   :  { %s13324_s23 = smov 0   ;;  %s13326_s24 = smov 0  }
   0x8 LB: > { %s13341_s25 = sadd.s32 4294967295, %s13272_s24   ;;  %s10561_s26 = sadd.s32 4294967294, %s13272_s24   ;;  %s13272_s24 = sphi %s13326_s24, %s15107_s24   ;;  %s13268_s23 = sphi %s13324_s23, %s15106_s23   ;;  %s13264_s22 = sphi %s13322_s22, %s15105_s22   ;;  %s13260_s21 = sphi %s13320_s21, %s15104_s21  }
   0x9   : > { %p47_p0 = scmp.ne.s32.totalorder %s13264_s22, %s13260_s21  ;;  %p15080_p1 = scmp.eq.s32.totalorder %s13341_s25, 0 }
   0xa   : > { %p161_p3 = scmp.eq.s32.totalorder %s10561_s26, 1  ;;  %p10562_p5 = scmp.ge.s32.totalorder %s13272_s24, 1 }
   0xb   : > { %p13350_p4 = por %p15080_p1, %p47_p0  ;;  %p194_p7 = scmp.lt.s32.totalorder %s13272_s24, 3 }
   0xc   : > { %p13355_p6 = por %p161_p3, %p47_p0  ;;  %s13274_s30 = smov [#allocation7]  }
   0xd   : > { %s15083_s27 = scalar_select %p13350_p4, 1, 0 }
   0xe   : > { %s15084_s28 = scalar_select %p13355_p6, 1, 0 }
   0xf   : > { %p13360_p8 = pnand %p10562_p5, %p194_p7  ;;  %s206_s7 = sshll.u32 %s13274_s30, 4  ;;  %s13364_s7 = int_to_ptr.vmem [resolvable:$true] %s206_s7 }
  0x10   : > { %s13275_s9 = smov [#allocation9]   ;;  %s13084_s13 = scalar_lea.hbm %s15074_s1, 9216 }
  0x11   : > { %p12394_p9 = pneg %p13360_p8  ;;  %s222_s10 = sshll.u32 %s13275_s9, 4  ;;  %s13375_s10 = int_to_ptr.vmem [resolvable:$true] %s222_s10 }
  0x12   : > { %p13085_p12 = scmp.ne.s32.totalorder %s15074_s1, %s13084_s13  ;;  %p13091_p5 = scmp.lt.u32.totalorder %s13084_s13, %s15074_s1 }
  0x13   : > { %p13371_p11 = pnand %p12394_p9, %p15080_p1 }
  0x15   : > { %p13086_p13 = pneg %p13371_p11 }
  0x17   : > { %p13087_p0 = pnand %p13086_p13, %p13085_p12 }
  0x19   : > { %p13088_p3 = pneg %p13087_p0 }
  0x1b   : > { %p13093_p7 = pnand %p13091_p5, %p13088_p3 }
  0x1d   : > { %13096 = shalt.err (!%p13093_p7)
}
  0x1e   : > { %s13097_s18 = scalar_lea.vmem %s13364_s7, 9216  ;;  %p13105_p2 = scmp.lt.s32.totalorder %s13364_s7, %s13364_s7 }
  0x1f   : > { %p13098_p9 = scmp.ne.s32.totalorder %s13364_s7, %s13097_s18  ;;  %p13106_p12 = scmp.lt.s32.totalorder %s13097_s18, %s13097_s18 }
  0x21   : > { %p13100_p10 = pnand %p13098_p9, %p13086_p13  ;;  %p13107_p0 = por %p13106_p12, %p13105_p2 }
  0x23   : > { %p13101_p1 = pneg %p13100_p10 }
  0x25   : > { %p13108_p6 = pnand %p13107_p0, %p13101_p1 }
  0x27   : > { %13111 = shalt.err (!%p13108_p6)
}
  0x28   : > { %s13276_s19 = smov 64   ;;  %s13277_s20 = smov 4  }
  0x29   : > { %12397 = dma.hbm_to_vmem [thread:$0]  (!%p13371_p11), %s15074_s1, 9216, %s13364_s7, [#allocation8], %s13276_s19, %s13276_s19, %s13277_s20  }
  0x2a   : > { %s13112_s12 = scalar_lea.hbm %s15076_s3, 9216 }
  0x2b   : > { %p13113_p1 = scmp.ne.s32.totalorder %s15076_s3, %s13112_s12  ;;  %p13119_p10 = scmp.lt.u32.totalorder %s13112_s12, %s15076_s3 }
  0x2d   : > { %p13115_p2 = pnand %p13113_p1, %p13086_p13 }
  0x2f   : > { %p13116_p6 = pneg %p13115_p2 }
  0x31   : > { %p13121_p3 = pnand %p13119_p10, %p13116_p6 }
  0x33   : > { %13124 = shalt.err (!%p13121_p3)
}
  0x34   : > { %s13125_s7 = scalar_lea.vmem %s13375_s10, 9216  ;;  %p13133_p12 = scmp.lt.s32.totalorder %s13375_s10, %s13375_s10 }
  0x35   : > { %p13126_p5 = scmp.ne.s32.totalorder %s13375_s10, %s13125_s7  ;;  %p13134_p0 = scmp.lt.s32.totalorder %s13125_s7, %s13125_s7 }
  0x37   : > { %p13128_p7 = pnand %p13126_p5, %p13086_p13  ;;  %p13135_p1 = por %p13134_p0, %p13133_p12 }
  0x39   : > { %p13129_p9 = pneg %p13128_p7 }
  0x3b   : > { %p13136_p2 = pnand %p13135_p1, %p13129_p9 }
  0x3d   : > { %13139 = shalt.err (!%p13136_p2)
}
  0x3e   : > { %12400 = dma.hbm_to_vmem [thread:$0]  (!%p13371_p11), %s15076_s3, 9216, %s13375_s10, [#allocation8], %s13276_s19, %s13276_s19, %s13277_s20  }
  0x3f   : > { %s13436_s8 = sadd.s32 1, %s13272_s24   ;;  %s34_s26 = sadd.s32 1, %s13268_s23 }
  0x40   : > { %s31_s30 = ssub.s32 %s13272_s24, %s13436_s8  ;;  %p41_p13 = scmp.ne.s32.totalorder %s13268_s23, %s13264_s22 }
  0x41   : > { %p32_p6 = scmp.eq.s32.totalorder %s31_s30, 0  ;;  %p42_p10 = scmp.eq.s32.totalorder %s13272_s24, 0 }
  0x42   : > { %p15087_p3 = scmp.eq.s32.totalorder %s13341_s25, 1  ;;  %p12414_p7 = scmp.lt.s32.totalorder %s13272_s24, 2 }
  0x43   : > { %s13452_s11 = scalar_select %p32_p6, %s13268_s23, %s34_s26  }
  0x44   : > { %p13446_p5 = por %p15087_p3, %p41_p13  ;;  %p43_p9 = por %p42_p10, %p41_p13 }
  0x45   : > { %s239_s12 = sand.u32 1, %s13268_s23   ;;  %s11305_s10 = sshll.u32 %s13272_s24, 11 }
  0x46   : > { %s15088_s9 = scalar_select %p13446_p5, 1, 0 }
  0x47   : > { %s10566_s13 = sshll.u32 %s239_s12, 7  ;;  %s13459_s16 = scalar_lea.hbm %s15073_s0, %s11305_s10 }
  0x48   : > { %s243_s7 = scalar_lea.vmem [#allocation4], %s10566_s13  ;;  %p13463_p11 = pnand %p12414_p7, %p43_p9 }
  0x49   : > { %s250_s17 = sshll.u32 %s243_s7, 4  ;;  %s13467_s26 = scalar_lea.sflag [#allocation5], %s239_s12  ;;  %s13461_s17 = int_to_ptr.vmem [resolvable:$true] %s250_s17 }
  0x4a   : > { %s13140_s30 = scalar_lea.hbm %s13459_s16, 2048  ;;  %p13142_p0 = pneg %p13463_p11 }
  0x4b   : > { %p13141_p12 = scmp.ne.s32.totalorder %s13459_s16, %s13140_s30  ;;  %s13145_s14 = scalar_lea.hbm %s15073_s0, 4096 }
  0x4c   : > { %p13146_p13 = scmp.lt.u32.totalorder %s13459_s16, %s15073_s0  ;;  %p13147_p6 = scmp.lt.u32.totalorder %s13145_s14, %s13140_s30 }
  0x4d   : > { %p13143_p1 = pnand %p13142_p0, %p13141_p12  ;;  %p13149_p3 = scmp.lt.u32.totalorder %s13140_s30, %s13459_s16 }
  0x4e   : > { %p13148_p10 = por %p13147_p6, %p13146_p13 }
  0x4f   : > { %p13144_p2 = pneg %p13143_p1 }
  0x50   : > { %p13150_p7 = por %p13149_p3, %p13148_p10 }
  0x52   : > { %p13151_p9 = pnand %p13150_p7, %p13144_p2 }
  0x54   : > { %13154 = shalt.err (!%p13151_p9)
}
  0x55   : > { %s13155_s12 = scalar_lea.vmem %s13461_s17, 2048  ;;  %s13278_s13 = smov [#allocation4]  }
  0x56   : > { %p13156_p12 = scmp.ne.s32.totalorder %s13461_s17, %s13155_s12  ;;  %s13160_s10 = sshll.u32 %s13278_s13, 4  ;;  %s13161_s10 = int_to_ptr.vmem [resolvable:$false] %s13160_s10 }
  0x57   : > { %s13162_s15 = scalar_lea.vmem %s13161_s10, 4096  ;;  %p13163_p4 = scmp.lt.s32.totalorder %s13461_s17, %s13161_s10 }
  0x58   : > { %p13158_p1 = pnand %p13156_p12, %p13142_p0  ;;  %p13164_p13 = scmp.lt.s32.totalorder %s13162_s15, %s13155_s12 }
  0x5a   : > { %p13159_p5 = pneg %p13158_p1  ;;  %p13165_p6 = por %p13164_p13, %p13163_p4 }
  0x5c   : > { %p13166_p10 = pnand %p13165_p6, %p13159_p5 }
  0x5e   : > { %13169 = shalt.err (!%p13166_p10)
}
  0x5f   : > { %12404 = dma.hbm_to_vmem [thread:$0]  (!%p13463_p11), %s13459_s16, 2048, %s13461_s17, %s13467_s26, %s13276_s19, %s13276_s19, %s13277_s20  }
  0x60   : > { %262 = sbr.rel (%p13360_p8) target bundleno = 1288 (0x508), region = 40  ;;  %s13501_s30 = sand.u32 (!%p13360_p8), 1, %s13264_s22  }
  0x61   : > { %s10570_s14 = sshll.u32 (!%p13360_p8), %s13501_s30, 7  ;;  %s265_s7 = scalar_lea.sflag (!%p13360_p8), [#allocation5], %s13501_s30 }
  0x62   : > { %s13505_s12 = scalar_lea.vmem (!%p13360_p8), [#allocation4], %s10570_s14  ;;  %p15090_p4 = scmp.ne.s32.totalorder (!%p13360_p8), %s15083_s27, 0 }
  0x67   : > { %13243 = dma.done.wait (%p15090_p4), %s265_s7, 2048  }
  0x68   : > { %13245 = vsyncadd (%p15090_p4), %s265_s7, 4294965248  ;;  %p15091_p5 = scmp.eq.s32.totalorder %s13341_s25, 0 }
  0x6a   : > { %13247 = dma.done.wait (%p15091_p5), [#allocation8], 18432   ;;  %p15092_p8 = pmov %p15091_p5 }
  0x6b   : > { %v13279_v0 = vmov 0   ;;  %v12458_v1 = vld [vmem:[#allocation7 + $0x40] sm:$0xff]   ;;  %v12462_v5 = vld [vmem:[#allocation7 + $0x48] sm:$0xff]   ;;  %v12466_v9 = vld [vmem:[#allocation7 + $0x50] sm:$0xff]   ;;  %vm320_vm0 = vsmask.f32 256 }
  0x6c   : > { %13249 = vsyncadd (%p15092_p8), [#allocation8], 4294948864  ;;  %311 = vst [vmem:[#allocation2] sm:$0xf] %v13279_v0  ;;  %v12459_v2 = vld [vmem:[#allocation7] sm:$0xff]   ;;  %11340 = vmatprep.subr.bf16.mxu0 %v12458_v1  ;;  %v12463_v6 = vld [vmem:[#allocation7 + $0x8] sm:$0xff]  }
  0x6d   : > { %312 = vst [vmem:[#allocation2 + $0x4] sm:$0xf] %v13279_v0  ;;  %313 = vst [vmem:[#allocation2 + $0x8] sm:$0x1] %v13279_v0  ;;  %v12460_v3 = vld [vmem:[#allocation7 + $0xc0] sm:$0xff]   ;;  %11341 = vmatpush3.bf16.msra.mxu0 %v12459_v2  ;;  %v12464_v7 = vld [vmem:[#allocation7 + $0xc8] sm:$0xff]  }
  0x6e   : > { %315 = vst [vmem:[#allocation2 + $0xcc] sm:$0xf] %v13279_v0  ;;  %316 = vst [vmem:[#allocation2 + $0xd0] sm:$0xf] %v13279_v0  ;;  %v12461_v4 = vld [vmem:[#allocation7 + $0x80] sm:$0xff]   ;;  %11452 = vmatprep.subr.bf16.mxu1 %v12460_v3  ;;  %11342 = vmatprep.subr.bf16.mxu0 %v12462_v5  ;;  %v12465_v8 = vld [vmem:[#allocation7 + $0x88] sm:$0xff]  }
  0x6f   : > { %317 = vst [vmem:[#allocation2 + $0xd4] sm:$0x1] %v13279_v0  ;;  %11453 = vmatpush3.bf16.msra.mxu1 %v12461_v4  ;;  %v12467_v10 = vld [vmem:[#allocation7 + $0x10] sm:$0xff]   ;;  %v12470_v13 = vld [vmem:[#allocation7 + $0x58] sm:$0xff]   ;;  %v12474_v17 = vld [vmem:[#allocation7 + $0x60] sm:$0xff]   ;;  %vm319_vm3 = vcmask 1040384  }
  0x70   : > { %11454 = vmatprep.subr.bf16.mxu1 %v12464_v7  ;;  %v12468_v11 = vld [vmem:[#allocation7 + $0xd0] sm:$0xff]   ;;  %v12471_v14 = vld [vmem:[#allocation7 + $0x18] sm:$0xff]   ;;  %v12475_v18 = vld [vmem:[#allocation7 + $0x20] sm:$0xff]   ;;  %vm370_vm1 = vsmask.f32 7938  ;;  %vm774_vm6 = vcmask 1043456  }
  0x71   : > { %11343 = vmatpush3.bf16.msra.mxu0 %v12463_v6  ;;  %v12469_v12 = vld [vmem:[#allocation7 + $0x90] sm:$0xff]   ;;  %v12472_v15 = vld [vmem:[#allocation7 + $0xd8] sm:$0xff]   ;;  %v12476_v19 = vld [vmem:[#allocation7 + $0xe0] sm:$0xff]   ;;  %vm1208_vm2 = vsmask.f32 7424  ;;  %vm1609_vm10 = vcmask 1046528  }
  0x72   : > { %11344 = vmatprep.subr.bf16.mxu0 %v12466_v9  ;;  %v12473_v16 = vld [vmem:[#allocation7 + $0x98] sm:$0xff]   ;;  %v12477_v20 = vld [vmem:[#allocation7 + $0xa0] sm:$0xff]   ;;  %v12478_v21 = vld [vmem:[#allocation7 + $0x68] sm:$0xff]   ;;  %vm452_vm4 = vsmask.f32 4368  ;;  %s10573_s13 = sshll.u32 %s13501_s30, 8 }
  0x73   : > { %11455 = vmatpush3.bf16.msra.mxu1 %v12465_v8  ;;  %v12479_v22 = vld [vmem:[#allocation7 + $0x28] sm:$0xff]   ;;  %v12482_v25 = vld [vmem:[#allocation7 + $0x70] sm:$0xff]   ;;  %v12486_v29 = vld [vmem:[#allocation7 + $0x78] sm:$0xff]   ;;  %s14680_s10 = scalar_lea.vmem [#allocation10], %s10573_s13  ;;  %vm10323_vm11 = vcmask 1041409   ;;  %vm10325_vm12 = vcmask 1042434  }
  0x74   : > { %11456 = vmatprep.subr.bf16.mxu1 %v12468_v11  ;;  %v12480_v23 = vld [vmem:[#allocation7 + $0xe8] sm:$0xff]   ;;  %v12483_v26 = vld [vmem:[#allocation7 + $0x30] sm:$0xff]   ;;  %v12487_v30 = vld [vmem:[#allocation7 + $0x38] sm:$0xff]   ;;  %vm10327_vm13 = vcmask 1043459   ;;  %vm10329_vm14 = vcmask 1044484   ;;  %vm10331_vm15 = vcmask 1045509  }
  0x75   : > { %11345 = vmatpush3.bf16.msra.mxu0 %v12467_v10  ;;  %v12481_v24 = vld [vmem:[#allocation7 + $0xa8] sm:$0xff]   ;;  %v12484_v27 = vld [vmem:[#allocation7 + $0xf0] sm:$0xff]   ;;  %v12488_v31 = vld [vmem:[#allocation7 + $0xf8] sm:$0xff]   ;;  %s10574_s15 = sshll.u32 %s13501_s30, 6  ;;  %s11338_s7 = sshll.u32 %s13341_s25, 12 }
  0x76   : > { %11346 = vmatprep.subr.bf16.mxu0 %v12470_v13  ;;  %v12485_v28 = vld [vmem:[#allocation7 + $0xb0] sm:$0xff]   ;;  %v12489_v32 = vld [vmem:[#allocation2] sm:$0xff]   ;;  %v12491_v34 = vld [vmem:[#allocation7 + $0xb8] sm:$0xff]   ;;  %s14723_s14 = scalar_lea.vmem [#allocation11], %s10574_s15  ;;  %s14957_s19 = scalar_lea.hbm %s15078_s5, %s11338_s7 }
  0x77   : > { %11457 = vmatpush3.bf16.msra.mxu1 %v12469_v12  ;;  %v12490_v33 = vld [vmem:[#allocation2 + $0x8] ss:$0 sps:$4 sm:$0x11]   ;;  %v1210_v35 = vshrl.u32 %v12489_v32, 16  ;;  %v1212_v36 = vshll.u32 %v12489_v32, 16  ;;  %vm13517_vm5 = vmand %vm319_vm3, %vm320_vm0  ;;  %v12493_v39 = vld [vmem:[#allocation7 + $0x140] sm:$0xff]  }
  0x78   : > { %11458 = vmatprep.subr.bf16.mxu1 %v12472_v15  ;;  %v1217_v37 = vshll.u32 %v12490_v33, 16  ;;  %v322_v42 = vld [vmem:[#allocation2 + $0xc] sm:$0x1]  ;;  %v420_v43 = vld [vmem:[%s13505_s12] sm:$0xf]  ;;  %v12492_v44 = vld [vmem:[#allocation2] sm:$0xff]  }
  0x79   : > { %11347 = vmatpush3.bf16.msra.mxu0 %v12471_v14  ;;  %v1214_v40 = vrot.slane %v1212_v36, 1  ;;  %v323_v45 = vsel %vm13517_vm5, 0, %v322_v42  ;;  %v421_v46 = vld [vmem:[%s13505_s12 + $0x4] sm:$0xf]  ;;  %v455_v47 = vshrl.u32 %v420_v43, 16  ;;  %v458_v48 = vshll.u32 %v420_v43, 16  ;;  %vm13527_vm7 = vmand %vm319_vm3, %vm370_vm1 }
  0x7a   : > { %11348 = vmatprep.subr.bf16.mxu0 %v12474_v17  ;;  %v1219_v41 = vrot.slane %v1217_v37, 1  ;;  %324 = vst [vmem:[#allocation2 + $0xc] sm:$0x1] %v323_v45  ;;  %v463_v50 = vshrl.u32 %v421_v46, 16  ;;  %v466_v51 = vshll.u32 %v421_v46, 16  ;;  %v12495_v54 = vld [vmem:[#allocation7 + $0x100] sm:$0xff]   ;;  %vm13538_vm8 = vmor %vm320_vm0, %vm452_vm4 }
  0x7b   : > { %11459 = vmatpush3.bf16.msra.mxu1 %v12473_v16  ;;  %v1215_v49 = vor.u32 %v1214_v40, %v1210_v35  ;;  %v457_v53 = vrot.slane %v455_v47, 7  ;;  %v13534_v57 = vld [vmem:[#allocation2] sm:$0xfe]   ;;  %v13542_v62 = vld [vmem:[#allocation2 + $0x8] ss:$0 sps:$4 sm:$0x11]   ;;  %vm13551_vm9 = vmand %vm774_vm6, %vm370_vm1 }
  0x7c   : > { %11460 = vmatprep.subr.bf16.mxu1 %v12476_v19  ;;  %v13532_v56 = vrot.slane %v463_v50, 7  ;;  %v12507_v58 = vld [vmem:[#allocation7 + $0x148] sm:$0xff]   ;;  %v372_v63 = vld [vmem:[#allocation2 + $0x14] sm:$0x1]  ;;  %v1610_v2 = vrot.slane %v13534_v57, 1  ;;  %v1611_v7 = vrot.slane %v13542_v62, 1 }
  0x7d   : > { %11349 = vmatpush3.bf16.msra.mxu0 %v12475_v18  ;;  %v1220_v55 = vsel %vm1208_vm2, %v1215_v49, %v1219_v41  ;;  %v460_v60 = vor.u32 %v458_v48, %v457_v53  ;;  %v461_v61 = vrot.slane %v457_v53, 4  ;;  %v373_v3 = vsel %vm13527_vm7, 0, %v372_v63  ;;  %v325_v4 = vld [vmem:[#allocation2 + $0x18] sm:$0x1]  ;;  %v12509_v5 = vld [vmem:[#allocation7 + $0x108] sm:$0xff]   ;;  %v12521_v16 = vld [vmem:[#allocation7 + $0x150] sm:$0xff]  }
  0x7e   : > { %11350 = vmatprep.subr.bf16.mxu0 %v12478_v21  ;;  %4050 = vmatprep.mubr.bf16.mxu0 %v1220_v55  ;;  %v468_v0 = vor.u32 %v466_v51, %v13532_v56  ;;  %v470_v1 = vrot.slane %v13532_v56, 4  ;;  %374 = vst [vmem:[#allocation2 + $0x14] sm:$0x1] %v373_v3  ;;  %v326_v8 = vsel %vm13517_vm5, 0, %v325_v4  ;;  %v422_v9 = vld [vmem:[%s13505_s12 + $0x8] sm:$0xf] }
  0x7f   : > { %11461 = vmatpush3.bf16.msra.mxu1 %v12477_v20  ;;  %v423_v10 = vld [vmem:[%s13505_s12 + $0xc] sm:$0xf]  ;;  %327 = vst [vmem:[#allocation2 + $0x18] sm:$0x1] %v326_v8  ;;  %v472_v12 = vshrl.u32 %v422_v9, 16  ;;  %v475_v13 = vshll.u32 %v422_v9, 16 }
  0x80   : > { %11462 = vmatprep.subr.bf16.mxu1 %v12480_v23  ;;  %v469_v11 = vsel %vm13538_vm8, %v461_v61, %v468_v0  ;;  %v480_v14 = vshrl.u32 %v423_v10, 16  ;;  %v375_v15 = vld [vmem:[#allocation2 + $0x20] sm:$0x1]  ;;  %v483_v18 = vshll.u32 %v423_v10, 16  ;;  %v12523_v20 = vld [vmem:[#allocation7 + $0x110] sm:$0xff]   ;;  %v12537_v43 = vld [vmem:[#allocation7 + $0x118] sm:$0xff]  }
  0x81   : > { %11351 = vmatpush3.bf16.msra.mxu0 %v12479_v22  ;;  %v776_v17 = vld [vmem:[#allocation2 + $0xc] sm:$0xf]  ;;  %779 = vst [vmem:[#allocation2 + $0x10] sm:$0xf] %v469_v11  ;;  %v376_v19 = vsel %vm13527_vm7, 0, %v375_v15  ;;  %v474_v22 = vrot.slane %v472_v12, 7 }
  0x82   : > { %11352 = vmatprep.subr.bf16.mxu0 %v12482_v25  ;;  %v777_v21 = vsel %vm13551_vm9, %v460_v60, %v776_v17  ;;  %v482_v23 = vrot.slane %v480_v14, 7  ;;  %377 = vst [vmem:[#allocation2 + $0x20] sm:$0x1] %v376_v19  ;;  %v378_v37 = vld [vmem:[#allocation2 + $0x2c] sm:$0x1]  ;;  %v12549_v49 = vld [vmem:[#allocation7 + $0x160] sm:$0xff]  }
  0x83   : > { %11463 = vmatpush3.bf16.msra.mxu1 %v12481_v24  ;;  %v328_v24 = vld [vmem:[#allocation2 + $0x24] sm:$0x1]  ;;  %778 = vst [vmem:[#allocation2 + $0xc] sm:$0xf] %v777_v21  ;;  %v379_v41 = vsel %vm13527_vm7, 0, %v378_v37  ;;  %vm10333_vm0 = vcmask 1046534  }
  0x84   : > { %11464 = vmatprep.subr.bf16.mxu1 %v12484_v27  ;;  %v329_v25 = vsel %vm13517_vm5, 0, %v328_v24  ;;  %v425_v27 = vld [vmem:[%s13505_s12 + $0x14] sm:$0xf]  ;;  %v487_v32 = vrot.slane %v482_v23, 4  ;;  %v331_v42 = vld [vmem:[#allocation2 + $0x30] sm:$0x1] }
  0x85   : > { %11353 = vmatpush3.bf16.msra.mxu0 %v12483_v26  ;;  %v424_v26 = vld [vmem:[%s13505_s12 + $0x10] sm:$0xf]  ;;  %330 = vst [vmem:[#allocation2 + $0x24] sm:$0x1] %v329_v25  ;;  %v497_v35 = vshrl.u32 %v425_v27, 16  ;;  %v500_v36 = vshll.u32 %v425_v27, 16 }
  0x86   : > { %11354 = vmatprep.subr.bf16.mxu0 %v12486_v29  ;;  %v477_v29 = vor.u32 %v475_v13, %v474_v22  ;;  %v489_v33 = vshrl.u32 %v424_v26, 16  ;;  %v783_v45 = vld [vmem:[#allocation2 + $0x18] sm:$0xf]  ;;  %380 = vst [vmem:[#allocation2 + $0x2c] sm:$0x1] %v379_v41  ;;  %v332_v48 = vsel %vm13517_vm5, 0, %v331_v42 }
  0x87   : > { %11465 = vmatpush3.bf16.msra.mxu1 %v12485_v28  ;;  %v12535_v28 = vld [vmem:[#allocation7 + $0x158] sm:$0xff]   ;;  %v13576_v47 = vrot.slane %v497_v35, 7  ;;  %333 = vst [vmem:[#allocation2 + $0x30] sm:$0x1] %v332_v48  ;;  %v12563_v48 = vld [vmem:[#allocation7 + $0x168] sm:$0xff]   ;;  %vm10335_vm1 = vcmask 1047559  }
  0x88   : > { %11466 = vmatprep.subr.bf16.mxu1 %v12488_v31  ;;  %v485_v31 = vor.u32 %v483_v18, %v482_v23  ;;  %v491_v46 = vrot.slane %v489_v33, 7  ;;  %v784_v50 = vsel %vm13551_vm9, %v477_v29, %v783_v45  ;;  %v426_v3 = vld [vmem:[%s13505_s12 + $0x18] sm:$0xf]  ;;  %s10403_s20 = scalar_lea.sflag [#allocation6], %s13501_s30  ;;  %p15101_p0 = scmp.ne.s32.totalorder %s15088_s9, 0 }
  0x89   : > { %11355 = vmatpush3.bf16.msra.mxu0 %v12487_v30  ;;  %v478_v30 = vrot.slane %v474_v22, 4  ;;  %785 = vst [vmem:[#allocation2 + $0x18] sm:$0xf] %v784_v50  ;;  %v787_v51 = vld [vmem:[#allocation2 + $0x20] sm:$0x1]  ;;  %v502_v55 = vor.u32 %v500_v36, %v13576_v47  ;;  %v506_v10 = vshrl.u32 %v426_v3, 16 }
  0x8a   : > { %11564 = vmatprep.subr.bf16.mxu0 %v12493_v39  ;;  %v780_v39 = vld [vmem:[#allocation2 + $0x14] sm:$0x1]  ;;  %v12494_v56 = vld [vmem:[#allocation2 + $0xc] sm:$0xff]   ;;  %v788_v60 = vsel %vm13517_vm5, %v487_v32, %v787_v51  ;;  %v509_v27 = vshll.u32 %v426_v3, 16  ;;  %s13281_s17 = smov [#allocation10]  }
  0x8b   : > { %11467 = vmatpush3.bf16.msra.mxu1 %v12491_v34  ;;  %v492_v34 = vshll.u32 %v424_v26, 16  ;;  %v486_v40 = vsel %vm13538_vm8, %v478_v30, %v485_v31  ;;  %v12498_v61 = vld [vmem:[#allocation2 + $0xc] sm:$0xff]   ;;  %789 = vst [vmem:[#allocation2 + $0x20] sm:$0x1] %v788_v60  ;;  %4211 = vmatprep.mubr.bf16.mxu1 %v12494_v56  ;;  %v508_v22 = vrot.slane %v506_v10, 7  ;;  %s13174_s18 = sshll.u32 %s13281_s17, 4  ;;  %s13175_s18 = int_to_ptr.vmem [resolvable:$false] %s13174_s18 }
  0x8c   : > { %4051 = vmatmul.mubr.bf16.vlgmr.msra.gmra.mrb[0].mxu0 %v12492_v44  ;;  %v781_v44 = vsel %vm13517_vm5, %v470_v1, %v780_v39  ;;  %786 = vst [vmem:[#allocation2 + $0x1c] sm:$0xf] %v486_v40  ;;  %v12502_v0 = vld [vmem:[#allocation2 + $0xc] sm:$0xfe]   ;;  %v790_v1 = vld [vmem:[#allocation2 + $0x24] sm:$0xf] }
  0x8d   : > { %11565 = vmatpush3.bf16.msra.mxu0 %v12495_v54  ;;  %782 = vst [vmem:[#allocation2 + $0x14] sm:$0x1] %v781_v44  ;;  %v494_v53 = vor.u32 %v492_v34, %v491_v46  ;;  %v495_v54 = vrot.slane %v491_v46, 4  ;;  %v1222_v62 = vshrl.u32 %v12498_v61, 16  ;;  %v1224_v57 = vshll.u32 %v12498_v61, 16  ;;  %v12500_v13 = vld [vmem:[#allocation2 + $0xc] sm:$0xff]  }
  0x8e   : > { %11566 = vmatprep.subr.bf16.mxu0 %v12507_v58  ;;  %v1612_v58 = vsel %vm1609_vm10, %v1610_v2, %v1611_v7  ;;  %v1613_v4 = vrot.slane %v12502_v0, 1  ;;  %v427_v26 = vld [vmem:[%s13505_s12 + $0x1c] sm:$0xf]  ;;  %v794_v34 = vld [vmem:[#allocation2 + $0x2c] sm:$0x1]  ;;  %v511_v35 = vor.u32 %v509_v27, %v508_v22  ;;  %v12551_v44 = vld [vmem:[#allocation7 + $0x120] sm:$0xff]  }
  0x8f   : > { %v503_v63 = vsel %vm13538_vm8, %v495_v54, %v502_v55  ;;  %4212 = vmatmul.mubr.bf16.vlgmr.msra.gmra.mrb[0].mxu1 %v1612_v58  ;;  %v791_v2 = vsel %vm13551_vm9, %v494_v53, %v790_v1  ;;  %v1226_v8 = vrot.slane %v1224_v57, 1  ;;  %v517_v46 = vshll.u32 %v427_v26, 16  ;;  %v381_v54 = vld [vmem:[#allocation2 + $0x38] sm:$0x1]  ;;  %v334_v61 = vld [vmem:[#allocation2 + $0x3c] sm:$0x1] }
  0x90   : > { %793 = vst [vmem:[#allocation2 + $0x28] sm:$0xf] %v503_v63  ;;  %792 = vst [vmem:[#allocation2 + $0x24] sm:$0xf] %v791_v2  ;;  %v512_v50 = vrot.slane %v508_v22, 4  ;;  %v382_v0 = vsel %vm13527_vm7, 0, %v381_v54 }
  0x91   : > { %11567 = vmatpush3.bf16.msra.mxu0 %v12509_v5  ;;  %v504_v5 = vrot.slane %v13576_v47, 4  ;;  %v1227_v11 = vor.u32 %v1226_v8, %v1222_v62  ;;  %v797_v47 = vld [vmem:[#allocation2 + $0x30] sm:$0xf]  ;;  %v428_v63 = vld [vmem:[%s13505_s12 + $0x20] sm:$0xf]  ;;  %v335_v1 = vsel %vm13517_vm5, 0, %v334_v61 }
  0x92   : > { %11568 = vmatprep.subr.bf16.mxu0 %v12521_v16  ;;  %v12505_v16 = vld [vmem:[#allocation2 + $0x20] ss:$0 sps:$4 sm:$0x11]   ;;  %v798_v53 = vsel %vm13551_vm9, %v511_v35, %v797_v47  ;;  %v429_v62 = vld [vmem:[%s13505_s12 + $0x24] sm:$0xf]  ;;  %v523_v57 = vshrl.u32 %v428_v63, 16 }
  0x93   : > { %v12501_v9 = vld [vmem:[#allocation2 + $0x18] sm:$0xff]   ;;  %v1241_v21 = vshll.u32 %v12505_v16, 16  ;;  %v12511_v31 = vld [vmem:[#allocation2 + $0x20] ss:$0 sps:$4 sm:$0x11]   ;;  %v795_v39 = vsel %vm13517_vm5, %v504_v5, %v794_v34  ;;  %v526_v2 = vshll.u32 %v428_v63, 16 }
  0x94   : > { %v12499_v7 = vld [vmem:[#allocation2 + $0x14] ss:$0 sps:$4 sm:$0x11]   ;;  %4219 = vmatprep.mubr.bf16.mxu1 %v12501_v9  ;;  %v12504_v15 = vld [vmem:[#allocation2 + $0x18] sm:$0xff]   ;;  %v1617_v37 = vrot.slane %v12511_v31, 1  ;;  %v534_v5 = vshll.u32 %v429_v62, 16 }
  0x95   : > { %11569 = vmatpush3.bf16.msra.mxu0 %v12523_v20  ;;  %v1229_v12 = vshll.u32 %v12499_v7, 16  ;;  %v12503_v14 = vld [vmem:[#allocation2 + $0x14] ss:$0 sps:$4 sm:$0x11]   ;;  %v1234_v19 = vshrl.u32 %v12504_v15, 16  ;;  %v1236_v20 = vshll.u32 %v12504_v15, 16 }
  0x96   : > { %11570 = vmatprep.subr.bf16.mxu0 %v12535_v28  ;;  %v1614_v18 = vrot.slane %v12503_v14, 1  ;;  %v1243_v29 = vrot.slane %v1241_v21, 1  ;;  %v12510_v30 = vld [vmem:[#allocation2 + $0x18] sm:$0xfe]   ;;  %796 = vst [vmem:[#allocation2 + $0x2c] sm:$0x1] %v795_v39 }
  0x97   : > { %v1231_v17 = vrot.slane %v1229_v12, 1  ;;  %v12508_v25 = vld [vmem:[#allocation2 + $0x24] sm:$0xff]   ;;  %v1238_v28 = vrot.slane %v1236_v20, 1  ;;  %v1616_v36 = vrot.slane %v12510_v30, 1  ;;  %v12506_v41 = vld [vmem:[#allocation2 + $0x18] sm:$0xff]   ;;  %v525_v8 = vrot.slane %v523_v57, 7 }
  0x98   : > { %v1615_v24 = vsel %vm1609_vm10, %v1613_v4, %v1614_v18  ;;  %v12512_v32 = vld [vmem:[#allocation2 + $0x24] sm:$0xff]   ;;  %799 = vst [vmem:[#allocation2 + $0x30] sm:$0xf] %v798_v53  ;;  %383 = vst [vmem:[#allocation2 + $0x38] sm:$0x1] %v382_v0  ;;  %v531_v4 = vshrl.u32 %v429_v62, 16 }
  0x99   : > { %11571 = vmatpush3.bf16.msra.mxu0 %v12537_v43  ;;  %v1232_v23 = vsel %vm1208_vm2, %v1227_v11, %v1231_v17  ;;  %4220 = vmatmul.mubr.bf16.gmra.mrb[4].mxu1 %v1615_v24  ;;  %v1239_v33 = vor.u32 %v1238_v28, %v1234_v19  ;;  %v1248_v42 = vshll.u32 %v12512_v32, 16  ;;  %v514_v43 = vshrl.u32 %v427_v26, 16  ;;  %v12516_v60 = vld [vmem:[#allocation2 + $0x24] sm:$0xfe]   ;;  %336 = vst [vmem:[#allocation2 + $0x3c] sm:$0x1] %v335_v1 }
  0x9a   : > { %11572 = vmatprep.subr.bf16.mxu0 %v12549_v49  ;;  %4058 = vmatprep.mubr.bf16.mxu0 %v1232_v23  ;;  %v1618_v45 = vsel %vm1609_vm10, %v1616_v36, %v1617_v37  ;;  %v1246_v49 = vshrl.u32 %v12512_v32, 16  ;;  %v533_v10 = vrot.slane %v531_v4, 7  ;;  %v529_v14 = vrot.slane %v525_v8, 4  ;;  %v384_v15 = vld [vmem:[#allocation2 + $0x44] sm:$0x1]  ;;  %s13176_s26 = scalar_lea.vmem %s13175_s18, 8192 }
  0x9b   : > { %4059 = vmatmul.mubr.bf16.gmra.mrb[4].mxu0 %v12500_v13  ;;  %4227 = vmatprep.mubr.bf16.mxu1 %v12508_v25  ;;  %v1244_v40 = vsel %vm1208_vm2, %v1239_v33, %v1243_v29  ;;  %v516_v51 = vrot.slane %v514_v43, 7  ;;  %v1250_v55 = vrot.slane %v1248_v42, 1  ;;  %v12514_v13 = vld [vmem:[#allocation2 + $0x24] sm:$0xff]   ;;  %v1619_v17 = vrot.slane %v12516_v60, 1  ;;  %v430_v25 = vld [vmem:[%s13505_s12 + $0x28] sm:$0xf] }
  0x9c   : > { %4066 = vmatprep.mubr.bf16.mxu0 %v1244_v40  ;;  %v337_v16 = vld [vmem:[#allocation2 + $0x48] sm:$0x1]  ;;  %v528_v19 = vor.u32 %v526_v2, %v525_v8  ;;  %v536_v20 = vor.u32 %v534_v5, %v533_v10  ;;  %v385_v22 = vsel %vm13527_vm7, 0, %v384_v15  ;;  %v431_v26 = vld [vmem:[%s13505_s12 + $0x2c] sm:$0xf]  ;;  %v540_v31 = vshrl.u32 %v430_v25, 16 }
  0x9d   : > { %11573 = vmatpush3.bf16.msra.mxu0 %v12551_v44  ;;  %v519_v56 = vor.u32 %v517_v46, %v516_v51  ;;  %v521_v58 = vrot.slane %v516_v51, 4  ;;  %v12513_v7 = vld [vmem:[#allocation2 + $0x2c] ss:$0 sps:$4 sm:$0x11]   ;;  %v1251_v11 = vor.u32 %v1250_v55, %v1246_v49  ;;  %386 = vst [vmem:[#allocation2 + $0x44] sm:$0x1] %v385_v22 }
  0x9e   : > { %11574 = vmatprep.subr.bf16.mxu0 %v12563_v48  ;;  %v12517_v9 = vld [vmem:[#allocation2 + $0x2c] ss:$0 sps:$4 sm:$0x11]   ;;  %v1253_v12 = vshll.u32 %v12513_v7, 16  ;;  %v537_v23 = vsel %vm13538_vm8, %v529_v14, %v536_v20  ;;  %v338_v24 = vsel %vm13517_vm5, 0, %v337_v16  ;;  %v12565_v27 = vld [vmem:[#allocation7 + $0x128] sm:$0xff]  }
  0x9f   : > { %v520_v3 = vsel %vm13538_vm8, %v512_v50, %v519_v56  ;;  %v1620_v18 = vrot.slane %v12517_v9, 1  ;;  %v801_v29 = vld [vmem:[#allocation2 + $0x38] sm:$0x1]  ;;  %807 = vst [vmem:[#allocation2 + $0x40] sm:$0xf] %v537_v23  ;;  %v543_v32 = vshll.u32 %v430_v25, 16 }
  0xa0   : > { %800 = vst [vmem:[#allocation2 + $0x34] sm:$0xf] %v520_v3  ;;  %v1255_v21 = vrot.slane %v1253_v12, 1  ;;  %v804_v30 = vld [vmem:[#allocation2 + $0x3c] sm:$0xf]  ;;  %v802_v35 = vsel %vm13517_vm5, %v521_v58, %v801_v29  ;;  %v548_v37 = vshrl.u32 %v431_v26, 16 }
  0xa1   : > { %4228 = vmatmul.mubr.bf16.gmra.mrb[8].mxu1 %v1618_v45  ;;  %339 = vst [vmem:[#allocation2 + $0x48] sm:$0x1] %v338_v24  ;;  %v1621_v34 = vsel %vm1609_vm10, %v1619_v17, %v1620_v18  ;;  %v805_v36 = vsel %vm13551_vm9, %v528_v19, %v804_v30  ;;  %11575 = vmatpush3.bf16.msra.mxu0 %v12565_v27  ;;  %803 = vst [vmem:[#allocation2 + $0x38] sm:$0x1] %v802_v35  ;;  %v542_v40 = vrot.slane %v540_v31, 7  ;;  %v12577_v44 = vld [vmem:[#allocation7 + $0x170] sm:$0xff]  }
  0xa2   : > { %v1256_v28 = vsel %vm1208_vm2, %v1251_v11, %v1255_v21  ;;  %806 = vst [vmem:[#allocation2 + $0x3c] sm:$0xf] %v805_v36  ;;  %v538_v42 = vrot.slane %v533_v10, 4  ;;  %v550_v43 = vrot.slane %v548_v37, 7  ;;  %v387_v47 = vld [vmem:[#allocation2 + $0x50] sm:$0x1]  ;;  %11576 = vmatprep.subr.bf16.mxu0 %v12577_v44 }
  0xa3   : > { %4067 = vmatmul.mubr.bf16.gmra.mrb[8].mxu0 %v12506_v41  ;;  %v551_v41 = vshll.u32 %v431_v26, 16  ;;  %v546_v46 = vrot.slane %v542_v40, 4  ;;  %v12579_v48 = vld [vmem:[#allocation7 + $0x130] sm:$0xff]   ;;  %v545_v51 = vor.u32 %v543_v32, %v542_v40  ;;  %v388_v54 = vsel %vm13527_vm7, 0, %v387_v47  ;;  %v12582_v55 = vld [vmem:[#allocation7 + $0x1c0] sm:$0xff]  }
  0xa4   : > { %4074 = vmatprep.mubr.bf16.mxu0 %v1256_v28  ;;  %v808_v58 = vld [vmem:[#allocation2 + $0x44] sm:$0x1]  ;;  %389 = vst [vmem:[#allocation2 + $0x50] sm:$0x1] %v388_v54  ;;  %v12583_v60 = vld [vmem:[#allocation7 + $0x180] sm:$0xff]   ;;  %11676 = vmatprep.subr.bf16.mxu1 %v12582_v55  ;;  %v555_v0 = vrot.slane %v550_v43, 4 }
  0xa5   : > { %v553_v53 = vor.u32 %v551_v41, %v550_v43  ;;  %11577 = vmatpush3.bf16.msra.mxu0 %v12579_v48  ;;  %v809_v61 = vsel %vm13517_vm5, %v538_v42, %v808_v58  ;;  %11677 = vmatpush3.bf16.msra.mxu1 %v12583_v60  ;;  %v340_v3 = vld [vmem:[#allocation2 + $0x54] sm:$0x1]  ;;  %v432_v20 = vld [vmem:[%s13505_s12 + $0x30] sm:$0xf]  ;;  %v433_v25 = vld [vmem:[%s13505_s12 + $0x34] sm:$0xf] }
  0xa6   : > { %810 = vst [vmem:[#allocation2 + $0x44] sm:$0x1] %v809_v61  ;;  %v341_v19 = vsel %vm13517_vm5, 0, %v340_v3  ;;  %v568_v42 = vshll.u32 %v433_v25, 16  ;;  %v12584_v54 = vld [vmem:[#allocation7 + $0x1c8] sm:$0xff]  }
  0xa7   : > { %v12515_v33 = vld [vmem:[#allocation2 + $0x30] sm:$0xff]   ;;  %v554_v63 = vsel %vm13538_vm8, %v546_v46, %v553_v53  ;;  %342 = vst [vmem:[#allocation2 + $0x54] sm:$0x1] %v341_v19  ;;  %v390_v61 = vld [vmem:[#allocation2 + $0x5c] sm:$0x1]  ;;  %11678 = vmatprep.subr.bf16.mxu1 %v12584_v54 }
  0xa8   : > { %v12518_v39 = vld [vmem:[#allocation2 + $0x30] sm:$0xff]   ;;  %4235 = vmatprep.mubr.bf16.mxu1 %v12515_v33  ;;  %v811_v1 = vld [vmem:[#allocation2 + $0x48] sm:$0xf]  ;;  %814 = vst [vmem:[#allocation2 + $0x4c] sm:$0xf] %v554_v63  ;;  %v557_v33 = vshrl.u32 %v432_v20, 16 }
  0xa9   : > { %4236 = vmatmul.mubr.bf16.gmra.mrb[12].mxu1 %v1621_v34  ;;  %v1260_v45 = vshll.u32 %v12518_v39, 16  ;;  %v1258_v49 = vshrl.u32 %v12518_v39, 16  ;;  %v12524_v50 = vld [vmem:[#allocation2 + $0x30] sm:$0xfe]   ;;  %v12522_v57 = vld [vmem:[#allocation2 + $0x3c] sm:$0xff]   ;;  %v812_v2 = vsel %vm13551_vm9, %v545_v51, %v811_v1  ;;  %v560_v34 = vshll.u32 %v432_v20, 16 }
  0xaa   : > { %v12519_v62 = vld [vmem:[#allocation2 + $0x38] ss:$0 sps:$4 sm:$0x11]   ;;  %813 = vst [vmem:[#allocation2 + $0x48] sm:$0xf] %v812_v2  ;;  %v12520_v7 = vld [vmem:[#allocation2 + $0x30] sm:$0xff]   ;;  %4243 = vmatprep.mubr.bf16.mxu1 %v12522_v57 }
  0xab   : > { %4075 = vmatmul.mubr.bf16.gmra.mrb[12].mxu0 %v12514_v13  ;;  %v1262_v56 = vrot.slane %v1260_v45, 1  ;;  %v1265_v5 = vshll.u32 %v12519_v62, 16  ;;  %v12525_v8 = vld [vmem:[#allocation2 + $0x38] ss:$0 sps:$4 sm:$0x11]   ;;  %v1622_v9 = vrot.slane %v12524_v50, 1 }
  0xac   : > { %v12526_v10 = vld [vmem:[#allocation2 + $0x3c] sm:$0xff]   ;;  %v1623_v13 = vrot.slane %v12525_v8, 1  ;;  %v815_v16 = vld [vmem:[#allocation2 + $0x50] sm:$0x1]  ;;  %v565_v39 = vshrl.u32 %v433_v25, 16  ;;  %v559_v41 = vrot.slane %v557_v33, 7 }
  0xad   : > { %v1263_v4 = vor.u32 %v1262_v56, %v1258_v49  ;;  %v12530_v11 = vld [vmem:[#allocation2 + $0x3c] sm:$0xfe]   ;;  %v1267_v12 = vrot.slane %v1265_v5, 1  ;;  %v1270_v14 = vshrl.u32 %v12526_v10, 16  ;;  %v1272_v15 = vshll.u32 %v12526_v10, 16  ;;  %v12593_v25 = vld [vmem:[#allocation7 + $0x190] sm:$0xff]  }
  0xae   : > { %v1625_v17 = vrot.slane %v12530_v11, 1  ;;  %v816_v18 = vsel %vm13517_vm5, %v555_v0, %v815_v16  ;;  %v1624_v22 = vsel %vm1609_vm10, %v1622_v9, %v1623_v13  ;;  %v12527_v23 = vld [vmem:[#allocation2 + $0x44] ss:$0 sps:$4 sm:$0x11]   ;;  %v12528_v32 = vld [vmem:[#allocation2 + $0x3c] sm:$0xff]   ;;  %v562_v46 = vor.u32 %v560_v34, %v559_v41 }
  0xaf   : > { %v1268_v21 = vsel %vm1208_vm2, %v1263_v4, %v1267_v12  ;;  %v1274_v24 = vrot.slane %v1272_v15, 1  ;;  %817 = vst [vmem:[#allocation2 + $0x50] sm:$0x1] %v816_v18  ;;  %v1277_v27 = vshll.u32 %v12527_v23, 16  ;;  %v563_v47 = vrot.slane %v559_v41, 4  ;;  %v12587_v57 = vld [vmem:[#allocation7 + $0x188] sm:$0xff]  }
  0xb0   : > { %4082 = vmatprep.mubr.bf16.mxu0 %v1268_v21  ;;  %v12531_v29 = vld [vmem:[#allocation2 + $0x44] ss:$0 sps:$4 sm:$0x11]   ;;  %v13645_v48 = vrot.slane %v565_v39, 7  ;;  %v818_v49 = vld [vmem:[#allocation2 + $0x54] sm:$0xf]  ;;  %11679 = vmatpush3.bf16.msra.mxu1 %v12587_v57 }
  0xb1   : > { %4244 = vmatmul.mubr.bf16.gmra.mrb[16].mxu1 %v1624_v22  ;;  %v1275_v26 = vor.u32 %v1274_v24, %v1270_v14  ;;  %v12529_v28 = vld [vmem:[#allocation2 + $0x48] sm:$0xff]   ;;  %v1279_v31 = vrot.slane %v1277_v27, 1  ;;  %v1626_v35 = vrot.slane %v12531_v29, 1  ;;  %v819_v58 = vsel %vm13551_vm9, %v562_v46, %v818_v49  ;;  %v343_v62 = vld [vmem:[#allocation2 + $0x60] sm:$0x1] }
  0xb2   : > { %v12532_v30 = vld [vmem:[#allocation2 + $0x48] sm:$0xff]   ;;  %4251 = vmatprep.mubr.bf16.mxu1 %v12529_v28  ;;  %v570_v55 = vor.u32 %v568_v42, %v13645_v48  ;;  %v572_v56 = vrot.slane %v13645_v48, 4  ;;  %820 = vst [vmem:[#allocation2 + $0x54] sm:$0xf] %v819_v58  ;;  %v391_v1 = vsel %vm13527_vm7, 0, %v390_v61  ;;  %v344_v5 = vsel %vm13517_vm5, 0, %v343_v62 }
  0xb3   : > { %4083 = vmatmul.mubr.bf16.gmra.mrb[16].mxu0 %v12520_v7  ;;  %v1282_v36 = vshrl.u32 %v12532_v30, 16  ;;  %v1284_v37 = vshll.u32 %v12532_v30, 16  ;;  %v1280_v40 = vsel %vm1208_vm2, %v1275_v26, %v1279_v31  ;;  %v1627_v43 = vsel %vm1609_vm10, %v1625_v17, %v1626_v35  ;;  %v12538_v53 = vld [vmem:[#allocation2 + $0x48] sm:$0xfe]   ;;  %392 = vst [vmem:[#allocation2 + $0x5c] sm:$0x1] %v391_v1 }
  0xb4   : > { %4090 = vmatprep.mubr.bf16.mxu0 %v1280_v40  ;;  %v1628_v0 = vrot.slane %v12538_v53, 1  ;;  %v12534_v2 = vld [vmem:[#allocation2 + $0x48] sm:$0xff]   ;;  %v571_v3 = vsel %vm13538_vm8, %v563_v47, %v570_v55  ;;  %v434_v7 = vld [vmem:[%s13505_s12 + $0x38] sm:$0xf]  ;;  %v435_v8 = vld [vmem:[%s13505_s12 + $0x3c] sm:$0xf] }
  0xb5   : > { %v1286_v45 = vrot.slane %v1284_v37, 1  ;;  %821 = vst [vmem:[#allocation2 + $0x58] sm:$0xf] %v571_v3  ;;  %345 = vst [vmem:[#allocation2 + $0x60] sm:$0x1] %v344_v5  ;;  %v574_v10 = vshrl.u32 %v434_v7, 16 }
  0xb6   : > { %v12533_v44 = vld [vmem:[#allocation2 + $0x50] ss:$0 sps:$4 sm:$0x11]   ;;  %v577_v11 = vshll.u32 %v434_v7, 16  ;;  %v582_v12 = vshrl.u32 %v435_v8, 16  ;;  %v12592_v14 = vld [vmem:[#allocation7 + $0x1d0] sm:$0xff]  }
  0xb7   : > { %v1287_v50 = vor.u32 %v1286_v45, %v1282_v36  ;;  %v1289_v51 = vshll.u32 %v12533_v44, 16  ;;  %v12539_v60 = vld [vmem:[#allocation2 + $0x50] ss:$0 sps:$4 sm:$0x11]   ;;  %v393_v13 = vld [vmem:[#allocation2 + $0x68] sm:$0x1]  ;;  %11680 = vmatprep.subr.bf16.mxu1 %v12592_v14 }
  0xb8   : > { %v1629_v4 = vrot.slane %v12539_v60, 1  ;;  %v585_v15 = vshll.u32 %v435_v8, 16  ;;  %v394_v16 = vsel %vm13527_vm7, 0, %v393_v13  ;;  %v576_v17 = vrot.slane %v574_v10, 7  ;;  %v346_v19 = vld [vmem:[#allocation2 + $0x6c] sm:$0x1]  ;;  %11681 = vmatpush3.bf16.msra.mxu1 %v12593_v25 }
  0xb9   : > { %4252 = vmatmul.mubr.bf16.gmra.mrb[20].mxu1 %v1627_v43  ;;  %v1291_v63 = vrot.slane %v1289_v51, 1  ;;  %v584_v18 = vrot.slane %v582_v12, 7  ;;  %395 = vst [vmem:[#allocation2 + $0x68] sm:$0x1] %v394_v16  ;;  %v436_v20 = vld [vmem:[%s13505_s12 + $0x40] sm:$0xf] }
  0xba   : > { %v347_v21 = vsel %vm13517_vm5, 0, %v346_v19  ;;  %v437_v22 = vld [vmem:[%s13505_s12 + $0x44] sm:$0xf]  ;;  %v591_v23 = vshrl.u32 %v436_v20, 16  ;;  %v594_v24 = vshll.u32 %v436_v20, 16  ;;  %v580_v26 = vrot.slane %v576_v17, 4 }
  0xbb   : > { %4091 = vmatmul.mubr.bf16.gmra.mrb[20].mxu0 %v12528_v32  ;;  %v1292_v9 = vsel %vm1208_vm2, %v1287_v50, %v1291_v63  ;;  %v587_v27 = vor.u32 %v585_v15, %v584_v18  ;;  %v589_v28 = vrot.slane %v584_v18, 4  ;;  %348 = vst [vmem:[#allocation2 + $0x6c] sm:$0x1] %v347_v21  ;;  %v822_v29 = vld [vmem:[#allocation2 + $0x5c] sm:$0x1]  ;;  %v579_v30 = vor.u32 %v577_v11, %v576_v17  ;;  %v12594_v55 = vld [vmem:[#allocation7 + $0x1d8] sm:$0xff]  }
  0xbc   : > { %4098 = vmatprep.mubr.bf16.mxu0 %v1292_v9  ;;  %v593_v32 = vrot.slane %v591_v23, 7  ;;  %v599_v33 = vshrl.u32 %v437_v22, 16  ;;  %v12536_v34 = vld [vmem:[#allocation2 + $0x54] sm:$0xff]   ;;  %v1630_v35 = vsel %vm1609_vm10, %v1628_v0, %v1629_v4  ;;  %v823_v36 = vsel %vm13517_vm5, %v572_v56, %v822_v29  ;;  %v825_v43 = vld [vmem:[#allocation2 + $0x60] sm:$0xf]  ;;  %11682 = vmatprep.subr.bf16.mxu1 %v12594_v55 }
  0xbd   : > { %v588_v31 = vsel %vm13538_vm8, %v580_v26, %v587_v27  ;;  %v602_v37 = vshll.u32 %v437_v22, 16  ;;  %824 = vst [vmem:[#allocation2 + $0x5c] sm:$0x1] %v823_v36  ;;  %v12540_v39 = vld [vmem:[#allocation2 + $0x54] sm:$0xff]   ;;  %4259 = vmatprep.mubr.bf16.mxu1 %v12536_v34  ;;  %v826_v46 = vsel %vm13551_vm9, %v579_v30, %v825_v43  ;;  %v438_v63 = vld [vmem:[%s13505_s12 + $0x48] sm:$0xf] }
  0xbe   : > { %828 = vst [vmem:[#allocation2 + $0x64] sm:$0xf] %v588_v31  ;;  %v596_v40 = vor.u32 %v594_v24, %v593_v32  ;;  %v597_v41 = vrot.slane %v593_v32, 4  ;;  %v13671_v42 = vrot.slane %v599_v33, 7  ;;  %v12544_v44 = vld [vmem:[#allocation2 + $0x54] sm:$0xfe]  }
  0xbf   : > { %v1296_v45 = vshll.u32 %v12540_v39, 16  ;;  %v396_v49 = vld [vmem:[#allocation2 + $0x74] sm:$0x1]  ;;  %v1294_v50 = vshrl.u32 %v12540_v39, 16  ;;  %827 = vst [vmem:[#allocation2 + $0x60] sm:$0xf] %v826_v46 }
  0xc0   : > { %v829_v47 = vld [vmem:[#allocation2 + $0x68] sm:$0x1]  ;;  %v604_v48 = vor.u32 %v602_v37, %v13671_v42  ;;  %v397_v54 = vsel %vm13527_vm7, 0, %v396_v49  ;;  %v1631_v56 = vrot.slane %v12544_v44, 1  ;;  %v349_v61 = vld [vmem:[#allocation2 + $0x78] sm:$0x1] }
  0xc1   : > { %4260 = vmatmul.mubr.bf16.gmra.mrb[24].mxu1 %v1630_v35  ;;  %v830_v51 = vsel %vm13517_vm5, %v589_v28, %v829_v47  ;;  %398 = vst [vmem:[#allocation2 + $0x74] sm:$0x1] %v397_v54  ;;  %v12597_v0 = vld [vmem:[#allocation7 + $0x198] sm:$0xff]   ;;  %v1298_v1 = vrot.slane %v1296_v45, 1  ;;  %v350_v62 = vsel %vm13517_vm5, 0, %v349_v61  ;;  %v606_v5 = vrot.slane %v13671_v42, 4 }
  0xc2   : > { %v832_v53 = vld [vmem:[#allocation2 + $0x6c] sm:$0xf]  ;;  %831 = vst [vmem:[#allocation2 + $0x68] sm:$0x1] %v830_v51  ;;  %v605_v58 = vsel %vm13538_vm8, %v597_v41, %v604_v48  ;;  %v439_v57 = vld [vmem:[%s13505_s12 + $0x4c] sm:$0xf]  ;;  %11683 = vmatpush3.bf16.msra.mxu1 %v12597_v0 }
  0xc3   : > { %4099 = vmatmul.mubr.bf16.gmra.mrb[24].mxu0 %v12534_v2  ;;  %v833_v60 = vsel %vm13551_vm9, %v596_v40, %v832_v53  ;;  %835 = vst [vmem:[#allocation2 + $0x70] sm:$0xf] %v605_v58  ;;  %v608_v2 = vshrl.u32 %v438_v63, 16  ;;  %v12599_v3 = vld [vmem:[#allocation7 + $0x178] sm:$0xff]   ;;  %351 = vst [vmem:[#allocation2 + $0x78] sm:$0x1] %v350_v62  ;;  %v1299_v9 = vor.u32 %v1298_v1, %v1294_v50 }
  0xc4   : > { %834 = vst [vmem:[#allocation2 + $0x6c] sm:$0xf] %v833_v60  ;;  %v12541_v4 = vld [vmem:[#allocation2 + $0x5c] ss:$0 sps:$4 sm:$0x11]   ;;  %11578 = vmatprep.subr.bf16.mxu0 %v12599_v3  ;;  %v12542_v11 = vld [vmem:[#allocation2 + $0x54] sm:$0xff]  }
  0xc5   : > { %v12545_v7 = vld [vmem:[#allocation2 + $0x5c] ss:$0 sps:$4 sm:$0x11]   ;;  %v610_v8 = vrot.slane %v608_v2, 7  ;;  %v1301_v10 = vshll.u32 %v12541_v4, 16  ;;  %v611_v12 = vshll.u32 %v438_v63, 16 }
  0xc6   : > { %v616_v13 = vshrl.u32 %v439_v57, 16  ;;  %v12601_v14 = vld [vmem:[#allocation7 + $0x138] sm:$0xff]   ;;  %v12543_v15 = vld [vmem:[#allocation2 + $0x60] sm:$0xff]   ;;  %v1632_v16 = vrot.slane %v12545_v7, 1  ;;  %v619_v26 = vshll.u32 %v439_v57, 16  ;;  %v12604_v0 = vld [vmem:[#allocation7 + $0x1e0] sm:$0xff]  }
  0xc7   : > { %v1303_v17 = vrot.slane %v1301_v10, 1  ;;  %v12546_v18 = vld [vmem:[#allocation2 + $0x60] sm:$0xff]   ;;  %11579 = vmatpush3.bf16.msra.mxu0 %v12601_v14  ;;  %4267 = vmatprep.mubr.bf16.mxu1 %v12543_v15  ;;  %v614_v21 = vrot.slane %v610_v8, 4  ;;  %v613_v32 = vor.u32 %v611_v12, %v610_v8  ;;  %v440_v61 = vld [vmem:[%s13505_s12 + $0x50] sm:$0xf] }
  0xc8   : > { %v1633_v19 = vsel %vm1609_vm10, %v1631_v56, %v1632_v16  ;;  %v1306_v23 = vshrl.u32 %v12546_v18, 16  ;;  %v1308_v24 = vshll.u32 %v12546_v18, 16  ;;  %v12552_v30 = vld [vmem:[#allocation2 + $0x60] sm:$0xfe]   ;;  %v836_v34 = vld [vmem:[#allocation2 + $0x74] sm:$0x1]  ;;  %11684 = vmatprep.subr.bf16.mxu1 %v12604_v0 }
  0xc9   : > { %v12547_v20 = vld [vmem:[#allocation2 + $0x68] ss:$0 sps:$4 sm:$0x11]   ;;  %v1304_v22 = vsel %vm1208_vm2, %v1299_v9, %v1303_v17  ;;  %4268 = vmatmul.mubr.bf16.gmra.mrb[28].mxu1 %v1633_v19  ;;  %v12548_v37 = vld [vmem:[#allocation2 + $0x60] sm:$0xff]   ;;  %v1634_v39 = vrot.slane %v12552_v30, 1  ;;  %v837_v41 = vsel %vm13517_vm5, %v606_v5, %v836_v34  ;;  %v618_v43 = vrot.slane %v616_v13, 7 }
  0xca   : > { %4106 = vmatprep.mubr.bf16.mxu0 %v1304_v22  ;;  %v1313_v27 = vshll.u32 %v12547_v20, 16  ;;  %v1310_v29 = vrot.slane %v1308_v24, 1  ;;  %v12553_v31 = vld [vmem:[#allocation2 + $0x68] ss:$0 sps:$4 sm:$0x11]   ;;  %v625_v1 = vshrl.u32 %v440_v61, 16 }
  0xcb   : > { %v12550_v25 = vld [vmem:[#allocation2 + $0x6c] sm:$0xff]   ;;  %4107 = vmatmul.mubr.bf16.gmra.mrb[28].mxu0 %v12542_v11  ;;  %v1635_v40 = vrot.slane %v12553_v31, 1  ;;  %838 = vst [vmem:[#allocation2 + $0x74] sm:$0x1] %v837_v41  ;;  %v839_v44 = vld [vmem:[#allocation2 + $0x78] sm:$0xf]  ;;  %v621_v50 = vor.u32 %v619_v26, %v618_v43 }
  0xcc   : > { %v12554_v28 = vld [vmem:[#allocation2 + $0x6c] sm:$0xff]   ;;  %4275 = vmatprep.mubr.bf16.mxu1 %v12550_v25  ;;  %v1315_v33 = vrot.slane %v1313_v27, 1  ;;  %v1311_v36 = vor.u32 %v1310_v29, %v1306_v23  ;;  %v840_v47 = vsel %vm13551_vm9, %v613_v32, %v839_v44  ;;  %v623_v51 = vrot.slane %v618_v43, 4  ;;  %v399_v53 = vld [vmem:[#allocation2 + $0x80] sm:$0x1] }
  0xcd   : > { %v1318_v35 = vshrl.u32 %v12554_v28, 16  ;;  %v1320_v42 = vshll.u32 %v12554_v28, 16  ;;  %v1636_v46 = vsel %vm1609_vm10, %v1634_v39, %v1635_v40  ;;  %v12558_v48 = vld [vmem:[#allocation2 + $0x6c] sm:$0xfe]   ;;  %841 = vst [vmem:[#allocation2 + $0x78] sm:$0xf] %v840_v47  ;;  %v622_v58 = vsel %vm13538_vm8, %v614_v21, %v621_v50 }
  0xce   : > { %v1316_v45 = vsel %vm1208_vm2, %v1311_v36, %v1315_v33  ;;  %v1637_v54 = vrot.slane %v12558_v48, 1  ;;  %v400_v55 = vsel %vm13527_vm7, 0, %v399_v53  ;;  %v352_v56 = vld [vmem:[#allocation2 + $0x84] sm:$0x1]  ;;  %v441_v63 = vld [vmem:[%s13505_s12 + $0x54] sm:$0xf] }
  0xcf   : > { %4114 = vmatprep.mubr.bf16.mxu0 %v1316_v45  ;;  %v1322_v49 = vrot.slane %v1320_v42, 1  ;;  %401 = vst [vmem:[#allocation2 + $0x80] sm:$0x1] %v400_v55  ;;  %v353_v60 = vsel %vm13517_vm5, 0, %v352_v56  ;;  %842 = vst [vmem:[#allocation2 + $0x7c] sm:$0xf] %v622_v58 }
  0xd0   : > { %354 = vst [vmem:[#allocation2 + $0x84] sm:$0x1] %v353_v60  ;;  %v628_v62 = vshll.u32 %v440_v61, 16  ;;  %v633_v57 = vshrl.u32 %v441_v63, 16  ;;  %v636_v2 = vshll.u32 %v441_v63, 16  ;;  %v627_v7 = vrot.slane %v625_v1, 7 }
  0xd1   : > { %4276 = vmatmul.mubr.bf16.gmra.mrb[32].mxu1 %v1636_v46  ;;  %v402_v3 = vld [vmem:[#allocation2 + $0x8c] sm:$0x1]  ;;  %v355_v4 = vld [vmem:[#allocation2 + $0x90] sm:$0x1]  ;;  %v1323_v10 = vor.u32 %v1322_v49, %v1318_v35  ;;  %v12605_v21 = vld [vmem:[#allocation7 + $0x1a0] sm:$0xff]  }
  0xd2   : > { %v12555_v5 = vld [vmem:[#allocation2 + $0x74] ss:$0 sps:$4 sm:$0x11]   ;;  %v635_v9 = vrot.slane %v633_v57, 7  ;;  %v631_v12 = vrot.slane %v627_v7, 4  ;;  %v12556_v13 = vld [vmem:[#allocation2 + $0x6c] sm:$0xff]   ;;  %v630_v18 = vor.u32 %v628_v62, %v627_v7  ;;  %11685 = vmatpush3.bf16.msra.mxu1 %v12605_v21 }
  0xd3   : > { %4115 = vmatmul.mubr.bf16.gmra.mrb[32].mxu0 %v12548_v37  ;;  %v12559_v8 = vld [vmem:[#allocation2 + $0x74] ss:$0 sps:$4 sm:$0x11]   ;;  %v1325_v11 = vshll.u32 %v12555_v5, 16  ;;  %v403_v19 = vsel %vm13527_vm7, 0, %v402_v3  ;;  %v356_v20 = vsel %vm13517_vm5, 0, %v355_v4 }
  0xd4   : > { %v1638_v14 = vrot.slane %v12559_v8, 1  ;;  %v638_v15 = vor.u32 %v636_v2, %v635_v9  ;;  %404 = vst [vmem:[#allocation2 + $0x8c] sm:$0x1] %v403_v19  ;;  %357 = vst [vmem:[#allocation2 + $0x90] sm:$0x1] %v356_v20  ;;  %v640_v28 = vrot.slane %v635_v9, 4 }
  0xd5   : > { %v1327_v16 = vrot.slane %v1325_v11, 1  ;;  %v442_v34 = vld [vmem:[%s13505_s12 + $0x58] sm:$0xf]  ;;  %v443_v35 = vld [vmem:[%s13505_s12 + $0x5c] sm:$0xf]  ;;  %v12606_v45 = vld [vmem:[#allocation7 + $0x1e8] sm:$0xff]  }
  0xd6   : > { %v843_v17 = vld [vmem:[#allocation2 + $0x80] sm:$0x1]  ;;  %v12557_v22 = vld [vmem:[#allocation2 + $0x78] sm:$0xff]   ;;  %v1639_v23 = vsel %vm1609_vm10, %v1637_v54, %v1638_v14  ;;  %v639_v25 = vsel %vm13538_vm8, %v631_v12, %v638_v15  ;;  %v642_v37 = vshrl.u32 %v442_v34, 16  ;;  %v645_v39 = vshll.u32 %v442_v34, 16  ;;  %11686 = vmatprep.subr.bf16.mxu1 %v12606_v45  ;;  %v12614_v19 = vld [vmem:[#allocation7 + $0x1f0] sm:$0xff]  }
  0xd7   : > { %v844_v24 = vsel %vm13517_vm5, %v623_v51, %v843_v17  ;;  %v1328_v26 = vsel %vm1208_vm2, %v1323_v10, %v1327_v16  ;;  %v12560_v27 = vld [vmem:[#allocation2 + $0x78] sm:$0xff]   ;;  %849 = vst [vmem:[#allocation2 + $0x88] sm:$0xf] %v639_v25  ;;  %4283 = vmatprep.mubr.bf16.mxu1 %v12557_v22  ;;  %v846_v29 = vld [vmem:[#allocation2 + $0x84] sm:$0xf]  ;;  %v650_v40 = vshrl.u32 %v443_v35, 16 }
  0xd8   : > { %845 = vst [vmem:[#allocation2 + $0x80] sm:$0x1] %v844_v24  ;;  %4122 = vmatprep.mubr.bf16.mxu0 %v1328_v26  ;;  %v12566_v30 = vld [vmem:[#allocation2 + $0x78] sm:$0xfe]   ;;  %v1330_v31 = vshrl.u32 %v12560_v27, 16  ;;  %v1332_v32 = vshll.u32 %v12560_v27, 16  ;;  %v847_v33 = vsel %vm13551_vm9, %v630_v18, %v846_v29 }
  0xd9   : > { %4284 = vmatmul.mubr.bf16.gmra.mrb[36].mxu1 %v1639_v23  ;;  %848 = vst [vmem:[#allocation2 + $0x84] sm:$0xf] %v847_v33  ;;  %v1640_v36 = vrot.slane %v12566_v30, 1  ;;  %v405_v41 = vld [vmem:[#allocation2 + $0x98] sm:$0x1]  ;;  %v653_v43 = vshll.u32 %v443_v35, 16 }
  0xda   : > { %v1334_v42 = vrot.slane %v1332_v32, 1  ;;  %v406_v44 = vsel %vm13527_vm7, 0, %v405_v41  ;;  %v644_v46 = vrot.slane %v642_v37, 7  ;;  %v652_v47 = vrot.slane %v650_v40, 7  ;;  %v358_v48 = vld [vmem:[#allocation2 + $0x9c] sm:$0x1] }
  0xdb   : > { %4123 = vmatmul.mubr.bf16.gmra.mrb[36].mxu0 %v12556_v13  ;;  %407 = vst [vmem:[#allocation2 + $0x98] sm:$0x1] %v406_v44  ;;  %v850_v49 = vld [vmem:[#allocation2 + $0x8c] sm:$0x1]  ;;  %v853_v50 = vld [vmem:[#allocation2 + $0x90] sm:$0xf] }
  0xdc   : > { %v359_v51 = vsel %vm13517_vm5, 0, %v358_v48  ;;  %v12609_v53 = vld [vmem:[#allocation7 + $0x1a8] sm:$0xff]   ;;  %v851_v55 = vsel %vm13517_vm5, %v640_v28, %v850_v49  ;;  %v647_v56 = vor.u32 %v645_v39, %v644_v46  ;;  %v648_v58 = vrot.slane %v644_v46, 4  ;;  %v12562_v4 = vld [vmem:[#allocation2 + $0x78] sm:$0xff]   ;;  %v12615_v39 = vld [vmem:[#allocation7 + $0x1b0] sm:$0xff]  }
  0xdd   : > { %v655_v60 = vor.u32 %v653_v43, %v652_v47  ;;  %360 = vst [vmem:[#allocation2 + $0x9c] sm:$0x1] %v359_v51  ;;  %852 = vst [vmem:[#allocation2 + $0x8c] sm:$0x1] %v851_v55  ;;  %11687 = vmatpush3.bf16.msra.mxu1 %v12609_v53  ;;  %v1335_v61 = vor.u32 %v1334_v42, %v1330_v31  ;;  %v657_v2 = vrot.slane %v652_v47, 4  ;;  %v12616_v47 = vld [vmem:[#allocation7 + $0x1f8] sm:$0xff]  }
  0xde   : > { %v854_v62 = vsel %vm13551_vm9, %v647_v56, %v853_v50  ;;  %v444_v14 = vld [vmem:[%s13505_s12 + $0x60] sm:$0xf]  ;;  %v445_v23 = vld [vmem:[%s13505_s12 + $0x64] sm:$0xf]  ;;  %11688 = vmatprep.subr.bf16.mxu1 %v12614_v19  ;;  %v12619_v51 = vld [vmem:[#allocation7 + $0x1b8] sm:$0xff]  }
  0xdf   : > { %v12561_v54 = vld [vmem:[#allocation2 + $0x80] ss:$0 sps:$4 sm:$0x11]   ;;  %v656_v1 = vsel %vm13538_vm8, %v648_v58, %v655_v60  ;;  %855 = vst [vmem:[#allocation2 + $0x90] sm:$0xf] %v854_v62  ;;  %v659_v17 = vshrl.u32 %v444_v14, 16 }
  0xe0   : > { %v1337_v63 = vshll.u32 %v12561_v54, 16  ;;  %v12567_v0 = vld [vmem:[#allocation2 + $0x80] ss:$0 sps:$4 sm:$0x11]   ;;  %v12564_v57 = vld [vmem:[#allocation2 + $0x84] sm:$0xff]   ;;  %v662_v18 = vshll.u32 %v444_v14, 16 }
  0xe1   : > { %856 = vst [vmem:[#allocation2 + $0x94] sm:$0xf] %v656_v1  ;;  %v1641_v5 = vrot.slane %v12567_v0, 1  ;;  %v12568_v7 = vld [vmem:[#allocation2 + $0x84] sm:$0xff]   ;;  %4291 = vmatprep.mubr.bf16.mxu1 %v12564_v57  ;;  %v661_v24 = vrot.slane %v659_v17, 7  ;;  %v667_v41 = vshrl.u32 %v445_v23, 16  ;;  %11689 = vmatpush3.bf16.msra.mxu1 %v12615_v39 }
  0xe2   : > { %v1339_v3 = vrot.slane %v1337_v63, 1  ;;  %v12572_v8 = vld [vmem:[#allocation2 + $0x84] sm:$0xfe]   ;;  %v1342_v11 = vshrl.u32 %v12568_v7, 16  ;;  %v1344_v12 = vshll.u32 %v12568_v7, 16  ;;  %v670_v42 = vshll.u32 %v445_v23, 16  ;;  %11690 = vmatprep.subr.bf16.mxu1 %v12616_v47 }
  0xe3   : > { %v1642_v10 = vsel %vm1609_vm10, %v1640_v36, %v1641_v5  ;;  %v857_v13 = vld [vmem:[#allocation2 + $0x98] sm:$0x1]  ;;  %v1643_v15 = vrot.slane %v12572_v8, 1  ;;  %v664_v30 = vor.u32 %v662_v18, %v661_v24  ;;  %v12570_v32 = vld [vmem:[#allocation2 + $0x84] sm:$0xff]   ;;  %v665_v36 = vrot.slane %v661_v24, 4 }
  0xe4   : > { %v1340_v9 = vsel %vm1208_vm2, %v1335_v61, %v1339_v3  ;;  %4292 = vmatmul.mubr.bf16.gmra.mrb[40].mxu1 %v1642_v10  ;;  %v858_v16 = vsel %vm13517_vm5, %v657_v2, %v857_v13  ;;  %v12569_v20 = vld [vmem:[#allocation2 + $0x8c] ss:$0 sps:$4 sm:$0x11]   ;;  %v1346_v21 = vrot.slane %v1344_v12, 1  ;;  %v860_v37 = vld [vmem:[#allocation2 + $0x9c] sm:$0xf] }
  0xe5   : > { %4130 = vmatprep.mubr.bf16.mxu0 %v1340_v9  ;;  %859 = vst [vmem:[#allocation2 + $0x98] sm:$0x1] %v858_v16  ;;  %v12573_v22 = vld [vmem:[#allocation2 + $0x8c] ss:$0 sps:$4 sm:$0x11]   ;;  %v1349_v26 = vshll.u32 %v12569_v20, 16  ;;  %v861_v43 = vsel %vm13551_vm9, %v664_v30, %v860_v37  ;;  %11691 = vmatpush3.bf16.msra.mxu1 %v12619_v51 }
  0xe6   : > { %4131 = vmatmul.mubr.bf16.gmra.mrb[40].mxu0 %v12562_v4  ;;  %v1347_v25 = vor.u32 %v1346_v21, %v1342_v11  ;;  %v1644_v28 = vrot.slane %v12573_v22, 1  ;;  %862 = vst [vmem:[#allocation2 + $0x9c] sm:$0xf] %v861_v43  ;;  %v669_v46 = vrot.slane %v667_v41, 7  ;;  %v408_v63 = vld [vmem:[#allocation2 + $0xa4] sm:$0x1] }
  0xe7   : > { %v1351_v31 = vrot.slane %v1349_v26, 1  ;;  %v409_v1 = vsel %vm13527_vm7, 0, %v408_v63  ;;  %v361_v62 = vld [vmem:[#allocation2 + $0xa8] sm:$0x1]  ;;  %v446_v3 = vld [vmem:[%s13505_s12 + $0x68] sm:$0xf] }
  0xe8   : > { %v12571_v27 = vld [vmem:[#allocation2 + $0x90] sm:$0xff]   ;;  %v1645_v33 = vsel %vm1609_vm10, %v1643_v15, %v1644_v28  ;;  %v672_v53 = vor.u32 %v670_v42, %v669_v46  ;;  %v674_v60 = vrot.slane %v669_v46, 4  ;;  %410 = vst [vmem:[#allocation2 + $0xa4] sm:$0x1] %v409_v1  ;;  %v362_v2 = vsel %vm13517_vm5, 0, %v361_v62  ;;  %v13760_v30 = vld [vmem:[#allocation7 + $0x200] sm:$0xff]  }
  0xe9   : > { %v12574_v29 = vld [vmem:[#allocation2 + $0x90] sm:$0xff]   ;;  %4299 = vmatprep.mubr.bf16.mxu1 %v12571_v27  ;;  %v1352_v40 = vsel %vm1208_vm2, %v1347_v25, %v1351_v31  ;;  %v447_v4 = vld [vmem:[%s13505_s12 + $0x6c] sm:$0xf]  ;;  %363 = vst [vmem:[#allocation2 + $0xa8] sm:$0x1] %v362_v2  ;;  %v676_v5 = vshrl.u32 %v446_v3, 16  ;;  %12284 = vmatprep.subr.bf16.mxu0 %v13760_v30 }
  0xea   : > { %v1354_v34 = vshrl.u32 %v12574_v29, 16  ;;  %v1356_v35 = vshll.u32 %v12574_v29, 16  ;;  %4138 = vmatprep.mubr.bf16.mxu0 %v1352_v40  ;;  %v12580_v50 = vld [vmem:[#allocation2 + $0x90] sm:$0xfe]   ;;  %v673_v58 = vsel %vm13538_vm8, %v665_v36, %v672_v53  ;;  %v679_v7 = vshll.u32 %v446_v3, 16 }
  0xeb   : > { %v12576_v56 = vld [vmem:[#allocation2 + $0x90] sm:$0xff]   ;;  %863 = vst [vmem:[#allocation2 + $0xa0] sm:$0xf] %v673_v58  ;;  %v1646_v0 = vrot.slane %v12580_v50, 1  ;;  %v684_v8 = vshrl.u32 %v447_v4, 16  ;;  %v687_v9 = vshll.u32 %v447_v4, 16 }
  0xec   : > { %4300 = vmatmul.mubr.bf16.gmra.mrb[44].mxu1 %v1645_v33  ;;  %v12575_v44 = vld [vmem:[#allocation2 + $0x98] ss:$0 sps:$4 sm:$0x11]   ;;  %v1358_v45 = vrot.slane %v1356_v35, 1  ;;  %v13748_v10 = vld [vmem:[#allocation2 + $0xc] sm:$0xff]   ;;  %v678_v11 = vrot.slane %v676_v5, 7 }
  0xed   : > { %v1361_v49 = vshll.u32 %v12575_v44, 16  ;;  %v12581_v54 = vld [vmem:[#allocation2 + $0x98] ss:$0 sps:$4 sm:$0x11]   ;;  %v686_v12 = vrot.slane %v684_v8, 7  ;;  %v2013_v27 = vshll.u32 %v13748_v10, 16 }
  0xee   : > { %4139 = vmatmul.mubr.bf16.gmra.mrb[44].mxu0 %v12570_v32  ;;  %v1359_v48 = vor.u32 %v1358_v45, %v1354_v34  ;;  %v1647_v57 = vrot.slane %v12581_v54, 1  ;;  %v681_v16 = vor.u32 %v679_v7, %v678_v11  ;;  %v682_v17 = vrot.slane %v678_v11, 4  ;;  %v411_v23 = vld [vmem:[#allocation2 + $0xb0] sm:$0x1]  ;;  %v364_v31 = vld [vmem:[#allocation2 + $0xb4] sm:$0x1] }
  0xef   : > { %v1363_v55 = vrot.slane %v1361_v49, 1  ;;  %v689_v18 = vor.u32 %v687_v9, %v686_v12  ;;  %v864_v19 = vld [vmem:[#allocation2 + $0xa4] sm:$0x1]  ;;  %v412_v26 = vsel %vm13527_vm7, 0, %v411_v23  ;;  %v691_v28 = vrot.slane %v686_v12, 4  ;;  %v13770_v49 = vld [vmem:[#allocation2 + $0x18] sm:$0xff]  }
  0xf0   : > { %v1648_v14 = vsel %vm1609_vm10, %v1646_v0, %v1647_v57  ;;  %v865_v20 = vsel %vm13517_vm5, %v674_v60, %v864_v19  ;;  %v867_v24 = vld [vmem:[#allocation2 + $0xa8] sm:$0xf]  ;;  %413 = vst [vmem:[#allocation2 + $0xb0] sm:$0x1] %v412_v26  ;;  %v365_v35 = vsel %vm13517_vm5, 0, %v364_v31  ;;  %v2011_v57 = vshrl.u32 %v13748_v10, 16 }
  0xf1   : > { %v1364_v61 = vsel %vm1208_vm2, %v1359_v48, %v1363_v55  ;;  %v690_v22 = vsel %vm13538_vm8, %v682_v17, %v689_v18  ;;  %866 = vst [vmem:[#allocation2 + $0xa4] sm:$0x1] %v865_v20  ;;  %v868_v29 = vsel %vm13551_vm9, %v681_v16, %v867_v24  ;;  %v448_v32 = vld [vmem:[%s13505_s12 + $0x70] sm:$0xf]  ;;  %v449_v36 = vld [vmem:[%s13505_s12 + $0x74] sm:$0xf] }
  0xf2   : > { %4146 = vmatprep.mubr.bf16.mxu0 %v1364_v61  ;;  %v12578_v13 = vld [vmem:[#allocation2 + $0x9c] sm:$0xff]   ;;  %870 = vst [vmem:[#allocation2 + $0xac] sm:$0xf] %v690_v22  ;;  %869 = vst [vmem:[#allocation2 + $0xa8] sm:$0xf] %v868_v29  ;;  %v693_v37 = vshrl.u32 %v448_v32, 16 }
  0xf3   : > { %v12585_v15 = vld [vmem:[#allocation2 + $0x9c] sm:$0xff]   ;;  %4307 = vmatprep.mubr.bf16.mxu1 %v12578_v13  ;;  %366 = vst [vmem:[#allocation2 + $0xb4] sm:$0x1] %v365_v35  ;;  %v701_v39 = vshrl.u32 %v449_v36, 16  ;;  %v704_v40 = vshll.u32 %v449_v36, 16  ;;  %v696_v42 = vshll.u32 %v448_v32, 16 }
  0xf4   : > { %4308 = vmatmul.mubr.bf16.gmra.mrb[48].mxu1 %v1648_v14  ;;  %v1368_v21 = vshll.u32 %v12585_v15, 16  ;;  %v12590_v25 = vld [vmem:[#allocation2 + $0x9c] sm:$0xfe]   ;;  %v1366_v33 = vshrl.u32 %v12585_v15, 16  ;;  %v695_v41 = vrot.slane %v693_v37, 7  ;;  %v13777_v2 = vrot.slane %v2013_v27, 1 }
  0xf5   : > { %v1649_v43 = vrot.slane %v12590_v25, 1  ;;  %v13767_v44 = vrot.slane %v701_v39, 7  ;;  %v12588_v63 = vld [vmem:[#allocation2 + $0x9c] sm:$0xff]   ;;  %v2814_v9 = vshll.u32 %v13770_v49, 16  ;;  %v450_v23 = vld [vmem:[%s13505_s12 + $0x78] sm:$0xf] }
  0xf6   : > { %4147 = vmatmul.mubr.bf16.gmra.mrb[48].mxu0 %v12576_v56  ;;  %v1370_v34 = vrot.slane %v1368_v21, 1  ;;  %v699_v46 = vrot.slane %v695_v41, 4  ;;  %v698_v55 = vor.u32 %v696_v42, %v695_v41  ;;  %v414_v13 = vld [vmem:[#allocation2 + $0xbc] sm:$0x1]  ;;  %v367_v16 = vld [vmem:[#allocation2 + $0xc0] sm:$0x1] }
  0xf7   : > { %v871_v47 = vld [vmem:[#allocation2 + $0xb0] sm:$0x1]  ;;  %v706_v48 = vor.u32 %v704_v40, %v13767_v44  ;;  %v708_v12 = vrot.slane %v13767_v44, 4  ;;  %v415_v15 = vsel %vm13527_vm7, 0, %v414_v13  ;;  %v368_v18 = vsel %vm13517_vm5, 0, %v367_v16 }
  0xf8   : > { %v12586_v45 = vld [vmem:[#allocation2 + $0xa4] ss:$0 sps:$4 sm:$0x11]   ;;  %v1371_v50 = vor.u32 %v1370_v34, %v1366_v33  ;;  %v872_v54 = vsel %vm13517_vm5, %v691_v28, %v871_v47  ;;  %416 = vst [vmem:[#allocation2 + $0xbc] sm:$0x1] %v415_v15  ;;  %v710_v29 = vshrl.u32 %v450_v23, 16 }
  0xf9   : > { %v1373_v51 = vshll.u32 %v12586_v45, 16  ;;  %v12589_v53 = vld [vmem:[#allocation2 + $0xa8] sm:$0xff]   ;;  %v12591_v56 = vld [vmem:[#allocation2 + $0xa4] ss:$0 sps:$4 sm:$0x11]   ;;  %v707_v60 = vsel %vm13538_vm8, %v699_v46, %v706_v48  ;;  %v2812_v31 = vshrl.u32 %v13770_v49, 16 }
  0xfa   : > { %873 = vst [vmem:[#allocation2 + $0xb0] sm:$0x1] %v872_v54  ;;  %v12595_v58 = vld [vmem:[#allocation2 + $0xa8] sm:$0xff]   ;;  %4315 = vmatprep.mubr.bf16.mxu1 %v12589_v53  ;;  %877 = vst [vmem:[#allocation2 + $0xb8] sm:$0xf] %v707_v60  ;;  %v1650_v0 = vrot.slane %v12591_v56, 1 }
  0xfb   : > { %v1375_v61 = vrot.slane %v1373_v51, 1  ;;  %v1380_v1 = vshll.u32 %v12595_v58, 16  ;;  %v874_v62 = vld [vmem:[#allocation2 + $0xb4] sm:$0xf]  ;;  %v12602_v5 = vld [vmem:[#allocation2 + $0xa8] sm:$0xfe]  }
  0xfc   : > { %v875_v4 = vsel %vm13551_vm9, %v698_v55, %v874_v62  ;;  %v1651_v7 = vsel %vm1609_vm10, %v1649_v43, %v1650_v0  ;;  %v1378_v8 = vshrl.u32 %v12595_v58, 16  ;;  %v1652_v14 = vrot.slane %v12602_v5, 1  ;;  %369 = vst [vmem:[#allocation2 + $0xc0] sm:$0x1] %v368_v18  ;;  %v12598_v21 = vld [vmem:[#allocation2 + $0xa8] sm:$0xff]   ;;  %v13796_v45 = vld [vmem:[#allocation2 + $0x18] sm:$0xff]  }
  0xfd   : > { %v1376_v3 = vsel %vm1208_vm2, %v1371_v50, %v1375_v61  ;;  %876 = vst [vmem:[#allocation2 + $0xb4] sm:$0xf] %v875_v4  ;;  %4316 = vmatmul.mubr.bf16.gmra.mrb[52].mxu1 %v1651_v7  ;;  %v1382_v11 = vrot.slane %v1380_v1, 1  ;;  %v451_v24 = vld [vmem:[%s13505_s12 + $0x7c] sm:$0xf]  ;;  %v2816_v35 = vrot.slane %v2814_v9, 1 }
  0xfe   : > { %4154 = vmatprep.mubr.bf16.mxu0 %v1376_v3  ;;  %v712_v37 = vrot.slane %v710_v29, 7  ;;  %v713_v39 = vshll.u32 %v450_v23, 16  ;;  %v718_v40 = vshrl.u32 %v451_v24, 16  ;;  %v721_v41 = vshll.u32 %v451_v24, 16  ;;  %v12617_v54 = vld [vmem:[#allocation2 + $0xc] sm:$0xfe]  }
  0xff   : > { %4155 = vmatmul.mubr.bf16.gmra.mrb[52].mxu0 %v12588_v63  ;;  %v1383_v19 = vor.u32 %v1382_v11, %v1378_v8  ;;  %v878_v36 = vld [vmem:[#allocation2 + $0xbc] sm:$0x1]  ;;  %v12618_v58 = vld [vmem:[#allocation2 + $0x14] ss:$0 sps:$4 sm:$0x11]   ;;  %v2023_v60 = vshrl.u32 %v13796_v45, 16 }
 0x100   : > { %v879_v42 = vsel %vm13517_vm5, %v708_v12, %v878_v36  ;;  %v715_v46 = vor.u32 %v713_v39, %v712_v37  ;;  %v716_v47 = vrot.slane %v712_v37, 4  ;;  %v13798_v48 = vrot.slane %v718_v40, 7  ;;  %v12621_v0 = vld [vmem:[#allocation2 + $0x14] ss:$0 sps:$4 sm:$0x11]   ;;  %v12630_v62 = vld [vmem:[#allocation2 + $0x24] sm:$0xff]  }
 0x101   : > { %v12596_v17 = vld [vmem:[#allocation2 + $0xb0] ss:$0 sps:$4 sm:$0x11]   ;;  %880 = vst [vmem:[#allocation2 + $0xbc] sm:$0x1] %v879_v42  ;;  %v2025_v61 = vshll.u32 %v13796_v45, 16 }
 0x102   : > { %v1385_v20 = vshll.u32 %v12596_v17, 16  ;;  %v12603_v22 = vld [vmem:[#allocation2 + $0xb0] ss:$0 sps:$4 sm:$0x11]   ;;  %v723_v51 = vor.u32 %v721_v41, %v13798_v48  ;;  %v2410_v63 = vrot.slane %v12617_v54, 1  ;;  %v2411_v4 = vrot.slane %v12618_v58, 1 }
 0x103   : > { %v1653_v27 = vrot.slane %v12603_v22, 1  ;;  %v881_v43 = vld [vmem:[#allocation2 + $0xc0] sm:$0xf]  ;;  %v2018_v9 = vshll.u32 %v12621_v0, 16  ;;  %v2824_v12 = vshrl.u32 %v12630_v62, 16  ;;  %v12625_v29 = vld [vmem:[#allocation2 + $0x18] sm:$0xff]  }
 0x104   : > { %v1387_v25 = vrot.slane %v1385_v20, 1  ;;  %v12600_v26 = vld [vmem:[#allocation2 + $0xb4] sm:$0xff]   ;;  %v882_v53 = vsel %vm13551_vm9, %v715_v46, %v881_v43  ;;  %v724_v55 = vsel %vm13538_vm8, %v716_v47, %v723_v51  ;;  %v12624_v17 = vld [vmem:[#allocation2 + $0x20] ss:$0 sps:$4 sm:$0x11]   ;;  %v12632_v54 = vld [vmem:[#allocation2 + $0x24] sm:$0xff]  }
 0x105   : > { %v12607_v28 = vld [vmem:[#allocation2 + $0xb4] sm:$0xff]   ;;  %4323 = vmatprep.mubr.bf16.mxu1 %v12600_v26  ;;  %v1654_v33 = vsel %vm1609_vm10, %v1652_v14, %v1653_v27  ;;  %883 = vst [vmem:[#allocation2 + $0xc0] sm:$0xf] %v882_v53  ;;  %884 = vst [vmem:[#allocation2 + $0xc4] sm:$0xf] %v724_v55  ;;  %v2826_v14 = vshll.u32 %v12630_v62, 16  ;;  %v2016_v26 = vor.u32 %v13777_v2, %v2011_v57 }
 0x106   : > { %v1388_v32 = vsel %vm1208_vm2, %v1383_v19, %v1387_v25  ;;  %v1392_v34 = vshll.u32 %v12607_v28, 16  ;;  %4324 = vmatmul.mubr.bf16.gmra.mrb[56].mxu1 %v1654_v33  ;;  %v12612_v44 = vld [vmem:[#allocation2 + $0xb4] sm:$0xfe]   ;;  %v1390_v49 = vshrl.u32 %v12607_v28, 16  ;;  %v2412_v19 = vsel %vm1609_vm10, %v2410_v63, %v2411_v4  ;;  %v12635_v28 = vld [vmem:[#allocation2 + $0x24] sm:$0xff]   ;;  %s10421_s12 = sshll.u32 %s14680_s10, 4  ;;  %s14959_s12 = int_to_ptr.vmem [resolvable:$true] %s10421_s12 }
 0x107   : > { %4162 = vmatprep.mubr.bf16.mxu0 %v1388_v32  ;;  %v1655_v56 = vrot.slane %v12612_v44, 1  ;;  %v12610_v8 = vld [vmem:[#allocation2 + $0xb4] sm:$0xff]   ;;  %v2020_v20 = vrot.slane %v2018_v9, 1  ;;  %v2819_v22 = vshll.u32 %v12624_v17, 16  ;;  %v2828_v25 = vrot.slane %v2826_v14, 1  ;;  %v12637_v2 = vld [vmem:[#allocation7 + $0x208] sm:$0xff]   ;;  %p13177_p7 = scmp.lt.s32.totalorder %s14959_s12, %s13175_s18 }
 0x108   : > { %4163 = vmatmul.mubr.bf16.gmra.mrb[56].mxu0 %v12598_v21  ;;  %v1394_v50 = vrot.slane %v1392_v34, 1  ;;  %v12608_v1 = vld [vmem:[#allocation2 + $0xbc] ss:$0 sps:$4 sm:$0x11]   ;;  %v2817_v21 = vor.u32 %v2816_v35, %v2812_v31  ;;  %v2027_v31 = vrot.slane %v2025_v61, 1  ;;  %v2037_v37 = vshll.u32 %v12635_v28, 16 }
 0x109   : > { %v12613_v3 = vld [vmem:[#allocation2 + $0xbc] ss:$0 sps:$4 sm:$0x11]   ;;  %v1397_v7 = vshll.u32 %v12608_v1, 16  ;;  %v2821_v27 = vrot.slane %v2819_v22, 1  ;;  %v2021_v39 = vsel %vm1208_vm2, %v2016_v26, %v2020_v20  ;;  %v2035_v41 = vshrl.u32 %v12635_v28, 16 }
 0x10a   : > { %v1395_v5 = vor.u32 %v1394_v50, %v1390_v49  ;;  %v1656_v11 = vrot.slane %v12613_v3, 1  ;;  %v12626_v23 = vld [vmem:[#allocation2 + $0x18] sm:$0xfe]   ;;  %v12627_v24 = vld [vmem:[#allocation2 + $0x20] ss:$0 sps:$4 sm:$0x11]   ;;  %v2829_v42 = vor.u32 %v2828_v25, %v2824_v12  ;;  %v2028_v49 = vor.u32 %v2027_v31, %v2023_v60 }
 0x10b   : > { %v1399_v13 = vrot.slane %v1397_v7, 1  ;;  %v2413_v32 = vrot.slane %v12626_v23, 1  ;;  %v2414_v33 = vrot.slane %v12627_v24, 1  ;;  %v2822_v34 = vsel %vm1208_vm2, %v2817_v21, %v2821_v27  ;;  %v12629_v36 = vld [vmem:[#allocation2 + $0x20] ss:$0 sps:$4 sm:$0x11]  }
 0x10c   : > { %v12611_v15 = vld [vmem:[#allocation2 + $0xc0] sm:$0xff]   ;;  %v1657_v16 = vsel %vm1609_vm10, %v1655_v56, %v1656_v11  ;;  %v12631_v35 = vld [vmem:[#allocation2 + $0x2c] ss:$0 sps:$4 sm:$0x11]   ;;  %v2030_v40 = vshll.u32 %v12629_v36, 16  ;;  %v2039_v45 = vrot.slane %v2037_v37, 1 }
 0x10d   : > { %v1400_v18 = vsel %vm1208_vm2, %v1395_v5, %v1399_v13  ;;  %4331 = vmatprep.mubr.bf16.mxu1 %v12611_v15  ;;  %v2415_v10 = vsel %vm1609_vm10, %v2413_v32, %v2414_v33  ;;  %v2831_v57 = vshll.u32 %v12631_v35, 16  ;;  %v12633_v44 = vld [vmem:[#allocation2 + $0x24] sm:$0xfe]   ;;  %v12634_v47 = vld [vmem:[#allocation2 + $0x2c] ss:$0 sps:$4 sm:$0x11]  }
 0x10e   : > { %4170 = vmatprep.mubr.bf16.mxu0 %v1400_v18  ;;  %4332 = vmatmul.mubr.bf16.gmra.mrb[60].mxu1 %v1657_v16  ;;  %v2032_v43 = vrot.slane %v2030_v40, 1  ;;  %v2416_v50 = vrot.slane %v12633_v44, 1  ;;  %v12638_v51 = vld [vmem:[#allocation2 + $0x30] sm:$0xff]   ;;  %v2417_v55 = vrot.slane %v12634_v47, 1  ;;  %v12645_v17 = vld [vmem:[#allocation2 + $0x3c] sm:$0xff]   ;;  %s13170_s16 = scalar_lea.vmem %s14959_s12, 4096 }
 0x10f   : > { %4533 = vmatprep.mubr.bf16.mxu1 %v2822_v34  ;;  %v2833_v46 = vrot.slane %v2831_v57, 1  ;;  %v12636_v56 = vld [vmem:[#allocation2 + $0x2c] ss:$0 sps:$4 sm:$0x11]   ;;  %v2836_v61 = vshrl.u32 %v12638_v51, 16  ;;  %v2838_v1 = vshll.u32 %v12638_v51, 16  ;;  %p13171_p11 = scmp.ne.s32.totalorder %s14959_s12, %s13170_s16  ;;  %p13178_p9 = scmp.lt.s32.totalorder %s13176_s26, %s13170_s16 }
 0x110   : > { %4171 = vmatmul.mubr.bf16.gmra.mrb[60].mxu0 %v12610_v8  ;;  %v12639_v58 = vld [vmem:[#allocation2 + $0x38] ss:$0 sps:$4 sm:$0x11]   ;;  %v2033_v63 = vsel %vm1208_vm2, %v2028_v49, %v2032_v43  ;;  %v2042_v0 = vshll.u32 %v12636_v56, 16  ;;  %v12641_v3 = vld [vmem:[#allocation2 + $0x30] sm:$0xfe]   ;;  %v2040_v8 = vor.u32 %v2039_v45, %v2035_v41 }
 0x111   : > { %4372 = vmatprep.mubr.bf16.mxu0 %v2412_v19  ;;  %v2834_v53 = vsel %vm1208_vm2, %v2829_v42, %v2833_v46  ;;  %v2843_v62 = vshll.u32 %v12639_v58, 16  ;;  %v2840_v60 = vrot.slane %v2838_v1, 1  ;;  %v12643_v4 = vld [vmem:[#allocation2 + $0x30] sm:$0xff]   ;;  %v12642_v7 = vld [vmem:[#allocation2 + $0x38] ss:$0 sps:$4 sm:$0x11]   ;;  %p13172_p2 = pnand %p13171_p11, %p15101_p0  ;;  %p13179_p12 = por %p13178_p9, %p13177_p7 }
 0x112   : > { %v2044_v9 = vrot.slane %v2042_v0, 1  ;;  %v2419_v12 = vrot.slane %v12641_v3, 1  ;;  %v12640_v13 = vld [vmem:[#allocation2 + $0x30] sm:$0xff]   ;;  %v2420_v14 = vrot.slane %v12642_v7, 1  ;;  %v2049_v16 = vshll.u32 %v12643_v4, 16  ;;  %v12650_v33 = vld [vmem:[#allocation2 + $0x3c] sm:$0xff]  }
 0x113   : > { %v2845_v5 = vrot.slane %v2843_v62, 1  ;;  %v2841_v11 = vor.u32 %v2840_v60, %v2836_v61  ;;  %v12644_v15 = vld [vmem:[#allocation2 + $0x38] ss:$0 sps:$4 sm:$0x11]   ;;  %v2047_v19 = vshrl.u32 %v12643_v4, 16  ;;  %v2848_v24 = vshrl.u32 %v12645_v17, 16  ;;  %p13173_p3 = pneg %p13172_p2 }
 0x114   : > { %v2051_v20 = vrot.slane %v2049_v16, 1  ;;  %v2054_v21 = vshll.u32 %v12644_v15, 16  ;;  %v12646_v22 = vld [vmem:[#allocation2 + $0x44] ss:$0 sps:$4 sm:$0x11]   ;;  %v2045_v23 = vsel %vm1208_vm2, %v2040_v8, %v2044_v9  ;;  %v2850_v25 = vshll.u32 %v12645_v17, 16 }
 0x115   : > { %v2846_v18 = vsel %vm1208_vm2, %v2841_v11, %v2845_v5  ;;  %v2421_v26 = vsel %vm1609_vm10, %v2419_v12, %v2420_v14  ;;  %v2855_v28 = vshll.u32 %v12646_v22, 16  ;;  %v12648_v32 = vld [vmem:[#allocation2 + $0x3c] sm:$0xfe]   ;;  %v12649_v36 = vld [vmem:[#allocation2 + $0x44] ss:$0 sps:$4 sm:$0x11]   ;;  %p13180_p1 = pnand %p13179_p12, %p13173_p3 }
 0x116   : > { %4534 = vmatmul.mubr.bf16.vlgmr.msra.gmra.mrb[64].mxu1 %v12625_v29  ;;  %v2056_v27 = vrot.slane %v2054_v21, 1  ;;  %v2852_v29 = vrot.slane %v2850_v25, 1  ;;  %v2052_v31 = vor.u32 %v2051_v20, %v2047_v19  ;;  %v2422_v37 = vrot.slane %v12648_v32, 1  ;;  %v12647_v40 = vld [vmem:[#allocation2 + $0x3c] sm:$0xff]   ;;  %v12652_v57 = vld [vmem:[#allocation7 + $0x210] sm:$0xff]   ;;  %v12660_v8 = vld [vmem:[#allocation2 + $0x54] sm:$0xff]  }
 0x117   : > { %4541 = vmatprep.mubr.bf16.mxu1 %v2834_v53  ;;  %v2857_v34 = vrot.slane %v2855_v28, 1  ;;  %v2423_v41 = vrot.slane %v12649_v36, 1  ;;  %v2061_v42 = vshll.u32 %v12650_v33, 16  ;;  %v12653_v46 = vld [vmem:[#allocation2 + $0x48] sm:$0xff]   ;;  %v2872_v15 = vshrl.u32 %v12660_v8, 16  ;;  %v12665_v17 = vld [vmem:[#allocation2 + $0x54] sm:$0xff]  }
 0x118   : > { %4373 = vmatmul.mubr.bf16.vlgmr.msra.gmra.mrb[64].mxu0 %v2021_v39  ;;  %v2853_v35 = vor.u32 %v2852_v29, %v2848_v24  ;;  %v2059_v39 = vshrl.u32 %v12650_v33, 16  ;;  %v2057_v45 = vsel %vm1208_vm2, %v2052_v31, %v2056_v27  ;;  %v12654_v47 = vld [vmem:[#allocation2 + $0x50] ss:$0 sps:$4 sm:$0x11]   ;;  %v2860_v51 = vshrl.u32 %v12653_v46, 16  ;;  %v12662_v27 = vld [vmem:[#allocation2 + $0x54] sm:$0xff]  }
 0x119   : > { %12285 = vmatpush3.bf16.msra.mxu0 %v13760_v30  ;;  %4380 = vmatprep.mubr.bf16.mxu0 %v2415_v10  ;;  %v2418_v30 = vsel %vm1609_vm10, %v2416_v50, %v2417_v55  ;;  %v12651_v10 = vld [vmem:[#allocation2 + $0x44] ss:$0 sps:$4 sm:$0x11]   ;;  %v2063_v43 = vrot.slane %v2061_v42, 1  ;;  %v2424_v49 = vsel %vm1609_vm10, %v2422_v37, %v2423_v41  ;;  %v2862_v53 = vshll.u32 %v12653_v46, 16  ;;  %v12658_v55 = vld [vmem:[#allocation2 + $0x48] sm:$0xff]  }
 0x11a   : > { %12286 = vmatprep.subr.bf16.mxu0 %v12637_v2  ;;  %v2066_v44 = vshll.u32 %v12651_v10, 16  ;;  %v12656_v56 = vld [vmem:[#allocation2 + $0x48] sm:$0xfe]   ;;  %v12657_v0 = vld [vmem:[#allocation2 + $0x50] ss:$0 sps:$4 sm:$0x11]  }
 0x11b   : > { %v2064_v58 = vor.u32 %v2063_v43, %v2059_v39  ;;  %v2864_v61 = vrot.slane %v2862_v53, 1  ;;  %v2071_v1 = vshrl.u32 %v12658_v55, 16  ;;  %v2425_v62 = vrot.slane %v12656_v56, 1  ;;  %v12659_v5 = vld [vmem:[#allocation2 + $0x50] ss:$0 sps:$4 sm:$0x11]  }
 0x11c   : > { %v2068_v50 = vrot.slane %v2066_v44, 1  ;;  %v2073_v60 = vshll.u32 %v12658_v55, 16  ;;  %v2426_v4 = vrot.slane %v12657_v0, 1  ;;  %v2078_v12 = vshll.u32 %v12659_v5, 16  ;;  %v12663_v21 = vld [vmem:[#allocation2 + $0x54] sm:$0xfe]  }
 0x11d   : > { %12287 = vmatpush3.bf16.msra.mxu0 %v12637_v2  ;;  %v2858_v2 = vsel %vm1208_vm2, %v2853_v35, %v2857_v34  ;;  %v2865_v3 = vor.u32 %v2864_v61, %v2860_v51  ;;  %v2874_v16 = vshll.u32 %v12660_v8, 16  ;;  %v2083_v22 = vshrl.u32 %v12665_v17, 16  ;;  %v12664_v25 = vld [vmem:[#allocation2 + $0x5c] ss:$0 sps:$4 sm:$0x11]   ;;  %v12667_v31 = vld [vmem:[#allocation7 + $0x218] sm:$0xff]  }
 0x11e   : > { %4542 = vmatmul.mubr.bf16.gmra.mrb[68].mxu1 %v12632_v54  ;;  %12288 = vmatprep.subr.bf16.mxu0 %v12652_v57  ;;  %v2867_v54 = vshll.u32 %v12654_v47, 16  ;;  %v2075_v7 = vrot.slane %v2073_v60, 1  ;;  %v2069_v9 = vsel %vm1208_vm2, %v2064_v58, %v2068_v50  ;;  %v2427_v14 = vsel %vm1609_vm10, %v2425_v62, %v2426_v4  ;;  %v12666_v33 = vld [vmem:[#allocation2 + $0x5c] ss:$0 sps:$4 sm:$0x11]   ;;  %v12668_v39 = vld [vmem:[#allocation2 + $0x60] sm:$0xff]  }
 0x11f   : > { %4549 = vmatprep.mubr.bf16.mxu1 %v2846_v18  ;;  %v2080_v18 = vrot.slane %v2078_v12, 1  ;;  %v2876_v20 = vrot.slane %v2874_v16, 1  ;;  %v2428_v28 = vrot.slane %v12663_v21, 1  ;;  %v2085_v29 = vshll.u32 %v12665_v17, 16  ;;  %v12671_v46 = vld [vmem:[#allocation2 + $0x60] sm:$0xfe]  }
 0x120   : > { %4381 = vmatmul.mubr.bf16.gmra.mrb[68].mxu0 %v2033_v63  ;;  %v2869_v63 = vrot.slane %v2867_v54, 1  ;;  %v2429_v32 = vrot.slane %v12664_v25, 1  ;;  %v2090_v37 = vshll.u32 %v12666_v33, 16  ;;  %v12669_v41 = vld [vmem:[#allocation2 + $0x68] ss:$0 sps:$4 sm:$0x11]  }
 0x121   : > { %4388 = vmatprep.mubr.bf16.mxu0 %v2418_v30  ;;  %12289 = vmatpush3.bf16.msra.mxu0 %v12652_v57  ;;  %v12655_v30 = vld [vmem:[#allocation2 + $0x48] sm:$0xff]   ;;  %v2087_v36 = vrot.slane %v2085_v29, 1  ;;  %v2884_v10 = vshrl.u32 %v12668_v39, 16  ;;  %v2886_v42 = vshll.u32 %v12668_v39, 16  ;;  %v12673_v57 = vld [vmem:[#allocation2 + $0x60] sm:$0xff]   ;;  %v2891_v43 = vshll.u32 %v12669_v41, 16 }
 0x122   : > { %v2870_v11 = vsel %vm1208_vm2, %v2865_v3, %v2869_v63  ;;  %12290 = vmatprep.subr.bf16.mxu0 %v12667_v31  ;;  %v12675_v47 = vld [vmem:[#allocation2 + $0x6c] sm:$0xff]   ;;  %v12670_v50 = vld [vmem:[#allocation2 + $0x60] sm:$0xff]   ;;  %v12672_v51 = vld [vmem:[#allocation2 + $0x68] ss:$0 sps:$4 sm:$0x11]   ;;  %v2431_v54 = vrot.slane %v12671_v46, 1 }
 0x123   : > { %v2088_v44 = vor.u32 %v2087_v36, %v2083_v22  ;;  %v2097_v55 = vshll.u32 %v12673_v57, 16  ;;  %v2432_v56 = vrot.slane %v12672_v51, 1  ;;  %v12674_v58 = vld [vmem:[#allocation2 + $0x68] ss:$0 sps:$4 sm:$0x11]   ;;  %v2095_v0 = vshrl.u32 %v12673_v57, 16 }
 0x124   : > { %v2102_v62 = vshll.u32 %v12674_v58, 16  ;;  %v12676_v60 = vld [vmem:[#allocation2 + $0x74] ss:$0 sps:$4 sm:$0x11]   ;;  %v2896_v3 = vshrl.u32 %v12675_v47, 16  ;;  %v2898_v4 = vshll.u32 %v12675_v47, 16 }
 0x125   : > { %12291 = vmatpush3.bf16.msra.mxu0 %v12667_v31  ;;  %v2903_v8 = vshll.u32 %v12676_v60, 16  ;;  %v12678_v12 = vld [vmem:[#allocation2 + $0x6c] sm:$0xfe]   ;;  %v12679_v16 = vld [vmem:[#allocation2 + $0x74] ss:$0 sps:$4 sm:$0x11]  }
 0x126   : > { %4550 = vmatmul.mubr.bf16.gmra.mrb[72].mxu1 %v12640_v13  ;;  %v12661_v13 = vld [vmem:[#allocation2 + $0x5c] ss:$0 sps:$4 sm:$0x11]   ;;  %v2104_v5 = vrot.slane %v2102_v62, 1  ;;  %v2434_v17 = vrot.slane %v12678_v12, 1  ;;  %v12690_v57 = vld [vmem:[#allocation2 + $0x84] sm:$0xff]  }
 0x127   : > { %4557 = vmatprep.mubr.bf16.mxu1 %v2858_v2  ;;  %v2879_v19 = vshll.u32 %v12661_v13, 16  ;;  %v2092_v2 = vrot.slane %v2090_v37, 1  ;;  %v12685_v37 = vld [vmem:[#allocation2 + $0x78] sm:$0xff]   ;;  %v12693_v62 = vld [vmem:[#allocation2 + $0x84] sm:$0xfe]  }
 0x128   : > { %4389 = vmatmul.mubr.bf16.gmra.mrb[72].mxu0 %v2045_v23  ;;  %v2076_v23 = vor.u32 %v2075_v7, %v2071_v1  ;;  %v2099_v1 = vrot.slane %v2097_v55, 1  ;;  %v2900_v7 = vrot.slane %v2898_v4, 1  ;;  %v12686_v39 = vld [vmem:[#allocation2 + $0x78] sm:$0xfe]  }
 0x129   : > { %4396 = vmatprep.mubr.bf16.mxu0 %v2421_v26  ;;  %v2881_v24 = vrot.slane %v2879_v19, 1  ;;  %v2877_v26 = vor.u32 %v2876_v20, %v2872_v15  ;;  %v2093_v61 = vsel %vm1208_vm2, %v2088_v44, %v2092_v2  ;;  %v12677_v15 = vld [vmem:[#allocation2 + $0x6c] sm:$0xff]   ;;  %v2435_v20 = vrot.slane %v12679_v16, 1  ;;  %v12688_v41 = vld [vmem:[#allocation2 + $0x78] sm:$0xff]  }
 0x12a   : > { %v2081_v35 = vsel %vm1208_vm2, %v2076_v23, %v2080_v18  ;;  %v2901_v13 = vor.u32 %v2900_v7, %v2896_v3  ;;  %v12681_v18 = vld [vmem:[#allocation2 + $0x74] ss:$0 sps:$4 sm:$0x11]   ;;  %v12682_v23 = vld [vmem:[#allocation7 + $0x220] sm:$0xff]   ;;  %v2437_v2 = vrot.slane %v12686_v39, 1  ;;  %v2119_v44 = vshrl.u32 %v12688_v41, 16 }
 0x12b   : > { %v2882_v34 = vsel %vm1208_vm2, %v2877_v26, %v2881_v24  ;;  %v2114_v25 = vshll.u32 %v12681_v18, 16  ;;  %v12683_v26 = vld [vmem:[#allocation2 + $0x78] sm:$0xff]   ;;  %12292 = vmatprep.subr.bf16.mxu0 %v12682_v23  ;;  %v12694_v60 = vld [vmem:[#allocation2 + $0x8c] ss:$0 sps:$4 sm:$0x11]   ;;  %v12695_v3 = vld [vmem:[#allocation2 + $0x84] sm:$0xff]  }
 0x12c   : > { %v2908_v33 = vshrl.u32 %v12683_v26, 16  ;;  %12293 = vmatpush3.bf16.msra.mxu0 %v12682_v23  ;;  %v2440_v7 = vrot.slane %v12693_v62, 1 }
 0x12d   : > { %v2116_v29 = vrot.slane %v2114_v25, 1  ;;  %v13847_v25 = vld [vmem:[%s15075_s2] ss:$0 sm:$0xff] }
 0x12e   : > { %4558 = vmatmul.mubr.bf16.gmra.mrb[76].mxu1 %v12647_v40  ;;  %v2430_v40 = vsel %vm1609_vm10, %v2428_v28, %v2429_v32  ;;  %v12684_v32 = vld [vmem:[#allocation2 + $0x80] ss:$0 sps:$4 sm:$0x11]  }
 0x12f   : > { %4565 = vmatprep.mubr.bf16.mxu1 %v2870_v11  ;;  %v2100_v11 = vor.u32 %v2099_v1, %v2095_v0 }
 0x130   : > { %4397 = vmatmul.mubr.bf16.gmra.mrb[76].mxu0 %v2057_v45  ;;  %v2888_v45 = vrot.slane %v2886_v42, 1 }
 0x131   : > { %4404 = vmatprep.mubr.bf16.mxu0 %v2424_v49  ;;  %v2893_v49 = vrot.slane %v2891_v43, 1  ;;  %v2105_v24 = vsel %vm1208_vm2, %v2100_v11, %v2104_v5  ;;  %v12697_v5 = vld [vmem:[#allocation7 + $0x228] sm:$0xff]   ;;  %v2133_v11 = vshll.u32 %v12695_v3, 16 }
 0x132   : > { %v2889_v53 = vor.u32 %v2888_v45, %v2884_v10  ;;  %v2121_v45 = vshll.u32 %v12688_v41, 16  ;;  %12294 = vmatprep.subr.bf16.mxu0 %v12697_v5  ;;  %v12701_v41 = vld [vmem:[#allocation2 + $0x90] sm:$0xfe]  }
 0x133   : > { %12295 = vmatpush3.bf16.msra.mxu0 %v12697_v5 }
 0x134   : > { %v2894_v63 = vsel %vm1208_vm2, %v2889_v53, %v2893_v49  ;;  %v12689_v49 = vld [vmem:[#allocation2 + $0x80] ss:$0 sps:$4 sm:$0x11]   ;;  %v2123_v53 = vrot.slane %v2121_v45, 1 }
 0x135   : > { %v2126_v55 = vshll.u32 %v12689_v49, 16 }
 0x136   : > { %4566 = vmatmul.mubr.bf16.gmra.mrb[80].mxu1 %v12655_v30  ;;  %v2433_v30 = vsel %vm1609_vm10, %v2431_v54, %v2432_v56  ;;  %v2922_v54 = vshll.u32 %v12690_v57, 16  ;;  %v12691_v56 = vld [vmem:[#allocation2 + $0x8c] ss:$0 sps:$4 sm:$0x11]  }
 0x137   : > { %4573 = vmatprep.mubr.bf16.mxu1 %v2882_v34  ;;  %v2910_v34 = vshll.u32 %v12683_v26, 16  ;;  %v2927_v0 = vshll.u32 %v12691_v56, 16 }
 0x138   : > { %4405 = vmatmul.mubr.bf16.gmra.mrb[80].mxu0 %v2069_v9  ;;  %v12680_v9 = vld [vmem:[#allocation2 + $0x6c] sm:$0xff]   ;;  %v2924_v58 = vrot.slane %v2922_v54, 1 }
 0x139   : > { %4412 = vmatprep.mubr.bf16.mxu0 %v2427_v14  ;;  %v2905_v14 = vrot.slane %v2903_v8, 1  ;;  %v2107_v21 = vshrl.u32 %v12680_v9, 16  ;;  %v2109_v22 = vshll.u32 %v12680_v9, 16  ;;  %v2912_v31 = vrot.slane %v2910_v34, 1 }
 0x13a   : > { %v2929_v4 = vrot.slane %v2927_v0, 1  ;;  %v2441_v8 = vrot.slane %v12694_v60, 1  ;;  %v2131_v9 = vshrl.u32 %v12695_v3, 16  ;;  %v12706_v0 = vld [vmem:[#allocation2 + $0xa4] ss:$0 sps:$4 sm:$0x11]  }
 0x13b   : > { %v2906_v19 = vsel %vm1208_vm2, %v2901_v13, %v2905_v14  ;;  %v2111_v28 = vrot.slane %v2109_v22, 1  ;;  %v2913_v10 = vor.u32 %v2912_v31, %v2908_v33  ;;  %v12696_v14 = vld [vmem:[#allocation2 + $0x8c] ss:$0 sps:$4 sm:$0x11]  }
 0x13c   : > { %v2442_v16 = vsel %vm1609_vm10, %v2440_v7, %v2441_v8  ;;  %v2138_v18 = vshll.u32 %v12696_v14, 16 }
 0x13d   : > { %v2112_v36 = vor.u32 %v2111_v28, %v2107_v21  ;;  %v12700_v28 = vld [vmem:[#allocation2 + $0x90] sm:$0xff]  }
 0x13e   : > { %4574 = vmatmul.mubr.bf16.gmra.mrb[84].mxu1 %v12662_v27  ;;  %v2436_v27 = vsel %vm1609_vm10, %v2434_v17, %v2435_v20  ;;  %v2135_v17 = vrot.slane %v2133_v11, 1  ;;  %v12699_v20 = vld [vmem:[#allocation2 + $0x98] ss:$0 sps:$4 sm:$0x11]   ;;  %v2140_v23 = vrot.slane %v2138_v18, 1 }
 0x13f   : > { %4581 = vmatprep.mubr.bf16.mxu1 %v2894_v63  ;;  %v2117_v46 = vsel %vm1208_vm2, %v2112_v36, %v2116_v29  ;;  %v2128_v63 = vrot.slane %v2126_v55, 1  ;;  %v12705_v55 = vld [vmem:[#allocation2 + $0x9c] sm:$0xff]  }
 0x140   : > { %4413 = vmatmul.mubr.bf16.gmra.mrb[84].mxu0 %v2081_v35  ;;  %v2915_v35 = vshll.u32 %v12684_v32, 16  ;;  %v2136_v22 = vor.u32 %v2135_v17, %v2131_v9  ;;  %v12707_v9 = vld [vmem:[#allocation2 + $0x9c] sm:$0xff]  }
 0x141   : > { %4420 = vmatprep.mubr.bf16.mxu0 %v2430_v40  ;;  %v12687_v40 = vld [vmem:[#allocation2 + $0x80] ss:$0 sps:$4 sm:$0x11]  }
 0x142   : > { %v2917_v42 = vrot.slane %v2915_v35, 1  ;;  %v2438_v43 = vrot.slane %v12687_v40, 1 }
 0x144   : > { %v2918_v47 = vsel %vm1208_vm2, %v2913_v10, %v2917_v42  ;;  %v2439_v51 = vsel %vm1609_vm10, %v2437_v2, %v2438_v43  ;;  %v12703_v10 = vld [vmem:[#allocation2 + $0x90] sm:$0xff]   ;;  %v2141_v42 = vsel %vm1208_vm2, %v2136_v22, %v2140_v23  ;;  %v12702_v43 = vld [vmem:[#allocation2 + $0x98] ss:$0 sps:$4 sm:$0x11]   ;;  %v12708_v23 = vld [vmem:[#allocation2 + $0x9c] sm:$0xfe]  }
 0x145   : > { %v2143_v49 = vshrl.u32 %v12703_v10, 16  ;;  %v2145_v54 = vshll.u32 %v12703_v10, 16 }
 0x146   : > { %4582 = vmatmul.mubr.bf16.gmra.mrb[88].mxu1 %v12670_v50  ;;  %v2920_v50 = vshrl.u32 %v12690_v57, 16 }
 0x147   : > { %4589 = vmatprep.mubr.bf16.mxu1 %v2906_v19 }
 0x148   : > { %4421 = vmatmul.mubr.bf16.gmra.mrb[88].mxu0 %v2093_v61  ;;  %v2124_v61 = vor.u32 %v2123_v53, %v2119_v44  ;;  %v2925_v1 = vor.u32 %v2924_v58, %v2920_v50  ;;  %v12704_v53 = vld [vmem:[#allocation2 + $0x98] ss:$0 sps:$4 sm:$0x11]  }
 0x149   : > { %4428 = vmatprep.mubr.bf16.mxu0 %v2433_v30  ;;  %v12692_v30 = vld [vmem:[#allocation2 + $0x84] sm:$0xff]  }
 0x14a   : > { %v2129_v12 = vsel %vm1208_vm2, %v2124_v61, %v2128_v63  ;;  %v2930_v13 = vsel %vm1208_vm2, %v2925_v1, %v2929_v4  ;;  %v2147_v61 = vrot.slane %v2145_v54, 1  ;;  %v2150_v63 = vshll.u32 %v12704_v53, 16 }
 0x14b   : > { %v2944_v1 = vshrl.u32 %v12705_v55, 16  ;;  %v2951_v4 = vshll.u32 %v12706_v0, 16 }
 0x14c   : > { %v2148_v60 = vor.u32 %v2147_v61, %v2143_v49  ;;  %v2152_v3 = vrot.slane %v2150_v63, 1  ;;  %v12720_v61 = vld [vmem:[#allocation2 + $0xb4] sm:$0xff]  }
 0x14e   : > { %4590 = vmatmul.mubr.bf16.gmra.mrb[92].mxu1 %v12677_v15  ;;  %v12698_v15 = vld [vmem:[#allocation2 + $0x90] sm:$0xff]   ;;  %v2153_v14 = vsel %vm1208_vm2, %v2148_v60, %v2152_v3 }
 0x14f   : > { %4597 = vmatprep.mubr.bf16.mxu1 %v2918_v47  ;;  %v2932_v19 = vshrl.u32 %v12698_v15, 16  ;;  %v2934_v21 = vshll.u32 %v12698_v15, 16  ;;  %v2953_v15 = vrot.slane %v2951_v4, 1 }
 0x150   : > { %4429 = vmatmul.mubr.bf16.gmra.mrb[92].mxu0 %v2105_v24 }
 0x151   : > { %4436 = vmatprep.mubr.bf16.mxu0 %v2436_v27  ;;  %v2936_v26 = vrot.slane %v2934_v21, 1  ;;  %v2939_v27 = vshll.u32 %v12699_v20, 16  ;;  %v12712_v20 = vld [vmem:[#allocation7 + $0x230] sm:$0xff]  }
 0x152   : > { %12296 = vmatprep.subr.bf16.mxu0 %v12712_v20 }
 0x153   : > { %v2937_v31 = vor.u32 %v2936_v26, %v2932_v19  ;;  %v2941_v35 = vrot.slane %v2939_v27, 1  ;;  %12297 = vmatpush3.bf16.msra.mxu0 %v12712_v20 }
 0x155   : > { %v2942_v45 = vsel %vm1208_vm2, %v2937_v31, %v2941_v35  ;;  %v12711_v35 = vld [vmem:[#allocation2 + $0xa4] ss:$0 sps:$4 sm:$0x11]  }
 0x156   : > { %4598 = vmatmul.mubr.bf16.gmra.mrb[96].mxu1 %v12685_v37  ;;  %v2162_v10 = vshll.u32 %v12711_v35, 16 }
 0x157   : > { %4605 = vmatprep.mubr.bf16.mxu1 %v2930_v13  ;;  %v12710_v13 = vld [vmem:[#allocation2 + $0x9c] sm:$0xff]  }
 0x158   : > { %4437 = vmatmul.mubr.bf16.gmra.mrb[96].mxu0 %v2117_v46  ;;  %v2443_v46 = vrot.slane %v12701_v41, 1 }
 0x159   : > { %4444 = vmatprep.mubr.bf16.mxu0 %v2439_v51  ;;  %v2444_v51 = vrot.slane %v12702_v43, 1 }
 0x15b   : > { %v2445_v58 = vsel %vm1609_vm10, %v2443_v46, %v2444_v51  ;;  %v12718_v51 = vld [vmem:[#allocation2 + $0xa8] sm:$0xff]  }
 0x15c   : > { %v2167_v4 = vshrl.u32 %v12718_v51, 16 }
 0x15e   : > { %4606 = vmatmul.mubr.bf16.gmra.mrb[100].mxu1 %v12692_v30  ;;  %v2946_v30 = vshll.u32 %v12705_v55, 16 }
 0x15f   : > { %v11356_v24 = vpop.f32.mrb[0].mxu0  ;;  %4613 = vmatprep.mubr.bf16.mxu1 %v2942_v45  ;;  %v2164_v45 = vrot.slane %v2162_v10, 1 }
 0x160   : > { %4445 = vmatmul.mubr.bf16.gmra.mrb[100].mxu0 %v2129_v12  ;;  %v11357_v29 = vpop.f32.mrb[1].mxu0  ;;  %v2948_v8 = vrot.slane %v2946_v30, 1 }
 0x161   : > { %4452 = vmatprep.mubr.bf16.mxu0 %v2442_v16  ;;  %v11358_v33 = vadd.f32 %v11357_v29, %v11356_v24  ;;  %v11359_v34 = vpop.f32.mrb[2].mxu0  ;;  %v12709_v24 = vld [vmem:[#allocation2 + $0xa4] ss:$0 sps:$4 sm:$0x11]   ;;  %v2155_v29 = vshrl.u32 %v12710_v13, 16 }
 0x162   : > { %v11468_v32 = vpop.f32.mrb[0].mxu1  ;;  %v11360_v37 = vpop.f32.mrb[3].mxu0  ;;  %v2949_v21 = vor.u32 %v2948_v8, %v2944_v1  ;;  %v12715_v1 = vld [vmem:[#allocation2 + $0xa8] sm:$0xff]  }
 0x163   : > { %v11469_v36 = vpop.f32.mrb[1].mxu1  ;;  %v4053_v57 = vadd.f32 %v11358_v33, %v13847_v25  ;;  %v11361_v2 = vadd.f32 %v11360_v37, %v11359_v34  ;;  %v2446_v33 = vrot.slane %v12708_v23, 1  ;;  %v2447_v34 = vrot.slane %v12709_v24, 1 }
 0x164   : > { %v11470_v39 = vadd.f32 %v11469_v36, %v11468_v32  ;;  %v11471_v40 = vpop.f32.mrb[2].mxu1  ;;  %v2954_v32 = vsel %vm1208_vm2, %v2949_v21, %v2953_v15  ;;  %v2157_v37 = vshll.u32 %v12710_v13, 16  ;;  %v12717_v13 = vld [vmem:[#allocation2 + $0xb0] ss:$0 sps:$4 sm:$0x11]   ;;  %v2169_v15 = vshll.u32 %v12718_v51, 16 }
 0x165   : > { %v11472_v44 = vpop.f32.mrb[3].mxu1  ;;  %v4056_v50 = vadd.f32 %v11361_v2, %v13847_v25  ;;  %v2450_v21 = vrot.slane %v12717_v13, 1  ;;  %v2970_v24 = vshll.u32 %v12720_v61, 16  ;;  %v12725_v51 = vld [vmem:[#allocation2 + $0xb4] sm:$0xff]  }
 0x166   : > { %v11473_v47 = vadd.f32 %v11472_v44, %v11471_v40  ;;  %v13853_v56 = vadd.f32 %v11470_v39, %v4053_v57  ;;  %4614 = vmatmul.mubr.bf16.gmra.mrb[104].mxu1 %v12700_v28  ;;  %v2448_v40 = vsel %vm1609_vm10, %v2446_v33, %v2447_v34  ;;  %v2159_v41 = vrot.slane %v2157_v37, 1  ;;  %v12714_v57 = vld [vmem:[#allocation2 + $0xb0] ss:$0 sps:$4 sm:$0x11]  }
 0x167   : > { %4621 = vmatprep.mubr.bf16.mxu1 %v2954_v32  ;;  %v2963_v53 = vshll.u32 %v12714_v57, 16  ;;  %v2171_v23 = vrot.slane %v2169_v15, 1  ;;  %v12721_v32 = vld [vmem:[#allocation2 + $0xbc] ss:$0 sps:$4 sm:$0x11]   ;;  %v2972_v33 = vrot.slane %v2970_v24, 1 }
 0x168   : > { %4453 = vmatmul.mubr.bf16.gmra.mrb[104].mxu0 %v2141_v42  ;;  %v13856_v62 = vadd.f32 %v11473_v47, %v4056_v50  ;;  %v12713_v42 = vld [vmem:[#allocation2 + $0xa8] sm:$0xff]   ;;  %v2160_v44 = vor.u32 %v2159_v41, %v2155_v29  ;;  %v2975_v37 = vshll.u32 %v12721_v32, 16  ;;  %v13891_v24 = vld [vmem:[#allocation2 + $0xc0] sm:$0xff]  }
 0x169   : > { %4460 = vmatprep.mubr.bf16.mxu0 %v2445_v58  ;;  %v2956_v46 = vshrl.u32 %v12713_v42, 16  ;;  %v2958_v47 = vshll.u32 %v12713_v42, 16 }
 0x16a   : > { %v2165_v63 = vsel %vm1208_vm2, %v2160_v44, %v2164_v45 }
 0x16b   : > { %v2960_v0 = vrot.slane %v2958_v47, 1 }
 0x16c   : > { %v11474_v7 = vpop.f32.mrb[4].mxu1 }
 0x16d   : > { %v11475_v12 = vpop.f32.mrb[5].mxu1 }
 0x16e   : > { %v11362_v5 = vpop.f32.mrb[4].mxu0  ;;  %v11476_v18 = vadd.f32 %v11475_v12, %v11474_v7  ;;  %v11477_v19 = vpop.f32.mrb[6].mxu1  ;;  %4622 = vmatmul.mubr.bf16.gmra.mrb[108].mxu1 %v12707_v9  ;;  %v12716_v9 = vld [vmem:[#allocation2 + $0xa8] sm:$0xfe]   ;;  %v2961_v12 = vor.u32 %v2960_v0, %v2956_v46  ;;  %v2977_v46 = vrot.slane %v2975_v37, 1 }
 0x16f   : > { %v11363_v11 = vpop.f32.mrb[5].mxu0  ;;  %v11478_v28 = vpop.f32.mrb[7].mxu1 }
 0x170   : > { %v11364_v16 = vadd.f32 %v11363_v11, %v11362_v5  ;;  %v11365_v17 = vpop.f32.mrb[6].mxu0  ;;  %4461 = vmatmul.mubr.bf16.gmra.mrb[108].mxu0 %v2153_v14  ;;  %v11479_v36 = vadd.f32 %v11478_v28, %v11477_v19  ;;  %v2965_v5 = vrot.slane %v2963_v53, 1  ;;  %v2172_v28 = vor.u32 %v2171_v23, %v2167_v4 }
 0x171   : > { %v11366_v22 = vpop.f32.mrb[7].mxu0  ;;  %4468 = vmatprep.mubr.bf16.mxu0 %v2448_v40  ;;  %v12722_v40 = vld [vmem:[#allocation2 + $0xb4] sm:$0xff]   ;;  %v2181_v4 = vshll.u32 %v12725_v51, 16 }
 0x172   : > { %v4061_v26 = vadd.f32 %v11364_v16, %v13847_v25  ;;  %v11367_v27 = vadd.f32 %v11366_v22, %v11365_v17  ;;  %v2449_v17 = vrot.slane %v12716_v9, 1  ;;  %v2966_v20 = vsel %vm1208_vm2, %v2961_v12, %v2965_v5  ;;  %v12719_v22 = vld [vmem:[#allocation2 + $0xb0] ss:$0 sps:$4 sm:$0x11]   ;;  %v13880_v5 = vld [vmem:[#allocation2 + $0xc0] sm:$0xff]  }
 0x173   : > { %4629 = vmatprep.mubr.bf16.mxu1 %v2966_v20  ;;  %v2174_v29 = vshll.u32 %v12719_v22, 16 }
 0x174   : > { %v4064_v31 = vadd.f32 %v11367_v27, %v13847_v25  ;;  %v13862_v39 = vadd.f32 %v11476_v18, %v4061_v26  ;;  %v11480_v50 = vpop.f32.mrb[8].mxu1  ;;  %v2968_v18 = vshrl.u32 %v12720_v61, 16  ;;  %v2451_v27 = vsel %vm1609_vm10, %v2449_v17, %v2450_v21  ;;  %v12727_v61 = vld [vmem:[#allocation7 + $0x238] sm:$0xff]  }
 0x175   : > { %v11481_v58 = vpop.f32.mrb[9].mxu1  ;;  %12298 = vmatprep.subr.bf16.mxu0 %v12727_v61 }
 0x176   : > { %v13865_v2 = vadd.f32 %v11479_v36, %v4064_v31  ;;  %v11368_v43 = vpop.f32.mrb[8].mxu0  ;;  %v11482_v60 = vadd.f32 %v11481_v58, %v11480_v50  ;;  %v11483_v3 = vpop.f32.mrb[10].mxu1  ;;  %4630 = vmatmul.mubr.bf16.gmra.mrb[112].mxu1 %v12715_v1  ;;  %v2176_v31 = vrot.slane %v2174_v29, 1  ;;  %v2973_v35 = vor.u32 %v2972_v33, %v2968_v18  ;;  %12299 = vmatpush3.bf16.msra.mxu0 %v12727_v61  ;;  %v13896_v33 = vld [vmem:[#allocation2 + $0xc0] sm:$0xfe]  }
 0x177   : > { %v11369_v49 = vpop.f32.mrb[9].mxu0  ;;  %v11484_v11 = vpop.f32.mrb[11].mxu1  ;;  %v2179_v1 = vshrl.u32 %v12725_v51, 16  ;;  %v2982_v18 = vshll.u32 %v13880_v5, 16 }
 0x178   : > { %v11370_v54 = vadd.f32 %v11369_v49, %v11368_v43  ;;  %v11371_v55 = vpop.f32.mrb[10].mxu0  ;;  %4469 = vmatmul.mubr.bf16.gmra.mrb[112].mxu0 %v2165_v63  ;;  %v11485_v14 = vadd.f32 %v11484_v11, %v11483_v3  ;;  %v2177_v45 = vsel %vm1208_vm2, %v2172_v28, %v2176_v31  ;;  %v12723_v49 = vld [vmem:[#allocation2 + $0xb4] sm:$0xfe]   ;;  %v2978_v63 = vsel %vm1208_vm2, %v2973_v35, %v2977_v46  ;;  %v12726_v3 = vld [vmem:[#allocation2 + $0xbc] ss:$0 sps:$4 sm:$0x11]  }
 0x179   : > { %v11372_v30 = vpop.f32.mrb[11].mxu0  ;;  %4476 = vmatprep.mubr.bf16.mxu0 %v2451_v27  ;;  %v2452_v0 = vrot.slane %v12723_v49, 1  ;;  %4637 = vmatprep.mubr.bf16.mxu1 %v2978_v63  ;;  %v2183_v11 = vrot.slane %v2181_v4, 1  ;;  %v2186_v12 = vshll.u32 %v12726_v3, 16  ;;  %v13893_v27 = vld [vmem:[#allocation2 + $0xcc] sm:$0xff]   ;;  %v2193_v49 = vshll.u32 %v13891_v24, 16 }
 0x17a   : > { %v4069_v7 = vadd.f32 %v11370_v54, %v13847_v25  ;;  %v11373_v8 = vadd.f32 %v11372_v30, %v11371_v55  ;;  %v12724_v55 = vld [vmem:[#allocation2 + $0xbc] ss:$0 sps:$4 sm:$0x11]  }
 0x17b   : > { %v2188_v17 = vrot.slane %v2186_v12, 1  ;;  %v12738_v4 = vld [vmem:[#allocation2 + $0x18] sm:$0xfe]  }
 0x17c   : > { %v4072_v16 = vadd.f32 %v11373_v8, %v13847_v25  ;;  %v13870_v19 = vadd.f32 %v11482_v60, %v4069_v7  ;;  %v11486_v36 = vpop.f32.mrb[12].mxu1  ;;  %v2453_v60 = vrot.slane %v12724_v55, 1  ;;  %v417_v8 = vld [vmem:[#allocation2 + $0xc8] sm:$0x1]  ;;  %v12770_v55 = vld [vmem:[#allocation9 + $0x40] sm:$0xff]  }
 0x17d   : > { %v11487_v10 = vpop.f32.mrb[13].mxu1  ;;  %v418_v13 = vsel %vm13527_vm7, 0, %v417_v8  ;;  %11812 = vmatprep.subr.bf16.mxu1 %v12770_v55 }
 0x17e   : > { %v13873_v26 = vadd.f32 %v11485_v14, %v4072_v16  ;;  %v11374_v34 = vpop.f32.mrb[12].mxu0  ;;  %v11488_v43 = vadd.f32 %v11487_v10, %v11486_v36  ;;  %v11489_v44 = vpop.f32.mrb[14].mxu1  ;;  %4638 = vmatmul.mubr.bf16.gmra.mrb[116].mxu1 %v12722_v40  ;;  %v2454_v9 = vsel %vm1609_vm10, %v2452_v0, %v2453_v60  ;;  %v725_v14 = vrot.slane %v13798_v48, 4  ;;  %419 = vst [vmem:[#allocation2 + $0xc8] sm:$0x1] %v418_v13 }
 0x17f   : > { %v11375_v41 = vpop.f32.mrb[13].mxu0  ;;  %v11490_v50 = vpop.f32.mrb[15].mxu1  ;;  %v2184_v16 = vor.u32 %v2183_v11, %v2179_v1  ;;  %v2980_v40 = vshrl.u32 %v13880_v5, 16  ;;  %v2455_v10 = vrot.slane %v13896_v33, 1  ;;  %v2992_v1 = vshrl.u32 %v13893_v27, 16  ;;  %v12771_v5 = vld [vmem:[#allocation9] sm:$0xff]  }
 0x180   : > { %v11376_v42 = vadd.f32 %v11375_v41, %v11374_v34  ;;  %v11377_v57 = vpop.f32.mrb[14].mxu0  ;;  %4477 = vmatmul.mubr.bf16.gmra.mrb[116].mxu0 %v2177_v45  ;;  %v11491_v58 = vadd.f32 %v11490_v50, %v11489_v44  ;;  %v2984_v41 = vrot.slane %v2982_v18, 1  ;;  %v12736_v44 = vld [vmem:[#allocation2 + $0xd4] ss:$0 sps:$4 sm:$0x11]   ;;  %v2994_v50 = vshll.u32 %v13893_v27, 16  ;;  %11813 = vmatpush3.bf16.msra.mxu1 %v12771_v5 }
 0x181   : > { %v11378_v47 = vpop.f32.mrb[15].mxu0  ;;  %4484 = vmatprep.mubr.bf16.mxu0 %v2454_v9  ;;  %v2189_v52 = vsel %vm1208_vm2, %v2184_v16, %v2188_v17  ;;  %v2999_v51 = vshll.u32 %v12736_v44, 16  ;;  %v12739_v11 = vld [vmem:[#allocation2 + $0x20] ss:$0 sps:$4 sm:$0x11]   ;;  %v2195_v13 = vrot.slane %v2193_v49, 1 }
 0x182   : > { %v4077_v53 = vadd.f32 %v11376_v42, %v13847_v25  ;;  %v11379_v54 = vadd.f32 %v11378_v47, %v11377_v57  ;;  %v2191_v42 = vshrl.u32 %v13891_v24, 16  ;;  %v2996_v17 = vrot.slane %v2994_v50, 1  ;;  %v12743_v33 = vld [vmem:[#allocation2 + $0x38] ss:$0 sps:$4 sm:$0x11]  }
 0x183   : > { %v3001_v18 = vrot.slane %v2999_v51, 1  ;;  %v3211_v27 = vrot.slane %v12738_v4, 1  ;;  %v12740_v51 = vld [vmem:[#allocation2 + $0x24] sm:$0xfe]   ;;  %v12742_v4 = vld [vmem:[#allocation2 + $0x30] sm:$0xfe]  }
 0x184   : > { %v4080_v30 = vadd.f32 %v11379_v54, %v13847_v25  ;;  %v13882_v7 = vadd.f32 %v11488_v43, %v4077_v53  ;;  %v11492_v21 = vpop.f32.mrb[16].mxu1  ;;  %v2196_v49 = vor.u32 %v2195_v13, %v2191_v42 }
 0x185   : > { %v11493_v23 = vpop.f32.mrb[17].mxu1  ;;  %v885_v57 = vld [vmem:[#allocation2 + $0xc8] sm:$0x1] }
 0x186   : > { %v13888_v15 = vadd.f32 %v11491_v58, %v4080_v30  ;;  %v11380_v20 = vpop.f32.mrb[16].mxu0  ;;  %v11494_v29 = vadd.f32 %v11493_v23, %v11492_v21  ;;  %v11495_v32 = vpop.f32.mrb[18].mxu1  ;;  %v886_v47 = vsel %vm13517_vm5, %v725_v14, %v885_v57 }
 0x187   : > { %v11381_v22 = vpop.f32.mrb[17].mxu0  ;;  %v11496_v36 = vpop.f32.mrb[19].mxu1  ;;  %887 = vst [vmem:[#allocation2 + $0xc8] sm:$0x1] %v886_v47 }
 0x188   : > { %v11382_v28 = vadd.f32 %v11381_v22, %v11380_v20  ;;  %v11383_v48 = vpop.f32.mrb[18].mxu0  ;;  %4485 = vmatmul.mubr.bf16.gmra.mrb[120].mxu0 %v2189_v52  ;;  %v11497_v37 = vadd.f32 %v11496_v36, %v11495_v32  ;;  %v2985_v32 = vor.u32 %v2984_v41, %v2980_v40  ;;  %v12730_v36 = vld [vmem:[#allocation2 + $0xc0] sm:$0xff]   ;;  %v12741_v41 = vld [vmem:[#allocation2 + $0x2c] ss:$0 sps:$4 sm:$0x11]  }
 0x189   : > { %v11384_v34 = vpop.f32.mrb[19].mxu0 }
 0x18a   : > { %v4085_v31 = vadd.f32 %v11382_v28, %v13847_v25  ;;  %v11385_v35 = vadd.f32 %v11384_v34, %v11383_v48 }
 0x18c   : > { %v4088_v43 = vadd.f32 %v11385_v35, %v13847_v25  ;;  %v13903_v46 = vadd.f32 %v11494_v29, %v4085_v31  ;;  %v11498_v54 = vpop.f32.mrb[20].mxu1  ;;  %v3212_v29 = vrot.slane %v12739_v11, 1  ;;  %v2997_v35 = vor.u32 %v2996_v17, %v2992_v1 }
 0x18d   : > { %v11499_v0 = vpop.f32.mrb[21].mxu1 }
 0x18e   : > { %v11386_v45 = vpop.f32.mrb[20].mxu0  ;;  %v13909_v58 = vadd.f32 %v11497_v37, %v4088_v43  ;;  %v11500_v60 = vadd.f32 %v11499_v0, %v11498_v54  ;;  %v11501_v3 = vpop.f32.mrb[22].mxu1  ;;  %v12729_v24 = vld [vmem:[#allocation2 + $0xc8] ss:$0 sps:$4 sm:$0x11]  }
 0x18f   : > { %v11387_v53 = vpop.f32.mrb[21].mxu0  ;;  %v11502_v12 = vpop.f32.mrb[23].mxu1  ;;  %v12732_v48 = vld [vmem:[#allocation2 + $0xc8] ss:$0 sps:$4 sm:$0x11]   ;;  %v2987_v34 = vshll.u32 %v12729_v24, 16 }
 0x190   : > { %v11388_v61 = vadd.f32 %v11387_v53, %v11386_v45  ;;  %v11389_v63 = vpop.f32.mrb[22].mxu0  ;;  %v11503_v14 = vadd.f32 %v11502_v12, %v11501_v3  ;;  %v12734_v31 = vld [vmem:[#allocation2 + $0xc8] ss:$0 sps:$4 sm:$0x11]   ;;  %v2456_v37 = vrot.slane %v12732_v48, 1  ;;  %v12772_v45 = vld [vmem:[#allocation9 + $0x48] sm:$0xff]  }
 0x191   : > { %v11390_v30 = vpop.f32.mrb[23].mxu0  ;;  %v2989_v47 = vrot.slane %v2987_v34, 1  ;;  %v2198_v50 = vshll.u32 %v12734_v31, 16  ;;  %11814 = vmatprep.subr.bf16.mxu1 %v12772_v45  ;;  %v3218_v24 = vrot.slane %v12743_v33, 1  ;;  %v12773_v48 = vld [vmem:[#allocation9 + $0x8] sm:$0xff]  }
 0x192   : > { %v4093_v8 = vadd.f32 %v11388_v61, %v13847_v25  ;;  %v11391_v9 = vadd.f32 %v11390_v30, %v11389_v63  ;;  %v2457_v40 = vsel %vm1609_vm10, %v2455_v10, %v2456_v37  ;;  %v3002_v30 = vsel %vm1208_vm2, %v2997_v35, %v3001_v18  ;;  %v12745_v34 = vld [vmem:[#allocation2 + $0x44] ss:$0 sps:$4 sm:$0x11]   ;;  %11815 = vmatpush3.bf16.msra.mxu1 %v12773_v48  ;;  %v12775_v48 = vld [vmem:[#allocation9 + $0x10] sm:$0xff]  }
 0x193   : > { %v2990_v0 = vsel %vm1208_vm2, %v2985_v32, %v2989_v47  ;;  %4492 = vmatprep.mubr.bf16.mxu0 %v2457_v40  ;;  %v2200_v1 = vrot.slane %v2198_v50, 1  ;;  %v12744_v32 = vld [vmem:[#allocation2 + $0x3c] sm:$0xfe]  }
 0x194   : > { %v4096_v20 = vadd.f32 %v11391_v9, %v13847_v25  ;;  %v13914_v21 = vadd.f32 %v11500_v60, %v4093_v8  ;;  %v11504_v23 = vpop.f32.mrb[24].mxu1  ;;  %4645 = vmatprep.mubr.bf16.mxu1 %v2990_v0  ;;  %v3213_v60 = vsel %vm1609_vm10, %v3211_v27, %v3212_v29  ;;  %v12737_v29 = vld [vmem:[#allocation2 + $0xcc] sm:$0xff]  }
 0x195   : > { %v11505_v44 = vpop.f32.mrb[25].mxu1  ;;  %4646 = vmatmul.mubr.bf16.gmra.mrb[120].mxu1 %v12730_v36  ;;  %v2201_v10 = vsel %vm1208_vm2, %v2196_v49, %v2200_v1 }
 0x196   : > { %v11392_v16 = vpop.f32.mrb[24].mxu0  ;;  %v13916_v28 = vadd.f32 %v11503_v14, %v4096_v20  ;;  %v11506_v54 = vadd.f32 %v11505_v44, %v11504_v23  ;;  %v11507_v55 = vpop.f32.mrb[26].mxu1  ;;  %4493 = vmatmul.mubr.bf16.gmra.mrb[124].mxu0 %v2201_v10  ;;  %4653 = vmatprep.mubr.bf16.mxu1 %v3002_v30  ;;  %v3214_v14 = vrot.slane %v12740_v51, 1  ;;  %v3217_v23 = vrot.slane %v12742_v4, 1 }
 0x197   : > { %v11393_v22 = vpop.f32.mrb[25].mxu0  ;;  %v11508_v63 = vpop.f32.mrb[27].mxu1  ;;  %12300 = vmatprep.mubr.bf16.mxu0 %v3213_v60  ;;  %v3221_v60 = vrot.slane %v12745_v34, 1 }
 0x198   : > { %v11394_v52 = vadd.f32 %v11393_v22, %v11392_v16  ;;  %v11395_v43 = vpop.f32.mrb[26].mxu0  ;;  %v11509_v42 = vadd.f32 %v11508_v63, %v11507_v55  ;;  %v3215_v16 = vrot.slane %v12741_v41, 1  ;;  %v3219_v51 = vsel %vm1609_vm10, %v3217_v23, %v3218_v24 }
 0x199   : > { %v11396_v53 = vpop.f32.mrb[27].mxu0 }
 0x19a   : > { %v4101_v57 = vadd.f32 %v11394_v52, %v13847_v25  ;;  %v11397_v61 = vadd.f32 %v11396_v53, %v11395_v43  ;;  %v12747_v43 = vld [vmem:[#allocation2 + $0x50] ss:$0 sps:$4 sm:$0x11]   ;;  %v3216_v44 = vsel %vm1609_vm10, %v3214_v14, %v3215_v16 }
 0x19b   : > { %v3224_v10 = vrot.slane %v12747_v43, 1 }
 0x19c   : > { %v4104_v3 = vadd.f32 %v11397_v61, %v13847_v25  ;;  %v13926_v5 = vadd.f32 %v11506_v54, %v4101_v57  ;;  %v11510_v9 = vpop.f32.mrb[28].mxu1  ;;  %v12746_v57 = vld [vmem:[#allocation2 + $0x48] sm:$0xfe]  }
 0x19d   : > { %v11511_v12 = vpop.f32.mrb[29].mxu1  ;;  %4654 = vmatmul.mubr.bf16.gmra.mrb[124].mxu1 %v12737_v29 }
 0x19e   : > { %v11398_v8 = vpop.f32.mrb[28].mxu0  ;;  %v13929_v13 = vadd.f32 %v11509_v42, %v4104_v3  ;;  %v11512_v20 = vadd.f32 %v11511_v12, %v11510_v9  ;;  %v11513_v22 = vpop.f32.mrb[30].mxu1  ;;  %12301 = vmatmul.mubr.bf16.vlgmr.msra.gmra.mrb[128].mxu0 %v3216_v44  ;;  %v3220_v42 = vrot.slane %v12744_v32, 1  ;;  %v3223_v3 = vrot.slane %v12746_v57, 1  ;;  %v12750_v32 = vld [vmem:[#allocation2 + $0x60] sm:$0xfe]  }
 0x19f   : > { %v11399_v11 = vpop.f32.mrb[29].mxu0  ;;  %v11514_v52 = vpop.f32.mrb[31].mxu1  ;;  %12304 = vmatprep.mubr.bf16.mxu0 %v3219_v51  ;;  %v12749_v9 = vld [vmem:[#allocation2 + $0x5c] ss:$0 sps:$4 sm:$0x11]  }
 0x1a0   : > { %v11400_v17 = vadd.f32 %v11399_v11, %v11398_v8  ;;  %v11401_v18 = vpop.f32.mrb[30].mxu0  ;;  %v11515_v35 = vadd.f32 %v11514_v52, %v11513_v22  ;;  %v12748_v8 = vld [vmem:[#allocation2 + $0x54] sm:$0xfe]   ;;  %v12774_v22 = vld [vmem:[#allocation9 + $0x50] sm:$0xff]   ;;  %v3222_v29 = vsel %vm1609_vm10, %v3220_v42, %v3221_v60 }
 0x1a1   : > { %v11402_v27 = vpop.f32.mrb[31].mxu0  ;;  %11816 = vmatprep.subr.bf16.mxu1 %v12774_v22  ;;  %v12751_v57 = vld [vmem:[#allocation2 + $0x68] ss:$0 sps:$4 sm:$0x11]  }
 0x1a2   : > { %v4109_v36 = vadd.f32 %v11400_v17, %v13847_v25  ;;  %v11403_v31 = vadd.f32 %v11402_v27, %v11401_v18  ;;  %11817 = vmatpush3.bf16.msra.mxu1 %v12775_v48  ;;  %v3230_v42 = vrot.slane %v12751_v57, 1 }
 0x1a4   : > { %v4112_v45 = vadd.f32 %v11403_v31, %v13847_v25  ;;  %v11516_v49 = vpop.f32.mrb[32].mxu1  ;;  %v13934_v50 = vadd.f32 %v11512_v20, %v4109_v36 }
 0x1a5   : > { %v11517_v55 = vpop.f32.mrb[33].mxu1 }
 0x1a6   : > { %v11404_v37 = vpop.f32.mrb[32].mxu0  ;;  %v11518_v41 = vadd.f32 %v11517_v55, %v11516_v49  ;;  %v11519_v61 = vpop.f32.mrb[34].mxu1  ;;  %v13937_v63 = vadd.f32 %v11515_v35, %v4112_v45  ;;  %12305 = vmatmul.mubr.bf16.gmra.mrb[132].mxu0 %v3222_v29  ;;  %v12752_v55 = vld [vmem:[#allocation2 + $0x6c] sm:$0xfe]  }
 0x1a7   : > { %v11405_v47 = vpop.f32.mrb[33].mxu0  ;;  %v11520_v30 = vpop.f32.mrb[35].mxu1 }
 0x1a8   : > { %v11406_v53 = vadd.f32 %v11405_v47, %v11404_v37  ;;  %v11407_v54 = vpop.f32.mrb[34].mxu0  ;;  %v11521_v4 = vadd.f32 %v11520_v30, %v11519_v61  ;;  %v3225_v37 = vsel %vm1609_vm10, %v3223_v3, %v3224_v10  ;;  %v3229_v30 = vrot.slane %v12750_v32, 1  ;;  %v12755_v10 = vld [vmem:[#allocation2 + $0x80] ss:$0 sps:$4 sm:$0x11]  }
 0x1a9   : > { %v11408_v40 = vpop.f32.mrb[35].mxu0  ;;  %12308 = vmatprep.mubr.bf16.mxu0 %v3225_v37 }
 0x1aa   : > { %v4117_v0 = vadd.f32 %v11406_v53, %v13847_v25  ;;  %v11409_v1 = vadd.f32 %v11408_v40, %v11407_v54  ;;  %v3226_v53 = vrot.slane %v12748_v8, 1  ;;  %v3227_v54 = vrot.slane %v12749_v9, 1  ;;  %v12753_v40 = vld [vmem:[#allocation2 + $0x74] ss:$0 sps:$4 sm:$0x11]  }
 0x1ab   : > { %v3231_v22 = vsel %vm1609_vm10, %v3229_v30, %v3230_v42  ;;  %v3233_v29 = vrot.slane %v12753_v40, 1  ;;  %v13970_v30 = vld [vmem:[#allocation2 + $0x9c] sm:$0xfe]   ;;  %v13972_v42 = vld [vmem:[#allocation2 + $0xa4] ss:$0 sps:$4 sm:$0x11]  }
 0x1ac   : > { %v4120_v11 = vadd.f32 %v11409_v1, %v13847_v25  ;;  %v13941_v12 = vadd.f32 %v11518_v41, %v4117_v0  ;;  %v11522_v16 = vpop.f32.mrb[36].mxu1 }
 0x1ad   : > { %v11523_v20 = vpop.f32.mrb[37].mxu1 }
 0x1ae   : > { %v11410_v33 = vpop.f32.mrb[36].mxu0  ;;  %v13943_v23 = vadd.f32 %v11521_v4, %v4120_v11  ;;  %v11524_v27 = vadd.f32 %v11523_v20, %v11522_v16  ;;  %v11525_v52 = vpop.f32.mrb[38].mxu1 }
 0x1af   : > { %v11411_v14 = vpop.f32.mrb[37].mxu0  ;;  %v11526_v31 = vpop.f32.mrb[39].mxu1 }
 0x1b0   : > { %v11412_v17 = vadd.f32 %v11411_v14, %v11410_v33  ;;  %v11413_v18 = vpop.f32.mrb[38].mxu0  ;;  %v11527_v43 = vadd.f32 %v11526_v31, %v11525_v52  ;;  %v12754_v33 = vld [vmem:[#allocation2 + $0x78] sm:$0xfe]  }
 0x1b1   : > { %v11414_v24 = vpop.f32.mrb[39].mxu0  ;;  %v3235_v32 = vrot.slane %v12754_v33, 1 }
 0x1b2   : > { %v4125_v34 = vadd.f32 %v11412_v17, %v13847_v25  ;;  %v11415_v36 = vadd.f32 %v11414_v24, %v11413_v18  ;;  %v3228_v17 = vsel %vm1609_vm10, %v3226_v53, %v3227_v54  ;;  %v3232_v24 = vrot.slane %v12752_v55, 1  ;;  %v13965_v53 = vld [vmem:[%s15075_s2] ss:$0 sm:$0xff] }
 0x1b3   : > { %12309 = vmatmul.mubr.bf16.gmra.mrb[136].mxu0 %v3228_v17 }
 0x1b4   : > { %v4128_v45 = vadd.f32 %v11415_v36, %v13847_v25  ;;  %v13949_v47 = vadd.f32 %v11524_v27, %v4125_v34  ;;  %12312 = vmatprep.mubr.bf16.mxu0 %v3231_v22 }
 0x1b6   : > { %v13951_v41 = vadd.f32 %v11527_v43, %v4128_v45  ;;  %v12756_v45 = vld [vmem:[#allocation2 + $0x84] sm:$0xfe]  }
 0x1b7   : > { %v11528_v0 = vpop.f32.mrb[40].mxu1 }
 0x1b8   : > { %v11529_v3 = vpop.f32.mrb[41].mxu1 }
 0x1b9   : > { %v11416_v35 = vpop.f32.mrb[40].mxu0  ;;  %v11530_v11 = vadd.f32 %v11529_v3, %v11528_v0  ;;  %v11531_v14 = vpop.f32.mrb[42].mxu1  ;;  %v12759_v0 = vld [vmem:[#allocation2 + $0x98] ss:$0 sps:$4 sm:$0x11]  }
 0x1ba   : > { %v11417_v44 = vpop.f32.mrb[41].mxu0  ;;  %v11532_v9 = vpop.f32.mrb[43].mxu1  ;;  %v13976_v3 = vld [vmem:[#allocation2 + $0xb0] ss:$0 sps:$4 sm:$0x11]  }
 0x1bb   : > { %v11418_v49 = vadd.f32 %v11417_v44, %v11416_v35  ;;  %v11419_v51 = vpop.f32.mrb[42].mxu0  ;;  %v11533_v20 = vadd.f32 %v11532_v9, %v11531_v14  ;;  %v3236_v35 = vrot.slane %v12755_v10, 1  ;;  %v3234_v14 = vsel %vm1609_vm10, %v3232_v24, %v3233_v29  ;;  %v13981_v9 = vld [vmem:[#allocation2 + $0xb4] sm:$0xfe]  }
 0x1bc   : > { %v11420_v1 = vpop.f32.mrb[43].mxu0  ;;  %v12767_v24 = vld [vmem:[#allocation2 + $0xc8] ss:$0 sps:$4 sm:$0x11]   ;;  %12313 = vmatmul.mubr.bf16.gmra.mrb[140].mxu0 %v3234_v14 }
 0x1bd   : > { %v4133_v61 = vadd.f32 %v11418_v49, %v13847_v25  ;;  %v11421_v60 = vadd.f32 %v11420_v1, %v11419_v51  ;;  %v12757_v49 = vld [vmem:[#allocation2 + $0x8c] ss:$0 sps:$4 sm:$0x11]  }
 0x1bf   : > { %v4136_v8 = vadd.f32 %v11421_v60, %v13847_v25  ;;  %v13956_v18 = vadd.f32 %v11530_v11, %v4133_v61  ;;  %v11534_v48 = vpop.f32.mrb[44].mxu1  ;;  %v12758_v61 = vld [vmem:[#allocation2 + $0x90] sm:$0xfe]   ;;  %v13974_v60 = vld [vmem:[#allocation2 + $0xa8] sm:$0xfe]  }
 0x1c0   : > { %v11535_v31 = vpop.f32.mrb[45].mxu1  ;;  %v12776_v11 = vld [vmem:[#allocation9 + $0x58] sm:$0xff]  }
 0x1c1   : > { %v11422_v4 = vpop.f32.mrb[44].mxu0  ;;  %v13959_v34 = vadd.f32 %v11533_v20, %v4136_v8  ;;  %v11536_v43 = vadd.f32 %v11535_v31, %v11534_v48  ;;  %v11537_v44 = vpop.f32.mrb[46].mxu1  ;;  %v3238_v8 = vrot.slane %v12756_v45, 1  ;;  %v3237_v48 = vsel %vm1609_vm10, %v3235_v32, %v3236_v35  ;;  %11818 = vmatprep.subr.bf16.mxu1 %v12776_v11 }
 0x1c2   : > { %v11423_v16 = vpop.f32.mrb[45].mxu0  ;;  %v11538_v51 = vpop.f32.mrb[47].mxu1  ;;  %12316 = vmatprep.mubr.bf16.mxu0 %v3237_v48  ;;  %v3241_v45 = vrot.slane %v12758_v61, 1  ;;  %v3244_v32 = vrot.slane %v13970_v30, 1  ;;  %v3245_v35 = vrot.slane %v13972_v42, 1 }
 0x1c3   : > { %v11424_v27 = vadd.f32 %v11423_v16, %v11422_v4  ;;  %v11425_v52 = vpop.f32.mrb[46].mxu0  ;;  %v11539_v40 = vadd.f32 %v11538_v51, %v11537_v44  ;;  %v13983_v16 = vld [vmem:[#allocation2 + $0xbc] ss:$0 sps:$4 sm:$0x11]   ;;  %v3242_v51 = vrot.slane %v12759_v0, 1  ;;  %v3254_v0 = vrot.slane %v12767_v24, 1 }
 0x1c4   : > { %v11426_v36 = vpop.f32.mrb[47].mxu0 }
 0x1c5   : > { %v4141_v37 = vadd.f32 %v11424_v27, %v13847_v25  ;;  %v11427_v57 = vadd.f32 %v11426_v36, %v11425_v52  ;;  %v12777_v52 = vld [vmem:[#allocation9 + $0x18] sm:$0xff]   ;;  %v3239_v36 = vrot.slane %v12757_v49, 1  ;;  %v3247_v49 = vrot.slane %v13974_v60, 1  ;;  %v12778_v60 = vld [vmem:[#allocation9 + $0x60] sm:$0xff]  }
 0x1c6   : > { %11819 = vmatpush3.bf16.msra.mxu1 %v12777_v52  ;;  %v3243_v14 = vsel %vm1609_vm10, %v3241_v45, %v3242_v51  ;;  %v12768_v52 = vld [vmem:[#allocation2 + $0xcc] sm:$0xfe]  }
 0x1c7   : > { %v4144_v54 = vadd.f32 %v13965_v53, %v11427_v57  ;;  %v13968_v55 = vadd.f32 %v11536_v43, %v4141_v37  ;;  %v11540_v1 = vpop.f32.mrb[48].mxu1  ;;  %v13987_v43 = vld [vmem:[#allocation2 + $0xc0] sm:$0xfe]   ;;  %v3240_v11 = vsel %vm1609_vm10, %v3238_v8, %v3239_v36  ;;  %11820 = vmatprep.subr.bf16.mxu1 %v12778_v60  ;;  %v3246_v8 = vsel %vm1609_vm10, %v3244_v32, %v3245_v35 }
 0x1c8   : > { %v11541_v10 = vpop.f32.mrb[49].mxu1  ;;  %v3253_v61 = vrot.slane %v13987_v43, 1  ;;  %12317 = vmatmul.mubr.bf16.gmra.mrb[144].mxu0 %v3240_v11  ;;  %v3256_v51 = vrot.slane %v12768_v52, 1 }
 0x1c9   : > { %v11428_v25 = vpop.f32.mrb[48].mxu0  ;;  %v13978_v4 = vadd.f32 %v11539_v40, %v4144_v54  ;;  %v11542_v22 = vadd.f32 %v11541_v10, %v11540_v1  ;;  %v11543_v27 = vpop.f32.mrb[50].mxu1  ;;  %v3250_v1 = vrot.slane %v13981_v9, 1  ;;  %12320 = vmatprep.mubr.bf16.mxu0 %v3243_v14 }
 0x1ca   : > { %v11429_v33 = vpop.f32.mrb[49].mxu0  ;;  %v11544_v29 = vpop.f32.mrb[51].mxu1 }
 0x1cb   : > { %v11430_v17 = vadd.f32 %v11429_v33, %v11428_v25  ;;  %v11431_v20 = vpop.f32.mrb[50].mxu0  ;;  %v11545_v44 = vadd.f32 %v11544_v29, %v11543_v27  ;;  %v3248_v25 = vrot.slane %v13976_v3, 1  ;;  %v3251_v33 = vrot.slane %v13983_v16, 1 }
 0x1cc   : > { %v11432_v31 = vpop.f32.mrb[51].mxu0 }
 0x1cd   : > { %v4149_v37 = vadd.f32 %v13965_v53, %v11430_v17  ;;  %v11433_v57 = vadd.f32 %v11432_v31, %v11431_v20  ;;  %v12779_v17 = vld [vmem:[#allocation9 + $0x20] sm:$0xff]   ;;  %v3249_v43 = vsel %vm1609_vm10, %v3247_v49, %v3248_v25 }
 0x1ce   : > { %11821 = vmatpush3.bf16.msra.mxu1 %v12779_v17  ;;  %v3255_v17 = vsel %vm1609_vm10, %v3253_v61, %v3254_v0 }
 0x1cf   : > { %v4152_v54 = vadd.f32 %v13965_v53, %v11433_v57  ;;  %v13990_v40 = vadd.f32 %v11542_v22, %v4149_v37 }
 0x1d0   : > { %v11546_v42 = vpop.f32.mrb[52].mxu1  ;;  %12321 = vmatmul.mubr.bf16.gmra.mrb[148].mxu0 %v3246_v8 }
 0x1d1   : > { %v13998_v10 = vadd.f32 %v11545_v44, %v4152_v54  ;;  %v11547_v20 = vpop.f32.mrb[53].mxu1  ;;  %v12769_v44 = vld [vmem:[#allocation2 + $0xd4] ss:$0 sps:$4 sm:$0x11]   ;;  %12324 = vmatprep.mubr.bf16.mxu0 %v3249_v43 }
 0x1d2   : > { %v11434_v30 = vpop.f32.mrb[52].mxu0  ;;  %v11548_v16 = vadd.f32 %v11547_v20, %v11546_v42  ;;  %v11549_v27 = vpop.f32.mrb[54].mxu1  ;;  %v3252_v42 = vsel %vm1609_vm10, %v3250_v1, %v3251_v33  ;;  %v12780_v1 = vld [vmem:[#allocation9 + $0x68] sm:$0xff]  }
 0x1d3   : > { %v11435_v3 = vpop.f32.mrb[53].mxu0  ;;  %v11550_v31 = vpop.f32.mrb[55].mxu1  ;;  %v12781_v33 = vld [vmem:[#allocation9 + $0x28] sm:$0xff]   ;;  %11822 = vmatprep.subr.bf16.mxu1 %v12780_v1 }
 0x1d4   : > { %v11436_v9 = vadd.f32 %v11435_v3, %v11434_v30  ;;  %v11437_v22 = vpop.f32.mrb[54].mxu0  ;;  %v11551_v57 = vadd.f32 %v11550_v31, %v11549_v27  ;;  %v3257_v3 = vrot.slane %v12769_v44, 1  ;;  %11823 = vmatpush3.bf16.msra.mxu1 %v12781_v33 }
 0x1d5   : > { %v11438_v48 = vpop.f32.mrb[55].mxu0 }
 0x1d6   : > { %v4157_v36 = vadd.f32 %v13965_v53, %v11436_v9  ;;  %v11439_v37 = vadd.f32 %v11438_v48, %v11437_v22  ;;  %v3258_v31 = vsel %vm1609_vm10, %v3256_v51, %v3257_v3 }
 0x1d8   : > { %v4160_v24 = vadd.f32 %v13965_v53, %v11439_v37  ;;  %v14007_v29 = vadd.f32 %v11548_v16, %v4157_v36  ;;  %12325 = vmatmul.mubr.bf16.gmra.mrb[152].mxu0 %v3252_v42 }
 0x1d9   : > { %v11552_v54 = vpop.f32.mrb[56].mxu1  ;;  %12328 = vmatprep.mubr.bf16.mxu0 %v3255_v17 }
 0x1da   : > { %v14009_v45 = vadd.f32 %v11551_v57, %v4160_v24  ;;  %v11553_v14 = vpop.f32.mrb[57].mxu1 }
 0x1db   : > { %v11440_v11 = vpop.f32.mrb[56].mxu0  ;;  %v11554_v35 = vadd.f32 %v11553_v14, %v11552_v54  ;;  %v11555_v30 = vpop.f32.mrb[58].mxu1 }
 0x1dc   : > { %v11441_v32 = vpop.f32.mrb[57].mxu0  ;;  %v11556_v25 = vpop.f32.mrb[59].mxu1 }
 0x1dd   : > { %v11442_v60 = vadd.f32 %v11441_v32, %v11440_v11  ;;  %v11443_v49 = vpop.f32.mrb[58].mxu0  ;;  %v11557_v9 = vadd.f32 %v11556_v25, %v11555_v30 }
 0x1de   : > { %v11444_v20 = vpop.f32.mrb[59].mxu0 }
 0x1df   : > { %v4165_v22 = vadd.f32 %v13965_v53, %v11442_v60  ;;  %v11445_v16 = vadd.f32 %v11444_v20, %v11443_v49 }
 0x1e0   : > { %12329 = vmatmul.mubr.bf16.gmra.mrb[156].mxu0 %v3258_v31 }
 0x1e1   : > { %v4168_v27 = vadd.f32 %v13965_v53, %v11445_v16  ;;  %v14015_v52 = vadd.f32 %v11554_v35, %v4165_v22  ;;  %v11558_v0 = vpop.f32.mrb[60].mxu1 }
 0x1e2   : > { %v11559_v36 = vpop.f32.mrb[61].mxu1 }
 0x1e3   : > { %v14017_v48 = vadd.f32 %v11557_v9, %v4168_v27  ;;  %v11446_v61 = vpop.f32.mrb[60].mxu0  ;;  %v11560_v43 = vadd.f32 %v11559_v36, %v11558_v0  ;;  %v11561_v24 = vpop.f32.mrb[62].mxu1 }
 0x1e4   : > { %v11447_v8 = vpop.f32.mrb[61].mxu0  ;;  %v11562_v54 = vpop.f32.mrb[63].mxu1 }
 0x1e5   : > { %v11448_v37 = vadd.f32 %v11447_v8, %v11446_v61  ;;  %v11449_v57 = vpop.f32.mrb[62].mxu0  ;;  %v11563_v32 = vadd.f32 %v11562_v54, %v11561_v24 }
 0x1e6   : > { %v11450_v44 = vpop.f32.mrb[63].mxu0 }
 0x1e7   : > { %v4173_v11 = vadd.f32 %v13965_v53, %v11448_v37  ;;  %v11451_v14 = vadd.f32 %v11450_v44, %v11449_v57 }
 0x1e9   : > { %v4176_v35 = vadd.f32 %v13965_v53, %v11451_v14  ;;  %v14022_v51 = vadd.f32 %v11560_v43, %v4173_v11  ;;  %v11692_v60 = vpop.f32.mrb[64].mxu1 }
 0x1ea   : > { %v11693_v25 = vpop.f32.mrb[65].mxu1 }
 0x1eb   : > { %v14024_v30 = vadd.f32 %v11563_v32, %v4176_v35  ;;  %v11580_v42 = vpop.f32.mrb[64].mxu0  ;;  %v11694_v20 = vadd.f32 %v11693_v25, %v11692_v60  ;;  %v11695_v9 = vpop.f32.mrb[66].mxu1  ;;  %v12784_v35 = vld [vmem:[#allocation9 + $0xc0] sm:$0xff]  }
 0x1ec   : > { %v11581_v49 = vpop.f32.mrb[65].mxu0  ;;  %v11696_v16 = vpop.f32.mrb[67].mxu1  ;;  %v12785_v60 = vld [vmem:[#allocation9 + $0x80] sm:$0xff]   ;;  %11924 = vmatprep.subr.bf16.mxu0 %v12784_v35 }
 0x1ed   : > { %v11582_v17 = vadd.f32 %v11581_v49, %v11580_v42  ;;  %v11583_v3 = vpop.f32.mrb[66].mxu0  ;;  %v11697_v33 = vadd.f32 %v11696_v16, %v11695_v9  ;;  %v12782_v9 = vld [vmem:[#allocation9 + $0x70] sm:$0xff]   ;;  %11925 = vmatpush3.bf16.msra.mxu0 %v12785_v60 }
 0x1ee   : > { %v11584_v22 = vpop.f32.mrb[67].mxu0  ;;  %11824 = vmatprep.subr.bf16.mxu1 %v12782_v9 }
 0x1ef   : > { %v4375_v27 = vadd.f32 %v11582_v17, %v13853_v56  ;;  %v11585_v1 = vadd.f32 %v11584_v22, %v11583_v3  ;;  %v12783_v22 = vld [vmem:[#allocation9 + $0x30] sm:$0xff]  }
 0x1f0   : > { %11825 = vmatpush3.bf16.msra.mxu1 %v12783_v22 }
 0x1f1   : > { %v4378_v53 = vadd.f32 %v11585_v1, %v13856_v62  ;;  %v14028_v31 = vadd.f32 %v11694_v20, %v4375_v27  ;;  %v11698_v0 = vpop.f32.mrb[68].mxu1 }
 0x1f2   : > { %v11699_v37 = vpop.f32.mrb[69].mxu1 }
 0x1f3   : > { %v11586_v61 = vpop.f32.mrb[68].mxu0  ;;  %v14030_v8 = vadd.f32 %v11697_v33, %v4378_v53  ;;  %v11700_v24 = vadd.f32 %v11699_v37, %v11698_v0  ;;  %v11701_v44 = vpop.f32.mrb[70].mxu1  ;;  %v12786_v33 = vld [vmem:[#allocation9 + $0xc8] sm:$0xff]  }
 0x1f4   : > { %v11587_v36 = vpop.f32.mrb[69].mxu0  ;;  %v11702_v11 = vpop.f32.mrb[71].mxu1  ;;  %11926 = vmatprep.subr.bf16.mxu0 %v12786_v33 }
 0x1f5   : > { %v11588_v57 = vadd.f32 %v11587_v36, %v11586_v61  ;;  %v11589_v43 = vpop.f32.mrb[70].mxu0  ;;  %v11703_v32 = vadd.f32 %v11702_v11, %v11701_v44  ;;  %v12787_v61 = vld [vmem:[#allocation9 + $0x88] sm:$0xff]   ;;  %v12789_v44 = vld [vmem:[#allocation9 + $0x90] sm:$0xff]  }
 0x1f6   : > { %v11590_v54 = vpop.f32.mrb[71].mxu0  ;;  %11927 = vmatpush3.bf16.msra.mxu0 %v12787_v61 }
 0x1f7   : > { %v4383_v56 = vadd.f32 %v11588_v57, %v13862_v39  ;;  %v11591_v14 = vadd.f32 %v11590_v54, %v11589_v43  ;;  %v12788_v43 = vld [vmem:[#allocation9 + $0xd0] sm:$0xff]  }
 0x1f8   : > { %11928 = vmatprep.subr.bf16.mxu0 %v12788_v43 }
 0x1f9   : > { %v4386_v62 = vadd.f32 %v11591_v14, %v13865_v2  ;;  %v14034_v42 = vadd.f32 %v11700_v24, %v4383_v56  ;;  %v11704_v25 = vpop.f32.mrb[72].mxu1 }
 0x1fa   : > { %v11705_v20 = vpop.f32.mrb[73].mxu1  ;;  %11929 = vmatpush3.bf16.msra.mxu0 %v12789_v44 }
 0x1fb   : > { %v11592_v49 = vpop.f32.mrb[72].mxu0  ;;  %v14036_v17 = vadd.f32 %v11703_v32, %v4386_v62  ;;  %v11706_v27 = vadd.f32 %v11705_v20, %v11704_v25  ;;  %v11707_v1 = vpop.f32.mrb[74].mxu1 }
 0x1fc   : > { %v11593_v3 = vpop.f32.mrb[73].mxu0  ;;  %v11708_v53 = vpop.f32.mrb[75].mxu1 }
 0x1fd   : > { %v11594_v16 = vadd.f32 %v11593_v3, %v11592_v49  ;;  %v11595_v39 = vpop.f32.mrb[74].mxu0  ;;  %v11709_v37 = vadd.f32 %v11708_v53, %v11707_v1  ;;  %v12790_v49 = vld [vmem:[#allocation9 + $0xd8] sm:$0xff]   ;;  %v12795_v53 = vld [vmem:[#allocation9 + $0xa0] sm:$0xff]  }
 0x1fe   : > { %v11596_v2 = vpop.f32.mrb[75].mxu0  ;;  %11930 = vmatprep.subr.bf16.mxu0 %v12790_v49 }
 0x1ff   : > { %v4391_v0 = vadd.f32 %v11594_v16, %v13870_v19  ;;  %v11597_v36 = vadd.f32 %v11596_v2, %v11595_v39 }
 0x201   : > { %v4394_v57 = vadd.f32 %v11597_v36, %v13873_v26  ;;  %v14040_v24 = vadd.f32 %v11706_v27, %v4391_v0  ;;  %v11710_v11 = vpop.f32.mrb[76].mxu1  ;;  %v12791_v26 = vld [vmem:[#allocation9 + $0x98] sm:$0xff]   ;;  %v12794_v27 = vld [vmem:[#allocation9 + $0xe0] sm:$0xff]  }
 0x202   : > { %v11711_v32 = vpop.f32.mrb[77].mxu1  ;;  %11931 = vmatpush3.bf16.msra.mxu0 %v12791_v26 }
 0x203   : > { %v11598_v54 = vpop.f32.mrb[76].mxu0  ;;  %v14042_v56 = vadd.f32 %v11709_v37, %v4394_v57  ;;  %v11712_v35 = vadd.f32 %v11711_v32, %v11710_v11  ;;  %v11713_v60 = vpop.f32.mrb[78].mxu1  ;;  %11932 = vmatprep.subr.bf16.mxu0 %v12794_v27  ;;  %v12797_v32 = vld [vmem:[#allocation9 + $0xa8] sm:$0xff]  }
 0x204   : > { %v11599_v14 = vpop.f32.mrb[77].mxu0  ;;  %v11714_v3 = vpop.f32.mrb[79].mxu1 }
 0x205   : > { %v11600_v19 = vadd.f32 %v11599_v14, %v11598_v54  ;;  %v11601_v62 = vpop.f32.mrb[78].mxu0  ;;  %v11715_v22 = vadd.f32 %v11714_v3, %v11713_v60  ;;  %v12796_v54 = vld [vmem:[#allocation9 + $0xe8] sm:$0xff]   ;;  %v12801_v60 = vld [vmem:[#allocation2 + $0x8] ss:$0 sps:$4 sm:$0x11]  }
 0x206   : > { %v11602_v25 = vpop.f32.mrb[79].mxu0  ;;  %11933 = vmatpush3.bf16.msra.mxu0 %v12795_v53  ;;  %v5711_v53 = vshll.u32 %v12801_v60, 16 }
 0x207   : > { %v4399_v20 = vadd.f32 %v11600_v19, %v13882_v7  ;;  %v11603_v9 = vadd.f32 %v11602_v25, %v11601_v62  ;;  %v12800_v19 = vld [vmem:[#allocation2] sm:$0xff]   ;;  %11934 = vmatprep.subr.bf16.mxu0 %v12796_v54  ;;  %v12792_v25 = vld [vmem:[#allocation9 + $0x78] sm:$0xff]  }
 0x208   : > { %v5706_v49 = vshll.u32 %v12800_v19, 16  ;;  %11826 = vmatprep.subr.bf16.mxu1 %v12792_v25 }
 0x209   : > { %v4402_v16 = vadd.f32 %v11603_v9, %v13888_v15  ;;  %v14046_v39 = vadd.f32 %v11712_v35, %v4399_v20  ;;  %v11716_v33 = vpop.f32.mrb[80].mxu1  ;;  %v12793_v20 = vld [vmem:[#allocation9 + $0x38] sm:$0xff]  }
 0x20a   : > { %v11717_v0 = vpop.f32.mrb[81].mxu1  ;;  %11935 = vmatpush3.bf16.msra.mxu0 %v12797_v32  ;;  %11827 = vmatpush3.bf16.msra.mxu1 %v12793_v20 }
 0x20b   : > { %v11604_v1 = vpop.f32.mrb[80].mxu0  ;;  %v14048_v2 = vadd.f32 %v11715_v22, %v4402_v16  ;;  %v11718_v7 = vadd.f32 %v11717_v0, %v11716_v33  ;;  %v11719_v57 = vpop.f32.mrb[82].mxu1  ;;  %v12798_v22 = vld [vmem:[#allocation9 + $0xf0] sm:$0xff]   ;;  %v5708_v16 = vrot.slane %v5706_v49, 1 }
 0x20c   : > { %v11605_v61 = vpop.f32.mrb[81].mxu0  ;;  %v11720_v44 = vpop.f32.mrb[83].mxu1  ;;  %v12799_v33 = vld [vmem:[#allocation9 + $0xb0] sm:$0xff]   ;;  %11936 = vmatprep.subr.bf16.mxu0 %v12798_v22 }
 0x20d   : > { %v11606_v36 = vadd.f32 %v11605_v61, %v11604_v1  ;;  %v11607_v37 = vpop.f32.mrb[82].mxu0  ;;  %v11721_v14 = vadd.f32 %v11720_v44, %v11719_v57 }
 0x20e   : > { %v11608_v43 = vpop.f32.mrb[83].mxu0  ;;  %11937 = vmatpush3.bf16.msra.mxu0 %v12799_v33 }
 0x20f   : > { %v4407_v15 = vadd.f32 %v11606_v36, %v13903_v46  ;;  %v11609_v11 = vadd.f32 %v11608_v43, %v11607_v37  ;;  %v5704_v46 = vshrl.u32 %v12800_v19, 16  ;;  %v5713_v43 = vrot.slane %v5711_v53, 1  ;;  %v12804_v19 = vld [vmem:[#allocation9 + $0xb8] sm:$0xff]  }
 0x211   : > { %v4410_v62 = vadd.f32 %v11609_v11, %v13909_v58  ;;  %v14052_v35 = vadd.f32 %v11718_v7, %v4407_v15  ;;  %v11722_v26 = vpop.f32.mrb[84].mxu1  ;;  %v5709_v37 = vor.u32 %v5708_v16, %v5704_v46  ;;  %v12802_v11 = vld [vmem:[#allocation9 + $0xf8] sm:$0xff]  }
 0x212   : > { %v11723_v1 = vpop.f32.mrb[85].mxu1  ;;  %11938 = vmatprep.subr.bf16.mxu0 %v12802_v11 }
 0x213   : > { %v11610_v3 = vpop.f32.mrb[84].mxu0  ;;  %v14054_v9 = vadd.f32 %v11721_v14, %v4410_v62  ;;  %v11724_v0 = vadd.f32 %v11723_v1, %v11722_v26  ;;  %v11725_v36 = vpop.f32.mrb[86].mxu1  ;;  %v12803_v14 = vld [vmem:[#allocation2] sm:$0xff]   ;;  %v5714_v32 = vsel %vm1208_vm2, %v5709_v37, %v5713_v43  ;;  %11939 = vmatpush3.bf16.msra.mxu0 %v12804_v19 }
 0x214   : > { %v11611_v27 = vpop.f32.mrb[85].mxu0  ;;  %v11726_v57 = vpop.f32.mrb[87].mxu1  ;;  %8542 = vmatprep.mubr.bf16.mxu1 %v5714_v32 }
 0x215   : > { %v11612_v58 = vadd.f32 %v11611_v27, %v11610_v3  ;;  %v11613_v61 = vpop.f32.mrb[86].mxu0  ;;  %v11727_v15 = vadd.f32 %v11726_v57, %v11725_v36  ;;  %8543 = vmatmul.mubr.bf16.vlgmr.msra.gmra.mrb[128].mxu1 %v12803_v14 }
 0x216   : > { %v11614_v7 = vpop.f32.mrb[87].mxu0 }
 0x217   : > { %v4415_v44 = vadd.f32 %v11612_v58, %v13914_v21  ;;  %v11615_v54 = vadd.f32 %v11614_v7, %v11613_v61 }
 0x219   : > { %v4418_v62 = vadd.f32 %v11615_v54, %v13916_v28  ;;  %v14059_v60 = vadd.f32 %v11724_v0, %v4415_v44  ;;  %v11728_v25 = vpop.f32.mrb[88].mxu1 }
 0x21a   : > { %v11729_v26 = vpop.f32.mrb[89].mxu1 }
 0x21b   : > { %v11616_v49 = vpop.f32.mrb[88].mxu0  ;;  %v14061_v3 = vadd.f32 %v11727_v15, %v4418_v62  ;;  %v11730_v46 = vadd.f32 %v11729_v26, %v11728_v25  ;;  %v11731_v16 = vpop.f32.mrb[90].mxu1  ;;  %v12809_v25 = vld [vmem:[#allocation9 + $0x100] sm:$0xff]  }
 0x21c   : > { %v11617_v21 = vpop.f32.mrb[89].mxu0  ;;  %v11732_v1 = vpop.f32.mrb[91].mxu1 }
 0x21d   : > { %v11618_v20 = vadd.f32 %v11617_v21, %v11616_v49  ;;  %v11619_v22 = vpop.f32.mrb[90].mxu0  ;;  %v11733_v53 = vadd.f32 %v11732_v1, %v11731_v16  ;;  %v12806_v49 = vld [vmem:[#allocation9 + $0x140] sm:$0xff]  }
 0x21e   : > { %v11620_v27 = vpop.f32.mrb[91].mxu0  ;;  %12036 = vmatprep.subr.bf16.mxu1 %v12806_v49 }
 0x21f   : > { %v4423_v28 = vadd.f32 %v11618_v20, %v13926_v5  ;;  %v11621_v33 = vadd.f32 %v11620_v27, %v11619_v22  ;;  %12037 = vmatpush3.bf16.msra.mxu1 %v12809_v25 }
 0x221   : > { %v4426_v58 = vadd.f32 %v11621_v33, %v13929_v13  ;;  %v14065_v61 = vadd.f32 %v11730_v46, %v4423_v28  ;;  %v11734_v36 = vpop.f32.mrb[92].mxu1 }
 0x222   : > { %v11735_v57 = vpop.f32.mrb[93].mxu1 }
 0x223   : > { %v11622_v0 = vpop.f32.mrb[92].mxu0  ;;  %v14067_v37 = vadd.f32 %v11733_v53, %v4426_v58  ;;  %v11736_v54 = vadd.f32 %v11735_v57, %v11734_v36  ;;  %v11737_v15 = vpop.f32.mrb[94].mxu1 }
 0x224   : > { %v11623_v7 = vpop.f32.mrb[93].mxu0  ;;  %v11738_v14 = vpop.f32.mrb[95].mxu1 }
 0x225   : > { %v11624_v43 = vadd.f32 %v11623_v7, %v11622_v0  ;;  %v11625_v44 = vpop.f32.mrb[94].mxu0  ;;  %v11739_v19 = vadd.f32 %v11738_v14, %v11737_v15 }
 0x226   : > { %v11626_v11 = vpop.f32.mrb[95].mxu0 }
 0x227   : > { %v4431_v5 = vadd.f32 %v11624_v43, %v13934_v50  ;;  %v11627_v32 = vadd.f32 %v11626_v11, %v11625_v44 }
 0x229   : > { %v4434_v13 = vadd.f32 %v11627_v32, %v13937_v63  ;;  %v14071_v62 = vadd.f32 %v11736_v54, %v4431_v5  ;;  %v11740_v26 = vpop.f32.mrb[96].mxu1 }
 0x22a   : > { %v11741_v46 = vpop.f32.mrb[97].mxu1 }
 0x22b   : > { %v11628_v21 = vpop.f32.mrb[96].mxu0  ;;  %v14073_v20 = vadd.f32 %v11739_v19, %v4434_v13  ;;  %v11742_v1 = vadd.f32 %v11741_v46, %v11740_v26  ;;  %v11743_v28 = vpop.f32.mrb[98].mxu1 }
 0x22c   : > { %v11629_v22 = vpop.f32.mrb[97].mxu0  ;;  %v11744_v33 = vpop.f32.mrb[99].mxu1 }
 0x22d   : > { %v11630_v16 = vadd.f32 %v11629_v22, %v11628_v21  ;;  %v11631_v27 = vpop.f32.mrb[98].mxu0  ;;  %v11745_v58 = vadd.f32 %v11744_v33, %v11743_v28 }
 0x22e   : > { %v11632_v50 = vpop.f32.mrb[99].mxu0 }
 0x22f   : > { %v4439_v63 = vadd.f32 %v11630_v16, %v13941_v12  ;;  %v11633_v53 = vadd.f32 %v11632_v50, %v11631_v27 }
 0x231   : > { %v4442_v0 = vadd.f32 %v11633_v53, %v13943_v23  ;;  %v14077_v36 = vadd.f32 %v11742_v1, %v4439_v63  ;;  %v11746_v57 = vpop.f32.mrb[100].mxu1 }
 0x232   : > { %v11747_v54 = vpop.f32.mrb[101].mxu1 }
 0x233   : > { %v11634_v7 = vpop.f32.mrb[100].mxu0  ;;  %v14079_v43 = vadd.f32 %v11745_v58, %v4442_v0  ;;  %v11748_v14 = vadd.f32 %v11747_v54, %v11746_v57  ;;  %v11749_v5 = vpop.f32.mrb[102].mxu1  ;;  %v12825_v57 = vld [vmem:[#allocation9 + $0x108] sm:$0xff]  }
 0x234   : > { %v11635_v44 = vpop.f32.mrb[101].mxu0  ;;  %v11750_v19 = vpop.f32.mrb[103].mxu1 }
 0x235   : > { %v11636_v15 = vadd.f32 %v11635_v44, %v11634_v7  ;;  %v11637_v11 = vpop.f32.mrb[102].mxu0  ;;  %v11751_v49 = vadd.f32 %v11750_v19, %v11749_v5  ;;  %v12820_v7 = vld [vmem:[#allocation9 + $0x148] sm:$0xff]  }
 0x236   : > { %v11638_v32 = vpop.f32.mrb[103].mxu0  ;;  %12038 = vmatprep.subr.bf16.mxu1 %v12820_v7 }
 0x237   : > { %v4447_v12 = vadd.f32 %v11636_v15, %v13949_v47  ;;  %v11639_v13 = vadd.f32 %v11638_v32, %v11637_v11  ;;  %12039 = vmatpush3.bf16.msra.mxu1 %v12825_v57 }
 0x239   : > { %v4450_v23 = vadd.f32 %v11639_v13, %v13951_v41  ;;  %v14083_v25 = vadd.f32 %v11748_v14, %v4447_v12  ;;  %v11752_v26 = vpop.f32.mrb[104].mxu1 }
 0x23a   : > { %v11753_v16 = vpop.f32.mrb[105].mxu1 }
 0x23b   : > { %v11640_v21 = vpop.f32.mrb[104].mxu0  ;;  %v14085_v22 = vadd.f32 %v11751_v49, %v4450_v23  ;;  %v11754_v28 = vadd.f32 %v11753_v16, %v11752_v26  ;;  %v11755_v50 = vpop.f32.mrb[106].mxu1 }
 0x23c   : > { %v11641_v46 = vpop.f32.mrb[105].mxu0  ;;  %v11756_v63 = vpop.f32.mrb[107].mxu1 }
 0x23d   : > { %v11642_v27 = vadd.f32 %v11641_v46, %v11640_v21  ;;  %v11643_v1 = vpop.f32.mrb[106].mxu0  ;;  %v11757_v58 = vadd.f32 %v11756_v63, %v11755_v50 }
 0x23e   : > { %v11644_v33 = vpop.f32.mrb[107].mxu0 }
 0x23f   : > { %v4455_v47 = vadd.f32 %v11642_v27, %v13956_v18  ;;  %v11645_v53 = vadd.f32 %v11644_v33, %v11643_v1 }
 0x241   : > { %v4458_v41 = vadd.f32 %v11645_v53, %v13959_v34  ;;  %v14089_v0 = vadd.f32 %v11754_v28, %v4455_v47  ;;  %v11758_v5 = vpop.f32.mrb[108].mxu1 }
 0x242   : > { %v11759_v19 = vpop.f32.mrb[109].mxu1 }
 0x243   : > { %v11646_v44 = vpop.f32.mrb[108].mxu0  ;;  %v14091_v54 = vadd.f32 %v11757_v58, %v4458_v41  ;;  %v11760_v13 = vadd.f32 %v11759_v19, %v11758_v5  ;;  %v11761_v34 = vpop.f32.mrb[110].mxu1 }
 0x244   : > { %v11647_v15 = vpop.f32.mrb[109].mxu0  ;;  %v11762_v49 = vpop.f32.mrb[111].mxu1 }
 0x245   : > { %v11648_v11 = vadd.f32 %v11647_v15, %v11646_v44  ;;  %v11649_v14 = vpop.f32.mrb[110].mxu0  ;;  %v11763_v21 = vadd.f32 %v11762_v49, %v11761_v34  ;;  %v12834_v34 = vld [vmem:[#allocation9 + $0x150] sm:$0xff]  }
 0x246   : > { %v11650_v32 = vpop.f32.mrb[111].mxu0  ;;  %v12839_v49 = vld [vmem:[#allocation9 + $0x110] sm:$0xff]   ;;  %12040 = vmatprep.subr.bf16.mxu1 %v12834_v34 }
 0x247   : > { %v4463_v18 = vadd.f32 %v11648_v11, %v13968_v55  ;;  %v11651_v12 = vadd.f32 %v11650_v32, %v11649_v14  ;;  %12041 = vmatpush3.bf16.msra.mxu1 %v12839_v49 }
 0x249   : > { %v4466_v23 = vadd.f32 %v11651_v12, %v13978_v4  ;;  %v14095_v26 = vadd.f32 %v11760_v13, %v4463_v18  ;;  %v11764_v55 = vpop.f32.mrb[112].mxu1 }
 0x24a   : > { %v11765_v53 = vpop.f32.mrb[113].mxu1 }
 0x24b   : > { %v11652_v46 = vpop.f32.mrb[112].mxu0  ;;  %v14097_v16 = vadd.f32 %v11763_v21, %v4466_v23  ;;  %v11766_v58 = vadd.f32 %v11765_v53, %v11764_v55  ;;  %v11767_v41 = vpop.f32.mrb[114].mxu1 }
 0x24c   : > { %v11653_v27 = vpop.f32.mrb[113].mxu0  ;;  %v11768_v4 = vpop.f32.mrb[115].mxu1 }
 0x24d   : > { %v11654_v1 = vadd.f32 %v11653_v27, %v11652_v46  ;;  %v11655_v28 = vpop.f32.mrb[114].mxu0  ;;  %v11769_v7 = vadd.f32 %v11768_v4, %v11767_v41  ;;  %v12861_v41 = vld [vmem:[#allocation9 + $0x1c0] sm:$0xff]  }
 0x24e   : > { %v11656_v50 = vpop.f32.mrb[115].mxu0  ;;  %v12864_v4 = vld [vmem:[#allocation9 + $0x160] sm:$0xff]   ;;  %12148 = vmatprep.subr.bf16.mxu0 %v12861_v41 }
 0x24f   : > { %v4471_v33 = vadd.f32 %v11654_v1, %v13990_v40  ;;  %v11657_v63 = vadd.f32 %v11656_v50, %v11655_v28  ;;  %v12848_v50 = vld [vmem:[#allocation9 + $0x158] sm:$0xff]  }
 0x250   : > { %12042 = vmatprep.subr.bf16.mxu1 %v12848_v50 }
 0x251   : > { %v4474_v47 = vadd.f32 %v11657_v63, %v13998_v10  ;;  %v14101_v57 = vadd.f32 %v11766_v58, %v4471_v33  ;;  %v11770_v32 = vpop.f32.mrb[116].mxu1  ;;  %v12853_v58 = vld [vmem:[#allocation9 + $0x118] sm:$0xff]  }
 0x252   : > { %v11771_v12 = vpop.f32.mrb[117].mxu1  ;;  %12043 = vmatpush3.bf16.msra.mxu1 %v12853_v58  ;;  %v14121_v58 = vld [vmem:[#allocation2] sm:$0xfe]  }
 0x253   : > { %v11658_v44 = vpop.f32.mrb[116].mxu0  ;;  %v14103_v11 = vadd.f32 %v11769_v7, %v4474_v47  ;;  %v11772_v10 = vadd.f32 %v11771_v12, %v11770_v32  ;;  %v11773_v13 = vpop.f32.mrb[118].mxu1  ;;  %12044 = vmatprep.subr.bf16.mxu1 %v12864_v4  ;;  %v12869_v12 = vld [vmem:[#allocation9 + $0x120] sm:$0xff]  }
 0x254   : > { %v11659_v15 = vpop.f32.mrb[117].mxu0  ;;  %v11774_v21 = vpop.f32.mrb[119].mxu1 }
 0x255   : > { %v11660_v14 = vadd.f32 %v11659_v15, %v11658_v44  ;;  %v11661_v5 = vpop.f32.mrb[118].mxu0  ;;  %v11775_v46 = vadd.f32 %v11774_v21, %v11773_v13 }
 0x256   : > { %v11662_v19 = vpop.f32.mrb[119].mxu0  ;;  %12045 = vmatpush3.bf16.msra.mxu1 %v12869_v12 }
 0x257   : > { %v4479_v40 = vadd.f32 %v11660_v14, %v14007_v29  ;;  %v11663_v18 = vadd.f32 %v11662_v19, %v11661_v5 }
 0x259   : > { %v4482_v23 = vadd.f32 %v11663_v18, %v14009_v45  ;;  %v14107_v27 = vadd.f32 %v11772_v10, %v4479_v40 }
 0x25b   : > { %v11664_v1 = vpop.f32.mrb[120].mxu0  ;;  %v14109_v28 = vadd.f32 %v11775_v46, %v4482_v23 }
 0x25c   : > { %v11665_v33 = vpop.f32.mrb[121].mxu0 }
 0x25d   : > { %v11666_v29 = vadd.f32 %v11665_v33, %v11664_v1  ;;  %v11667_v63 = vpop.f32.mrb[122].mxu0 }
 0x25e   : > { %v11668_v55 = vpop.f32.mrb[123].mxu0 }
 0x25f   : > { %v4487_v47 = vadd.f32 %v11666_v29, %v14015_v52  ;;  %v11669_v53 = vadd.f32 %v11668_v55, %v11667_v63 }
 0x261   : > { %v4490_v45 = vadd.f32 %v11669_v53, %v14017_v48 }
 0x268   : > { %v11776_v7 = vpop.f32.mrb[120].mxu1 }
 0x269   : > { %v11777_v44 = vpop.f32.mrb[121].mxu1  ;;  %v11670_v15 = vpop.f32.mrb[124].mxu0 }
 0x26a   : > { %v11778_v14 = vadd.f32 %v11777_v44, %v11776_v7  ;;  %v11779_v5 = vpop.f32.mrb[122].mxu1  ;;  %v11671_v32 = vpop.f32.mrb[125].mxu0  ;;  %v12880_v44 = vld [vmem:[#allocation9 + $0x168] sm:$0xff]  }
 0x26b   : > { %v11780_v19 = vpop.f32.mrb[123].mxu1  ;;  %v11672_v40 = vadd.f32 %v11671_v32, %v11670_v15  ;;  %v11673_v18 = vpop.f32.mrb[126].mxu0  ;;  %12046 = vmatprep.subr.bf16.mxu1 %v12880_v44 }
 0x26c   : > { %v11781_v52 = vadd.f32 %v11780_v19, %v11779_v5  ;;  %v11674_v10 = vpop.f32.mrb[127].mxu0  ;;  %v14113_v13 = vadd.f32 %v11778_v14, %v4487_v47 }
 0x26d   : > { %v4495_v48 = vadd.f32 %v11672_v40, %v14022_v51  ;;  %v11675_v34 = vadd.f32 %v11674_v10, %v11673_v18 }
 0x26e   : > { %v14116_v49 = vadd.f32 %v11781_v52, %v4490_v45 }
 0x26f   : > { %v4498_v23 = vadd.f32 %v11675_v34, %v14024_v30  ;;  %v14124_v30 = vld [vmem:[#allocation2 + $0x8] ss:$0 sps:$4 sm:$0x11]  }
 0x270   : > { %v11782_v21 = vpop.f32.mrb[124].mxu1  ;;  %v6104_v12 = vrot.slane %v14124_v30, 1 }
 0x271   : > { %v11783_v46 = vpop.f32.mrb[125].mxu1  ;;  %v12302_v1 = vpop.f32.mrb[128].mxu0 }
 0x272   : > { %v11784_v50 = vadd.f32 %v11783_v46, %v11782_v21  ;;  %v11785_v33 = vpop.f32.mrb[126].mxu1  ;;  %v4705_v29 = vadd.f32 %v12302_v1, %v14034_v42  ;;  %v4696_v63 = vpop.f32.mrb[129].mxu0 }
 0x273   : > { %v11786_v55 = vpop.f32.mrb[127].mxu1  ;;  %v4697_v47 = vadd.f32 %v4696_v63, %v14028_v31  ;;  %v12303_v53 = vpop.f32.mrb[130].mxu0 }
 0x274   : > { %v11787_v51 = vadd.f32 %v11786_v55, %v11785_v33  ;;  %v4825_v41 = vmax.f32 %v4705_v29, 0.0  ;;  %v4708_v45 = vadd.f32 %v12303_v53, %v14036_v17  ;;  %v4699_v4 = vpop.f32.mrb[131].mxu0  ;;  %v14126_v7 = vadd.f32 %v11784_v50, %v4495_v48 }
 0x275   : > { %v4823_v15 = vmax.f32 %v4697_v47, 0.0  ;;  %v4700_v42 = vadd.f32 %v4699_v4, %v14030_v8  ;;  %v6103_v17 = vrot.slane %v14121_v58, 1  ;;  %v5278_v8 = vld [vmem:[#allocation2 + $0x18] sm:$0xf]  ;;  %v5271_v4 = vld [vmem:[#allocation2 + $0xc] sm:$0xf] }
 0x276   : > { %v11308_v14 = vpack.c.bf16 %v4825_v41, %v4825_v41  ;;  %v4826_v5 = vmax.f32 %v4708_v45, 0.0  ;;  %v14129_v32 = vadd.f32 %v11787_v51, %v4498_v23  ;;  %v12885_v51 = vld [vmem:[#allocation9 + $0x128] sm:$0xff]  }
 0x277   : > { %v11306_v31 = vpack.c.bf16 %v4823_v15, %v4823_v15  ;;  %v4824_v19 = vmax.f32 %v4700_v42, 0.0  ;;  %12047 = vmatpush3.bf16.msra.mxu1 %v12885_v51 }
 0x278   : > { %v4969_v40 = vshrl.u32 %v11308_v14, 16  ;;  %v11309_v18 = vpack.c.bf16 %v4826_v5, %v4826_v5  ;;  %v4972_v52 = vshll.u32 %v11308_v14, 16 }
 0x279   : > { %v4952_v10 = vshrl.u32 %v11306_v31, 16  ;;  %v4955_v48 = vshll.u32 %v11306_v31, 16  ;;  %v11307_v34 = vpack.c.bf16 %v4824_v19, %v4824_v19  ;;  %v12306_v21 = vpop.f32.mrb[132].mxu0  ;;  %v5282_v31 = vld [vmem:[#allocation2 + $0x20] sm:$0x1] }
 0x27a   : > { %v4971_v46 = vrot.slane %v4969_v40, 7  ;;  %v4977_v1 = vshrl.u32 %v11309_v18, 16  ;;  %v4980_v50 = vshll.u32 %v11309_v18, 16  ;;  %v4721_v23 = vadd.f32 %v12306_v21, %v14046_v39  ;;  %v4712_v33 = vpop.f32.mrb[133].mxu0 }
 0x27b   : > { %v4954_v29 = vrot.slane %v4952_v10, 7  ;;  %v4960_v63 = vshrl.u32 %v11307_v34, 16  ;;  %v4963_v55 = vshll.u32 %v11307_v34, 16  ;;  %v4713_v47 = vadd.f32 %v4712_v33, %v14040_v24  ;;  %v12307_v53 = vpop.f32.mrb[134].mxu0  ;;  %v5275_v24 = vld [vmem:[#allocation2 + $0x14] sm:$0x1] }
 0x27c   : > { %v4974_v41 = vor.u32 %v4972_v52, %v4971_v46  ;;  %v4975_v45 = vrot.slane %v4971_v46, 4  ;;  %v4979_v44 = vrot.slane %v4977_v1, 7  ;;  %v4829_v15 = vmax.f32 %v4721_v23, 0.0  ;;  %v4715_v42 = vpop.f32.mrb[135].mxu0 }
 0x27d   : > { %v4957_v14 = vor.u32 %v4955_v48, %v4954_v29  ;;  %v4958_v5 = vrot.slane %v4954_v29, 4  ;;  %v4962_v19 = vrot.slane %v4960_v63, 7  ;;  %v4827_v40 = vmax.f32 %v4713_v47, 0.0 }
 0x27e   : > { %v5279_v39 = vsel %vm13551_vm9, %v4974_v41, %v5278_v8  ;;  %v4982_v18 = vor.u32 %v4980_v50, %v4979_v44  ;;  %v4984_v10 = vrot.slane %v4979_v44, 4  ;;  %v11312_v34 = vpack.c.bf16 %v4829_v15, %v4829_v15  ;;  %v5292_v44 = vld [vmem:[#allocation2 + $0x30] sm:$0xf] }
 0x27f   : > { %5280 = vst [vmem:[#allocation2 + $0x18] sm:$0xf] %v5279_v39  ;;  %v5272_v52 = vsel %vm13551_vm9, %v4957_v14, %v5271_v4  ;;  %v4965_v21 = vor.u32 %v4963_v55, %v4962_v19  ;;  %v4967_v46 = vrot.slane %v4962_v19, 4  ;;  %v11310_v1 = vpack.c.bf16 %v4827_v40, %v4827_v40 }
 0x280   : > { %5273 = vst [vmem:[#allocation2 + $0xc] sm:$0xf] %v5272_v52  ;;  %v4983_v48 = vsel %vm13538_vm8, %v4975_v45, %v4982_v18  ;;  %v5283_v23 = vsel %vm13517_vm5, %v4984_v10, %v5282_v31  ;;  %v5003_v33 = vshrl.u32 %v11312_v34, 16  ;;  %v5006_v29 = vshll.u32 %v11312_v34, 16 }
 0x281   : > { %5281 = vst [vmem:[#allocation2 + $0x1c] sm:$0xf] %v4983_v48  ;;  %5284 = vst [vmem:[#allocation2 + $0x20] sm:$0x1] %v5283_v23  ;;  %v4966_v8 = vsel %vm13538_vm8, %v4958_v5, %v4965_v21  ;;  %v5276_v50 = vsel %vm13517_vm5, %v4967_v46, %v5275_v24  ;;  %v4986_v63 = vshrl.u32 %v11310_v1, 16  ;;  %v4724_v51 = vadd.f32 %v12307_v53, %v14048_v2  ;;  %v12896_v24 = vld [vmem:[#allocation9 + $0x170] sm:$0xff]  }
 0x282   : > { %5274 = vst [vmem:[#allocation2 + $0x10] sm:$0xf] %v4966_v8  ;;  %5277 = vst [vmem:[#allocation2 + $0x14] sm:$0x1] %v5276_v50  ;;  %v14147_v47 = vrot.slane %v5003_v33, 7  ;;  %v4716_v41 = vadd.f32 %v4715_v42, %v14042_v56  ;;  %v4989_v14 = vshll.u32 %v11310_v1, 16  ;;  %v6105_v19 = vsel %vm1609_vm10, %v6103_v17, %v6104_v12  ;;  %12048 = vmatprep.subr.bf16.mxu1 %v12896_v24 }
 0x283   : > { %v14152_v15 = vrot.slane %v4986_v63, 7  ;;  %v5285_v53 = vld [vmem:[#allocation2 + $0x24] sm:$0xf]  ;;  %v12862_v1 = vld [vmem:[#allocation9 + $0x180] sm:$0xff]  }
 0x284   : > { %v5008_v2 = vor.u32 %v5006_v29, %v14147_v47  ;;  %v5009_v56 = vrot.slane %v14147_v47, 4  ;;  %v4828_v42 = vmax.f32 %v4716_v41, 0.0  ;;  %v5296_v50 = vld [vmem:[#allocation2 + $0x38] sm:$0x1]  ;;  %v5289_v29 = vld [vmem:[#allocation2 + $0x2c] sm:$0x1] }
 0x285   : > { %v4991_v39 = vor.u32 %v4989_v14, %v14152_v15  ;;  %v4992_v18 = vrot.slane %v14152_v15, 4  ;;  %v5306_v15 = vld [vmem:[#allocation2 + $0x48] sm:$0xf]  ;;  %v5299_v14 = vld [vmem:[#allocation2 + $0x3c] sm:$0xf] }
 0x286   : > { %v12310_v55 = vpop.f32.mrb[136].mxu0  ;;  %v5293_v58 = vsel %vm13551_vm9, %v5008_v2, %v5292_v44  ;;  %v11311_v17 = vpack.c.bf16 %v4828_v42, %v4828_v42  ;;  %v12877_v2 = vld [vmem:[#allocation9 + $0x1c8] sm:$0xff]  }
 0x287   : > { %v4737_v45 = vadd.f32 %v12310_v55, %v14059_v60  ;;  %v4728_v4 = vpop.f32.mrb[137].mxu0  ;;  %v4830_v60 = vmax.f32 %v4724_v51, 0.0  ;;  %5294 = vst [vmem:[#allocation2 + $0x30] sm:$0xf] %v5293_v58  ;;  %v5286_v34 = vsel %vm13551_vm9, %v4991_v39, %v5285_v53 }
 0x288   : > { %v4729_v5 = vadd.f32 %v4728_v4, %v14052_v35  ;;  %v12311_v31 = vpop.f32.mrb[138].mxu0  ;;  %5287 = vst [vmem:[#allocation2 + $0x24] sm:$0xf] %v5286_v34  ;;  %v4994_v33 = vshrl.u32 %v11311_v17, 16  ;;  %v4997_v8 = vshll.u32 %v11311_v17, 16 }
 0x289   : > { %v4731_v40 = vpop.f32.mrb[139].mxu0  ;;  %v4833_v35 = vmax.f32 %v4737_v45, 0.0  ;;  %v11313_v30 = vpack.c.bf16 %v4830_v60, %v4830_v60  ;;  %v4740_v12 = vadd.f32 %v12311_v31, %v14061_v3  ;;  %v12805_v45 = vld [vmem:[#allocation2 + $0xc] sm:$0xff]  }
 0x28a   : > { %v4831_v10 = vmax.f32 %v4729_v5, 0.0  ;;  %v4732_v46 = vadd.f32 %v4731_v40, %v14054_v9  ;;  %v4996_v44 = vrot.slane %v4994_v33, 7  ;;  %8703 = vmatprep.mubr.bf16.mxu0 %v12805_v45 }
 0x28b   : > { %v11316_v52 = vpack.c.bf16 %v4833_v35, %v4833_v35  ;;  %v5011_v48 = vshrl.u32 %v11313_v30, 16  ;;  %v5014_v23 = vshll.u32 %v11313_v30, 16  ;;  %v4834_v9 = vmax.f32 %v4740_v12, 0.0  ;;  %v12810_v35 = vld [vmem:[#allocation2 + $0x18] sm:$0xff]   ;;  %8704 = vmatmul.mubr.bf16.vlgmr.msra.gmra.mrb[160].mxu0 %v6105_v19  ;;  %v12878_v12 = vld [vmem:[#allocation9 + $0x188] sm:$0xff]  }
 0x28c   : > { %v11314_v21 = vpack.c.bf16 %v4831_v10, %v4831_v10  ;;  %v4832_v5 = vmax.f32 %v4732_v46, 0.0  ;;  %v4999_v58 = vor.u32 %v4997_v8, %v4996_v44  ;;  %v5001_v30 = vrot.slane %v4996_v44, 4  ;;  %8711 = vmatprep.mubr.bf16.mxu0 %v12810_v35  ;;  %12149 = vmatpush3.bf16.msra.mxu0 %v12862_v1  ;;  %v12894_v8 = vld [vmem:[#allocation9 + $0x190] sm:$0xff]   ;;  %v5310_v44 = vld [vmem:[#allocation2 + $0x50] sm:$0x1] }
 0x28d   : > { %v5037_v63 = vshrl.u32 %v11316_v52, 16  ;;  %v5040_v55 = vshll.u32 %v11316_v52, 16  ;;  %v5013_v4 = vrot.slane %v5011_v48, 7  ;;  %12150 = vmatprep.subr.bf16.mxu0 %v12877_v2  ;;  %v11317_v1 = vpack.c.bf16 %v4834_v9, %v4834_v9 }
 0x28e   : > { %v5020_v3 = vshrl.u32 %v11314_v21, 16  ;;  %v5023_v51 = vshll.u32 %v11314_v21, 16  ;;  %v5000_v19 = vsel %vm13538_vm8, %v4992_v18, %v4999_v58  ;;  %v5290_v48 = vsel %vm13517_vm5, %v5001_v30, %v5289_v29 }
 0x28f   : > { %v12314_v41 = vpop.f32.mrb[140].mxu0  ;;  %v14170_v53 = vrot.slane %v5037_v63, 7  ;;  %v5016_v10 = vor.u32 %v5014_v23, %v5013_v4  ;;  %v5018_v24 = vrot.slane %v5013_v4, 4  ;;  %v12893_v23 = vld [vmem:[#allocation9 + $0x1d0] sm:$0xff]   ;;  %5288 = vst [vmem:[#allocation2 + $0x28] sm:$0xf] %v5000_v19  ;;  %v11315_v33 = vpack.c.bf16 %v4832_v5, %v4832_v5 }
 0x290   : > { %v4744_v31 = vpop.f32.mrb[141].mxu0  ;;  %v14172_v60 = vrot.slane %v5020_v3, 7  ;;  %v4753_v42 = vadd.f32 %v12314_v41, %v14071_v62  ;;  %5291 = vst [vmem:[#allocation2 + $0x2c] sm:$0x1] %v5290_v48  ;;  %v5048_v3 = vshll.u32 %v11317_v1, 16  ;;  %12151 = vmatpush3.bf16.msra.mxu0 %v12878_v12  ;;  %v12901_v4 = vld [vmem:[#allocation9 + $0x130] sm:$0xff]  }
 0x291   : > { %v4745_v40 = vadd.f32 %v4744_v31, %v14065_v61  ;;  %v12315_v39 = vpop.f32.mrb[142].mxu0  ;;  %v5042_v34 = vor.u32 %v5040_v55, %v14170_v53  ;;  %v5043_v52 = vrot.slane %v14170_v53, 4  ;;  %v5017_v61 = vsel %vm13538_vm8, %v5009_v56, %v5016_v10  ;;  %12152 = vmatprep.subr.bf16.mxu0 %v12893_v23  ;;  %12049 = vmatpush3.bf16.msra.mxu1 %v12901_v4  ;;  %v5313_v19 = vld [vmem:[#allocation2 + $0x54] sm:$0xf]  ;;  %v5324_v4 = vld [vmem:[#allocation2 + $0x68] sm:$0x1] }
 0x292   : > { %v4747_v17 = vpop.f32.mrb[143].mxu0  ;;  %v5025_v21 = vor.u32 %v5023_v51, %v14172_v60  ;;  %v5026_v62 = vrot.slane %v14172_v60, 4  ;;  %v5297_v46 = vsel %vm13517_vm5, %v5018_v24, %v5296_v50  ;;  %5295 = vst [vmem:[#allocation2 + $0x34] sm:$0xf] %v5017_v61  ;;  %v4837_v18 = vmax.f32 %v4753_v42, 0.0  ;;  %v12910_v48 = vld [vmem:[#allocation9 + $0x198] sm:$0xff]  }
 0x293   : > { %5298 = vst [vmem:[#allocation2 + $0x38] sm:$0x1] %v5297_v46  ;;  %v5307_v47 = vsel %vm13551_vm9, %v5042_v34, %v5306_v15  ;;  %v4835_v50 = vmax.f32 %v4745_v40, 0.0  ;;  %v4756_v29 = vadd.f32 %v12315_v39, %v14073_v20  ;;  %v4748_v63 = vadd.f32 %v4747_v17, %v14067_v37  ;;  %v5303_v40 = vld [vmem:[#allocation2 + $0x44] sm:$0x1]  ;;  %v12909_v17 = vld [vmem:[#allocation9 + $0x1d8] sm:$0xff]  }
 0x294   : > { %v5300_v56 = vsel %vm13551_vm9, %v5025_v21, %v5299_v14  ;;  %5308 = vst [vmem:[#allocation2 + $0x48] sm:$0xf] %v5307_v47  ;;  %v5045_v55 = vshrl.u32 %v11317_v1, 16  ;;  %v5028_v51 = vshrl.u32 %v11315_v33, 16  ;;  %v5031_v41 = vshll.u32 %v11315_v33, 16  ;;  %12153 = vmatpush3.bf16.msra.mxu0 %v12894_v8 }
 0x295   : > { %5301 = vst [vmem:[#allocation2 + $0x3c] sm:$0xf] %v5300_v56  ;;  %v11320_v15 = vpack.c.bf16 %v4837_v18, %v4837_v18  ;;  %v11318_v14 = vpack.c.bf16 %v4835_v50, %v4835_v50  ;;  %v4838_v9 = vmax.f32 %v4756_v29, 0.0  ;;  %v4836_v5 = vmax.f32 %v4748_v63, 0.0  ;;  %v5320_v46 = vld [vmem:[#allocation2 + $0x60] sm:$0xf]  ;;  %12154 = vmatprep.subr.bf16.mxu0 %v12909_v17 }
 0x296   : > { %v5047_v2 = vrot.slane %v5045_v55, 7  ;;  %v5030_v42 = vrot.slane %v5028_v51, 7  ;;  %v14200_v56 = vld [vmem:[#allocation2 + $0x14] ss:$0 sps:$4 sm:$0x11]   ;;  %v14214_v50 = vld [vmem:[#allocation2 + $0xc] sm:$0xff]  }
 0x297   : > { %v5071_v35 = vshrl.u32 %v11320_v15, 16  ;;  %v5074_v10 = vshll.u32 %v11320_v15, 16  ;;  %v5054_v24 = vshrl.u32 %v11318_v14, 16  ;;  %v5057_v58 = vshll.u32 %v11318_v14, 16 }
 0x298   : > { %v5050_v12 = vor.u32 %v5048_v3, %v5047_v2  ;;  %v5052_v34 = vrot.slane %v5047_v2, 4  ;;  %v5033_v21 = vor.u32 %v5031_v41, %v5030_v42  ;;  %v5035_v61 = vrot.slane %v5030_v42, 4  ;;  %12155 = vmatpush3.bf16.msra.mxu0 %v12910_v48 }
 0x299   : > { %v5056_v23 = vrot.slane %v5054_v24, 7  ;;  %v11319_v47 = vpack.c.bf16 %v4836_v5, %v4836_v5  ;;  %v5716_v42 = vshrl.u32 %v14214_v50, 16  ;;  %v5718_v24 = vshll.u32 %v14214_v50, 16 }
 0x29a   : > { %v5051_v1 = vsel %vm13538_vm8, %v5043_v52, %v5050_v12  ;;  %v5311_v33 = vsel %vm13517_vm5, %v5052_v34, %v5310_v44  ;;  %v5034_v8 = vsel %vm13538_vm8, %v5026_v62, %v5033_v21  ;;  %v5304_v18 = vsel %vm13517_vm5, %v5035_v61, %v5303_v40  ;;  %v5317_v44 = vld [vmem:[#allocation2 + $0x5c] sm:$0x1] }
 0x29b   : > { %v12318_v45 = vpop.f32.mrb[144].mxu0  ;;  %5309 = vst [vmem:[#allocation2 + $0x4c] sm:$0xf] %v5051_v1  ;;  %5312 = vst [vmem:[#allocation2 + $0x50] sm:$0x1] %v5311_v33  ;;  %v5059_v52 = vor.u32 %v5057_v58, %v5056_v23  ;;  %v5060_v63 = vrot.slane %v5056_v23, 4 }
 0x29c   : > { %v4760_v31 = vpop.f32.mrb[145].mxu0  ;;  %v4769_v20 = vadd.f32 %v12318_v45, %v14083_v25  ;;  %v5073_v25 = vrot.slane %v5071_v35, 7  ;;  %5302 = vst [vmem:[#allocation2 + $0x40] sm:$0xf] %v5034_v8  ;;  %5305 = vst [vmem:[#allocation2 + $0x44] sm:$0x1] %v5304_v18 }
 0x29d   : > { %v4761_v37 = vadd.f32 %v4760_v31, %v14077_v36  ;;  %v12319_v39 = vpop.f32.mrb[146].mxu0  ;;  %v11321_v36 = vpack.c.bf16 %v4838_v9, %v4838_v9  ;;  %v5062_v51 = vshrl.u32 %v11319_v47, 16  ;;  %v5065_v60 = vshll.u32 %v11319_v47, 16  ;;  %v12814_v21 = vld [vmem:[#allocation2 + $0x18] sm:$0xff]   ;;  %v12816_v1 = vld [vmem:[#allocation2 + $0xc] sm:$0xfe]  }
 0x29e   : > { %v14198_v30 = vpop.f32.mrb[147].mxu0  ;;  %v5076_v53 = vor.u32 %v5074_v10, %v5073_v25  ;;  %v5077_v29 = vrot.slane %v5073_v25, 4  ;;  %v5314_v45 = vsel %vm13551_vm9, %v5059_v52, %v5313_v19  ;;  %v4841_v15 = vmax.f32 %v4769_v20, 0.0  ;;  %v12815_v19 = vld [vmem:[#allocation2 + $0x20] ss:$0 sps:$4 sm:$0x11]  }
 0x29f   : > { %v5079_v55 = vshrl.u32 %v11321_v36, 16  ;;  %v5082_v3 = vshll.u32 %v11321_v36, 16  ;;  %v4839_v14 = vmax.f32 %v4761_v37, 0.0  ;;  %5315 = vst [vmem:[#allocation2 + $0x54] sm:$0xf] %v5314_v45  ;;  %v5064_v31 = vrot.slane %v5062_v51, 7 }
 0x2a0   : > { %v5321_v62 = vsel %vm13551_vm9, %v5076_v53, %v5320_v46  ;;  %v4772_v2 = vadd.f32 %v12319_v39, %v14085_v22  ;;  %v11324_v35 = vpack.c.bf16 %v4841_v15, %v4841_v15  ;;  %v5723_v58 = vshll.u32 %v14200_v56, 16  ;;  %v5334_v47 = vld [vmem:[#allocation2 + $0x78] sm:$0xf]  ;;  %v5327_v56 = vld [vmem:[#allocation2 + $0x6c] sm:$0xf] }
 0x2a1   : > { %5322 = vst [vmem:[#allocation2 + $0x60] sm:$0xf] %v5321_v62  ;;  %v5081_v5 = vrot.slane %v5079_v55, 7  ;;  %v11322_v10 = vpack.c.bf16 %v4839_v14, %v4839_v14  ;;  %v5067_v12 = vor.u32 %v5065_v60, %v5064_v31  ;;  %v5069_v34 = vrot.slane %v5064_v31, 4 }
 0x2a2   : > { %v5105_v61 = vshrl.u32 %v11324_v35, 16  ;;  %v5108_v46 = vshll.u32 %v11324_v35, 16  ;;  %v4842_v18 = vmax.f32 %v4772_v2, 0.0  ;;  %v5720_v50 = vrot.slane %v5718_v24, 1 }
 0x2a3   : > { %v14216_v41 = vpop.f32.mrb[148].mxu0  ;;  %v5084_v37 = vor.u32 %v5082_v3, %v5081_v5  ;;  %v5086_v17 = vrot.slane %v5081_v5, 4  ;;  %v5088_v22 = vshrl.u32 %v11322_v10, 16  ;;  %v5091_v39 = vshll.u32 %v11322_v10, 16 }
 0x2a4   : > { %v14222_v9 = vpop.f32.mrb[149].mxu0  ;;  %v5068_v23 = vsel %vm13538_vm8, %v5060_v63, %v5067_v12  ;;  %v5318_v36 = vsel %vm13517_vm5, %v5069_v34, %v5317_v44  ;;  %v14240_v33 = vrot.slane %v5105_v61, 7  ;;  %v12817_v53 = vld [vmem:[#allocation2 + $0x14] ss:$0 sps:$4 sm:$0x11]   ;;  %v4764_v52 = vadd.f32 %v14198_v30, %v14079_v43  ;;  %v14263_v12 = vld [vmem:[#allocation2 + $0x24] sm:$0xff]  }
 0x2a5   : > { %v14226_v40 = vpop.f32.mrb[150].mxu0  ;;  %v5085_v48 = vsel %vm13538_vm8, %v5077_v29, %v5084_v37  ;;  %v5325_v25 = vsel %vm13517_vm5, %v5086_v17, %v5324_v4  ;;  %5316 = vst [vmem:[#allocation2 + $0x58] sm:$0xf] %v5068_v23  ;;  %5319 = vst [vmem:[#allocation2 + $0x5c] sm:$0x1] %v5318_v36  ;;  %v14242_v8 = vrot.slane %v5088_v22, 7  ;;  %v11325_v44 = vpack.c.bf16 %v4842_v18, %v4842_v18 }
 0x2a6   : > { %v14230_v20 = vpop.f32.mrb[151].mxu0  ;;  %5323 = vst [vmem:[#allocation2 + $0x64] sm:$0xf] %v5085_v48  ;;  %5326 = vst [vmem:[#allocation2 + $0x68] sm:$0x1] %v5325_v25  ;;  %v5725_v29 = vrot.slane %v5723_v58, 1  ;;  %v5110_v51 = vor.u32 %v5108_v46, %v14240_v33  ;;  %v5721_v15 = vor.u32 %v5720_v50, %v5716_v42  ;;  %v4785_v46 = vadd.f32 %v14216_v41, %v14095_v26 }
 0x2a7   : > { %v5728_v63 = vshrl.u32 %v12814_v21, 16  ;;  %v5730_v55 = vshll.u32 %v12814_v21, 16  ;;  %v5111_v60 = vrot.slane %v14240_v33, 4  ;;  %v5093_v62 = vor.u32 %v5091_v39, %v14242_v8  ;;  %v12813_v17 = vld [vmem:[#allocation2 + $0xc] sm:$0xff]   ;;  %v5338_v25 = vld [vmem:[#allocation2 + $0x80] sm:$0x1] }
 0x2a8   : > { %v5094_v45 = vrot.slane %v14242_v8, 4  ;;  %v4840_v14 = vmax.f32 %v4764_v52, 0.0  ;;  %v5335_v43 = vsel %vm13551_vm9, %v5110_v51, %v5334_v47  ;;  %v5735_v2 = vshll.u32 %v12815_v19, 16  ;;  %v5331_v23 = vld [vmem:[#allocation2 + $0x74] sm:$0x1] }
 0x2a9   : > { %v5732_v5 = vrot.slane %v5730_v55, 1  ;;  %v5328_v30 = vsel %vm13551_vm9, %v5093_v62, %v5327_v56  ;;  %v6106_v35 = vrot.slane %v12816_v1, 1  ;;  %5336 = vst [vmem:[#allocation2 + $0x78] sm:$0xf] %v5335_v43  ;;  %v5113_v24 = vshrl.u32 %v11325_v44, 16  ;;  %v12818_v56 = vld [vmem:[#allocation2 + $0x24] sm:$0xff]  }
 0x2aa   : > { %5329 = vst [vmem:[#allocation2 + $0x6c] sm:$0xf] %v5328_v30  ;;  %v5116_v58 = vshll.u32 %v11325_v44, 16  ;;  %v5726_v42 = vsel %vm1208_vm2, %v5721_v15, %v5725_v29  ;;  %v11323_v37 = vpack.c.bf16 %v4840_v14, %v4840_v14  ;;  %v5737_v21 = vrot.slane %v5735_v2, 1  ;;  %v5348_v2 = vld [vmem:[#allocation2 + $0x90] sm:$0xf] }
 0x2ab   : > { %v14246_v3 = vpop.f32.mrb[152].mxu0  ;;  %8550 = vmatprep.mubr.bf16.mxu1 %v5726_v42  ;;  %v5733_v34 = vor.u32 %v5732_v5, %v5728_v63  ;;  %v6107_v61 = vrot.slane %v12817_v53, 1  ;;  %v5115_v22 = vrot.slane %v5113_v24, 7  ;;  %v4777_v48 = vadd.f32 %v14222_v9, %v14089_v0  ;;  %v12822_v53 = vld [vmem:[#allocation2 + $0x2c] ss:$0 sps:$4 sm:$0x11]  }
 0x2ac   : > { %v14252_v4 = vpop.f32.mrb[153].mxu0  ;;  %v5096_v39 = vshrl.u32 %v11323_v37, 16  ;;  %v5099_v19 = vshll.u32 %v11323_v37, 16  ;;  %8551 = vmatmul.mubr.bf16.gmra.mrb[132].mxu1 %v12813_v17  ;;  %v4845_v1 = vmax.f32 %v4785_v46, 0.0  ;;  %v4788_v33 = vadd.f32 %v14226_v40, %v14097_v16  ;;  %v12846_v59 = vld [vmem:[#allocation2 + $0x54] sm:$0xff]  }
 0x2ad   : > { %v14254_v31 = vpop.f32.mrb[154].mxu0  ;;  %v5738_v36 = vsel %vm1208_vm2, %v5733_v34, %v5737_v21  ;;  %v6108_v47 = vsel %vm1609_vm10, %v6106_v35, %v6107_v61  ;;  %v5118_v18 = vor.u32 %v5116_v58, %v5115_v22  ;;  %v5120_v26 = vrot.slane %v5115_v22, 4  ;;  %v12823_v58 = vld [vmem:[#allocation2 + $0x18] sm:$0xfe]   ;;  %v5341_v21 = vld [vmem:[#allocation2 + $0x84] sm:$0xf] }
 0x2ae   : > { %v14260_v10 = vpop.f32.mrb[155].mxu0  ;;  %v5098_v41 = vrot.slane %v5096_v39, 7  ;;  %8558 = vmatprep.mubr.bf16.mxu1 %v5738_v36  ;;  %8712 = vmatmul.mubr.bf16.gmra.mrb[164].mxu0 %v6108_v47  ;;  %v4843_v50 = vmax.f32 %v4777_v48, 0.0  ;;  %v11328_v0 = vpack.c.bf16 %v4845_v1, %v4845_v1  ;;  %v4846_v9 = vmax.f32 %v4788_v33, 0.0 }
 0x2af   : > { %8719 = vmatprep.mubr.bf16.mxu0 %v12818_v56  ;;  %v4780_v52 = vadd.f32 %v14230_v20, %v14091_v54  ;;  %v5740_v63 = vshrl.u32 %v14263_v12, 16  ;;  %v5119_v16 = vsel %vm13538_vm8, %v5111_v60, %v5118_v18  ;;  %v5339_v40 = vsel %vm13517_vm5, %v5120_v26, %v5338_v25  ;;  %v12819_v20 = vld [vmem:[#allocation2 + $0x18] sm:$0xff]   ;;  %v12824_v22 = vld [vmem:[#allocation2 + $0x20] ss:$0 sps:$4 sm:$0x11]  }
 0x2b0   : > { %v5101_v51 = vor.u32 %v5099_v19, %v5098_v41  ;;  %v5103_v62 = vrot.slane %v5098_v41, 4  ;;  %5337 = vst [vmem:[#allocation2 + $0x7c] sm:$0xf] %v5119_v16  ;;  %5340 = vst [vmem:[#allocation2 + $0x80] sm:$0x1] %v5339_v40  ;;  %v5139_v15 = vshrl.u32 %v11328_v0, 16  ;;  %v11326_v5 = vpack.c.bf16 %v4843_v50, %v4843_v50 }
 0x2b1   : > { %v5142_v14 = vshll.u32 %v11328_v0, 16  ;;  %v11329_v54 = vpack.c.bf16 %v4846_v9, %v4846_v9  ;;  %v4844_v35 = vmax.f32 %v4780_v52, 0.0  ;;  %v5742_v24 = vshll.u32 %v14263_v12, 16  ;;  %v5352_v26 = vld [vmem:[#allocation2 + $0x98] sm:$0x1]  ;;  %v12828_v52 = vld [vmem:[#allocation2 + $0x30] sm:$0xff]  }
 0x2b2   : > { %v5102_v60 = vsel %vm13538_vm8, %v5094_v45, %v5101_v51  ;;  %v5332_v30 = vsel %vm13517_vm5, %v5103_v62, %v5331_v23  ;;  %v5141_v42 = vrot.slane %v5139_v15, 7  ;;  %v5122_v37 = vshrl.u32 %v11326_v5, 16  ;;  %v5345_v41 = vld [vmem:[#allocation2 + $0x8c] sm:$0x1]  ;;  %v12830_v40 = vld [vmem:[#allocation2 + $0x24] sm:$0xfe]  }
 0x2b3   : > { %v14273_v29 = vpop.f32.mrb[156].mxu0  ;;  %5330 = vst [vmem:[#allocation2 + $0x70] sm:$0xf] %v5102_v60  ;;  %5333 = vst [vmem:[#allocation2 + $0x74] sm:$0x1] %v5332_v30  ;;  %v5125_v17 = vshll.u32 %v11326_v5, 16  ;;  %v11327_v8 = vpack.c.bf16 %v4844_v35, %v4844_v35  ;;  %v4793_v60 = vadd.f32 %v14252_v4, %v14101_v57 }
 0x2b4   : > { %v14278_v55 = vpop.f32.mrb[157].mxu0  ;;  %v5147_v34 = vshrl.u32 %v11329_v54, 16  ;;  %v5150_v61 = vshll.u32 %v11329_v54, 16  ;;  %8559 = vmatmul.mubr.bf16.gmra.mrb[136].mxu1 %v12819_v20  ;;  %v5744_v46 = vrot.slane %v5742_v24, 1  ;;  %v5747_v45 = vshll.u32 %v12822_v53, 16  ;;  %v12827_v30 = vld [vmem:[#allocation2 + $0x24] sm:$0xff]  }
 0x2b5   : > { %v14284_v44 = vpop.f32.mrb[158].mxu0  ;;  %v5144_v39 = vor.u32 %v5142_v14, %v5141_v42  ;;  %v5145_v19 = vrot.slane %v5141_v42, 4  ;;  %v5124_v48 = vrot.slane %v5122_v37, 7  ;;  %v5130_v23 = vshrl.u32 %v11327_v8, 16  ;;  %v12826_v35 = vld [vmem:[#allocation2 + $0x30] sm:$0xff]  }
 0x2b6   : > { %v14286_v43 = vpop.f32.mrb[159].mxu0  ;;  %v5149_v25 = vrot.slane %v5147_v34, 7  ;;  %v5133_v12 = vshll.u32 %v11327_v8, 16  ;;  %v5745_v36 = vor.u32 %v5744_v46, %v5740_v63  ;;  %v5749_v47 = vrot.slane %v5747_v45, 1 }
 0x2b7   : > { %v5349_v56 = vsel %vm13551_vm9, %v5144_v39, %v5348_v2  ;;  %v5127_v1 = vor.u32 %v5125_v17, %v5124_v48  ;;  %v5128_v33 = vrot.slane %v5124_v48, 4  ;;  %v5132_v53 = vrot.slane %v5130_v23, 7  ;;  %v12829_v16 = vld [vmem:[#allocation2 + $0x38] ss:$0 sps:$4 sm:$0x11]  }
 0x2b8   : > { %v5152_v18 = vor.u32 %v5150_v61, %v5149_v25  ;;  %5350 = vst [vmem:[#allocation2 + $0x90] sm:$0xf] %v5349_v56  ;;  %v5154_v50 = vrot.slane %v5149_v25, 4  ;;  %v5750_v0 = vsel %vm1208_vm2, %v5745_v36, %v5749_v47  ;;  %v6109_v9 = vrot.slane %v12823_v58, 1 }
 0x2b9   : > { %v12831_v51 = vld [vmem:[#allocation2 + $0x2c] ss:$0 sps:$4 sm:$0x11]   ;;  %v5342_v63 = vsel %vm13551_vm9, %v5127_v1, %v5341_v21  ;;  %8566 = vmatprep.mubr.bf16.mxu1 %v5750_v0  ;;  %v6110_v15 = vrot.slane %v12824_v22, 1  ;;  %v4801_v14 = vadd.f32 %v14246_v3, %v14107_v27  ;;  %v5135_v54 = vor.u32 %v5133_v12, %v5132_v53  ;;  %v5362_v22 = vld [vmem:[#allocation2 + $0xa8] sm:$0xf] }
 0x2ba   : > { %v5153_v62 = vsel %vm13538_vm8, %v5145_v19, %v5152_v18  ;;  %5343 = vst [vmem:[#allocation2 + $0x84] sm:$0xf] %v5342_v63  ;;  %v5353_v5 = vsel %vm13517_vm5, %v5154_v50, %v5352_v26  ;;  %v5137_v20 = vrot.slane %v5132_v53, 4  ;;  %v4804_v58 = vadd.f32 %v14254_v31, %v14109_v28  ;;  %v5355_v1 = vld [vmem:[#allocation2 + $0x9c] sm:$0xf] }
 0x2bb   : > { %5351 = vst [vmem:[#allocation2 + $0x94] sm:$0xf] %v5153_v62  ;;  %5354 = vst [vmem:[#allocation2 + $0x98] sm:$0x1] %v5353_v5  ;;  %v6111_v2 = vsel %vm1609_vm10, %v6109_v9, %v6110_v15  ;;  %v4849_v24 = vmax.f32 %v4801_v14, 0.0  ;;  %v4796_v27 = vadd.f32 %v14260_v10, %v14103_v11  ;;  %v5136_v3 = vsel %vm13538_vm8, %v5128_v33, %v5135_v54  ;;  %v12833_v14 = vld [vmem:[#allocation2 + $0x30] sm:$0xff]  }
 0x2bc   : > { %v5346_v42 = vsel %vm13517_vm5, %v5137_v20, %v5345_v41  ;;  %8720 = vmatmul.mubr.bf16.gmra.mrb[168].mxu0 %v6111_v2  ;;  %v4847_v57 = vmax.f32 %v4793_v60, 0.0  ;;  %8567 = vmatmul.mubr.bf16.gmra.mrb[140].mxu1 %v12827_v30  ;;  %v5752_v4 = vshrl.u32 %v12828_v52, 16  ;;  %5344 = vst [vmem:[#allocation2 + $0x88] sm:$0xf] %v5136_v3  ;;  %v4850_v17 = vmax.f32 %v4804_v58, 0.0  ;;  %v12835_v30 = vld [vmem:[#allocation2 + $0x3c] sm:$0xff]  }
 0x2bd   : > { %5347 = vst [vmem:[#allocation2 + $0x8c] sm:$0x1] %v5346_v42  ;;  %8727 = vmatprep.mubr.bf16.mxu0 %v12826_v35  ;;  %v11332_v37 = vpack.c.bf16 %v4849_v24, %v4849_v24  ;;  %v4848_v34 = vmax.f32 %v4796_v27, 0.0  ;;  %v5754_v28 = vshll.u32 %v12828_v52, 16  ;;  %v5759_v21 = vshll.u32 %v12829_v16, 16  ;;  %v12832_v16 = vld [vmem:[#allocation2 + $0x3c] sm:$0xff]  }
 0x2be   : > { %v11330_v31 = vpack.c.bf16 %v4847_v57, %v4847_v57  ;;  %v6112_v11 = vrot.slane %v12830_v40, 1  ;;  %v6113_v10 = vrot.slane %v12831_v51, 1  ;;  %v11333_v46 = vpack.c.bf16 %v4850_v17, %v4850_v17  ;;  %v5366_v33 = vld [vmem:[#allocation2 + $0xb0] sm:$0x1]  ;;  %v5359_v52 = vld [vmem:[#allocation2 + $0xa4] sm:$0x1] }
 0x2bf   : > { %v5173_v61 = vshrl.u32 %v11332_v37, 16  ;;  %v5176_v8 = vshll.u32 %v11332_v37, 16  ;;  %v11331_v45 = vpack.c.bf16 %v4848_v34, %v4848_v34  ;;  %v5756_v48 = vrot.slane %v5754_v28, 1  ;;  %v12836_v40 = vld [vmem:[#allocation2 + $0x44] ss:$0 sps:$4 sm:$0x11]  }
 0x2c0   : > { %v5156_v39 = vshrl.u32 %v11330_v31, 16  ;;  %v5159_v19 = vshll.u32 %v11330_v31, 16  ;;  %v5761_v25 = vrot.slane %v5759_v21, 1  ;;  %v5181_v12 = vshrl.u32 %v11333_v46, 16 }
 0x2c1   : > { %v5175_v23 = vrot.slane %v5173_v61, 7  ;;  %v5184_v36 = vshll.u32 %v11333_v46, 16  ;;  %v5164_v47 = vshrl.u32 %v11331_v45, 16  ;;  %v5167_v18 = vshll.u32 %v11331_v45, 16 }
 0x2c2   : > { %v5158_v56 = vrot.slane %v5156_v39, 7  ;;  %v5757_v26 = vor.u32 %v5756_v48, %v5752_v4  ;;  %v6114_v41 = vsel %vm1609_vm10, %v6112_v11, %v6113_v10  ;;  %v5183_v0 = vrot.slane %v5181_v12, 7  ;;  %v12838_v37 = vld [vmem:[#allocation2 + $0x38] ss:$0 sps:$4 sm:$0x11]  }
 0x2c3   : > { %v5178_v50 = vor.u32 %v5176_v8, %v5175_v23  ;;  %v5179_v53 = vrot.slane %v5175_v23, 4  ;;  %v5166_v9 = vrot.slane %v5164_v47, 7  ;;  %v4817_v15 = vadd.f32 %v14273_v29, %v14126_v7  ;;  %v12837_v7 = vld [vmem:[#allocation2 + $0x30] sm:$0xfe]   ;;  %v5376_v10 = vld [vmem:[#allocation2 + $0xc0] sm:$0xf] }
 0x2c4   : > { %v5161_v51 = vor.u32 %v5159_v19, %v5158_v56  ;;  %v5162_v63 = vrot.slane %v5158_v56, 4  ;;  %v5762_v62 = vsel %vm1208_vm2, %v5757_v26, %v5761_v25  ;;  %8728 = vmatmul.mubr.bf16.gmra.mrb[172].mxu0 %v6114_v41  ;;  %v5186_v54 = vor.u32 %v5184_v36, %v5183_v0  ;;  %v12840_v47 = vld [vmem:[#allocation2 + $0x48] sm:$0xff]  }
 0x2c5   : > { %v5363_v5 = vsel %vm13551_vm9, %v5178_v50, %v5362_v22  ;;  %v5188_v20 = vrot.slane %v5183_v0, 4  ;;  %v5169_v60 = vor.u32 %v5167_v18, %v5166_v9  ;;  %8574 = vmatprep.mubr.bf16.mxu1 %v5762_v62  ;;  %8735 = vmatprep.mubr.bf16.mxu0 %v12832_v16  ;;  %v5171_v35 = vrot.slane %v5166_v9, 4  ;;  %v12842_v56 = vld [vmem:[#allocation2 + $0x48] sm:$0xff]   ;;  %v12845_v0 = vld [vmem:[#allocation2 + $0x44] ss:$0 sps:$4 sm:$0x11]  }
 0x2c6   : > { %5364 = vst [vmem:[#allocation2 + $0xa8] sm:$0xf] %v5363_v5  ;;  %v5356_v2 = vsel %vm13551_vm9, %v5161_v51, %v5355_v1  ;;  %v4853_v24 = vmax.f32 %v4817_v15, 0.0  ;;  %v4809_v58 = vadd.f32 %v14278_v55, %v14113_v13  ;;  %8575 = vmatmul.mubr.bf16.gmra.mrb[144].mxu1 %v12833_v14  ;;  %v5187_v29 = vsel %vm13538_vm8, %v5179_v53, %v5186_v54  ;;  %v12844_v1 = vld [vmem:[#allocation2 + $0x3c] sm:$0xfe]  }
 0x2c7   : > { %5357 = vst [vmem:[#allocation2 + $0x9c] sm:$0xf] %v5356_v2  ;;  %v5367_v27 = vsel %vm13517_vm5, %v5188_v20, %v5366_v33  ;;  %v5170_v3 = vsel %vm13538_vm8, %v5162_v63, %v5169_v60  ;;  %v4820_v42 = vadd.f32 %v14284_v44, %v14129_v32  ;;  %5365 = vst [vmem:[#allocation2 + $0xac] sm:$0xf] %v5187_v29  ;;  %v5764_v34 = vshrl.u32 %v12835_v30, 16  ;;  %v12841_v53 = vld [vmem:[#allocation2 + $0x3c] sm:$0xff]  }
 0x2c8   : > { %5368 = vst [vmem:[#allocation2 + $0xb0] sm:$0x1] %v5367_v27  ;;  %v5360_v13 = vsel %vm13517_vm5, %v5171_v35, %v5359_v52  ;;  %5358 = vst [vmem:[#allocation2 + $0xa0] sm:$0xf] %v5170_v3  ;;  %v11336_v55 = vpack.c.bf16 %v4853_v24, %v4853_v24  ;;  %v4851_v57 = vmax.f32 %v4809_v58, 0.0  ;;  %v4812_v4 = vadd.f32 %v14286_v43, %v14116_v49  ;;  %v12849_v2 = vld [vmem:[#allocation2 + $0x54] sm:$0xff]  }
 0x2c9   : > { %5361 = vst [vmem:[#allocation2 + $0xa4] sm:$0x1] %v5360_v13  ;;  %v4854_v17 = vmax.f32 %v4820_v42, 0.0  ;;  %v5766_v28 = vshll.u32 %v12835_v30, 16  ;;  %v5771_v31 = vshll.u32 %v12836_v40, 16  ;;  %v6115_v45 = vrot.slane %v12837_v7, 1 }
 0x2ca   : > { %v5207_v21 = vshrl.u32 %v11336_v55, 16  ;;  %v5210_v11 = vshll.u32 %v11336_v55, 16  ;;  %v11334_v32 = vpack.c.bf16 %v4851_v57, %v4851_v57  ;;  %v4852_v44 = vmax.f32 %v4812_v4, 0.0  ;;  %v12843_v49 = vld [vmem:[#allocation2 + $0x50] ss:$0 sps:$4 sm:$0x11]  }
 0x2cb   : > { %v11337_v61 = vpack.c.bf16 %v4854_v17, %v4854_v17  ;;  %v5768_v8 = vrot.slane %v5766_v28, 1  ;;  %v5773_v46 = vrot.slane %v5771_v31, 1  ;;  %v5369_v43 = vld [vmem:[#allocation2 + $0xb4] sm:$0xf]  ;;  %v6116_v36 = vrot.slane %v12838_v37, 1  ;;  %v12856_v13 = vld [vmem:[#allocation2 + $0x60] sm:$0xff]  }
 0x2cc   : > { %v5209_v22 = vrot.slane %v5207_v21, 7  ;;  %v5190_v39 = vshrl.u32 %v11334_v32, 16  ;;  %v5193_v19 = vshll.u32 %v11334_v32, 16  ;;  %v11335_v48 = vpack.c.bf16 %v4852_v44, %v4852_v44  ;;  %v5380_v41 = vld [vmem:[#allocation2 + $0xc8] sm:$0x1] }
 0x2cd   : > { %v5215_v25 = vshrl.u32 %v11337_v61, 16  ;;  %v5218_v23 = vshll.u32 %v11337_v61, 16  ;;  %v5769_v12 = vor.u32 %v5768_v8, %v5764_v34  ;;  %v5373_v16 = vld [vmem:[#allocation2 + $0xbc] sm:$0x1]  ;;  %v6117_v51 = vsel %vm1609_vm10, %v6115_v45, %v6116_v36  ;;  %v12851_v4 = vld [vmem:[#allocation2 + $0x48] sm:$0xfe]  }
 0x2ce   : > { %v5212_v33 = vor.u32 %v5210_v11, %v5209_v22  ;;  %v5213_v18 = vrot.slane %v5209_v22, 4  ;;  %v5192_v26 = vrot.slane %v5190_v39, 7  ;;  %v5198_v50 = vshrl.u32 %v11335_v48, 16  ;;  %8736 = vmatmul.mubr.bf16.gmra.mrb[176].mxu0 %v6117_v51  ;;  %v12850_v5 = vld [vmem:[#allocation2 + $0x5c] ss:$0 sps:$4 sm:$0x11]  }
 0x2cf   : > { %v5217_v9 = vrot.slane %v5215_v25, 7  ;;  %v5201_v52 = vshll.u32 %v11335_v48, 16  ;;  %v5774_v40 = vsel %vm1208_vm2, %v5769_v12, %v5773_v46  ;;  %8743 = vmatprep.mubr.bf16.mxu0 %v12840_v47  ;;  %v5776_v60 = vshrl.u32 %v12842_v56, 16  ;;  %v12852_v31 = vld [vmem:[#allocation2 + $0x50] ss:$0 sps:$4 sm:$0x11]  }
 0x2d0   : > { %v5377_v63 = vsel %vm13551_vm9, %v5212_v33, %v5376_v10  ;;  %v5195_v62 = vor.u32 %v5193_v19, %v5192_v26  ;;  %v5196_v15 = vrot.slane %v5192_v26, 4  ;;  %v5200_v14 = vrot.slane %v5198_v50, 7  ;;  %8582 = vmatprep.mubr.bf16.mxu1 %v5774_v40  ;;  %v12857_v11 = vld [vmem:[#allocation2 + $0x68] ss:$0 sps:$4 sm:$0x11]   ;;  %v12912_v8 = vld [vmem:[#allocation9 + $0x178] sm:$0xff]  }
 0x2d1   : > { %5378 = vst [vmem:[#allocation2 + $0xc0] sm:$0xf] %v5377_v63  ;;  %v5220_v54 = vor.u32 %v5218_v23, %v5217_v9  ;;  %v5222_v20 = vrot.slane %v5217_v9, 4  ;;  %8583 = vmatmul.mubr.bf16.gmra.mrb[148].mxu1 %v12841_v53  ;;  %v5778_v30 = vshll.u32 %v12842_v56, 16  ;;  %v5783_v7 = vshll.u32 %v12843_v49, 16  ;;  %v12847_v10 = vld [vmem:[#allocation2 + $0x48] sm:$0xff]   ;;  %12050 = vmatprep.subr.bf16.mxu1 %v12912_v8 }
 0x2d2   : > { %v5370_v35 = vsel %vm13551_vm9, %v5195_v62, %v5369_v43  ;;  %v5203_v24 = vor.u32 %v5201_v52, %v5200_v14  ;;  %v5205_v58 = vrot.slane %v5200_v14, 4  ;;  %v6118_v42 = vrot.slane %v12844_v1, 1  ;;  %v12865_v39 = vld [vmem:[#allocation2 + $0x6c] sm:$0xff]   ;;  %v12858_v12 = vld [vmem:[#allocation2 + $0x54] sm:$0xfe]   ;;  %v12854_v47 = vld [vmem:[#allocation2 + $0x60] sm:$0xff]  }
 0x2d3   : > { %5371 = vst [vmem:[#allocation2 + $0xb4] sm:$0xf] %v5370_v35  ;;  %v5221_v29 = vsel %vm13538_vm8, %v5213_v18, %v5220_v54  ;;  %v5381_v27 = vsel %vm13517_vm5, %v5222_v20, %v5380_v41  ;;  %v5780_v3 = vrot.slane %v5778_v30, 1  ;;  %v6119_v57 = vrot.slane %v12845_v0, 1  ;;  %v12917_v49 = vld [vmem:[#allocation9 + $0x138] sm:$0xff]   ;;  %v12872_v50 = vld [vmem:[#allocation2 + $0x78] sm:$0xff]  }
 0x2d4   : > { %5379 = vst [vmem:[#allocation2 + $0xc4] sm:$0xf] %v5221_v29  ;;  %5382 = vst [vmem:[#allocation2 + $0xc8] sm:$0x1] %v5381_v27  ;;  %v5204_v55 = vsel %vm13538_vm8, %v5196_v15, %v5203_v24  ;;  %v5374_v6 = vsel %vm13517_vm5, %v5205_v58, %v5373_v16  ;;  %v5785_v17 = vrot.slane %v5783_v7, 1  ;;  %v5790_v34 = vshll.u32 %v12849_v2, 16  ;;  %12051 = vmatpush3.bf16.msra.mxu1 %v12917_v49 }
 0x2d5   : > { %5372 = vst [vmem:[#allocation2 + $0xb8] sm:$0xf] %v5204_v55  ;;  %5375 = vst [vmem:[#allocation2 + $0xbc] sm:$0x1] %v5374_v6  ;;  %v5781_v37 = vor.u32 %v5780_v3, %v5776_v60  ;;  %v5795_v28 = vshll.u32 %v12850_v5, 16  ;;  %v5788_v21 = vshrl.u32 %v12849_v2, 16  ;;  %v6120_v44 = vsel %vm1609_vm10, %v6118_v42, %v6119_v57 }
 0x2d6   : > { %v5792_v61 = vrot.slane %v5790_v34, 1  ;;  %v5802_v38 = vshll.u32 %v12856_v13, 16  ;;  %8744 = vmatmul.mubr.bf16.gmra.mrb[180].mxu0 %v6120_v44  ;;  %v6121_v19 = vrot.slane %v12851_v4, 1  ;;  %v5807_v48 = vshll.u32 %v12857_v11, 16  ;;  %v12855_v18 = vld [vmem:[#allocation2 + $0x54] sm:$0xff]   ;;  %v12860_v14 = vld [vmem:[#allocation2 + $0x6c] sm:$0xff]  }
 0x2d7   : > { %v5786_v32 = vsel %vm1208_vm2, %v5781_v37, %v5785_v17  ;;  %8751 = vmatprep.mubr.bf16.mxu0 %v12846_v59  ;;  %v5797_v45 = vrot.slane %v5795_v28, 1  ;;  %v6122_v25 = vrot.slane %v12852_v31, 1  ;;  %v5800_v23 = vshrl.u32 %v12856_v13, 16  ;;  %v12859_v36 = vld [vmem:[#allocation2 + $0x5c] ss:$0 sps:$4 sm:$0x11]  }
 0x2d8   : > { %8590 = vmatprep.mubr.bf16.mxu1 %v5786_v32  ;;  %v5793_v46 = vor.u32 %v5792_v61, %v5788_v21  ;;  %v5804_v22 = vrot.slane %v5802_v38, 1  ;;  %v12866_v1 = vld [vmem:[#allocation2 + $0x74] ss:$0 sps:$4 sm:$0x11]   ;;  %v5814_v33 = vshll.u32 %v12865_v39, 16  ;;  %v5809_v26 = vrot.slane %v5807_v48, 1 }
 0x2d9   : > { %8591 = vmatmul.mubr.bf16.gmra.mrb[152].mxu1 %v12847_v10  ;;  %v6123_v41 = vsel %vm1609_vm10, %v6121_v19, %v6122_v25  ;;  %v6124_v9 = vrot.slane %v12858_v12, 1  ;;  %v6125_v52 = vrot.slane %v12859_v36, 1  ;;  %v5812_v16 = vshrl.u32 %v12865_v39, 16  ;;  %v12868_v51 = vld [vmem:[#allocation2 + $0x68] ss:$0 sps:$4 sm:$0x11]  }
 0x2da   : > { %v5798_v43 = vsel %vm1208_vm2, %v5793_v46, %v5797_v45  ;;  %v5805_v56 = vor.u32 %v5804_v22, %v5800_v23  ;;  %v5816_v0 = vrot.slane %v5814_v33, 1  ;;  %v5819_v40 = vshll.u32 %v12866_v1, 16  ;;  %v12867_v15 = vld [vmem:[#allocation2 + $0x60] sm:$0xfe]   ;;  %v12874_v42 = vld [vmem:[#allocation2 + $0x6c] sm:$0xfe]  }
 0x2db   : > { %8598 = vmatprep.mubr.bf16.mxu1 %v5798_v43  ;;  %v5826_v63 = vshll.u32 %v12872_v50, 16  ;;  %v12873_v5 = vld [vmem:[#allocation2 + $0x80] ss:$0 sps:$4 sm:$0x11]   ;;  %v6126_v54 = vsel %vm1609_vm10, %v6124_v9, %v6125_v52  ;;  %v12881_v2 = vld [vmem:[#allocation2 + $0x84] sm:$0xff]   ;;  %v6127_v24 = vrot.slane %v12867_v15, 1 }
 0x2dc   : > { %v5810_v53 = vsel %vm1208_vm2, %v5805_v56, %v5809_v26  ;;  %v5817_v62 = vor.u32 %v5816_v0, %v5812_v16  ;;  %v12863_v20 = vld [vmem:[#allocation2 + $0x60] sm:$0xff]   ;;  %v5821_v60 = vrot.slane %v5819_v40, 1  ;;  %v6128_v58 = vrot.slane %v12868_v51, 1  ;;  %v12875_v13 = vld [vmem:[#allocation2 + $0x74] ss:$0 sps:$4 sm:$0x11]  }
 0x2dd   : > { %v5828_v30 = vrot.slane %v5826_v63, 1  ;;  %v5824_v7 = vshrl.u32 %v12872_v50, 16  ;;  %v5831_v29 = vshll.u32 %v12873_v5, 16  ;;  %v5838_v27 = vshll.u32 %v12881_v2, 16  ;;  %v12870_v55 = vld [vmem:[#allocation2 + $0x78] sm:$0xff]   ;;  %v12871_v4 = vld [vmem:[#allocation2 + $0x6c] sm:$0xff]  }
 0x2de   : > { %8752 = vmatmul.mubr.bf16.gmra.mrb[184].mxu0 %v6123_v41  ;;  %v5822_v35 = vsel %vm1208_vm2, %v5817_v62, %v5821_v60  ;;  %v12882_v6 = vld [vmem:[#allocation2 + $0x8c] ss:$0 sps:$4 sm:$0x11]   ;;  %v6129_v57 = vsel %vm1609_vm10, %v6127_v24, %v6128_v58  ;;  %v12888_v34 = vld [vmem:[#allocation2 + $0x90] sm:$0xff]   ;;  %v6130_v31 = vrot.slane %v12874_v42, 1  ;;  %v5836_v21 = vshrl.u32 %v12881_v2, 16 }
 0x2df   : > { %8759 = vmatprep.mubr.bf16.mxu0 %v12854_v47  ;;  %v5829_v3 = vor.u32 %v5828_v30, %v5824_v7  ;;  %v5833_v37 = vrot.slane %v5831_v29, 1  ;;  %v5840_v17 = vrot.slane %v5838_v27, 1  ;;  %v6131_v11 = vrot.slane %v12875_v13, 1  ;;  %v12876_v44 = vld [vmem:[#allocation2 + $0x84] sm:$0xff]   ;;  %v12879_v59 = vld [vmem:[#allocation2 + $0x78] sm:$0xff]   ;;  %v12886_v36 = vld [vmem:[#allocation2 + $0x90] sm:$0xff]  }
 0x2e0   : > { %v5843_v32 = vshll.u32 %v12882_v6, 16  ;;  %v12884_v61 = vld [vmem:[#allocation2 + $0x80] ss:$0 sps:$4 sm:$0x11]   ;;  %v5850_v38 = vshll.u32 %v12888_v34, 16  ;;  %v5848_v25 = vshrl.u32 %v12888_v34, 16 }
 0x2e1   : > { %8599 = vmatmul.mubr.bf16.gmra.mrb[156].mxu1 %v12855_v18  ;;  %v5834_v28 = vsel %vm1208_vm2, %v5829_v3, %v5833_v37  ;;  %v5841_v10 = vor.u32 %v5840_v17, %v5836_v21  ;;  %v12883_v8 = vld [vmem:[#allocation2 + $0x78] sm:$0xfe]   ;;  %v6132_v46 = vsel %vm1609_vm10, %v6130_v31, %v6131_v11  ;;  %v12889_v22 = vld [vmem:[#allocation2 + $0x98] ss:$0 sps:$4 sm:$0x11]   ;;  %v6134_v43 = vrot.slane %v12884_v61, 1 }
 0x2e2   : > { %8606 = vmatprep.mubr.bf16.mxu1 %v5810_v53  ;;  %v5845_v45 = vrot.slane %v5843_v32, 1  ;;  %v5852_v19 = vrot.slane %v5850_v38, 1  ;;  %v12897_v48 = vld [vmem:[#allocation2 + $0x9c] sm:$0xff]   ;;  %v6133_v49 = vrot.slane %v12883_v8, 1  ;;  %v5855_v23 = vshll.u32 %v12889_v22, 16  ;;  %v12887_v47 = vld [vmem:[#allocation2 + $0x84] sm:$0xff]  }
 0x2e3   : > { %v12890_v12 = vld [vmem:[#allocation2 + $0x84] sm:$0xfe]   ;;  %v12898_v1 = vld [vmem:[#allocation2 + $0xa4] ss:$0 sps:$4 sm:$0x11]   ;;  %v5862_v33 = vshll.u32 %v12897_v48, 16 }
 0x2e4   : > { %v5846_v39 = vsel %vm1208_vm2, %v5841_v10, %v5845_v45  ;;  %v5853_v56 = vor.u32 %v5852_v19, %v5848_v25  ;;  %v12918_v18 = vld [vmem:[#allocation9 + $0x1e0] sm:$0xff]   ;;  %v6135_v26 = vsel %vm1609_vm10, %v6133_v49, %v6134_v43  ;;  %v5857_v41 = vrot.slane %v5855_v23, 1  ;;  %v12891_v50 = vld [vmem:[#allocation2 + $0x8c] ss:$0 sps:$4 sm:$0x11]   ;;  %v12921_v40 = vld [vmem:[#allocation9 + $0x1e8] sm:$0xff]  }
 0x2e5   : > { %v12904_v53 = vld [vmem:[#allocation2 + $0xa8] sm:$0xff]   ;;  %12156 = vmatprep.subr.bf16.mxu0 %v12918_v18  ;;  %v5860_v9 = vshrl.u32 %v12897_v48, 16  ;;  %v5864_v52 = vrot.slane %v5862_v33, 1  ;;  %v12920_v16 = vld [vmem:[#allocation9 + $0x1a0] sm:$0xff]   ;;  %v6136_v51 = vrot.slane %v12890_v12, 1  ;;  %v5867_v63 = vshll.u32 %v12898_v1, 16 }
 0x2e6   : > { %8760 = vmatmul.mubr.bf16.gmra.mrb[188].mxu0 %v6126_v54  ;;  %v5858_v0 = vsel %vm1208_vm2, %v5853_v56, %v5857_v41  ;;  %v6137_v62 = vrot.slane %v12891_v50, 1  ;;  %v12922_v15 = vld [vmem:[#allocation9 + $0x1a8] sm:$0xff]   ;;  %v12895_v5 = vld [vmem:[#allocation2 + $0x90] sm:$0xff]   ;;  %v5874_v60 = vshll.u32 %v12904_v53, 16  ;;  %v12928_v30 = vld [vmem:[#allocation9 + $0x1f0] sm:$0xff]   ;;  %v5872_v6 = vshrl.u32 %v12904_v53, 16 }
 0x2e7   : > { %8767 = vmatprep.mubr.bf16.mxu0 %v12860_v14  ;;  %12157 = vmatpush3.bf16.msra.mxu0 %v12920_v16  ;;  %v12892_v14 = vld [vmem:[#allocation2 + $0x9c] sm:$0xff]   ;;  %v5865_v54 = vor.u32 %v5864_v52, %v5860_v9  ;;  %v5869_v2 = vrot.slane %v5867_v63, 1  ;;  %v12905_v58 = vld [vmem:[#allocation2 + $0xb0] ss:$0 sps:$4 sm:$0x11]   ;;  %v12929_v7 = vld [vmem:[#allocation9 + $0x1b0] sm:$0xff]  }
 0x2e8   : > { %12158 = vmatprep.subr.bf16.mxu0 %v12921_v40  ;;  %v6138_v24 = vsel %vm1609_vm10, %v6136_v51, %v6137_v62  ;;  %v5876_v27 = vrot.slane %v5874_v60, 1  ;;  %v12913_v3 = vld [vmem:[#allocation2 + $0xb4] sm:$0xff]   ;;  %v14370_v17 = vpop.f32.mrb[128].mxu1  ;;  %v12902_v34 = vld [vmem:[#allocation2 + $0xa8] sm:$0xff]   ;;  %v12906_v31 = vld [vmem:[#allocation2 + $0x9c] sm:$0xfe]  }
 0x2e9   : > { %8607 = vmatmul.mubr.bf16.gmra.mrb[160].mxu1 %v12863_v20  ;;  %v12899_v20 = vld [vmem:[#allocation2 + $0x90] sm:$0xfe]   ;;  %v5870_v29 = vsel %vm1208_vm2, %v5865_v54, %v5869_v2  ;;  %v14368_v37 = vld [vmem:[#allocation9 + $0x200] sm:$0xff]   ;;  %v5886_v21 = vshll.u32 %v12913_v3, 16  ;;  %v6142_v8 = vrot.slane %v12906_v31, 1  ;;  %v5884_v45 = vshrl.u32 %v12913_v3, 16 }
 0x2ea   : > { %8614 = vmatprep.mubr.bf16.mxu1 %v5822_v35  ;;  %v12900_v35 = vld [vmem:[#allocation2 + $0x98] ss:$0 sps:$4 sm:$0x11]   ;;  %v12932_v42 = vld [vmem:[#allocation9 + $0x1f8] sm:$0xff]   ;;  %v6139_v13 = vrot.slane %v12899_v20, 1  ;;  %12332 = vmatprep.subr.bf16.mxu1 %v14368_v37  ;;  %v12911_v19 = vld [vmem:[#allocation2 + $0xa8] sm:$0xff]  }
 0x2eb   : > { %12159 = vmatpush3.bf16.msra.mxu0 %v12922_v15  ;;  %v12907_v11 = vld [vmem:[#allocation2 + $0xa4] ss:$0 sps:$4 sm:$0x11]   ;;  %v12914_v32 = vld [vmem:[#allocation2 + $0xbc] ss:$0 sps:$4 sm:$0x11]  }
 0x2ec   : > { %12160 = vmatprep.subr.bf16.mxu0 %v12928_v30  ;;  %v5888_v38 = vrot.slane %v5886_v21, 1  ;;  %v5891_v22 = vshll.u32 %v12914_v32, 16  ;;  %v12915_v49 = vld [vmem:[#allocation2 + $0xa8] sm:$0xfe]   ;;  %v12908_v43 = vld [vmem:[#allocation2 + $0xb4] sm:$0xff]   ;;  %v12919_v9 = vld [vmem:[#allocation2 + $0xc0] sm:$0xff]  }
 0x2ed   : > { %v12916_v25 = vld [vmem:[#allocation2 + $0xb0] ss:$0 sps:$4 sm:$0x11]   ;;  %v12931_v33 = vld [vmem:[#allocation2 + $0x20] ss:$0 sps:$4 sm:$0x11]  }
 0x2ee   : > { %8768 = vmatmul.mubr.bf16.gmra.mrb[192].mxu0 %v6129_v57  ;;  %v5879_v57 = vshll.u32 %v12905_v58, 16  ;;  %v5889_v48 = vor.u32 %v5888_v38, %v5884_v45  ;;  %v12934_v23 = vld [vmem:[#allocation2 + $0xc] sm:$0xff]   ;;  %v6145_v18 = vrot.slane %v12915_v49, 1  ;;  %v6146_v41 = vrot.slane %v12916_v25, 1  ;;  %v12924_v53 = vld [vmem:[#allocation2 + $0xb4] sm:$0xfe]  }
 0x2ef   : > { %8775 = vmatprep.mubr.bf16.mxu0 %v12870_v55  ;;  %v6140_v55 = vrot.slane %v12900_v35, 1  ;;  %12161 = vmatpush3.bf16.msra.mxu0 %v12929_v7  ;;  %v12926_v56 = vld [vmem:[#allocation2 + $0xc] sm:$0xfe]   ;;  %v12935_v50 = vld [vmem:[#allocation2 + $0x14] ss:$0 sps:$4 sm:$0x11]  }
 0x2f0   : > { %12162 = vmatprep.subr.bf16.mxu0 %v12932_v42  ;;  %v5881_v10 = vrot.slane %v5879_v57, 1  ;;  %v6903_v52 = vrot.slane %v12926_v56, 1  ;;  %v12923_v40 = vld [vmem:[#allocation2 + $0xb4] sm:$0xff]   ;;  %v12925_v51 = vld [vmem:[#allocation2 + $0xbc] ss:$0 sps:$4 sm:$0x11]   ;;  %v6147_v15 = vsel %vm1609_vm10, %v6145_v18, %v6146_v41 }
 0x2f1   : > { %8615 = vmatmul.mubr.bf16.gmra.mrb[164].mxu1 %v12871_v4  ;;  %v12933_v4 = vld [vmem:[#allocation9 + $0x1b8] sm:$0xff]   ;;  %v7311_v62 = vshll.u32 %v12931_v33, 16  ;;  %v12938_v54 = vld [vmem:[#allocation2 + $0x20] ss:$0 sps:$4 sm:$0x11]   ;;  %v12940_v20 = vld [vmem:[#allocation2 + $0x24] sm:$0xff]  }
 0x2f2   : > { %8622 = vmatprep.mubr.bf16.mxu1 %v5834_v28  ;;  %v5877_v28 = vor.u32 %v5876_v27, %v5872_v6  ;;  %v12942_v30 = vld [vmem:[#allocation2 + $0x18] sm:$0xff]   ;;  %v6148_v58 = vrot.slane %v12924_v53, 1  ;;  %v6504_v7 = vshrl.u32 %v12934_v23, 16  ;;  %v7318_v42 = vshll.u32 %v12940_v20, 16  ;;  %v12944_v31 = vld [vmem:[#allocation2 + $0x24] sm:$0xfe]  }
 0x2f3   : > { %12163 = vmatpush3.bf16.msra.mxu0 %v12933_v4  ;;  %v7313_v27 = vrot.slane %v7311_v62, 1  ;;  %v12943_v6 = vld [vmem:[#allocation2 + $0x20] ss:$0 sps:$4 sm:$0x11]   ;;  %v6518_v57 = vshll.u32 %v12942_v30, 16  ;;  %v12949_v32 = vld [vmem:[#allocation2 + $0x24] sm:$0xff]  }
 0x2f4   : > { %v5882_v61 = vsel %vm1208_vm2, %v5877_v28, %v5881_v10  ;;  %v12945_v21 = vld [vmem:[#allocation2 + $0x2c] ss:$0 sps:$4 sm:$0x11]   ;;  %v12951_v10 = vld [vmem:[#allocation9 + $0x208] sm:$0xff]   ;;  %v6528_v53 = vshrl.u32 %v12949_v32, 16 }
 0x2f5   : > { %v12948_v45 = vld [vmem:[#allocation2 + $0x38] ss:$0 sps:$4 sm:$0x11]   ;;  %v6910_v56 = vrot.slane %v12945_v21, 1  ;;  %v12955_v18 = vld [vmem:[#allocation2 + $0x3c] sm:$0xff]  }
 0x2f6   : > { %8776 = vmatmul.mubr.bf16.gmra.mrb[196].mxu0 %v6132_v46  ;;  %v6143_v46 = vrot.slane %v12907_v11, 1  ;;  %v12947_v11 = vld [vmem:[#allocation2 + $0x30] sm:$0xff]  }
 0x2f7   : > { %8783 = vmatprep.mubr.bf16.mxu0 %v12876_v44  ;;  %v6141_v44 = vsel %vm1609_vm10, %v6139_v13, %v6140_v55  ;;  %v7330_v49 = vshll.u32 %v12947_v11, 16  ;;  %v7328_v33 = vshrl.u32 %v12947_v11, 16 }
 0x2f8   : > { %v6144_v12 = vsel %vm1609_vm10, %v6142_v8, %v6143_v46  ;;  %v6520_v8 = vrot.slane %v6518_v57, 1  ;;  %v6523_v46 = vshll.u32 %v12943_v6, 16  ;;  %v12964_v6 = vld [vmem:[#allocation2 + $0x3c] sm:$0xff]  }
 0x2f9   : > { %8623 = vmatmul.mubr.bf16.gmra.mrb[168].mxu1 %v12879_v59  ;;  %v12903_v59 = vld [vmem:[#allocation2 + $0x9c] sm:$0xff]   ;;  %v7332_v41 = vrot.slane %v7330_v49, 1  ;;  %v12967_v49 = vld [vmem:[#allocation2 + $0x48] sm:$0xfe]  }
 0x2fa   : > { %8630 = vmatprep.mubr.bf16.mxu1 %v5846_v39  ;;  %v12930_v39 = vld [vmem:[#allocation2 + $0x18] sm:$0xff]  }
 0x2fb   : > { %v7304_v35 = vshrl.u32 %v12930_v39, 16 }
 0x2fe   : > { %8784 = vmatmul.mubr.bf16.gmra.mrb[200].mxu0 %v6135_v26  ;;  %v7306_v26 = vshll.u32 %v12930_v39, 16  ;;  %v7316_v39 = vshrl.u32 %v12940_v20, 16  ;;  %v12946_v20 = vld [vmem:[#allocation2 + $0x24] sm:$0xff]  }
 0x2ff   : > { %8791 = vmatprep.mubr.bf16.mxu0 %v12886_v36  ;;  %v5893_v36 = vrot.slane %v5891_v22, 1 }
 0x300   : > { %v7308_v63 = vrot.slane %v7306_v26, 1  ;;  %v12939_v26 = vld [vmem:[#allocation2 + $0x18] sm:$0xff]  }
 0x301   : > { %8631 = vmatmul.mubr.bf16.gmra.mrb[172].mxu1 %v12887_v47  ;;  %v12927_v47 = vld [vmem:[#allocation2 + $0x14] ss:$0 sps:$4 sm:$0x11]   ;;  %v5894_v1 = vsel %vm1208_vm2, %v5889_v48, %v5893_v36  ;;  %v6516_v48 = vshrl.u32 %v12942_v30, 16  ;;  %v6525_v36 = vrot.slane %v6523_v46, 1 }
 0x302   : > { %8638 = vmatprep.mubr.bf16.mxu1 %v5858_v0  ;;  %v6506_v0 = vshll.u32 %v12934_v23, 16  ;;  %v6904_v16 = vrot.slane %v12927_v47, 1  ;;  %v7309_v13 = vor.u32 %v7308_v63, %v7304_v35  ;;  %v6530_v23 = vshll.u32 %v12949_v32, 16  ;;  %v12952_v63 = vld [vmem:[#allocation2 + $0x30] sm:$0xfe]  }
 0x303   : > { %v6909_v47 = vrot.slane %v12944_v31, 1  ;;  %v6912_v35 = vrot.slane %v12952_v63, 1 }
 0x304   : > { %v6508_v60 = vrot.slane %v6506_v0, 1  ;;  %v6905_v2 = vsel %vm1609_vm10, %v6903_v52, %v6904_v16  ;;  %v12956_v52 = vld [vmem:[#allocation2 + $0x44] ss:$0 sps:$4 sm:$0x11]   ;;  %v12957_v16 = vld [vmem:[#allocation2 + $0x30] sm:$0xff]  }
 0x305   : > { %v6911_v62 = vsel %vm1609_vm10, %v6909_v47, %v6910_v56  ;;  %v6540_v11 = vshrl.u32 %v12957_v16, 16 }
 0x306   : > { %8792 = vmatmul.mubr.bf16.gmra.mrb[204].mxu0 %v6138_v24  ;;  %v12941_v24 = vld [vmem:[#allocation2 + $0x2c] ss:$0 sps:$4 sm:$0x11]   ;;  %v6509_v55 = vor.u32 %v6508_v60, %v6504_v7  ;;  %v7333_v60 = vor.u32 %v7332_v41, %v7328_v33  ;;  %v7340_v7 = vshrl.u32 %v12955_v18, 16 }
 0x307   : > { %8799 = vmatprep.mubr.bf16.mxu0 %v12892_v14  ;;  %v6511_v14 = vshll.u32 %v12935_v50, 16  ;;  %v7323_v28 = vshll.u32 %v12941_v24, 16  ;;  %v7335_v50 = vshll.u32 %v12948_v45, 16  ;;  %v12962_v24 = vld [vmem:[#allocation2 + $0x48] sm:$0xff]  }
 0x308   : > { %v7352_v45 = vshrl.u32 %v12962_v24, 16 }
 0x309   : > { %8639 = vmatmul.mubr.bf16.gmra.mrb[176].mxu1 %v12895_v5  ;;  %v12937_v5 = vld [vmem:[#allocation2 + $0x18] sm:$0xfe]   ;;  %v6513_v3 = vrot.slane %v6511_v14, 1  ;;  %v7325_v25 = vrot.slane %v7323_v28, 1  ;;  %v7354_v28 = vshll.u32 %v12962_v24, 16 }
 0x30a   : > { %8646 = vmatprep.mubr.bf16.mxu1 %v5870_v29  ;;  %v6149_v29 = vrot.slane %v12925_v51, 1  ;;  %v6906_v4 = vrot.slane %v12937_v5, 1  ;;  %v12958_v14 = vld [vmem:[#allocation2 + $0x38] ss:$0 sps:$4 sm:$0x11]   ;;  %v7337_v5 = vrot.slane %v7335_v50, 1 }
 0x30b   : > { %v6514_v38 = vsel %vm1208_vm2, %v6509_v55, %v6513_v3  ;;  %v6547_v3 = vshll.u32 %v12958_v14, 16  ;;  %v12973_v50 = vld [vmem:[#allocation2 + $0x50] ss:$0 sps:$4 sm:$0x11]  }
 0x30c   : > { %v7338_v57 = vsel %vm1208_vm2, %v7333_v60, %v7337_v5  ;;  %v6571_v14 = vshll.u32 %v12973_v50, 16  ;;  %v12974_v5 = vld [vmem:[#allocation2 + $0x54] sm:$0xfe]   ;;  %v12978_v60 = vld [vmem:[#allocation2 + $0x68] ss:$0 sps:$4 sm:$0x11]  }
 0x30d   : > { %v6549_v32 = vrot.slane %v6547_v3, 1  ;;  %v12980_v3 = vld [vmem:[#allocation2 + $0x5c] ss:$0 sps:$4 sm:$0x11]  }
 0x30e   : > { %8800 = vmatmul.mubr.bf16.gmra.mrb[208].mxu0 %v6141_v44  ;;  %v6150_v44 = vsel %vm1609_vm10, %v6148_v58, %v6149_v29  ;;  %v12990_v50 = vld [vmem:[#allocation2 + $0x74] ss:$0 sps:$4 sm:$0x11]  }
 0x30f   : > { %8807 = vmatprep.mubr.bf16.mxu0 %v12902_v34  ;;  %v6907_v34 = vrot.slane %v12938_v54, 1  ;;  %v6542_v54 = vshll.u32 %v12957_v16, 16 }
 0x311   : > { %8647 = vmatmul.mubr.bf16.gmra.mrb[180].mxu1 %v12903_v59  ;;  %v7320_v59 = vrot.slane %v7318_v42, 1  ;;  %v6908_v22 = vsel %vm1609_vm10, %v6906_v4, %v6907_v34  ;;  %v12959_v42 = vld [vmem:[#allocation2 + $0x3c] sm:$0xfe]   ;;  %v6544_v55 = vrot.slane %v6542_v54, 1 }
 0x312   : > { %8654 = vmatprep.mubr.bf16.mxu1 %v5882_v61  ;;  %v7314_v61 = vsel %vm1208_vm2, %v7309_v13, %v7313_v27  ;;  %v7347_v27 = vshll.u32 %v12956_v52, 16  ;;  %v12960_v13 = vld [vmem:[#allocation2 + $0x44] ss:$0 sps:$4 sm:$0x11]   ;;  %v12961_v52 = vld [vmem:[#allocation2 + $0x3c] sm:$0xff]  }
 0x313   : > { %v12963_v34 = vld [vmem:[#allocation2 + $0x50] ss:$0 sps:$4 sm:$0x11]   ;;  %v6916_v46 = vrot.slane %v12960_v13, 1  ;;  %v6921_v13 = vrot.slane %v12974_v5, 1 }
 0x314   : > { %v7349_v21 = vrot.slane %v7347_v27, 1  ;;  %v12975_v54 = vld [vmem:[#allocation2 + $0x5c] ss:$0 sps:$4 sm:$0x11]   ;;  %v6573_v27 = vrot.slane %v6571_v14, 1 }
 0x316   : > { %8808 = vmatmul.mubr.bf16.gmra.mrb[212].mxu0 %v6144_v12  ;;  %v6521_v12 = vor.u32 %v6520_v8, %v6516_v48  ;;  %v12954_v8 = vld [vmem:[#allocation2 + $0x30] sm:$0xff]  }
 0x317   : > { %8815 = vmatprep.mubr.bf16.mxu0 %v12908_v43  ;;  %v7321_v43 = vor.u32 %v7320_v59, %v7316_v39  ;;  %v7359_v39 = vshll.u32 %v12963_v34, 16  ;;  %v12981_v48 = vld [vmem:[#allocation9 + $0x218] sm:$0xff]  }
 0x318   : > { %v6526_v51 = vsel %vm1208_vm2, %v6521_v12, %v6525_v36  ;;  %v12971_v12 = vld [vmem:[#allocation2 + $0x5c] ss:$0 sps:$4 sm:$0x11]  }
 0x319   : > { %8655 = vmatmul.mubr.bf16.gmra.mrb[184].mxu1 %v12911_v19  ;;  %v12950_v19 = vld [vmem:[#allocation2 + $0x2c] ss:$0 sps:$4 sm:$0x11]  }
 0x31a   : > { %8662 = vmatprep.mubr.bf16.mxu1 %v5894_v1  ;;  %v12966_v1 = vld [vmem:[#allocation9 + $0x210] sm:$0xff]   ;;  %v6535_v0 = vshll.u32 %v12950_v19, 16  ;;  %v12970_v19 = vld [vmem:[#allocation2 + $0x54] sm:$0xff]  }
 0x31b   : > { %v7366_v56 = vshll.u32 %v12970_v19, 16 }
 0x31e   : > { %8816 = vmatmul.mubr.bf16.gmra.mrb[216].mxu0 %v6147_v15  ;;  %v7342_v15 = vshll.u32 %v12955_v18, 16  ;;  %v7361_v18 = vrot.slane %v7359_v39, 1  ;;  %v12988_v39 = vld [vmem:[#allocation2 + $0x68] ss:$0 sps:$4 sm:$0x11]  }
 0x31f   : > { %8823 = vmatprep.mubr.bf16.mxu0 %v12919_v9  ;;  %v12953_v9 = vld [vmem:[#allocation2 + $0x38] ss:$0 sps:$4 sm:$0x11]  }
 0x320   : > { %v6913_v58 = vrot.slane %v12953_v9, 1  ;;  %v7344_v29 = vrot.slane %v7342_v15, 1  ;;  %v7371_v9 = vshll.u32 %v12971_v12, 16  ;;  %v12979_v15 = vld [vmem:[#allocation2 + $0x54] sm:$0xff]  }
 0x321   : > { %8663 = vmatmul.mubr.bf16.gmra.mrb[188].mxu1 %v12923_v40  ;;  %v7326_v40 = vsel %vm1208_vm2, %v7321_v43, %v7325_v25  ;;  %v12968_v25 = vld [vmem:[#allocation2 + $0x50] ss:$0 sps:$4 sm:$0x11]  }
 0x322   : > { %8864 = vmatprep.mubr.bf16.mxu1 %v6905_v2  ;;  %v6537_v2 = vrot.slane %v6535_v0, 1  ;;  %v6914_v31 = vsel %vm1609_vm10, %v6912_v35, %v6913_v58  ;;  %v7345_v59 = vor.u32 %v7344_v29, %v7340_v7  ;;  %v6919_v16 = vrot.slane %v12968_v25, 1  ;;  %v11829_v25 = vpop.f32.mrb[129].mxu1 }
 0x323   : > { %v6578_v29 = vshll.u32 %v12979_v15, 16 }
 0x324   : > { %v7350_v36 = vsel %vm1208_vm2, %v7345_v59, %v7349_v21  ;;  %v6583_v59 = vshll.u32 %v12980_v3, 16  ;;  %v13001_v3 = vld [vmem:[#allocation2 + $0x8c] ss:$0 sps:$4 sm:$0x11]  }
 0x325   : > { %v6580_v21 = vrot.slane %v6578_v29, 1  ;;  %v12998_v29 = vld [vmem:[#allocation2 + $0x80] ss:$0 sps:$4 sm:$0x11]  }
 0x326   : > { %8824 = vmatmul.mubr.bf16.gmra.mrb[220].mxu0 %v6150_v44  ;;  %v12965_v44 = vld [vmem:[#allocation2 + $0x44] ss:$0 sps:$4 sm:$0x11]   ;;  %v6585_v12 = vrot.slane %v6583_v59, 1 }
 0x327   : > { %9025 = vmatprep.mubr.bf16.mxu0 %v7314_v61  ;;  %v6915_v61 = vrot.slane %v12959_v42, 1  ;;  %v6559_v43 = vshll.u32 %v12965_v44, 16  ;;  %v12987_v44 = vld [vmem:[#allocation2 + $0x60] sm:$0xff]  }
 0x329   : > { %8865 = vmatmul.mubr.bf16.vlgmr.msra.gmra.mrb[192].mxu1 %v6514_v38  ;;  %v6554_v38 = vshll.u32 %v12964_v6, 16  ;;  %v6917_v33 = vsel %vm1609_vm10, %v6915_v61, %v6916_v46  ;;  %v6561_v41 = vrot.slane %v6559_v43, 1 }
 0x32a   : > { %8872 = vmatprep.mubr.bf16.mxu1 %v6908_v22  ;;  %12333 = vmatpush3.bf16.msra.mxu1 %v14368_v37  ;;  %v6532_v37 = vrot.slane %v6530_v23, 1  ;;  %v7356_v22 = vrot.slane %v7354_v28, 1  ;;  %v7383_v28 = vshll.u32 %v12978_v60, 16  ;;  %v6928_v60 = vrot.slane %v12990_v50, 1 }
 0x32b   : > { %12334 = vmatprep.subr.bf16.mxu1 %v12951_v10  ;;  %v6556_v23 = vrot.slane %v6554_v38, 1 }
 0x32c   : > { %v6533_v30 = vor.u32 %v6532_v37, %v6528_v53  ;;  %v7357_v53 = vor.u32 %v7356_v22, %v7352_v45  ;;  %v6918_v37 = vrot.slane %v12967_v49, 1  ;;  %v6576_v45 = vshrl.u32 %v12979_v15, 16 }
 0x32d   : > { %v7385_v49 = vrot.slane %v7383_v28, 1 }
 0x32e   : > { %12335 = vmatpush3.bf16.msra.mxu1 %v12951_v10  ;;  %9026 = vmatmul.mubr.bf16.vlgmr.msra.gmra.mrb[224].mxu0 %v12939_v26  ;;  %v6538_v4 = vsel %vm1208_vm2, %v6533_v30, %v6537_v2  ;;  %v6545_v10 = vor.u32 %v6544_v55, %v6540_v11  ;;  %v6552_v26 = vshrl.u32 %v12964_v6, 16  ;;  %v7362_v30 = vsel %vm1208_vm2, %v7357_v53, %v7361_v18  ;;  %v12969_v6 = vld [vmem:[#allocation2 + $0x48] sm:$0xff]  }
 0x32f   : > { %12336 = vmatprep.subr.bf16.mxu1 %v12966_v1  ;;  %9033 = vmatprep.mubr.bf16.mxu0 %v7326_v40  ;;  %v7364_v40 = vshrl.u32 %v12970_v19, 16  ;;  %v6920_v58 = vsel %vm1609_vm10, %v6918_v37, %v6919_v16  ;;  %v6922_v55 = vrot.slane %v12975_v54, 1  ;;  %v12985_v11 = vld [vmem:[#allocation2 + $0x6c] sm:$0xff]   ;;  %v6590_v19 = vshll.u32 %v12987_v44, 16  ;;  %v12984_v54 = vld [vmem:[#allocation2 + $0x60] sm:$0xff]  }
 0x330   : > { %v6550_v47 = vsel %vm1208_vm2, %v6545_v10, %v6549_v32  ;;  %v6557_v0 = vor.u32 %v6556_v23, %v6552_v26  ;;  %v12983_v32 = vld [vmem:[#allocation2 + $0x68] ss:$0 sps:$4 sm:$0x11]   ;;  %v12986_v10 = vld [vmem:[#allocation2 + $0x74] ss:$0 sps:$4 sm:$0x11]   ;;  %v6581_v43 = vor.u32 %v6580_v21, %v6576_v45 }
 0x331   : > { %8873 = vmatmul.mubr.bf16.gmra.mrb[196].mxu1 %v6526_v51  ;;  %v7368_v51 = vrot.slane %v7366_v56, 1  ;;  %v6923_v46 = vsel %vm1609_vm10, %v6921_v13, %v6922_v55  ;;  %v7390_v22 = vshll.u32 %v12985_v11, 16  ;;  %v12976_v23 = vld [vmem:[#allocation2 + $0x54] sm:$0xff]   ;;  %v7395_v18 = vshll.u32 %v12986_v10, 16  ;;  %v12994_v16 = vld [vmem:[#allocation2 + $0x6c] sm:$0xff]  }
 0x332   : > { %8880 = vmatprep.mubr.bf16.mxu1 %v6911_v62  ;;  %12337 = vmatpush3.bf16.msra.mxu1 %v12966_v1  ;;  %v12972_v1 = vld [vmem:[#allocation2 + $0x48] sm:$0xff]   ;;  %v12977_v62 = vld [vmem:[#allocation2 + $0x60] sm:$0xff]   ;;  %v6562_v2 = vsel %vm1208_vm2, %v6557_v0, %v6561_v41  ;;  %v12992_v56 = vld [vmem:[#allocation2 + $0x78] sm:$0xff]   ;;  %v6592_v26 = vrot.slane %v6590_v19, 1  ;;  %v6595_v53 = vshll.u32 %v12988_v39, 16  ;;  %v6931_v45 = vrot.slane %v12998_v29, 1 }
 0x333   : > { %12338 = vmatprep.subr.bf16.mxu1 %v12981_v48  ;;  %v6566_v63 = vshll.u32 %v12972_v1, 16  ;;  %v7378_v24 = vshll.u32 %v12977_v62, 16  ;;  %v6564_v7 = vshrl.u32 %v12972_v1, 16  ;;  %v7369_v42 = vor.u32 %v7368_v51, %v7364_v40  ;;  %v12989_v41 = vld [vmem:[#allocation2 + $0x6c] sm:$0xfe]  }
 0x334   : > { %v11830_v1 = vadd.f32 %v11829_v25, %v14370_v17  ;;  %v12993_v0 = vld [vmem:[#allocation2 + $0x80] ss:$0 sps:$4 sm:$0x11]   ;;  %v7388_v51 = vshrl.u32 %v12985_v11, 16  ;;  %v6588_v17 = vshrl.u32 %v12987_v44, 16  ;;  %v7397_v15 = vrot.slane %v7395_v18, 1 }
 0x335   : > { %v6568_v35 = vrot.slane %v6566_v63, 1  ;;  %v7380_v34 = vrot.slane %v7378_v24, 1  ;;  %v12995_v63 = vld [vmem:[#allocation2 + $0x74] ss:$0 sps:$4 sm:$0x11]   ;;  %v6597_v5 = vrot.slane %v6595_v53, 1 }
 0x336   : > { %9034 = vmatmul.mubr.bf16.gmra.mrb[228].mxu0 %v12946_v20  ;;  %12339 = vmatpush3.bf16.msra.mxu1 %v12981_v48  ;;  %v7373_v20 = vrot.slane %v7371_v9, 1  ;;  %v6586_v9 = vsel %vm1208_vm2, %v6581_v43, %v6585_v12  ;;  %v6593_v14 = vor.u32 %v6592_v26, %v6588_v17  ;;  %v7407_v24 = vshll.u32 %v12993_v0, 16  ;;  %v14412_v21 = vld [vmem:[%s15077_s4] ss:$0 sm:$0xff]  ;;  %v13004_v43 = vld [vmem:[#allocation2 + $0x84] sm:$0xfe]  }
 0x337   : > { %9041 = vmatprep.mubr.bf16.mxu0 %v7338_v57  ;;  %v6569_v57 = vor.u32 %v6568_v35, %v6564_v7  ;;  %v14403_v35 = vld [vmem:[#allocation2 + $0x84] sm:$0xff]   ;;  %v6607_v7 = vshll.u32 %v12995_v63, 16  ;;  %v13007_v25 = vld [vmem:[#allocation2 + $0x90] sm:$0xff]   ;;  %v13005_v12 = vld [vmem:[#allocation2 + $0x8c] ss:$0 sps:$4 sm:$0x11]  }
 0x338   : > { %v7374_v61 = vsel %vm1208_vm2, %v7369_v42, %v7373_v20  ;;  %v6927_v20 = vrot.slane %v12989_v41, 1  ;;  %v13002_v42 = vld [vmem:[#allocation2 + $0x78] sm:$0xff]   ;;  %v6598_v55 = vsel %vm1208_vm2, %v6593_v14, %v6597_v5  ;;  %v7414_v28 = vshll.u32 %v14403_v35, 16 }
 0x339   : > { %8881 = vmatmul.mubr.bf16.gmra.mrb[200].mxu1 %v6538_v4  ;;  %v7376_v4 = vshrl.u32 %v12977_v62, 16  ;;  %v6574_v38 = vsel %vm1208_vm2, %v6569_v57, %v6573_v27  ;;  %v12997_v27 = vld [vmem:[#allocation2 + $0x78] sm:$0xfe]   ;;  %v11831_v57 = vpop.f32.mrb[130].mxu1  ;;  %v7409_v11 = vrot.slane %v7407_v24, 1  ;;  %v6609_v59 = vrot.slane %v6607_v7, 1 }
 0x33a   : > { %8888 = vmatprep.mubr.bf16.mxu1 %v6914_v31  ;;  %v12996_v31 = vld [vmem:[#allocation9 + $0x220] sm:$0xff]   ;;  %v6930_v10 = vrot.slane %v12997_v27, 1 }
 0x33b   : > { %12340 = vmatprep.subr.bf16.mxu1 %v12996_v31  ;;  %v7381_v48 = vor.u32 %v7380_v34, %v7376_v4  ;;  %v6929_v4 = vsel %vm1609_vm10, %v6927_v20, %v6928_v60  ;;  %v7400_v34 = vshrl.u32 %v12992_v56, 16  ;;  %v13008_v41 = vld [vmem:[#allocation2 + $0x98] ss:$0 sps:$4 sm:$0x11]   ;;  %v6934_v60 = vrot.slane %v13005_v12, 1  ;;  %v13015_v7 = vld [vmem:[#allocation2 + $0x9c] sm:$0xff]  }
 0x33c   : > { %12341 = vmatpush3.bf16.msra.mxu1 %v12996_v31  ;;  %v13003_v31 = vld [vmem:[#allocation2 + $0x80] ss:$0 sps:$4 sm:$0x11]   ;;  %v12999_v20 = vld [vmem:[#allocation2 + $0x78] sm:$0xff]  }
 0x33d   : > { %v7386_v37 = vsel %vm1208_vm2, %v7381_v48, %v7385_v49  ;;  %v7416_v48 = vrot.slane %v7414_v28, 1  ;;  %v7419_v49 = vshll.u32 %v13001_v3, 16  ;;  %v6619_v26 = vshll.u32 %v13003_v31, 16  ;;  %v13013_v27 = vld [vmem:[#allocation2 + $0x98] ss:$0 sps:$4 sm:$0x11]  }
 0x33e   : > { %9042 = vmatmul.mubr.bf16.gmra.mrb[232].mxu0 %v12954_v8  ;;  %v12982_v8 = vld [vmem:[#allocation2 + $0x60] sm:$0xfe]   ;;  %v13026_v3 = vld [vmem:[#allocation9 + $0x230] sm:$0xff]   ;;  %v13018_v28 = vld [vmem:[#allocation2 + $0x98] ss:$0 sps:$4 sm:$0x11]  }
 0x33f   : > { %9049 = vmatprep.mubr.bf16.mxu0 %v7350_v36  ;;  %v6924_v36 = vrot.slane %v12982_v8, 1  ;;  %v12991_v8 = vld [vmem:[#allocation2 + $0x6c] sm:$0xff]   ;;  %v7421_v17 = vrot.slane %v7419_v49, 1  ;;  %v6621_v5 = vrot.slane %v6619_v26, 1  ;;  %v13024_v49 = vld [vmem:[#allocation2 + $0x9c] sm:$0xff]  }
 0x341   : > { %8889 = vmatmul.mubr.bf16.gmra.mrb[204].mxu1 %v6550_v47  ;;  %v6925_v47 = vrot.slane %v12983_v32, 1  ;;  %v6600_v32 = vshrl.u32 %v12994_v16, 16 }
 0x342   : > { %8896 = vmatprep.mubr.bf16.mxu1 %v6917_v33  ;;  %v7392_v33 = vrot.slane %v7390_v22, 1  ;;  %v8545_v22 = vadd.f32 %v11830_v1, %v14412_v21 }
 0x343   : > { %v6926_v40 = vsel %vm1609_vm10, %v6924_v36, %v6925_v47  ;;  %v13009_v36 = vld [vmem:[#allocation2 + $0x84] sm:$0xff]  }
 0x344   : > { %v7393_v62 = vor.u32 %v7392_v33, %v7388_v51  ;;  %v13010_v51 = vld [vmem:[#allocation2 + $0x8c] ss:$0 sps:$4 sm:$0x11]   ;;  %v6626_v63 = vshll.u32 %v13009_v36, 16  ;;  %v6624_v24 = vshrl.u32 %v13009_v36, 16 }
 0x345   : > { %v6631_v29 = vshll.u32 %v13010_v51, 16  ;;  %v13020_v36 = vld [vmem:[#allocation2 + $0xa4] ss:$0 sps:$4 sm:$0x11]   ;;  %v6648_v51 = vshrl.u32 %v13024_v49, 16 }
 0x346   : > { %9050 = vmatmul.mubr.bf16.gmra.mrb[236].mxu0 %v12961_v52  ;;  %v7402_v52 = vshll.u32 %v12992_v56, 16  ;;  %v7398_v13 = vsel %vm1208_vm2, %v7393_v62, %v7397_v15 }
 0x347   : > { %9057 = vmatprep.mubr.bf16.mxu0 %v7362_v30 }
 0x348   : > { %v7404_v30 = vrot.slane %v7402_v52, 1  ;;  %v7412_v52 = vshrl.u32 %v14403_v35, 16  ;;  %v6628_v35 = vrot.slane %v6626_v63, 1 }
 0x349   : > { %8897 = vmatmul.mubr.bf16.gmra.mrb[208].mxu1 %v6562_v2  ;;  %v6602_v2 = vshll.u32 %v12994_v16, 16  ;;  %v6612_v16 = vshrl.u32 %v13002_v42, 16 }
 0x34a   : > { %8904 = vmatprep.mubr.bf16.mxu1 %v6920_v58  ;;  %v13011_v58 = vld [vmem:[#allocation9 + $0x228] sm:$0xff]   ;;  %v7405_v44 = vor.u32 %v7404_v30, %v7400_v34  ;;  %v7417_v15 = vor.u32 %v7416_v48, %v7412_v52  ;;  %v7424_v30 = vshrl.u32 %v13007_v25, 16  ;;  %v7438_v34 = vshll.u32 %v13015_v7, 16  ;;  %v13023_v48 = vld [vmem:[#allocation2 + $0xb0] ss:$0 sps:$4 sm:$0x11]  }
 0x34b   : > { %12342 = vmatprep.subr.bf16.mxu1 %v13011_v58  ;;  %v7455_v26 = vshll.u32 %v13023_v48, 16 }
 0x34c   : > { %12343 = vmatpush3.bf16.msra.mxu1 %v13011_v58  ;;  %v7410_v33 = vsel %vm1208_vm2, %v7405_v44, %v7409_v11  ;;  %v6633_v11 = vrot.slane %v6631_v29, 1 }
 0x34d   : > { %12344 = vmatprep.subr.bf16.mxu1 %v13026_v3  ;;  %v7457_v63 = vrot.slane %v7455_v26, 1 }
 0x34e   : > { %9058 = vmatmul.mubr.bf16.gmra.mrb[240].mxu0 %v12969_v6  ;;  %v6604_v6 = vrot.slane %v6602_v2, 1  ;;  %v7431_v2 = vshll.u32 %v13008_v41, 16  ;;  %v6650_v41 = vshll.u32 %v13024_v49, 16 }
 0x34f   : > { %9065 = vmatprep.mubr.bf16.mxu0 %v7374_v61  ;;  %v6614_v61 = vshll.u32 %v13002_v42, 16  ;;  %v13012_v42 = vld [vmem:[#allocation2 + $0x90] sm:$0xfe]  }
 0x350   : > { %v7433_v31 = vrot.slane %v7431_v2, 1  ;;  %12345 = vmatpush3.bf16.msra.mxu1 %v13026_v3  ;;  %v6936_v44 = vrot.slane %v13012_v42, 1 }
 0x351   : > { %8905 = vmatmul.mubr.bf16.gmra.mrb[212].mxu1 %v6574_v38  ;;  %v11832_v38 = vpop.f32.mrb[131].mxu1  ;;  %v6616_v18 = vrot.slane %v6614_v61, 1  ;;  %v6629_v61 = vor.u32 %v6628_v35, %v6624_v24 }
 0x352   : > { %8912 = vmatprep.mubr.bf16.mxu1 %v6923_v46  ;;  %v6605_v46 = vor.u32 %v6604_v6, %v6600_v32  ;;  %v11833_v39 = vadd.f32 %v11832_v38, %v11831_v57  ;;  %v13016_v6 = vld [vmem:[#allocation2 + $0xa4] ss:$0 sps:$4 sm:$0x11]   ;;  %v13017_v57 = vld [vmem:[#allocation2 + $0x90] sm:$0xff]   ;;  %v7436_v38 = vshrl.u32 %v13015_v7, 16 }
 0x353   : > { %v6617_v14 = vor.u32 %v6616_v18, %v6612_v16  ;;  %v13025_v18 = vld [vmem:[#allocation2 + $0xa4] ss:$0 sps:$4 sm:$0x11]   ;;  %v6940_v16 = vrot.slane %v13020_v36, 1  ;;  %v14452_v36 = vld [vmem:[#allocation2 + $0xb4] sm:$0xff]  }
 0x354   : > { %v6610_v1 = vsel %vm1208_vm2, %v6605_v46, %v6609_v59  ;;  %v8548_v53 = vadd.f32 %v11833_v39, %v14412_v21  ;;  %v6937_v59 = vrot.slane %v13013_v27, 1  ;;  %v6638_v46 = vshll.u32 %v13017_v57, 16  ;;  %v13031_v7 = vld [vmem:[#allocation2 + $0xbc] ss:$0 sps:$4 sm:$0x11]  }
 0x355   : > { %v6643_v39 = vshll.u32 %v13018_v28, 16  ;;  %v7467_v48 = vshll.u32 %v13031_v7, 16 }
 0x356   : > { %9066 = vmatmul.mubr.bf16.gmra.mrb[244].mxu0 %v12976_v23  ;;  %v6640_v12 = vrot.slane %v6638_v46, 1 }
 0x357   : > { %9073 = vmatprep.mubr.bf16.mxu0 %v7386_v37 }
 0x359   : > { %8913 = vmatmul.mubr.bf16.gmra.mrb[216].mxu1 %v6586_v9  ;;  %v6932_v9 = vsel %vm1609_vm10, %v6930_v10, %v6931_v45  ;;  %v13006_v10 = vld [vmem:[#allocation2 + $0x84] sm:$0xff]  }
 0x35a   : > { %8920 = vmatprep.mubr.bf16.mxu1 %v6926_v40  ;;  %v7426_v40 = vshll.u32 %v13007_v25, 16  ;;  %v14427_v45 = vld [vmem:[#allocation2 + $0xa8] sm:$0xff]   ;;  %v6634_v25 = vsel %vm1208_vm2, %v6629_v61, %v6633_v11 }
 0x35c   : > { %v7428_v58 = vrot.slane %v7426_v40, 1 }
 0x35e   : > { %9074 = vmatmul.mubr.bf16.gmra.mrb[248].mxu0 %v12984_v54  ;;  %v11940_v19 = vpop.f32.mrb[160].mxu0  ;;  %v6933_v54 = vrot.slane %v13004_v43, 1  ;;  %v7429_v32 = vor.u32 %v7428_v58, %v7424_v30  ;;  %v13028_v30 = vld [vmem:[#allocation2 + $0xb0] ss:$0 sps:$4 sm:$0x11]  }
 0x35f   : > { %9081 = vmatprep.mubr.bf16.mxu0 %v7398_v13  ;;  %v11941_v23 = vpop.f32.mrb[161].mxu0  ;;  %v7422_v13 = vsel %vm1208_vm2, %v7417_v15, %v7421_v17  ;;  %v14434_v17 = vld [vmem:[#allocation2 + $0xb4] sm:$0xff]   ;;  %v6652_v15 = vrot.slane %v6650_v41, 1 }
 0x360   : > { %v11942_v47 = vadd.f32 %v11941_v23, %v11940_v19  ;;  %v11943_v56 = vpop.f32.mrb[162].mxu0  ;;  %v13019_v19 = vld [vmem:[#allocation2 + $0x9c] sm:$0xfe]   ;;  %v7434_v43 = vsel %vm1208_vm2, %v7429_v32, %v7433_v31  ;;  %v7460_v42 = vshrl.u32 %v14434_v17, 16 }
 0x361   : > { %8921 = vmatmul.mubr.bf16.gmra.mrb[220].mxu1 %v6598_v55  ;;  %v11944_v50 = vpop.f32.mrb[163].mxu0  ;;  %v6622_v55 = vsel %vm1208_vm2, %v6617_v14, %v6621_v5  ;;  %v6939_v52 = vrot.slane %v13019_v19, 1  ;;  %v13027_v14 = vld [vmem:[#allocation2 + $0xa8] sm:$0xfe]  }
 0x362   : > { %8928 = vmatprep.mubr.bf16.mxu1 %v6929_v4  ;;  %v14418_v0 = vadd.f32 %v11942_v47, %v8545_v22  ;;  %v11945_v37 = vadd.f32 %v11944_v50, %v11943_v56  ;;  %v6935_v4 = vsel %vm1609_vm10, %v6933_v54, %v6934_v60  ;;  %v7440_v22 = vrot.slane %v7438_v34, 1  ;;  %v14436_v5 = vld [vmem:[#allocation2 + $0xa8] sm:$0xff]   ;;  %v13041_v54 = vld [vmem:[#allocation9 + $0x238] sm:$0xff]  }
 0x363   : > { %v7450_v47 = vshll.u32 %v14427_v45, 16  ;;  %v6938_v56 = vsel %vm1609_vm10, %v6936_v44, %v6937_v59  ;;  %v6655_v60 = vshll.u32 %v13025_v18, 16  ;;  %12346 = vmatprep.subr.bf16.mxu1 %v13041_v54  ;;  %v6941_v35 = vsel %vm1609_vm10, %v6939_v52, %v6940_v16  ;;  %v13035_v18 = vld [vmem:[#allocation2 + $0xbc] ss:$0 sps:$4 sm:$0x11]  }
 0x364   : > { %v14422_v62 = vadd.f32 %v11945_v37, %v8548_v53  ;;  %v7441_v50 = vor.u32 %v7440_v22, %v7436_v38  ;;  %v7448_v53 = vshrl.u32 %v14427_v45, 16  ;;  %v13014_v37 = vld [vmem:[#allocation2 + $0x90] sm:$0xff]   ;;  %12347 = vmatpush3.bf16.msra.mxu1 %v13041_v54  ;;  %v6942_v61 = vrot.slane %v13027_v14, 1  ;;  %v13021_v38 = vld [vmem:[#allocation2 + $0x9c] sm:$0xff]  }
 0x365   : > { %v7452_v40 = vrot.slane %v7450_v47, 1  ;;  %v6657_v32 = vrot.slane %v6655_v60, 1  ;;  %v6943_v22 = vrot.slane %v13028_v30, 1  ;;  %v13038_v52 = vld [vmem:[#allocation2 + $0xc8] ss:$0 sps:$4 sm:$0x11]  }
 0x366   : > { %9082 = vmatmul.mubr.bf16.gmra.mrb[252].mxu0 %v12991_v8  ;;  %v7443_v8 = vshll.u32 %v13016_v6, 16  ;;  %v7469_v16 = vrot.slane %v7467_v48, 1  ;;  %v6946_v54 = vrot.slane %v13035_v18, 1  ;;  %v13040_v30 = vld [vmem:[#allocation2 + $0xbc] ss:$0 sps:$4 sm:$0x11]  }
 0x367   : > { %9089 = vmatprep.mubr.bf16.mxu0 %v7410_v33  ;;  %v6636_v33 = vshrl.u32 %v13017_v57, 16  ;;  %v13033_v57 = vld [vmem:[#allocation2 + $0xb0] ss:$0 sps:$4 sm:$0x11]   ;;  %v7453_v44 = vor.u32 %v7452_v40, %v7448_v53  ;;  %v6944_v26 = vsel %vm1609_vm10, %v6942_v61, %v6943_v22  ;;  %v6679_v61 = vshll.u32 %v13040_v30, 16 }
 0x368   : > { %v7445_v23 = vrot.slane %v7443_v8, 1 }
 0x369   : > { %8929 = vmatmul.mubr.bf16.gmra.mrb[224].mxu1 %v6610_v1  ;;  %v6645_v1 = vrot.slane %v6643_v39, 1  ;;  %v14448_v39 = vld [vmem:[#allocation2 + $0xc0] sm:$0xff]   ;;  %v7458_v47 = vsel %vm1208_vm2, %v7453_v44, %v7457_v63  ;;  %v13029_v63 = vld [vmem:[#allocation2 + $0xa8] sm:$0xff]   ;;  %v6672_v44 = vshrl.u32 %v14452_v36, 16 }
 0x36a   : > { %8936 = vmatprep.mubr.bf16.mxu1 %v6932_v9  ;;  %v6641_v9 = vor.u32 %v6640_v12, %v6636_v33  ;;  %v7446_v2 = vsel %vm1208_vm2, %v7441_v50, %v7445_v23  ;;  %v13034_v12 = vld [vmem:[#allocation2 + $0xb4] sm:$0xfe]   ;;  %v7474_v53 = vshll.u32 %v14448_v39, 16 }
 0x36b   : > { %v6945_v14 = vrot.slane %v13034_v12, 1 }
 0x36c   : > { %v6646_v24 = vsel %vm1208_vm2, %v6641_v9, %v6645_v1  ;;  %v6660_v1 = vshrl.u32 %v14436_v5, 16  ;;  %v7476_v60 = vrot.slane %v7474_v53, 1 }
 0x36e   : > { %9090 = vmatmul.mubr.bf16.gmra.mrb[0].mxu0 %v12999_v20 }
 0x36f   : > { %9097 = vmatprep.mubr.bf16.mxu0 %v7422_v13  ;;  %v7462_v13 = vshll.u32 %v14434_v17, 16  ;;  %v6674_v17 = vshll.u32 %v14452_v36, 16  ;;  %v13046_v36 = vld [vmem:[#allocation2 + $0xc8] ss:$0 sps:$4 sm:$0x11]  }
 0x371   : > { %8937 = vmatmul.mubr.bf16.gmra.mrb[228].mxu1 %v6622_v55  ;;  %v7464_v19 = vrot.slane %v7462_v13, 1 }
 0x372   : > { %8944 = vmatprep.mubr.bf16.mxu1 %v6935_v4  ;;  %v6662_v4 = vshll.u32 %v14436_v5, 16  ;;  %v7479_v5 = vshll.u32 %v13038_v52, 16  ;;  %v13049_v52 = vld [vmem:[#allocation2 + $0x18] sm:$0xfe]  }
 0x374   : > { %v6664_v49 = vrot.slane %v6662_v4, 1  ;;  %v13048_v4 = vld [vmem:[#allocation2 + $0xd4] ss:$0 sps:$4 sm:$0x11]   ;;  %v7481_v48 = vrot.slane %v7479_v5, 1 }
 0x376   : > { %9098 = vmatmul.mubr.bf16.gmra.mrb[4].mxu0 %v13006_v10  ;;  %v6653_v10 = vor.u32 %v6652_v15, %v6648_v51  ;;  %v6665_v51 = vor.u32 %v6664_v49, %v6660_v1 }
 0x377   : > { %9105 = vmatprep.mubr.bf16.mxu0 %v7434_v43  ;;  %v6667_v43 = vshll.u32 %v13033_v57, 16  ;;  %v13045_v57 = vld [vmem:[#allocation2 + $0xc0] sm:$0xff]  }
 0x379   : > { %8945 = vmatmul.mubr.bf16.gmra.mrb[232].mxu1 %v6634_v25  ;;  %v6669_v15 = vrot.slane %v6667_v43, 1 }
 0x37a   : > { %8952 = vmatprep.mubr.bf16.mxu1 %v6938_v56  ;;  %v6658_v56 = vsel %vm1208_vm2, %v6653_v10, %v6657_v32 }
 0x37b   : > { %v6670_v13 = vsel %vm1208_vm2, %v6665_v51, %v6669_v15  ;;  %v6684_v15 = vshrl.u32 %v13045_v57, 16 }
 0x37e   : > { %9106 = vmatmul.mubr.bf16.gmra.mrb[8].mxu0 %v13014_v37  ;;  %v7465_v37 = vor.u32 %v7464_v19, %v7460_v42  ;;  %v13036_v19 = vld [vmem:[#allocation2 + $0xb4] sm:$0xff]  }
 0x37f   : > { %v11834_v20 = vpop.f32.mrb[132].mxu1  ;;  %9113 = vmatprep.mubr.bf16.mxu0 %v7446_v2  ;;  %v13042_v2 = vld [vmem:[#allocation2 + $0xc0] sm:$0xfe]  }
 0x380   : > { %v11835_v58 = vpop.f32.mrb[133].mxu1  ;;  %v6948_v43 = vrot.slane %v13042_v2, 1 }
 0x381   : > { %8953 = vmatmul.mubr.bf16.gmra.mrb[236].mxu1 %v6646_v24  ;;  %v11836_v29 = vadd.f32 %v11835_v58, %v11834_v20  ;;  %v11946_v27 = vpop.f32.mrb[164].mxu0  ;;  %v11837_v3 = vpop.f32.mrb[134].mxu1  ;;  %v7472_v20 = vshrl.u32 %v14448_v39, 16  ;;  %v14461_v24 = vld [vmem:[#allocation2 + $0xcc] sm:$0xff]  }
 0x382   : > { %8960 = vmatprep.mubr.bf16.mxu1 %v6941_v35  ;;  %v11947_v55 = vpop.f32.mrb[165].mxu0  ;;  %v11838_v6 = vpop.f32.mrb[135].mxu1 }
 0x383   : > { %v8553_v34 = vadd.f32 %v11836_v29, %v14412_v21  ;;  %v11948_v28 = vadd.f32 %v11947_v55, %v11946_v27  ;;  %v11839_v31 = vadd.f32 %v11838_v6, %v11837_v3  ;;  %v11949_v11 = vpop.f32.mrb[166].mxu0  ;;  %v6676_v29 = vrot.slane %v6674_v17, 1  ;;  %v13043_v27 = vld [vmem:[#allocation2 + $0xc8] ss:$0 sps:$4 sm:$0x11]  }
 0x384   : > { %v11950_v59 = vpop.f32.mrb[167].mxu0  ;;  %v7470_v3 = vsel %vm1208_vm2, %v7465_v37, %v7469_v16  ;;  %v6947_v55 = vsel %vm1609_vm10, %v6945_v14, %v6946_v54  ;;  %v7477_v22 = vor.u32 %v7476_v60, %v7472_v20  ;;  %v13050_v14 = vld [vmem:[#allocation2 + $0x20] ss:$0 sps:$4 sm:$0x11]   ;;  %v6691_v60 = vshll.u32 %v13046_v36, 16 }
 0x385   : > { %v14445_v8 = vadd.f32 %v11948_v28, %v8553_v34  ;;  %v8556_v46 = vadd.f32 %v11839_v31, %v14412_v21  ;;  %v11951_v45 = vadd.f32 %v11950_v59, %v11949_v11  ;;  %v6677_v49 = vor.u32 %v6676_v29, %v6672_v44 }
 0x386   : > { %9114 = vmatmul.mubr.bf16.gmra.mrb[12].mxu0 %v13021_v38  ;;  %v7486_v38 = vshll.u32 %v14461_v24, 16  ;;  %v7482_v1 = vsel %vm1208_vm2, %v7477_v22, %v7481_v48 }
 0x387   : > { %v14450_v25 = vadd.f32 %v11951_v45, %v8556_v46  ;;  %v11840_v23 = vpop.f32.mrb[136].mxu1  ;;  %9121 = vmatprep.mubr.bf16.mxu0 %v7458_v47  ;;  %v6949_v47 = vrot.slane %v13043_v27, 1 }
 0x388   : > { %v11841_v33 = vpop.f32.mrb[137].mxu1  ;;  %v7488_v18 = vrot.slane %v7486_v38, 1 }
 0x389   : > { %8961 = vmatmul.mubr.bf16.gmra.mrb[240].mxu1 %v6658_v56  ;;  %v11842_v41 = vadd.f32 %v11841_v33, %v11840_v23  ;;  %v11843_v50 = vpop.f32.mrb[138].mxu1  ;;  %v6686_v23 = vshll.u32 %v13045_v57, 16  ;;  %v6681_v56 = vrot.slane %v6679_v61, 1  ;;  %v7484_v33 = vshrl.u32 %v14461_v24, 16  ;;  %v13051_v61 = vld [vmem:[#allocation2 + $0xcc] sm:$0xff]  }
 0x38a   : > { %8968 = vmatprep.mubr.bf16.mxu1 %v6944_v26  ;;  %v11844_v9 = vpop.f32.mrb[139].mxu1  ;;  %v7491_v26 = vshll.u32 %v13048_v4, 16  ;;  %v6950_v17 = vsel %vm1609_vm10, %v6948_v43, %v6949_v47  ;;  %v13053_v4 = vld [vmem:[#allocation2 + $0x2c] ss:$0 sps:$4 sm:$0x11]  }
 0x38b   : > { %v11845_v40 = vadd.f32 %v11844_v9, %v11843_v50  ;;  %v8561_v58 = vadd.f32 %v11842_v41, %v14412_v21  ;;  %v6682_v37 = vsel %vm1208_vm2, %v6677_v49, %v6681_v56  ;;  %v6688_v9 = vrot.slane %v6686_v23, 1 }
 0x38c   : > { %v7489_v30 = vor.u32 %v7488_v18, %v7484_v33  ;;  %v7493_v5 = vrot.slane %v7491_v26, 1  ;;  %v7707_v22 = vrot.slane %v13053_v4, 1  ;;  %v13056_v33 = vld [vmem:[#allocation2 + $0x3c] sm:$0xfe]  }
 0x38d   : > { %v8564_v28 = vadd.f32 %v11845_v40, %v14412_v21  ;;  %v6689_v29 = vor.u32 %v6688_v9, %v6684_v15  ;;  %v7712_v15 = vrot.slane %v13056_v33, 1  ;;  %v13063_v4 = vld [vmem:[#allocation2 + $0x68] ss:$0 sps:$4 sm:$0x11]  }
 0x38e   : > { %9122 = vmatmul.mubr.bf16.gmra.mrb[16].mxu0 %v13029_v63  ;;  %v7494_v57 = vsel %vm1208_vm2, %v7489_v30, %v7493_v5 }
 0x38f   : > { %v11952_v7 = vpop.f32.mrb[168].mxu0  ;;  %v11846_v35 = vpop.f32.mrb[140].mxu1  ;;  %9129 = vmatprep.mubr.bf16.mxu0 %v7470_v3 }
 0x390   : > { %v11953_v42 = vpop.f32.mrb[169].mxu0  ;;  %v11847_v6 = vpop.f32.mrb[141].mxu1 }
 0x391   : > { %v11954_v34 = vadd.f32 %v11953_v42, %v11952_v7  ;;  %v11955_v31 = vpop.f32.mrb[170].mxu0  ;;  %8969 = vmatmul.mubr.bf16.gmra.mrb[244].mxu1 %v6670_v13  ;;  %v11848_v11 = vadd.f32 %v11847_v6, %v11846_v35  ;;  %v11849_v32 = vpop.f32.mrb[142].mxu1  ;;  %v7703_v42 = vrot.slane %v13049_v52, 1  ;;  %v7704_v13 = vrot.slane %v13050_v14, 1 }
 0x392   : > { %v11956_v59 = vpop.f32.mrb[171].mxu0  ;;  %8976 = vmatprep.mubr.bf16.mxu1 %v6947_v55  ;;  %v11850_v10 = vpop.f32.mrb[143].mxu1  ;;  %v13044_v55 = vld [vmem:[#allocation2 + $0xc0] sm:$0xff]   ;;  %v6693_v6 = vrot.slane %v6691_v60, 1 }
 0x393   : > { %v14470_v46 = vadd.f32 %v11954_v34, %v8561_v58  ;;  %v11957_v45 = vadd.f32 %v11956_v59, %v11955_v31  ;;  %v11851_v39 = vadd.f32 %v11850_v10, %v11849_v32  ;;  %v8569_v41 = vadd.f32 %v11848_v11, %v14412_v21  ;;  %v13054_v31 = vld [vmem:[#allocation2 + $0x30] sm:$0xfe]   ;;  %v13055_v32 = vld [vmem:[#allocation2 + $0x38] ss:$0 sps:$4 sm:$0x11]  }
 0x394   : > { %v6694_v34 = vsel %vm1208_vm2, %v6689_v29, %v6693_v6  ;;  %v7705_v11 = vsel %vm1609_vm10, %v7703_v42, %v7704_v13  ;;  %v7709_v43 = vrot.slane %v13054_v31, 1  ;;  %v7710_v23 = vrot.slane %v13055_v32, 1  ;;  %v13060_v29 = vld [vmem:[#allocation2 + $0x54] sm:$0xfe]   ;;  %v13062_v31 = vld [vmem:[#allocation2 + $0x60] sm:$0xfe]  }
 0x395   : > { %v14472_v12 = vadd.f32 %v11957_v45, %v8564_v28  ;;  %v8572_v40 = vadd.f32 %v11851_v39, %v14412_v21  ;;  %v13052_v28 = vld [vmem:[#allocation2 + $0x24] sm:$0xfe]  }
 0x396   : > { %9130 = vmatmul.mubr.bf16.gmra.mrb[20].mxu0 %v13036_v19  ;;  %v7706_v45 = vrot.slane %v13052_v28, 1  ;;  %v7711_v52 = vsel %vm1609_vm10, %v7709_v43, %v7710_v23 }
 0x397   : > { %v11958_v50 = vpop.f32.mrb[172].mxu0  ;;  %9137 = vmatprep.mubr.bf16.mxu0 %v7482_v1  ;;  %v13058_v1 = vld [vmem:[#allocation2 + $0x48] sm:$0xfe]  }
 0x398   : > { %v11959_v53 = vpop.f32.mrb[173].mxu0  ;;  %v7715_v5 = vrot.slane %v13058_v1, 1 }
 0x399   : > { %v11960_v16 = vadd.f32 %v11959_v53, %v11958_v50  ;;  %v11961_v51 = vpop.f32.mrb[174].mxu0  ;;  %8977 = vmatmul.mubr.bf16.gmra.mrb[248].mxu1 %v6682_v37  ;;  %v11852_v63 = vpop.f32.mrb[144].mxu1  ;;  %v13057_v50 = vld [vmem:[#allocation2 + $0x44] ss:$0 sps:$4 sm:$0x11]   ;;  %v7708_v37 = vsel %vm1609_vm10, %v7706_v45, %v7707_v22 }
 0x39a   : > { %v11962_v54 = vpop.f32.mrb[175].mxu0  ;;  %8984 = vmatprep.mubr.bf16.mxu1 %v6950_v17  ;;  %v11853_v20 = vpop.f32.mrb[145].mxu1  ;;  %v7713_v14 = vrot.slane %v13057_v50, 1  ;;  %v13065_v50 = vld [vmem:[#allocation2 + $0x74] ss:$0 sps:$4 sm:$0x11]  }
 0x39b   : > { %v14480_v2 = vadd.f32 %v11960_v16, %v8569_v41  ;;  %v11963_v24 = vadd.f32 %v11962_v54, %v11961_v51  ;;  %v11854_v58 = vadd.f32 %v11853_v20, %v11852_v63  ;;  %v11855_v7 = vpop.f32.mrb[146].mxu1  ;;  %v13059_v16 = vld [vmem:[#allocation2 + $0x50] ss:$0 sps:$4 sm:$0x11]  }
 0x39c   : > { %v11856_v35 = vpop.f32.mrb[147].mxu1 }
 0x39d   : > { %v14482_v27 = vadd.f32 %v11963_v24, %v8572_v40  ;;  %v11857_v3 = vadd.f32 %v11856_v35, %v11855_v7  ;;  %v8577_v44 = vadd.f32 %v11854_v58, %v14412_v21  ;;  %v7716_v24 = vrot.slane %v13059_v16, 1 }
 0x39e   : > { %9138 = vmatmul.mubr.bf16.gmra.mrb[24].mxu0 %v13044_v55  ;;  %v13061_v55 = vld [vmem:[#allocation2 + $0x5c] ss:$0 sps:$4 sm:$0x11]  }
 0x39f   : > { %9145 = vmatprep.mubr.bf16.mxu0 %v7494_v57  ;;  %v8580_v19 = vadd.f32 %v11857_v3, %v14412_v21  ;;  %v7714_v57 = vsel %vm1609_vm10, %v7712_v15, %v7713_v14  ;;  %v7717_v28 = vsel %vm1609_vm10, %v7715_v5, %v7716_v24  ;;  %v7725_v15 = vrot.slane %v13065_v50, 1 }
 0x3a1   : > { %8985 = vmatmul.mubr.bf16.gmra.mrb[252].mxu1 %v6694_v34  ;;  %v11964_v59 = vpop.f32.mrb[176].mxu0 }
 0x3a2   : > { %12348 = vmatprep.mubr.bf16.mxu1 %v7705_v11  ;;  %v11965_v10 = vpop.f32.mrb[177].mxu0 }
 0x3a3   : > { %v11966_v39 = vadd.f32 %v11965_v10, %v11964_v59  ;;  %v11967_v48 = vpop.f32.mrb[178].mxu0  ;;  %v7718_v10 = vrot.slane %v13060_v29, 1 }
 0x3a4   : > { %v11858_v38 = vpop.f32.mrb[148].mxu1  ;;  %v11968_v47 = vpop.f32.mrb[179].mxu0 }
 0x3a5   : > { %v11859_v49 = vpop.f32.mrb[149].mxu1  ;;  %v14489_v18 = vadd.f32 %v11966_v39, %v8577_v44  ;;  %v11969_v26 = vadd.f32 %v11968_v47, %v11967_v48  ;;  %v7722_v48 = vrot.slane %v13063_v4, 1 }
 0x3a6   : > { %v11860_v36 = vadd.f32 %v11859_v49, %v11858_v38  ;;  %v11861_v56 = vpop.f32.mrb[150].mxu1  ;;  %9146 = vmatmul.mubr.bf16.gmra.mrb[28].mxu0 %v13051_v61  ;;  %v7719_v61 = vrot.slane %v13061_v55, 1 }
 0x3a7   : > { %v11862_v41 = vpop.f32.mrb[151].mxu1  ;;  %v14492_v9 = vadd.f32 %v11969_v26, %v8580_v19  ;;  %v7721_v19 = vrot.slane %v13062_v31, 1  ;;  %v13070_v31 = vld [vmem:[#allocation2 + $0x90] sm:$0xfe]  }
 0x3a8   : > { %v11863_v53 = vadd.f32 %v11862_v41, %v11861_v56  ;;  %v8585_v40 = vadd.f32 %v11860_v36, %v14412_v21  ;;  %v7720_v26 = vsel %vm1609_vm10, %v7718_v10, %v7719_v61  ;;  %v13064_v41 = vld [vmem:[#allocation2 + $0x6c] sm:$0xfe]  }
 0x3a9   : > { %12349 = vmatmul.mubr.bf16.vlgmr.msra.gmra.mrb[0].mxu1 %v7708_v37  ;;  %v11970_v51 = vpop.f32.mrb[180].mxu0  ;;  %v13066_v37 = vld [vmem:[#allocation2 + $0x78] sm:$0xfe]  }
 0x3aa   : > { %12352 = vmatprep.mubr.bf16.mxu1 %v7711_v52  ;;  %v11971_v17 = vpop.f32.mrb[181].mxu0  ;;  %v8588_v20 = vadd.f32 %v11863_v53, %v14412_v21  ;;  %v7723_v53 = vsel %vm1609_vm10, %v7721_v19, %v7722_v48  ;;  %v13067_v52 = vld [vmem:[#allocation2 + $0x80] ss:$0 sps:$4 sm:$0x11]   ;;  %v7733_v48 = vrot.slane %v13070_v31, 1 }
 0x3ab   : > { %v11972_v54 = vadd.f32 %v11971_v17, %v11970_v51  ;;  %v11973_v60 = vpop.f32.mrb[182].mxu0  ;;  %v7728_v5 = vrot.slane %v13067_v52, 1 }
 0x3ac   : > { %v11864_v63 = vpop.f32.mrb[152].mxu1  ;;  %v11974_v58 = vpop.f32.mrb[183].mxu0 }
 0x3ad   : > { %v11865_v30 = vpop.f32.mrb[153].mxu1  ;;  %v14497_v3 = vadd.f32 %v11972_v54, %v8585_v40  ;;  %v11975_v42 = vadd.f32 %v11974_v58, %v11973_v60 }
 0x3ae   : > { %v11866_v7 = vadd.f32 %v11865_v30, %v11864_v63  ;;  %v11867_v35 = vpop.f32.mrb[154].mxu1  ;;  %v7724_v63 = vrot.slane %v13064_v41, 1  ;;  %v7727_v30 = vrot.slane %v13066_v37, 1  ;;  %v13073_v37 = vld [vmem:[#allocation2 + $0xa4] ss:$0 sps:$4 sm:$0x11]  }
 0x3af   : > { %v11868_v13 = vpop.f32.mrb[155].mxu1  ;;  %v14500_v34 = vadd.f32 %v11975_v42, %v8588_v20 }
 0x3b0   : > { %v11869_v6 = vadd.f32 %v11868_v13, %v11867_v35  ;;  %v8593_v11 = vadd.f32 %v11866_v7, %v14412_v21  ;;  %v7726_v55 = vsel %vm1609_vm10, %v7724_v63, %v7725_v15 }
 0x3b1   : > { %12353 = vmatmul.mubr.bf16.gmra.mrb[4].mxu1 %v7714_v57  ;;  %v11976_v32 = vpop.f32.mrb[184].mxu0  ;;  %v13069_v57 = vld [vmem:[#allocation2 + $0x8c] ss:$0 sps:$4 sm:$0x11]  }
 0x3b2   : > { %12356 = vmatprep.mubr.bf16.mxu1 %v7717_v28  ;;  %v11977_v44 = vpop.f32.mrb[185].mxu0  ;;  %v8596_v45 = vadd.f32 %v11869_v6, %v14412_v21  ;;  %v13068_v6 = vld [vmem:[#allocation2 + $0x84] sm:$0xfe]   ;;  %v7729_v28 = vsel %vm1609_vm10, %v7727_v30, %v7728_v5 }
 0x3b3   : > { %v11978_v38 = vadd.f32 %v11977_v44, %v11976_v32  ;;  %v11979_v22 = vpop.f32.mrb[186].mxu0  ;;  %v7730_v61 = vrot.slane %v13068_v6, 1 }
 0x3b4   : > { %v11870_v59 = vpop.f32.mrb[156].mxu1  ;;  %v11980_v49 = vpop.f32.mrb[187].mxu0 }
 0x3b5   : > { %v11871_v39 = vpop.f32.mrb[157].mxu1  ;;  %v14505_v47 = vadd.f32 %v11978_v38, %v8593_v11  ;;  %v11981_v36 = vadd.f32 %v11980_v49, %v11979_v22  ;;  %v13071_v11 = vld [vmem:[#allocation2 + $0x98] ss:$0 sps:$4 sm:$0x11]   ;;  %v7731_v38 = vrot.slane %v13069_v57, 1 }
 0x3b6   : > { %v11872_v43 = vadd.f32 %v11871_v39, %v11870_v59  ;;  %v11873_v23 = vpop.f32.mrb[158].mxu1  ;;  %v7734_v49 = vrot.slane %v13071_v11, 1  ;;  %v13076_v11 = vld [vmem:[#allocation2 + $0xb4] sm:$0xfe]  }
 0x3b7   : > { %v11874_v56 = vpop.f32.mrb[159].mxu1  ;;  %v14508_v1 = vadd.f32 %v11981_v36, %v8596_v45  ;;  %v7732_v50 = vsel %vm1609_vm10, %v7730_v61, %v7731_v38  ;;  %v13079_v61 = vld [vmem:[#allocation2 + $0xc8] ss:$0 sps:$4 sm:$0x11]  }
 0x3b8   : > { %v11875_v33 = vadd.f32 %v11874_v56, %v11873_v23  ;;  %v8601_v16 = vadd.f32 %v11872_v43, %v14412_v21 }
 0x3b9   : > { %12357 = vmatmul.mubr.bf16.gmra.mrb[8].mxu1 %v7720_v26  ;;  %v11982_v40 = vpop.f32.mrb[188].mxu0 }
 0x3ba   : > { %12360 = vmatprep.mubr.bf16.mxu1 %v7723_v53  ;;  %v11983_v51 = vpop.f32.mrb[189].mxu0  ;;  %v8604_v54 = vadd.f32 %v11875_v33, %v14412_v21  ;;  %v13072_v53 = vld [vmem:[#allocation2 + $0x9c] sm:$0xfe]  }
 0x3bb   : > { %v11984_v14 = vadd.f32 %v11983_v51, %v11982_v40  ;;  %v11985_v20 = vpop.f32.mrb[190].mxu0  ;;  %v13075_v40 = vld [vmem:[#allocation2 + $0xb0] ss:$0 sps:$4 sm:$0x11]   ;;  %v14530_v51 = vld [vmem:[%s15077_s4] ss:$0 sm:$0xff] }
 0x3bc   : > { %v11876_v17 = vpop.f32.mrb[160].mxu1  ;;  %v11986_v24 = vpop.f32.mrb[191].mxu0 }
 0x3bd   : > { %v11877_v60 = vpop.f32.mrb[161].mxu1  ;;  %v14513_v35 = vadd.f32 %v11984_v14, %v8601_v16  ;;  %v11987_v29 = vadd.f32 %v11986_v24, %v11985_v20  ;;  %v13074_v16 = vld [vmem:[#allocation2 + $0xa8] sm:$0xfe]   ;;  %v7737_v20 = vrot.slane %v13073_v37, 1 }
 0x3be   : > { %v11878_v58 = vadd.f32 %v11877_v60, %v11876_v17  ;;  %v11879_v7 = vpop.f32.mrb[162].mxu1 }
 0x3bf   : > { %v11880_v42 = vpop.f32.mrb[163].mxu1  ;;  %v14516_v4 = vadd.f32 %v11987_v29, %v8604_v54  ;;  %v7736_v54 = vrot.slane %v13072_v53, 1 }
 0x3c0   : > { %v11881_v13 = vadd.f32 %v11880_v42, %v11879_v7  ;;  %v8609_v32 = vadd.f32 %v11878_v58, %v14412_v21  ;;  %v7739_v58 = vrot.slane %v13074_v16, 1  ;;  %v7740_v7 = vrot.slane %v13075_v40, 1 }
 0x3c1   : > { %12361 = vmatmul.mubr.bf16.gmra.mrb[12].mxu1 %v7726_v55  ;;  %v11988_v44 = vpop.f32.mrb[192].mxu0  ;;  %v7738_v31 = vsel %vm1609_vm10, %v7736_v54, %v7737_v20 }
 0x3c2   : > { %12364 = vmatprep.mubr.bf16.mxu1 %v7729_v28  ;;  %v11989_v59 = vpop.f32.mrb[193].mxu0  ;;  %v8612_v22 = vadd.f32 %v11881_v13, %v14412_v21  ;;  %v7735_v21 = vsel %vm1609_vm10, %v7733_v48, %v7734_v49 }
 0x3c3   : > { %v11990_v45 = vadd.f32 %v11989_v59, %v11988_v44  ;;  %v11991_v39 = vpop.f32.mrb[194].mxu0  ;;  %v7741_v59 = vsel %vm1609_vm10, %v7739_v58, %v7740_v7 }
 0x3c4   : > { %v11882_v10 = vpop.f32.mrb[164].mxu1  ;;  %v11992_v43 = vpop.f32.mrb[195].mxu0 }
 0x3c5   : > { %v11883_v19 = vpop.f32.mrb[165].mxu1  ;;  %v14521_v56 = vadd.f32 %v11990_v45, %v8609_v32  ;;  %v11993_v33 = vadd.f32 %v11992_v43, %v11991_v39  ;;  %v13077_v32 = vld [vmem:[#allocation2 + $0xbc] ss:$0 sps:$4 sm:$0x11]  }
 0x3c6   : > { %v11884_v23 = vadd.f32 %v11883_v19, %v11882_v10  ;;  %v11885_v36 = vpop.f32.mrb[166].mxu1  ;;  %v13078_v10 = vld [vmem:[#allocation2 + $0xc0] sm:$0xfe]   ;;  %v7742_v19 = vrot.slane %v13076_v11, 1  ;;  %v7743_v48 = vrot.slane %v13077_v32, 1 }
 0x3c7   : > { %v11886_v26 = vpop.f32.mrb[167].mxu1  ;;  %v14524_v52 = vadd.f32 %v11993_v33, %v8612_v22  ;;  %v7745_v33 = vrot.slane %v13078_v10, 1 }
 0x3c8   : > { %v11887_v41 = vadd.f32 %v11886_v26, %v11885_v36  ;;  %v8617_v17 = vadd.f32 %v14530_v51, %v11884_v23  ;;  %v7746_v26 = vrot.slane %v13079_v61, 1 }
 0x3c9   : > { %12365 = vmatmul.mubr.bf16.gmra.mrb[16].mxu1 %v7732_v50  ;;  %v11994_v63 = vpop.f32.mrb[196].mxu0 }
 0x3ca   : > { %12368 = vmatprep.mubr.bf16.mxu1 %v7735_v21  ;;  %v11995_v15 = vpop.f32.mrb[197].mxu0  ;;  %v8620_v30 = vadd.f32 %v14530_v51, %v11887_v41  ;;  %v13080_v41 = vld [vmem:[#allocation2 + $0xcc] sm:$0xfe]   ;;  %v13081_v21 = vld [vmem:[#allocation2 + $0xd4] ss:$0 sps:$4 sm:$0x11]   ;;  %v7747_v54 = vsel %vm1609_vm10, %v7745_v33, %v7746_v26 }
 0x3cb   : > { %v11996_v60 = vadd.f32 %v11995_v15, %v11994_v63  ;;  %v11997_v5 = vpop.f32.mrb[198].mxu0  ;;  %v7744_v15 = vsel %vm1609_vm10, %v7742_v19, %v7743_v48  ;;  %v7748_v20 = vrot.slane %v13080_v41, 1 }
 0x3cc   : > { %v11888_v14 = vpop.f32.mrb[168].mxu1  ;;  %v11998_v29 = vpop.f32.mrb[199].mxu0 }
 0x3cd   : > { %v11889_v24 = vpop.f32.mrb[169].mxu1  ;;  %v14534_v55 = vadd.f32 %v11996_v60, %v8617_v17  ;;  %v11999_v6 = vadd.f32 %v11998_v29, %v11997_v5  ;;  %v7749_v60 = vrot.slane %v13081_v21, 1 }
 0x3ce   : > { %v11890_v42 = vadd.f32 %v11889_v24, %v11888_v14  ;;  %v11891_v13 = vpop.f32.mrb[170].mxu1 }
 0x3cf   : > { %v11892_v57 = vpop.f32.mrb[171].mxu1  ;;  %v14537_v44 = vadd.f32 %v11999_v6, %v8620_v30 }
 0x3d0   : > { %v11893_v28 = vadd.f32 %v11892_v57, %v11891_v13  ;;  %v8625_v38 = vadd.f32 %v14530_v51, %v11890_v42 }
 0x3d1   : > { %12369 = vmatmul.mubr.bf16.gmra.mrb[20].mxu1 %v7738_v31  ;;  %v12000_v45 = vpop.f32.mrb[200].mxu0  ;;  %v7750_v31 = vsel %vm1609_vm10, %v7748_v20, %v7749_v60 }
 0x3d2   : > { %12372 = vmatprep.mubr.bf16.mxu1 %v7741_v59  ;;  %v12001_v22 = vpop.f32.mrb[201].mxu0  ;;  %v8628_v43 = vadd.f32 %v14530_v51, %v11893_v28 }
 0x3d3   : > { %v12002_v49 = vadd.f32 %v12001_v22, %v12000_v45  ;;  %v12003_v23 = vpop.f32.mrb[202].mxu0 }
 0x3d4   : > { %v11894_v39 = vpop.f32.mrb[172].mxu1  ;;  %v12004_v50 = vpop.f32.mrb[203].mxu0 }
 0x3d5   : > { %v11895_v36 = vpop.f32.mrb[173].mxu1  ;;  %v14542_v16 = vadd.f32 %v12002_v49, %v8625_v38  ;;  %v12005_v40 = vadd.f32 %v12004_v50, %v12003_v23 }
 0x3d6   : > { %v11896_v53 = vadd.f32 %v11895_v36, %v11894_v39  ;;  %v11897_v37 = vpop.f32.mrb[174].mxu1 }
 0x3d7   : > { %v11898_v17 = vpop.f32.mrb[175].mxu1  ;;  %v14545_v14 = vadd.f32 %v12005_v40, %v8628_v43 }
 0x3d8   : > { %v11899_v63 = vadd.f32 %v11898_v17, %v11897_v37  ;;  %v8633_v30 = vadd.f32 %v14530_v51, %v11896_v53 }
 0x3d9   : > { %12373 = vmatmul.mubr.bf16.gmra.mrb[24].mxu1 %v7744_v15  ;;  %v12006_v5 = vpop.f32.mrb[204].mxu0 }
 0x3da   : > { %12376 = vmatprep.mubr.bf16.mxu1 %v7747_v54  ;;  %v12007_v24 = vpop.f32.mrb[205].mxu0  ;;  %v8636_v29 = vadd.f32 %v14530_v51, %v11899_v63 }
 0x3db   : > { %v12008_v7 = vadd.f32 %v12007_v24, %v12006_v5  ;;  %v12009_v42 = vpop.f32.mrb[206].mxu0 }
 0x3dc   : > { %v11900_v58 = vpop.f32.mrb[176].mxu1  ;;  %v12010_v6 = vpop.f32.mrb[207].mxu0 }
 0x3dd   : > { %v11901_v13 = vpop.f32.mrb[177].mxu1  ;;  %v14551_v11 = vadd.f32 %v12008_v7, %v8633_v30  ;;  %v12011_v32 = vadd.f32 %v12010_v6, %v12009_v42 }
 0x3de   : > { %v11902_v57 = vadd.f32 %v11901_v13, %v11900_v58  ;;  %v11903_v28 = vpop.f32.mrb[178].mxu1 }
 0x3df   : > { %v11904_v59 = vpop.f32.mrb[179].mxu1  ;;  %v14553_v61 = vadd.f32 %v12011_v32, %v8636_v29 }
 0x3e0   : > { %v11905_v10 = vadd.f32 %v11904_v59, %v11903_v28  ;;  %v8641_v38 = vadd.f32 %v14530_v51, %v11902_v57 }
 0x3e1   : > { %12377 = vmatmul.mubr.bf16.gmra.mrb[28].mxu1 %v7750_v31  ;;  %v12012_v45 = vpop.f32.mrb[208].mxu0 }
 0x3e2   : > { %v12013_v22 = vpop.f32.mrb[209].mxu0  ;;  %v8644_v48 = vadd.f32 %v14530_v51, %v11905_v10 }
 0x3e3   : > { %v12014_v19 = vadd.f32 %v12013_v22, %v12012_v45  ;;  %v12015_v49 = vpop.f32.mrb[210].mxu0 }
 0x3e4   : > { %v11906_v39 = vpop.f32.mrb[180].mxu1  ;;  %v12016_v23 = vpop.f32.mrb[211].mxu0 }
 0x3e5   : > { %v11907_v43 = vpop.f32.mrb[181].mxu1  ;;  %v14557_v26 = vadd.f32 %v12014_v19, %v8641_v38  ;;  %v12017_v41 = vadd.f32 %v12016_v23, %v12015_v49 }
 0x3e6   : > { %v11908_v36 = vadd.f32 %v11907_v43, %v11906_v39  ;;  %v11909_v33 = vpop.f32.mrb[182].mxu1 }
 0x3e7   : > { %v11910_v50 = vpop.f32.mrb[183].mxu1  ;;  %v14559_v37 = vadd.f32 %v12017_v41, %v8644_v48 }
 0x3e8   : > { %v11911_v53 = vadd.f32 %v11910_v50, %v11909_v33  ;;  %v8649_v21 = vadd.f32 %v14530_v51, %v11908_v36 }
 0x3e9   : > { %v12018_v40 = vpop.f32.mrb[212].mxu0 }
 0x3ea   : > { %v12019_v17 = vpop.f32.mrb[213].mxu0  ;;  %v8652_v54 = vadd.f32 %v14530_v51, %v11911_v53 }
 0x3eb   : > { %v12020_v15 = vadd.f32 %v12019_v17, %v12018_v40  ;;  %v12021_v20 = vpop.f32.mrb[214].mxu0 }
 0x3ec   : > { %v11912_v63 = vpop.f32.mrb[184].mxu1  ;;  %v12022_v30 = vpop.f32.mrb[215].mxu0 }
 0x3ed   : > { %v11913_v60 = vpop.f32.mrb[185].mxu1  ;;  %v14563_v58 = vadd.f32 %v12020_v15, %v8649_v21  ;;  %v12023_v7 = vadd.f32 %v12022_v30, %v12021_v20 }
 0x3ee   : > { %v11914_v5 = vadd.f32 %v11913_v60, %v11912_v63  ;;  %v11915_v24 = vpop.f32.mrb[186].mxu1 }
 0x3ef   : > { %v11916_v29 = vpop.f32.mrb[187].mxu1  ;;  %v14565_v13 = vadd.f32 %v12023_v7, %v8652_v54 }
 0x3f0   : > { %v11917_v42 = vadd.f32 %v11916_v29, %v11915_v24  ;;  %v8657_v6 = vadd.f32 %v14530_v51, %v11914_v5 }
 0x3f1   : > { %v12024_v57 = vpop.f32.mrb[216].mxu0 }
 0x3f2   : > { %v12025_v28 = vpop.f32.mrb[217].mxu0  ;;  %v8660_v59 = vadd.f32 %v14530_v51, %v11917_v42 }
 0x3f3   : > { %v12026_v32 = vadd.f32 %v12025_v28, %v12024_v57  ;;  %v12027_v10 = vpop.f32.mrb[218].mxu0 }
 0x3f4   : > { %v11918_v31 = vpop.f32.mrb[188].mxu1  ;;  %v12028_v45 = vpop.f32.mrb[219].mxu0 }
 0x3f5   : > { %v11919_v38 = vpop.f32.mrb[189].mxu1  ;;  %v14569_v19 = vadd.f32 %v12026_v32, %v8657_v6  ;;  %v12029_v48 = vadd.f32 %v12028_v45, %v12027_v10 }
 0x3f6   : > { %v11920_v22 = vadd.f32 %v11919_v38, %v11918_v31  ;;  %v11921_v39 = vpop.f32.mrb[190].mxu1 }
 0x3f7   : > { %v11922_v49 = vpop.f32.mrb[191].mxu1  ;;  %v14571_v23 = vadd.f32 %v12029_v48, %v8660_v59 }
 0x3f8   : > { %v11923_v43 = vadd.f32 %v11922_v49, %v11921_v39  ;;  %v8665_v36 = vadd.f32 %v14530_v51, %v11920_v22 }
 0x3f9   : > { %v12030_v33 = vpop.f32.mrb[220].mxu0 }
 0x3fa   : > { %v12031_v41 = vpop.f32.mrb[221].mxu0  ;;  %v8668_v21 = vadd.f32 %v14530_v51, %v11923_v43 }
 0x3fb   : > { %v12032_v53 = vadd.f32 %v12031_v41, %v12030_v33  ;;  %v12033_v40 = vpop.f32.mrb[222].mxu0 }
 0x3fc   : > { %v12052_v50 = vpop.f32.mrb[192].mxu1  ;;  %v12034_v63 = vpop.f32.mrb[223].mxu0 }
 0x3fd   : > { %v12053_v17 = vpop.f32.mrb[193].mxu1  ;;  %v14575_v20 = vadd.f32 %v12032_v53, %v8665_v36  ;;  %v12035_v60 = vadd.f32 %v12034_v63, %v12033_v40 }
 0x3fe   : > { %v12054_v15 = vadd.f32 %v12053_v17, %v12052_v50  ;;  %v12055_v54 = vpop.f32.mrb[194].mxu1 }
 0x3ff   : > { %v12056_v30 = vpop.f32.mrb[195].mxu1  ;;  %v14578_v7 = vadd.f32 %v12035_v60, %v8668_v21 }
 0x400   : > { %v8867_v5 = vadd.f32 %v12054_v15, %v14418_v0  ;;  %v12057_v24 = vadd.f32 %v12056_v30, %v12055_v54 }
 0x401   : > { %v12164_v42 = vpop.f32.mrb[224].mxu0 }
 0x402   : > { %v8870_v29 = vadd.f32 %v12057_v24, %v14422_v62  ;;  %v12165_v6 = vpop.f32.mrb[225].mxu0 }
 0x403   : > { %v12166_v51 = vadd.f32 %v12165_v6, %v12164_v42  ;;  %v12167_v28 = vpop.f32.mrb[226].mxu0 }
 0x404   : > { %v12058_v57 = vpop.f32.mrb[196].mxu1  ;;  %v12168_v32 = vpop.f32.mrb[227].mxu0 }
 0x405   : > { %v12059_v31 = vpop.f32.mrb[197].mxu1  ;;  %v12169_v38 = vadd.f32 %v12168_v32, %v12167_v28  ;;  %v14581_v22 = vadd.f32 %v12166_v51, %v8867_v5 }
 0x406   : > { %v12060_v59 = vadd.f32 %v12059_v31, %v12058_v57  ;;  %v12061_v10 = vpop.f32.mrb[198].mxu1 }
 0x407   : > { %v12062_v45 = vpop.f32.mrb[199].mxu1  ;;  %v14587_v15 = vadd.f32 %v12169_v38, %v8870_v29 }
 0x408   : > { %v8875_v0 = vadd.f32 %v12060_v59, %v14445_v8  ;;  %v12063_v39 = vadd.f32 %v12062_v45, %v12061_v10 }
 0x409   : > { %v12170_v49 = vpop.f32.mrb[228].mxu0 }
 0x40a   : > { %v8878_v48 = vadd.f32 %v12063_v39, %v14450_v25  ;;  %v12171_v62 = vpop.f32.mrb[229].mxu0 }
 0x40b   : > { %v12172_v36 = vadd.f32 %v12171_v62, %v12170_v49  ;;  %v12173_v33 = vpop.f32.mrb[230].mxu0 }
 0x40c   : > { %v12064_v43 = vpop.f32.mrb[200].mxu1  ;;  %v12174_v50 = vpop.f32.mrb[231].mxu0 }
 0x40d   : > { %v12065_v41 = vpop.f32.mrb[201].mxu1  ;;  %v12175_v40 = vadd.f32 %v12174_v50, %v12173_v33  ;;  %v14585_v63 = vadd.f32 %v12172_v36, %v8875_v0 }
 0x40e   : > { %v12066_v53 = vadd.f32 %v12065_v41, %v12064_v43  ;;  %v12067_v21 = vpop.f32.mrb[202].mxu1 }
 0x40f   : > { %v12068_v17 = vpop.f32.mrb[203].mxu1  ;;  %v14590_v60 = vadd.f32 %v12175_v40, %v8878_v48 }
 0x410   : > { %v8883_v8 = vadd.f32 %v12066_v53, %v14470_v46  ;;  %v12069_v54 = vadd.f32 %v12068_v17, %v12067_v21 }
 0x411   : > { %v12176_v30 = vpop.f32.mrb[232].mxu0 }
 0x412   : > { %v8886_v25 = vadd.f32 %v12069_v54, %v14472_v12  ;;  %v12177_v5 = vpop.f32.mrb[233].mxu0 }
 0x413   : > { %v12178_v42 = vadd.f32 %v12177_v5, %v12176_v30  ;;  %v12179_v6 = vpop.f32.mrb[234].mxu0 }
 0x414   : > { %v12070_v24 = vpop.f32.mrb[204].mxu1  ;;  %v12180_v51 = vpop.f32.mrb[235].mxu0 }
 0x415   : > { %v12071_v57 = vpop.f32.mrb[205].mxu1  ;;  %v12181_v32 = vadd.f32 %v12180_v51, %v12179_v6  ;;  %v14593_v29 = vadd.f32 %v12178_v42, %v8883_v8 }
 0x416   : > { %v12072_v28 = vadd.f32 %v12071_v57, %v12070_v24  ;;  %v12073_v31 = vpop.f32.mrb[206].mxu1 }
 0x417   : > { %v12074_v59 = vpop.f32.mrb[207].mxu1  ;;  %v14596_v38 = vadd.f32 %v12181_v32, %v8886_v25 }
 0x418   : > { %v8891_v46 = vadd.f32 %v12072_v28, %v14480_v2  ;;  %v12075_v10 = vadd.f32 %v12074_v59, %v12073_v31 }
 0x419   : > { %v12182_v45 = vpop.f32.mrb[236].mxu0 }
 0x41a   : > { %v8894_v12 = vadd.f32 %v12075_v10, %v14482_v27  ;;  %v12183_v0 = vpop.f32.mrb[237].mxu0 }
 0x41b   : > { %v12184_v48 = vadd.f32 %v12183_v0, %v12182_v45  ;;  %v12185_v49 = vpop.f32.mrb[238].mxu0 }
 0x41c   : > { %v12076_v39 = vpop.f32.mrb[208].mxu1  ;;  %v12186_v43 = vpop.f32.mrb[239].mxu0 }
 0x41d   : > { %v12077_v62 = vpop.f32.mrb[209].mxu1  ;;  %v12187_v41 = vadd.f32 %v12186_v43, %v12185_v49  ;;  %v14599_v53 = vadd.f32 %v12184_v48, %v8891_v46 }
 0x41e   : > { %v12078_v36 = vadd.f32 %v12077_v62, %v12076_v39  ;;  %v12079_v33 = vpop.f32.mrb[210].mxu1 }
 0x41f   : > { %v12080_v50 = vpop.f32.mrb[211].mxu1  ;;  %v14602_v40 = vadd.f32 %v12187_v41, %v8894_v12 }
 0x420   : > { %v8899_v2 = vadd.f32 %v12078_v36, %v14489_v18  ;;  %v12081_v21 = vadd.f32 %v12080_v50, %v12079_v33 }
 0x421   : > { %v12188_v17 = vpop.f32.mrb[240].mxu0 }
 0x422   : > { %v8902_v27 = vadd.f32 %v12081_v21, %v14492_v9  ;;  %v12189_v8 = vpop.f32.mrb[241].mxu0 }
 0x423   : > { %v12190_v25 = vadd.f32 %v12189_v8, %v12188_v17  ;;  %v12191_v30 = vpop.f32.mrb[242].mxu0 }
 0x424   : > { %v12082_v54 = vpop.f32.mrb[212].mxu1  ;;  %v12192_v24 = vpop.f32.mrb[243].mxu0 }
 0x425   : > { %v12083_v5 = vpop.f32.mrb[213].mxu1  ;;  %v12193_v57 = vadd.f32 %v12192_v24, %v12191_v30  ;;  %v14605_v28 = vadd.f32 %v12190_v25, %v8899_v2 }
 0x426   : > { %v12084_v42 = vadd.f32 %v12083_v5, %v12082_v54  ;;  %v12085_v6 = vpop.f32.mrb[214].mxu1 }
 0x427   : > { %v12086_v51 = vpop.f32.mrb[215].mxu1  ;;  %v14608_v32 = vadd.f32 %v12193_v57, %v8902_v27 }
 0x428   : > { %v8907_v18 = vadd.f32 %v12084_v42, %v14497_v3  ;;  %v12087_v31 = vadd.f32 %v12086_v51, %v12085_v6 }
 0x429   : > { %v12194_v59 = vpop.f32.mrb[244].mxu0 }
 0x42a   : > { %v8910_v9 = vadd.f32 %v12087_v31, %v14500_v34  ;;  %v12195_v46 = vpop.f32.mrb[245].mxu0 }
 0x42b   : > { %v12196_v12 = vadd.f32 %v12195_v46, %v12194_v59  ;;  %v12197_v45 = vpop.f32.mrb[246].mxu0 }
 0x42c   : > { %v12088_v10 = vpop.f32.mrb[216].mxu1  ;;  %v12198_v39 = vpop.f32.mrb[247].mxu0 }
 0x42d   : > { %v12089_v0 = vpop.f32.mrb[217].mxu1  ;;  %v12199_v62 = vadd.f32 %v12198_v39, %v12197_v45  ;;  %v14611_v36 = vadd.f32 %v12196_v12, %v8907_v18 }
 0x42e   : > { %v12090_v48 = vadd.f32 %v12089_v0, %v12088_v10  ;;  %v12091_v49 = vpop.f32.mrb[218].mxu1 }
 0x42f   : > { %v12092_v43 = vpop.f32.mrb[219].mxu1  ;;  %v14614_v41 = vadd.f32 %v12199_v62, %v8910_v9 }
 0x430   : > { %v8915_v3 = vadd.f32 %v12090_v48, %v14505_v47  ;;  %v12093_v33 = vadd.f32 %v12092_v43, %v12091_v49 }
 0x431   : > { %v12200_v50 = vpop.f32.mrb[248].mxu0 }
 0x432   : > { %v8918_v34 = vadd.f32 %v12093_v33, %v14508_v1  ;;  %v12201_v2 = vpop.f32.mrb[249].mxu0 }
 0x433   : > { %v12202_v27 = vadd.f32 %v12201_v2, %v12200_v50  ;;  %v12203_v17 = vpop.f32.mrb[250].mxu0 }
 0x434   : > { %v12094_v21 = vpop.f32.mrb[220].mxu1  ;;  %v12204_v54 = vpop.f32.mrb[251].mxu0 }
 0x435   : > { %v12095_v8 = vpop.f32.mrb[221].mxu1  ;;  %v12205_v5 = vadd.f32 %v12204_v54, %v12203_v17  ;;  %v14617_v42 = vadd.f32 %v12202_v27, %v8915_v3 }
 0x436   : > { %v12096_v25 = vadd.f32 %v12095_v8, %v12094_v21  ;;  %v12097_v30 = vpop.f32.mrb[222].mxu1 }
 0x437   : > { %v12098_v24 = vpop.f32.mrb[223].mxu1  ;;  %v14620_v57 = vadd.f32 %v12205_v5, %v8918_v34 }
 0x438   : > { %v8923_v47 = vadd.f32 %v12096_v25, %v14513_v35  ;;  %v12099_v6 = vadd.f32 %v12098_v24, %v12097_v30 }
 0x439   : > { %v12206_v51 = vpop.f32.mrb[252].mxu0 }
 0x43a   : > { %v8926_v1 = vadd.f32 %v12099_v6, %v14516_v4  ;;  %v12207_v18 = vpop.f32.mrb[253].mxu0 }
 0x43b   : > { %v12208_v9 = vadd.f32 %v12207_v18, %v12206_v51  ;;  %v12209_v59 = vpop.f32.mrb[254].mxu0 }
 0x43c   : > { %v12100_v31 = vpop.f32.mrb[224].mxu1  ;;  %v12210_v10 = vpop.f32.mrb[255].mxu0 }
 0x43d   : > { %v12101_v46 = vpop.f32.mrb[225].mxu1  ;;  %v12211_v0 = vadd.f32 %v12210_v10, %v12209_v59  ;;  %v14623_v48 = vadd.f32 %v12208_v9, %v8923_v47 }
 0x43e   : > { %v12102_v12 = vadd.f32 %v12101_v46, %v12100_v31  ;;  %v12103_v45 = vpop.f32.mrb[226].mxu1 }
 0x43f   : > { %v12104_v39 = vpop.f32.mrb[227].mxu1  ;;  %v14626_v62 = vadd.f32 %v12211_v0, %v8926_v1 }
 0x440   : > { %v8931_v35 = vadd.f32 %v12102_v12, %v14521_v56  ;;  %v12105_v49 = vadd.f32 %v12104_v39, %v12103_v45 }
 0x441   : > { %v12212_v43 = vpop.f32.mrb[0].mxu0 }
 0x442   : > { %v8934_v4 = vadd.f32 %v12105_v49, %v14524_v52  ;;  %v12213_v3 = vpop.f32.mrb[1].mxu0 }
 0x443   : > { %v12214_v34 = vadd.f32 %v12213_v3, %v12212_v43  ;;  %v12215_v50 = vpop.f32.mrb[2].mxu0 }
 0x444   : > { %v12106_v33 = vpop.f32.mrb[228].mxu1  ;;  %v12216_v21 = vpop.f32.mrb[3].mxu0 }
 0x445   : > { %v12107_v2 = vpop.f32.mrb[229].mxu1  ;;  %v12217_v8 = vadd.f32 %v12216_v21, %v12215_v50  ;;  %v14629_v25 = vadd.f32 %v12214_v34, %v8931_v35 }
 0x446   : > { %v12108_v27 = vadd.f32 %v12107_v2, %v12106_v33  ;;  %v12109_v17 = vpop.f32.mrb[230].mxu1 }
 0x447   : > { %v12110_v54 = vpop.f32.mrb[231].mxu1  ;;  %v14632_v5 = vadd.f32 %v12217_v8, %v8934_v4 }
 0x448   : > { %v8939_v56 = vadd.f32 %v12108_v27, %v14534_v55  ;;  %v12111_v30 = vadd.f32 %v12110_v54, %v12109_v17 }
 0x449   : > { %v12218_v24 = vpop.f32.mrb[4].mxu0 }
 0x44a   : > { %v8942_v52 = vadd.f32 %v12111_v30, %v14537_v44  ;;  %v12219_v47 = vpop.f32.mrb[5].mxu0 }
 0x44b   : > { %v12220_v1 = vadd.f32 %v12219_v47, %v12218_v24  ;;  %v12221_v51 = vpop.f32.mrb[6].mxu0 }
 0x44c   : > { %v12112_v6 = vpop.f32.mrb[232].mxu1  ;;  %v12222_v31 = vpop.f32.mrb[7].mxu0 }
 0x44d   : > { %v12113_v18 = vpop.f32.mrb[233].mxu1  ;;  %v12223_v46 = vadd.f32 %v12222_v31, %v12221_v51  ;;  %v14635_v12 = vadd.f32 %v12220_v1, %v8939_v56 }
 0x44e   : > { %v12114_v9 = vadd.f32 %v12113_v18, %v12112_v6  ;;  %v12115_v59 = vpop.f32.mrb[234].mxu1 }
 0x44f   : > { %v12116_v10 = vpop.f32.mrb[235].mxu1  ;;  %v14638_v0 = vadd.f32 %v12223_v46, %v8942_v52 }
 0x450   : > { %v8947_v55 = vadd.f32 %v12114_v9, %v14542_v16  ;;  %v12117_v45 = vadd.f32 %v12116_v10, %v12115_v59 }
 0x451   : > { %v12224_v39 = vpop.f32.mrb[8].mxu0 }
 0x452   : > { %v8950_v44 = vadd.f32 %v12117_v45, %v14545_v14  ;;  %v12225_v35 = vpop.f32.mrb[9].mxu0 }
 0x453   : > { %v12226_v4 = vadd.f32 %v12225_v35, %v12224_v39  ;;  %v12227_v43 = vpop.f32.mrb[10].mxu0 }
 0x454   : > { %v12118_v49 = vpop.f32.mrb[236].mxu1  ;;  %v12228_v33 = vpop.f32.mrb[11].mxu0 }
 0x455   : > { %v12119_v3 = vpop.f32.mrb[237].mxu1  ;;  %v12229_v2 = vadd.f32 %v12228_v33, %v12227_v43  ;;  %v14641_v27 = vadd.f32 %v12226_v4, %v8947_v55 }
 0x456   : > { %v12120_v34 = vadd.f32 %v12119_v3, %v12118_v49  ;;  %v12121_v50 = vpop.f32.mrb[238].mxu1 }
 0x457   : > { %v12122_v21 = vpop.f32.mrb[239].mxu1  ;;  %v14644_v8 = vadd.f32 %v12229_v2, %v8950_v44 }
 0x458   : > { %v8955_v16 = vadd.f32 %v12120_v34, %v14551_v11  ;;  %v12123_v17 = vadd.f32 %v12122_v21, %v12121_v50 }
 0x459   : > { %v12230_v54 = vpop.f32.mrb[12].mxu0 }
 0x45a   : > { %v8958_v14 = vadd.f32 %v12123_v17, %v14553_v61  ;;  %v12231_v56 = vpop.f32.mrb[13].mxu0 }
 0x45b   : > { %v12232_v52 = vadd.f32 %v12231_v56, %v12230_v54  ;;  %v12233_v24 = vpop.f32.mrb[14].mxu0 }
 0x45c   : > { %v12124_v30 = vpop.f32.mrb[240].mxu1  ;;  %v12234_v6 = vpop.f32.mrb[15].mxu0 }
 0x45d   : > { %v12125_v47 = vpop.f32.mrb[241].mxu1  ;;  %v12235_v18 = vadd.f32 %v12234_v6, %v12233_v24  ;;  %v14647_v9 = vadd.f32 %v12232_v52, %v8955_v16 }
 0x45e   : > { %v12126_v1 = vadd.f32 %v12125_v47, %v12124_v30  ;;  %v12127_v51 = vpop.f32.mrb[242].mxu1 }
 0x45f   : > { %v12128_v31 = vpop.f32.mrb[243].mxu1  ;;  %v14650_v46 = vadd.f32 %v12235_v18, %v8958_v14 }
 0x460   : > { %v8963_v11 = vadd.f32 %v12126_v1, %v14557_v26  ;;  %v12129_v59 = vadd.f32 %v12128_v31, %v12127_v51 }
 0x461   : > { %v12236_v10 = vpop.f32.mrb[16].mxu0 }
 0x462   : > { %v8966_v61 = vadd.f32 %v12129_v59, %v14559_v37  ;;  %v12237_v55 = vpop.f32.mrb[17].mxu0 }
 0x463   : > { %v12238_v44 = vadd.f32 %v12237_v55, %v12236_v10  ;;  %v12239_v39 = vpop.f32.mrb[18].mxu0 }
 0x464   : > { %v12130_v45 = vpop.f32.mrb[244].mxu1  ;;  %v12240_v49 = vpop.f32.mrb[19].mxu0 }
 0x465   : > { %v12131_v35 = vpop.f32.mrb[245].mxu1  ;;  %v12241_v3 = vadd.f32 %v12240_v49, %v12239_v39  ;;  %v14653_v34 = vadd.f32 %v12238_v44, %v8963_v11 }
 0x466   : > { %v12132_v4 = vadd.f32 %v12131_v35, %v12130_v45  ;;  %v12133_v43 = vpop.f32.mrb[246].mxu1 }
 0x467   : > { %v12134_v33 = vpop.f32.mrb[247].mxu1  ;;  %v14656_v2 = vadd.f32 %v12241_v3, %v8966_v61  ;;  %v13280_v3 = vmov 1983009808  }
 0x468   : > { %v8971_v26 = vadd.f32 %v12132_v4, %v14563_v58  ;;  %v12135_v50 = vadd.f32 %v12134_v33, %v12133_v43  ;;  %v9413_v33 = vunpack.c.l.s4 %v13280_v3 }
 0x469   : > { %v12242_v21 = vpop.f32.mrb[20].mxu0 }
 0x46a   : > { %v8974_v37 = vadd.f32 %v12135_v50, %v14565_v13  ;;  %v12243_v16 = vpop.f32.mrb[21].mxu0 }
 0x46b   : > { %v12244_v14 = vadd.f32 %v12243_v16, %v12242_v21  ;;  %v12245_v54 = vpop.f32.mrb[22].mxu0 }
 0x46c   : > { %v12136_v17 = vpop.f32.mrb[248].mxu1  ;;  %v12246_v30 = vpop.f32.mrb[23].mxu0 }
 0x46d   : > { %v12137_v56 = vpop.f32.mrb[249].mxu1  ;;  %v12247_v47 = vadd.f32 %v12246_v30, %v12245_v54  ;;  %v14659_v1 = vadd.f32 %v12244_v14, %v8971_v26 }
 0x46e   : > { %v12138_v52 = vadd.f32 %v12137_v56, %v12136_v17  ;;  %v12139_v24 = vpop.f32.mrb[250].mxu1  ;;  %v9414_v17 = vunpack.c.0.s8 %v9413_v33 }
 0x46f   : > { %v12140_v6 = vpop.f32.mrb[251].mxu1  ;;  %v14662_v18 = vadd.f32 %v12247_v47, %v8974_v37 }
 0x470   : > { %v8979_v58 = vadd.f32 %v12138_v52, %v14569_v19  ;;  %v12141_v51 = vadd.f32 %v12140_v6, %v12139_v24 }
 0x471   : > { %v12248_v31 = vpop.f32.mrb[24].mxu0 }
 0x472   : > { %v8982_v13 = vadd.f32 %v12141_v51, %v14571_v23  ;;  %v12249_v11 = vpop.f32.mrb[25].mxu0  ;;  %v9415_v23 = vlaneseq }
 0x473   : > { %v12250_v61 = vadd.f32 %v12249_v11, %v12248_v31  ;;  %v12251_v10 = vpop.f32.mrb[26].mxu0 }
 0x474   : > { %v12142_v59 = vpop.f32.mrb[252].mxu1  ;;  %v12252_v45 = vpop.f32.mrb[27].mxu0  ;;  %v9416_v14 = vshrl.u32 %v9415_v23, 7 }
 0x475   : > { %v12143_v55 = vpop.f32.mrb[253].mxu1  ;;  %v12253_v35 = vadd.f32 %v12252_v45, %v12251_v10  ;;  %v14665_v4 = vadd.f32 %v12250_v61, %v8979_v58 }
 0x476   : > { %v12144_v44 = vadd.f32 %v12143_v55, %v12142_v59  ;;  %v12145_v39 = vpop.f32.mrb[254].mxu1  ;;  %v14677_v11 = vsub.s32 %v9414_v17, %v9416_v14  ;;  %v14688_v45 = vsub.s32 0, %v9416_v14 }
 0x477   : > { %v12146_v49 = vpop.f32.mrb[255].mxu1  ;;  %v14668_v26 = vadd.f32 %v12253_v35, %v8982_v13 }
 0x478   : > { %v8987_v19 = vadd.f32 %v12144_v44, %v14575_v20  ;;  %v12147_v43 = vadd.f32 %v12146_v49, %v12145_v39 }
 0x479   : > { %v12254_v37 = vpop.f32.mrb[28].mxu0 }
 0x47a   : > { %v8990_v50 = vadd.f32 %v12147_v43, %v14578_v7  ;;  %v12255_v21 = vpop.f32.mrb[29].mxu0 }
 0x47b   : > { %v12256_v54 = vadd.f32 %v12255_v21, %v12254_v37  ;;  %v12257_v56 = vpop.f32.mrb[30].mxu0 }
 0x47c   : > { %v12350_v16 = vpop.f32.mrb[0].mxu1  ;;  %v12258_v20 = vpop.f32.mrb[31].mxu0 }
 0x47d   : > { %v9197_v30 = vadd.f32 %v12350_v16, %v14585_v63  ;;  %v9188_v52 = vpop.f32.mrb[1].mxu1  ;;  %v12259_v6 = vadd.f32 %v12258_v20, %v12257_v56  ;;  %v14675_v13 = vadd.f32 %v12256_v54, %v8987_v19 }
 0x47e   : > { %v9189_v24 = vadd.f32 %v9188_v52, %v14581_v22  ;;  %v12351_v47 = vpop.f32.mrb[2].mxu1 }
 0x47f   : > { %v9317_v58 = vmax.f32 %v9197_v30, 0.0  ;;  %v9200_v51 = vadd.f32 %v12351_v47, %v14590_v60  ;;  %v9191_v7 = vpop.f32.mrb[3].mxu1  ;;  %v14683_v63 = vadd.f32 %v12259_v6, %v8990_v50 }
 0x480   : > { %v9315_v31 = vmax.f32 %v9189_v24, 0.0  ;;  %v9192_v59 = vadd.f32 %v9191_v7, %v14587_v15 }
 0x481   : > { %9349 = vst [vmem:[%s14680_s10 + $0x10] sm:$0xff] %v9317_v58  ;;  %v9318_v22 = vmax.f32 %v9200_v51, 0.0 }
 0x482   : > { %9347 = vst [vmem:[%s14680_s10] sm:$0xff] %v9315_v31  ;;  %v9379_v60 = vmax.f32 %v9315_v31, %v9317_v58  ;;  %v9316_v61 = vmax.f32 %v9192_v59, 0.0 }
 0x483   : > { %9350 = vst [vmem:[%s14680_s10 + $0x18] sm:$0xff] %v9318_v22 }
 0x484   : > { %v9411_v10 = vcombine.high %v9379_v60, %v9379_v60  ;;  %v9418_v55 = vrot.slane %v9379_v60, %v14677_v11  ;;  %9348 = vst [vmem:[%s14680_s10 + $0x8] sm:$0xff] %v9316_v61  ;;  %v9380_v15 = vmax.f32 %v9316_v61, %v9318_v22  ;;  %v12354_v44 = vpop.f32.mrb[4].mxu1 }
 0x485   : > { %v9213_v39 = vadd.f32 %v12354_v44, %v14599_v53  ;;  %v9204_v35 = vpop.f32.mrb[5].mxu1 }
 0x486   : > { %v9425_v49 = vrot.slane %v9411_v10, %v14677_v11  ;;  %v9426_v19 = vcombine.high %v9418_v55, %v9418_v55  ;;  %v11233_v43 = vrot.slane %v9418_v55, 9  ;;  %v9428_v3 = vcombine.high %v9380_v15, %v9380_v15  ;;  %v12355_v33 = vpop.f32.mrb[6].mxu1 }
 0x487   : > { %v9435_v23 = vrot.slane %v9380_v15, %v14677_v11  ;;  %v9321_v50 = vmax.f32 %v9213_v39, 0.0  ;;  %v9205_v37 = vadd.f32 %v9204_v35, %v14593_v29  ;;  %v14696_v21 = vadd.f32 %v12355_v33, %v14602_v40  ;;  %v9207_v16 = vpop.f32.mrb[7].mxu1 }
 0x488   : > { %v9427_v53 = vcombine.high %v9425_v49, %v9425_v49  ;;  %v11234_v17 = vrot.slane %v9426_v19, 9  ;;  %v11235_v14 = vrot.slane %v9425_v49, 9  ;;  %v9939_v54 = vmax.f32 %v9418_v55, %v11233_v43 }
 0x489   : > { %v9442_v56 = vrot.slane %v9428_v3, %v14677_v11  ;;  %v9443_v30 = vcombine.high %v9435_v23, %v9435_v23  ;;  %v11237_v52 = vrot.slane %v9435_v23, 9  ;;  %9353 = vst [vmem:[%s14680_s10 + $0x30] sm:$0xff] %v9321_v50  ;;  %v9319_v20 = vmax.f32 %v9205_v37, 0.0 }
 0x48a   : > { %v11236_v24 = vrot.slane %v9427_v53, 9  ;;  %v9940_v47 = vmax.f32 %v9426_v19, %v11234_v17  ;;  %v9941_v29 = vmax.f32 %v9425_v49, %v11235_v14  ;;  %v10070_v40 = vrot.slane %v9939_v54, %v14688_v45 }
 0x48b   : > { %v9444_v6 = vcombine.high %v9442_v56, %v9442_v56  ;;  %v11238_v58 = vrot.slane %v9443_v30, 9  ;;  %v11239_v51 = vrot.slane %v9442_v56, 9  ;;  %v9943_v7 = vmax.f32 %v9435_v23, %v11237_v52  ;;  %9351 = vst [vmem:[%s14680_s10 + $0x20] sm:$0xff] %v9319_v20 }
 0x48c   : > { %v9942_v31 = vmax.f32 %v9427_v53, %v11236_v24  ;;  %v10074_v59 = vrot.slane %v9940_v47, %v14688_v45  ;;  %v10078_v22 = vrot.slane %v9941_v29, %v14688_v45  ;;  %v9381_v60 = vmax.f32 %v9319_v20, %v9321_v50  ;;  %v12358_v61 = vpop.f32.mrb[8].mxu1 }
 0x48d   : > { %v11240_v10 = vrot.slane %v9444_v6, 9  ;;  %v9944_v55 = vmax.f32 %v9443_v30, %v11238_v58  ;;  %v9945_v15 = vmax.f32 %v9442_v56, %v11239_v51  ;;  %v10086_v44 = vrot.slane %v9943_v7, %v14688_v45  ;;  %v9220_v39 = vpop.f32.mrb[9].mxu1 }
 0x48e   : > { %v10082_v35 = vrot.slane %v9942_v31, %v14688_v45  ;;  %v10324_v49 = vsel %vm10323_vm11, %v10074_v59, %v10070_v40  ;;  %v9445_v19 = vcombine.high %v9381_v60, %v9381_v60  ;;  %v9452_v43 = vrot.slane %v9381_v60, %v14677_v11  ;;  %v12359_v3 = vpop.f32.mrb[10].mxu1 }
 0x48f   : > { %v10326_v33 = vsel %vm10325_vm12, %v10078_v22, %v10324_v49  ;;  %v9946_v23 = vmax.f32 %v9444_v6, %v11240_v10  ;;  %v10090_v50 = vrot.slane %v9944_v55, %v14688_v45  ;;  %v10094_v37 = vrot.slane %v9945_v15, %v14688_v45  ;;  %v9223_v53 = vpop.f32.mrb[11].mxu1 }
 0x490   : > { %v10328_v17 = vsel %vm10327_vm13, %v10082_v35, %v10326_v33  ;;  %v9459_v14 = vrot.slane %v9445_v19, %v14677_v11  ;;  %v9460_v54 = vcombine.high %v9452_v43, %v9452_v43  ;;  %v11241_v56 = vrot.slane %v9452_v43, 9 }
 0x491   : > { %v10098_v30 = vrot.slane %v9946_v23, %v14688_v45  ;;  %v10330_v52 = vsel %vm10329_vm14, %v10086_v44, %v10328_v17  ;;  %v9322_v20 = vmax.f32 %v14696_v21, 0.0  ;;  %v9208_v24 = vadd.f32 %v9207_v16, %v14596_v38 }
 0x492   : > { %v10332_v47 = vsel %vm10331_vm15, %v10090_v50, %v10330_v52  ;;  %v9461_v29 = vcombine.high %v9459_v14, %v9459_v14  ;;  %v11242_v40 = vrot.slane %v9460_v54, 9  ;;  %v11243_v6 = vrot.slane %v9459_v14, 9 }
 0x493   : > { %v10334_v58 = vsel %vm10333_vm0, %v10094_v37, %v10332_v47  ;;  %v9947_v51 = vmax.f32 %v9452_v43, %v11241_v56  ;;  %9354 = vst [vmem:[%s14680_s10 + $0x38] sm:$0xff] %v9322_v20  ;;  %v9320_v7 = vmax.f32 %v9208_v24, 0.0  ;;  %v9229_v31 = vadd.f32 %v12358_v61, %v14611_v36 }
 0x494   : > { %v10336_v59 = vsel %vm10335_vm1, %v10098_v30, %v10334_v58  ;;  %v11244_v22 = vrot.slane %v9461_v29, 9  ;;  %v9948_v60 = vmax.f32 %v9460_v54, %v11242_v40  ;;  %v9949_v21 = vmax.f32 %v9459_v14, %v11243_v6  ;;  %v12362_v10 = vpop.f32.mrb[12].mxu1 }
 0x495   : > { %10394 = vst [vmem:[%s14723_s14] sm:$0xff] %v10336_v59  ;;  %v10102_v38 = vrot.slane %v9947_v51, %v14688_v45  ;;  %9352 = vst [vmem:[%s14680_s10 + $0x28] sm:$0xff] %v9320_v7  ;;  %v9382_v16 = vmax.f32 %v9320_v7, %v9322_v20  ;;  %v9325_v55 = vmax.f32 %v9229_v31, 0.0  ;;  %v9221_v15 = vadd.f32 %v9220_v39, %v14605_v28  ;;  %v9236_v44 = vpop.f32.mrb[13].mxu1 }
 0x496   : > { %v9950_v36 = vmax.f32 %v9461_v29, %v11244_v22  ;;  %v10106_v61 = vrot.slane %v9948_v60, %v14688_v45  ;;  %v10110_v35 = vrot.slane %v9949_v21, %v14688_v45  ;;  %v9232_v49 = vadd.f32 %v12359_v3, %v14614_v41  ;;  %v14732_v19 = vpop.f32.mrb[14].mxu1 }
 0x497   : > { %v9462_v43 = vcombine.high %v9382_v16, %v9382_v16  ;;  %v9469_v33 = vrot.slane %v9382_v16, %v14677_v11  ;;  %9357 = vst [vmem:[%s14680_s10 + $0x50] sm:$0xff] %v9325_v55  ;;  %v9323_v23 = vmax.f32 %v9221_v15, 0.0  ;;  %v9224_v50 = vadd.f32 %v9223_v53, %v14608_v32  ;;  %v14737_v28 = vpop.f32.mrb[15].mxu1 }
 0x498   : > { %v10114_v39 = vrot.slane %v9950_v36, %v14688_v45  ;;  %v10337_v37 = vsel %vm10323_vm11, %v10106_v61, %v10102_v38  ;;  %v9326_v17 = vmax.f32 %v9232_v49, 0.0  ;;  %v14742_v41 = vadd.f32 %v12362_v10, %v14623_v48 }
 0x499   : > { %v10338_v3 = vsel %vm10325_vm12, %v10110_v35, %v10337_v37  ;;  %v9476_v14 = vrot.slane %v9462_v43, %v14677_v11  ;;  %v9477_v54 = vcombine.high %v9469_v33, %v9469_v33  ;;  %v11245_v56 = vrot.slane %v9469_v33, 9  ;;  %9355 = vst [vmem:[%s14680_s10 + $0x40] sm:$0xff] %v9323_v23 }
 0x49a   : > { %v10339_v32 = vsel %vm10327_vm13, %v10114_v39, %v10338_v3  ;;  %v9383_v53 = vmax.f32 %v9323_v23, %v9325_v55  ;;  %9358 = vst [vmem:[%s14680_s10 + $0x58] sm:$0xff] %v9326_v17  ;;  %v9324_v30 = vmax.f32 %v9224_v50, 0.0  ;;  %v9329_v52 = vmax.f32 %v14742_v41, 0.0 }
 0x49b   : > { %v9478_v20 = vcombine.high %v9476_v14, %v9476_v14  ;;  %v11246_v24 = vrot.slane %v9477_v54, 9  ;;  %v11247_v48 = vrot.slane %v9476_v14, 9  ;;  %v9951_v47 = vmax.f32 %v9469_v33, %v11245_v56 }
 0x49c   : > { %v9479_v29 = vcombine.high %v9383_v53, %v9383_v53  ;;  %v9486_v40 = vrot.slane %v9383_v53, %v14677_v11  ;;  %9356 = vst [vmem:[%s14680_s10 + $0x48] sm:$0xff] %v9324_v30  ;;  %v9384_v6 = vmax.f32 %v9324_v30, %v9326_v17  ;;  %9361 = vst [vmem:[%s14680_s10 + $0x70] sm:$0xff] %v9329_v52  ;;  %v14756_v51 = vpop.f32.mrb[16].mxu1 }
 0x49d   : > { %v9237_v58 = vadd.f32 %v9236_v44, %v14617_v42  ;;  %v11248_v7 = vrot.slane %v9478_v20, 9  ;;  %v9952_v31 = vmax.f32 %v9477_v54, %v11246_v24  ;;  %v9953_v59 = vmax.f32 %v9476_v14, %v11247_v48  ;;  %v14759_v60 = vpop.f32.mrb[17].mxu1 }
 0x49e   : > { %v10118_v22 = vrot.slane %v9951_v47, %v14688_v45  ;;  %v9493_v21 = vrot.slane %v9479_v29, %v14677_v11  ;;  %v9494_v10 = vcombine.high %v9486_v40, %v9486_v40  ;;  %v11249_v38 = vrot.slane %v9486_v40, 9  ;;  %v12367_v55 = vpop.f32.mrb[18].mxu1 }
 0x49f   : > { %v9496_v16 = vcombine.high %v9384_v6, %v9384_v6  ;;  %v9954_v15 = vmax.f32 %v9478_v20, %v11248_v7  ;;  %v10122_v36 = vrot.slane %v9952_v31, %v14688_v45  ;;  %v10126_v42 = vrot.slane %v9953_v59, %v14688_v45  ;;  %v14765_v61 = vpop.f32.mrb[19].mxu1 }
 0x4a0   : > { %v10340_v44 = vsel %vm10329_vm14, %v10118_v22, %v10339_v32  ;;  %v9495_v35 = vcombine.high %v9493_v21, %v9493_v21  ;;  %v11250_v49 = vrot.slane %v9494_v10, 9  ;;  %v11251_v43 = vrot.slane %v9493_v21, 9 }
 0x4a1   : > { %v9955_v33 = vmax.f32 %v9486_v40, %v11249_v38  ;;  %v10130_v23 = vrot.slane %v9954_v15, %v14688_v45  ;;  %v10341_v50 = vsel %vm10331_vm15, %v10122_v36, %v10340_v44  ;;  %v9503_v39 = vrot.slane %v9384_v6, %v14677_v11 }
 0x4a2   : > { %v9510_v37 = vrot.slane %v9496_v16, %v14677_v11  ;;  %v10342_v17 = vsel %vm10333_vm0, %v10126_v42, %v10341_v50  ;;  %v11252_v3 = vrot.slane %v9495_v35, 9  ;;  %v9956_v14 = vmax.f32 %v9494_v10, %v11250_v49 }
 0x4a3   : > { %v9957_v54 = vmax.f32 %v9493_v21, %v11251_v43  ;;  %v10343_v56 = vsel %vm10335_vm1, %v10130_v23, %v10342_v17  ;;  %v10134_v32 = vrot.slane %v9955_v33, %v14688_v45  ;;  %v9511_v53 = vcombine.high %v9503_v39, %v9503_v39 }
 0x4a4   : > { %v9512_v30 = vcombine.high %v9510_v37, %v9510_v37  ;;  %10395 = vst [vmem:[%s14723_s14 + $0x8] sm:$0xff] %v10343_v56  ;;  %v9958_v20 = vmax.f32 %v9495_v35, %v11252_v3  ;;  %v10138_v24 = vrot.slane %v9956_v14, %v14688_v45  ;;  %v11253_v47 = vrot.slane %v9503_v39, 9  ;;  %v14777_v29 = vpop.f32.mrb[20].mxu1 }
 0x4a5   : > { %v10142_v48 = vrot.slane %v9957_v54, %v14688_v45  ;;  %v11254_v40 = vrot.slane %v9511_v53, 9  ;;  %v11255_v6 = vrot.slane %v9510_v37, 9  ;;  %v9327_v31 = vmax.f32 %v9237_v58, 0.0  ;;  %v14779_v59 = vpop.f32.mrb[21].mxu1 }
 0x4a6   : > { %v11256_v7 = vrot.slane %v9512_v30, 9  ;;  %v10146_v22 = vrot.slane %v9958_v20, %v14688_v45  ;;  %v10344_v21 = vsel %vm10323_vm11, %v10138_v24, %v10134_v32  ;;  %v9959_v10 = vmax.f32 %v9503_v39, %v11253_v47  ;;  %v14785_v16 = vpop.f32.mrb[22].mxu1 }
 0x4a7   : > { %v9248_v38 = vadd.f32 %v14732_v19, %v14626_v62  ;;  %v10345_v15 = vsel %vm10325_vm12, %v10142_v48, %v10344_v21  ;;  %v9960_v36 = vmax.f32 %v9511_v53, %v11254_v40  ;;  %v9961_v42 = vmax.f32 %v9510_v37, %v11255_v6  ;;  %9359 = vst [vmem:[%s14680_s10 + $0x60] sm:$0xff] %v9327_v31  ;;  %v14789_v58 = vpop.f32.mrb[23].mxu1 }
 0x4a8   : > { %v9962_v44 = vmax.f32 %v9512_v30, %v11256_v7  ;;  %v10150_v35 = vrot.slane %v9959_v10, %v14688_v45  ;;  %v10346_v49 = vsel %vm10327_vm13, %v10146_v22, %v10345_v15  ;;  %v9385_v43 = vmax.f32 %v9327_v31, %v9329_v52 }
 0x4a9   : > { %v9330_v33 = vmax.f32 %v9248_v38, 0.0  ;;  %v10154_v62 = vrot.slane %v9960_v36, %v14688_v45  ;;  %v10158_v19 = vrot.slane %v9961_v42, %v14688_v45  ;;  %v9240_v50 = vadd.f32 %v14737_v28, %v14620_v57 }
 0x4aa   : > { %v10162_v23 = vrot.slane %v9962_v44, %v14688_v45  ;;  %v10347_v39 = vsel %vm10329_vm14, %v10150_v35, %v10346_v49  ;;  %v9513_v37 = vcombine.high %v9385_v43, %v9385_v43  ;;  %v9520_v17 = vrot.slane %v9385_v43, %v14677_v11 }
 0x4ab   : > { %9362 = vst [vmem:[%s14680_s10 + $0x78] sm:$0xff] %v9330_v33  ;;  %v9261_v41 = vadd.f32 %v14756_v51, %v14635_v12  ;;  %v10348_v52 = vsel %vm10331_vm15, %v10154_v62, %v10347_v39  ;;  %v9328_v3 = vmax.f32 %v9240_v50, 0.0  ;;  %v9253_v14 = vadd.f32 %v14759_v60, %v14629_v25 }
 0x4ac   : > { %v14809_v54 = vadd.f32 %v12367_v55, %v14638_v0  ;;  %v10349_v57 = vsel %vm10333_vm0, %v10158_v19, %v10348_v52  ;;  %v9527_v28 = vrot.slane %v9513_v37, %v14677_v11  ;;  %v9528_v56 = vcombine.high %v9520_v17, %v9520_v17  ;;  %v14813_v53 = vpop.f32.mrb[24].mxu1 }
 0x4ad   : > { %v11257_v32 = vrot.slane %v9520_v17, 9  ;;  %v10350_v12 = vsel %vm10335_vm1, %v10162_v23, %v10349_v57  ;;  %9360 = vst [vmem:[%s14680_s10 + $0x68] sm:$0xff] %v9328_v3  ;;  %v9386_v51 = vmax.f32 %v9328_v3, %v9330_v33  ;;  %v9333_v30 = vmax.f32 %v9261_v41, 0.0  ;;  %v14817_v25 = vpop.f32.mrb[25].mxu1 }
 0x4ae   : > { %v9331_v20 = vmax.f32 %v9253_v14, 0.0  ;;  %10396 = vst [vmem:[%s14723_s14 + $0x10] sm:$0xff] %v10350_v12  ;;  %v9529_v0 = vcombine.high %v9527_v28, %v9527_v28  ;;  %v11258_v60 = vrot.slane %v9528_v56, 9  ;;  %v11259_v55 = vrot.slane %v9527_v28, 9  ;;  %v14820_v48 = vpop.f32.mrb[26].mxu1 }
 0x4af   : > { %v9963_v24 = vmax.f32 %v9520_v17, %v11257_v32  ;;  %v9530_v47 = vcombine.high %v9386_v51, %v9386_v51  ;;  %v9537_v40 = vrot.slane %v9386_v51, %v14677_v11  ;;  %9365 = vst [vmem:[%s14680_s10 + $0x90] sm:$0xff] %v9333_v30  ;;  %v9334_v7 = vmax.f32 %v14809_v54, 0.0  ;;  %v14826_v31 = vpop.f32.mrb[27].mxu1 }
 0x4b0   : > { %9363 = vst [vmem:[%s14680_s10 + $0x80] sm:$0xff] %v9331_v20  ;;  %v9387_v6 = vmax.f32 %v9331_v20, %v9333_v30  ;;  %v11260_v22 = vrot.slane %v9529_v0, 9  ;;  %v9964_v21 = vmax.f32 %v9528_v56, %v11258_v60  ;;  %v9965_v10 = vmax.f32 %v9527_v28, %v11259_v55 }
 0x4b1   : > { %v10166_v38 = vrot.slane %v9963_v24, %v14688_v45  ;;  %v9544_v15 = vrot.slane %v9530_v47, %v14677_v11  ;;  %v9545_v36 = vcombine.high %v9537_v40, %v9537_v40  ;;  %v11261_v42 = vrot.slane %v9537_v40, 9  ;;  %9366 = vst [vmem:[%s14680_s10 + $0x98] sm:$0xff] %v9334_v7 }
 0x4b2   : > { %v9547_v44 = vcombine.high %v9387_v6, %v9387_v6  ;;  %v9966_v35 = vmax.f32 %v9529_v0, %v11260_v22  ;;  %v10170_v49 = vrot.slane %v9964_v21, %v14688_v45  ;;  %v10174_v43 = vrot.slane %v9965_v10, %v14688_v45 }
 0x4b3   : > { %v9554_v33 = vrot.slane %v9387_v6, %v14677_v11  ;;  %v9546_v62 = vcombine.high %v9544_v15, %v9544_v15  ;;  %v11262_v19 = vrot.slane %v9545_v36, 9  ;;  %v11263_v23 = vrot.slane %v9544_v15, 9 }
 0x4b4   : > { %v9967_v50 = vmax.f32 %v9537_v40, %v11261_v42  ;;  %v10178_v39 = vrot.slane %v9966_v35, %v14688_v45  ;;  %v10351_v37 = vsel %vm10323_vm11, %v10170_v49, %v10166_v38  ;;  %v9561_v17 = vrot.slane %v9547_v44, %v14677_v11  ;;  %v14837_v52 = vpop.f32.mrb[28].mxu1 }
 0x4b5   : > { %v9562_v41 = vcombine.high %v9554_v33, %v9554_v33  ;;  %v10352_v3 = vsel %vm10325_vm12, %v10174_v43, %v10351_v37  ;;  %v11264_v14 = vrot.slane %v9546_v62, 9  ;;  %v9968_v54 = vmax.f32 %v9545_v36, %v11262_v19  ;;  %v14840_v28 = vpop.f32.mrb[29].mxu1 }
 0x4b6   : > { %v9969_v57 = vmax.f32 %v9544_v15, %v11263_v23  ;;  %v10182_v56 = vrot.slane %v9967_v50, %v14688_v45  ;;  %v10353_v32 = vsel %vm10327_vm13, %v10178_v39, %v10352_v3  ;;  %v9563_v12 = vcombine.high %v9561_v17, %v9561_v17  ;;  %v14844_v30 = vpop.f32.mrb[30].mxu1 }
 0x4b7   : > { %v11265_v51 = vrot.slane %v9554_v33, 9  ;;  %v9970_v20 = vmax.f32 %v9546_v62, %v11264_v14  ;;  %v10186_v0 = vrot.slane %v9968_v54, %v14688_v45  ;;  %v11266_v55 = vrot.slane %v9562_v41, 9  ;;  %v14848_v24 = vpop.f32.mrb[31].mxu1 }
 0x4b8   : > { %v10190_v60 = vrot.slane %v9969_v57, %v14688_v45  ;;  %v10354_v47 = vsel %vm10329_vm14, %v10182_v56, %v10353_v32  ;;  %v11267_v40 = vrot.slane %v9561_v17, 9  ;;  %v11268_v6 = vrot.slane %v9563_v12, 9 }
 0x4b9   : > { %v9971_v22 = vmax.f32 %v9554_v33, %v11265_v51  ;;  %v10194_v21 = vrot.slane %v9970_v20, %v14688_v45  ;;  %v10355_v10 = vsel %vm10331_vm15, %v10186_v0, %v10354_v47  ;;  %v9972_v38 = vmax.f32 %v9562_v41, %v11266_v55 }
 0x4ba   : > { %v9256_v15 = vadd.f32 %v14765_v61, %v14632_v5  ;;  %v10356_v36 = vsel %vm10333_vm0, %v10190_v60, %v10355_v10  ;;  %v9973_v42 = vmax.f32 %v9561_v17, %v11267_v40  ;;  %v9974_v44 = vmax.f32 %v9563_v12, %v11268_v6 }
 0x4bb   : > { %v10198_v35 = vrot.slane %v9971_v22, %v14688_v45  ;;  %v10357_v49 = vsel %vm10335_vm1, %v10194_v21, %v10356_v36  ;;  %v10202_v43 = vrot.slane %v9972_v38, %v14688_v45  ;;  %v9277_v62 = vadd.f32 %v14777_v29, %v14647_v9 }
 0x4bc   : > { %v9332_v33 = vmax.f32 %v9256_v15, 0.0  ;;  %10397 = vst [vmem:[%s14723_s14 + $0x18] sm:$0xff] %v10357_v49  ;;  %v10206_v19 = vrot.slane %v9973_v42, %v14688_v45  ;;  %v10210_v5 = vrot.slane %v9974_v44, %v14688_v45  ;;  %v9269_v61 = vadd.f32 %v14779_v59, %v14641_v27 }
 0x4bd   : > { %v9280_v23 = vadd.f32 %v14785_v16, %v14650_v46  ;;  %v10358_v50 = vsel %vm10323_vm11, %v10202_v43, %v10198_v35  ;;  %v9337_v37 = vmax.f32 %v9277_v62, 0.0  ;;  %v9272_v9 = vadd.f32 %v14789_v58, %v14644_v8 }
 0x4be   : > { %9364 = vst [vmem:[%s14680_s10 + $0x88] sm:$0xff] %v9332_v33  ;;  %v9388_v39 = vmax.f32 %v9332_v33, %v9334_v7  ;;  %v10359_v29 = vsel %vm10325_vm12, %v10206_v19, %v10358_v50  ;;  %v9335_v17 = vmax.f32 %v9269_v61, 0.0  ;;  %v14875_v27 = vadd.f32 %v14813_v53, %v14659_v1 }
 0x4bf   : > { %v9338_v41 = vmax.f32 %v9280_v23, 0.0  ;;  %v10360_v16 = vsel %vm10327_vm13, %v10210_v5, %v10359_v29  ;;  %9369 = vst [vmem:[%s14680_s10 + $0xb0] sm:$0xff] %v9337_v37  ;;  %v9336_v7 = vmax.f32 %v9272_v9, 0.0  ;;  %v9285_v58 = vadd.f32 %v14817_v25, %v14653_v34 }
 0x4c0   : > { %v9564_v59 = vcombine.high %v9388_v39, %v9388_v39  ;;  %v9571_v46 = vrot.slane %v9388_v39, %v14677_v11  ;;  %9367 = vst [vmem:[%s14680_s10 + $0xa0] sm:$0xff] %v9335_v17  ;;  %v9389_v3 = vmax.f32 %v9335_v17, %v9337_v37  ;;  %v9341_v8 = vmax.f32 %v14875_v27, 0.0 }
 0x4c1   : > { %9370 = vst [vmem:[%s14680_s10 + $0xb8] sm:$0xff] %v9338_v41  ;;  %v14887_v1 = vadd.f32 %v14820_v48, %v14662_v18  ;;  %9368 = vst [vmem:[%s14680_s10 + $0xa8] sm:$0xff] %v9336_v7  ;;  %v9390_v57 = vmax.f32 %v9336_v7, %v9338_v41  ;;  %v9339_v12 = vmax.f32 %v9285_v58, 0.0 }
 0x4c2   : > { %v9578_v53 = vrot.slane %v9564_v59, %v14677_v11  ;;  %v9579_v14 = vcombine.high %v9571_v46, %v9571_v46  ;;  %v11269_v54 = vrot.slane %v9571_v46, 9  ;;  %v9581_v56 = vcombine.high %v9389_v3, %v9389_v3  ;;  %9373 = vst [vmem:[%s14680_s10 + $0xd0] sm:$0xff] %v9341_v8 }
 0x4c3   : > { %v9588_v32 = vrot.slane %v9389_v3, %v14677_v11  ;;  %v9342_v51 = vmax.f32 %v14887_v1, 0.0  ;;  %v9598_v55 = vcombine.high %v9390_v57, %v9390_v57  ;;  %9371 = vst [vmem:[%s14680_s10 + $0xc0] sm:$0xff] %v9339_v12  ;;  %v9605_v61 = vrot.slane %v9390_v57, %v14677_v11 }
 0x4c4   : > { %v9580_v34 = vcombine.high %v9578_v53, %v9578_v53  ;;  %v11270_v25 = vrot.slane %v9579_v14, 9  ;;  %v11271_v20 = vrot.slane %v9578_v53, 9  ;;  %v9975_v18 = vmax.f32 %v9571_v46, %v11269_v54 }
 0x4c5   : > { %v9595_v48 = vrot.slane %v9581_v56, %v14677_v11  ;;  %v9596_v0 = vcombine.high %v9588_v32, %v9588_v32  ;;  %v11273_v60 = vrot.slane %v9588_v32, 9  ;;  %9374 = vst [vmem:[%s14680_s10 + $0xd8] sm:$0xff] %v9342_v51  ;;  %v9612_v23 = vrot.slane %v9598_v55, %v14677_v11 }
 0x4c6   : > { %v11272_v47 = vrot.slane %v9580_v34, 9  ;;  %v9976_v40 = vmax.f32 %v9579_v14, %v11270_v25  ;;  %v9977_v6 = vmax.f32 %v9578_v53, %v11271_v20  ;;  %v10214_v22 = vrot.slane %v9975_v18, %v14688_v45 }
 0x4c7   : > { %v9597_v21 = vcombine.high %v9595_v48, %v9595_v48  ;;  %v11274_v10 = vrot.slane %v9596_v0, 9  ;;  %v11275_v38 = vrot.slane %v9595_v48, 9  ;;  %v9979_v15 = vmax.f32 %v9588_v32, %v11273_v60 }
 0x4c8   : > { %v9978_v36 = vmax.f32 %v9580_v34, %v11272_v47  ;;  %v10218_v42 = vrot.slane %v9976_v40, %v14688_v45  ;;  %v10222_v44 = vrot.slane %v9977_v6, %v14688_v45  ;;  %v10361_v35 = vsel %vm10329_vm14, %v10214_v22, %v10360_v16 }
 0x4c9   : > { %v11276_v49 = vrot.slane %v9597_v21, 9  ;;  %v9980_v43 = vmax.f32 %v9596_v0, %v11274_v10  ;;  %v9981_v33 = vmax.f32 %v9595_v48, %v11275_v38  ;;  %v10230_v62 = vrot.slane %v9979_v15, %v14688_v45 }
 0x4ca   : > { %v10226_v19 = vrot.slane %v9978_v36, %v14688_v45  ;;  %v10362_v5 = vsel %vm10331_vm15, %v10218_v42, %v10361_v35  ;;  %v9613_v17 = vcombine.high %v9605_v61, %v9605_v61  ;;  %v9614_v41 = vcombine.high %v9612_v23, %v9612_v23 }
 0x4cb   : > { %v10363_v50 = vsel %vm10333_vm0, %v10222_v44, %v10362_v5  ;;  %v9982_v39 = vmax.f32 %v9597_v21, %v11276_v49  ;;  %v10234_v37 = vrot.slane %v9980_v43, %v14688_v45  ;;  %v10238_v9 = vrot.slane %v9981_v33, %v14688_v45 }
 0x4cc   : > { %v10364_v29 = vsel %vm10335_vm1, %v10226_v19, %v10363_v50  ;;  %v11277_v27 = vrot.slane %v9605_v61, 9  ;;  %v11279_v16 = vrot.slane %v9612_v23, 9  ;;  %v9391_v7 = vmax.f32 %v9339_v12, %v9341_v8 }
 0x4cd   : > { %10398 = vst [vmem:[%s14723_s14 + $0x20] sm:$0xff] %v10364_v29  ;;  %v10242_v59 = vrot.slane %v9982_v39, %v14688_v45  ;;  %v10365_v46 = vsel %vm10323_vm11, %v10234_v37, %v10230_v62  ;;  %v11278_v58 = vrot.slane %v9613_v17, 9  ;;  %v11280_v53 = vrot.slane %v9614_v41, 9 }
 0x4ce   : > { %v10366_v3 = vsel %vm10325_vm12, %v10238_v9, %v10365_v46  ;;  %v9983_v14 = vmax.f32 %v9605_v61, %v11277_v27  ;;  %v9985_v54 = vmax.f32 %v9612_v23, %v11279_v16  ;;  %v9615_v56 = vcombine.high %v9391_v7, %v9391_v7 }
 0x4cf   : > { %v10367_v57 = vsel %vm10327_vm13, %v10242_v59, %v10366_v3  ;;  %v9622_v32 = vrot.slane %v9391_v7, %v14677_v11  ;;  %v9984_v34 = vmax.f32 %v9613_v17, %v11278_v58  ;;  %v9986_v25 = vmax.f32 %v9614_v41, %v11280_v53 }
 0x4d0   : > { %v10246_v20 = vrot.slane %v9983_v14, %v14688_v45  ;;  %v9288_v18 = vadd.f32 %v14826_v31, %v14656_v2  ;;  %v10254_v8 = vrot.slane %v9985_v54, %v14688_v45  ;;  %v9629_v12 = vrot.slane %v9615_v56, %v14677_v11 }
 0x4d1   : > { %v9630_v48 = vcombine.high %v9622_v32, %v9622_v32  ;;  %v11281_v0 = vrot.slane %v9622_v32, 9  ;;  %v10250_v60 = vrot.slane %v9984_v34, %v14688_v45  ;;  %v10258_v55 = vrot.slane %v9986_v25, %v14688_v45 }
 0x4d2   : > { %v10368_v47 = vsel %vm10329_vm14, %v10246_v20, %v10367_v57  ;;  %v9340_v40 = vmax.f32 %v9288_v18, 0.0  ;;  %v9631_v6 = vcombine.high %v9629_v12, %v9629_v12  ;;  %v11283_v21 = vrot.slane %v9629_v12, 9 }
 0x4d3   : > { %v11282_v22 = vrot.slane %v9630_v48, 9  ;;  %v9987_v10 = vmax.f32 %v9622_v32, %v11281_v0  ;;  %v10369_v2 = vsel %vm10331_vm15, %v10250_v60, %v10368_v47  ;;  %v9309_v38 = vadd.f32 %v14837_v52, %v14675_v13 }
 0x4d4   : > { %9372 = vst [vmem:[%s14680_s10 + $0xc8] sm:$0xff] %v9340_v40  ;;  %v9392_v31 = vmax.f32 %v9340_v40, %v9342_v51  ;;  %v9301_v15 = vadd.f32 %v14840_v28, %v14665_v4  ;;  %v10370_v36 = vsel %vm10333_vm0, %v10254_v8, %v10369_v2  ;;  %v11284_v42 = vrot.slane %v9631_v6, 9 }
 0x4d5   : > { %v9988_v44 = vmax.f32 %v9630_v48, %v11282_v22  ;;  %v9989_v35 = vmax.f32 %v9629_v12, %v11283_v21  ;;  %v10371_v49 = vsel %vm10335_vm1, %v10258_v55, %v10370_v36  ;;  %v10262_v43 = vrot.slane %v9987_v10, %v14688_v45 }
 0x4d6   : > { %v9632_v1 = vcombine.high %v9392_v31, %v9392_v31  ;;  %v9639_v51 = vrot.slane %v9392_v31, %v14677_v11  ;;  %10399 = vst [vmem:[%s14723_s14 + $0x28] sm:$0xff] %v10371_v49  ;;  %v9990_v13 = vmax.f32 %v9631_v6, %v11284_v42  ;;  %v9345_v28 = vmax.f32 %v9309_v38, 0.0 }
 0x4d7   : > { %v10266_v52 = vrot.slane %v9988_v44, %v14688_v45  ;;  %v10270_v4 = vrot.slane %v9989_v35, %v14688_v45  ;;  %v9343_v5 = vmax.f32 %v9301_v15, 0.0  ;;  %v9312_v50 = vadd.f32 %v14844_v30, %v14683_v63 }
 0x4d8   : > { %v9646_v33 = vrot.slane %v9632_v1, %v14677_v11  ;;  %v9647_v62 = vcombine.high %v9639_v51, %v9639_v51  ;;  %v11285_v19 = vrot.slane %v9639_v51, 9  ;;  %v10274_v61 = vrot.slane %v9990_v13, %v14688_v45  ;;  %9377 = vst [vmem:[%s14680_s10 + $0xf0] sm:$0xff] %v9345_v28 }
 0x4d9   : > { %v10372_v23 = vsel %vm10323_vm11, %v10266_v52, %v10262_v43  ;;  %v9304_v39 = vadd.f32 %v14848_v24, %v14668_v26  ;;  %9375 = vst [vmem:[%s14680_s10 + $0xe0] sm:$0xff] %v9343_v5  ;;  %v9393_v59 = vmax.f32 %v9343_v5, %v9345_v28  ;;  %v9346_v46 = vmax.f32 %v9312_v50, 0.0 }
 0x4da   : > { %v10373_v37 = vsel %vm10325_vm12, %v10270_v4, %v10372_v23  ;;  %v9648_v9 = vcombine.high %v9646_v33, %v9646_v33  ;;  %v11286_v29 = vrot.slane %v9647_v62, 9  ;;  %v11287_v17 = vrot.slane %v9646_v33, 9 }
 0x4db   : > { %v9991_v41 = vmax.f32 %v9639_v51, %v11285_v19  ;;  %v10374_v27 = vsel %vm10327_vm13, %v10274_v61, %v10373_v37  ;;  %v9344_v24 = vmax.f32 %v9304_v39, 0.0  ;;  %v9649_v7 = vcombine.high %v9393_v59, %v9393_v59  ;;  %9378 = vst [vmem:[%s14680_s10 + $0xf8] sm:$0xff] %v9346_v46 }
 0x4dc   : > { %v11288_v26 = vrot.slane %v9648_v9, 9  ;;  %v9992_v63 = vmax.f32 %v9647_v62, %v11286_v29  ;;  %v9993_v30 = vmax.f32 %v9646_v33, %v11287_v17  ;;  %v9656_v3 = vrot.slane %v9393_v59, %v14677_v11 }
 0x4dd   : > { %v10278_v16 = vrot.slane %v9991_v41, %v14688_v45  ;;  %9376 = vst [vmem:[%s14680_s10 + $0xe8] sm:$0xff] %v9344_v24  ;;  %v9394_v54 = vmax.f32 %v9344_v24, %v9346_v46  ;;  %v9663_v56 = vrot.slane %v9649_v7, %v14677_v11 }
 0x4de   : > { %v9994_v58 = vmax.f32 %v9648_v9, %v11288_v26  ;;  %v10282_v53 = vrot.slane %v9992_v63, %v14688_v45  ;;  %v10286_v14 = vrot.slane %v9993_v30, %v14688_v45  ;;  %v9664_v32 = vcombine.high %v9656_v3, %v9656_v3 }
 0x4df   : > { %v10375_v57 = vsel %vm10329_vm14, %v10278_v16, %v10374_v27  ;;  %v11289_v34 = vrot.slane %v9656_v3, 9 }
 0x4e0   : > { %13183 = shalt.err (!%p13180_p1)
}
 0x4e1   : > { %s13184_s13 = scalar_lea.hbm %s14957_s19, 4096  ;;  %s13188_s7 = scalar_lea.hbm %s15078_s5, 8192 }
 0x4e2   : > { %p13185_p13 = scmp.ne.s32.totalorder %s14957_s19, %s13184_s13  ;;  %p13189_p4 = scmp.lt.u32.totalorder %s14957_s19, %s15078_s5 }
 0x4e3   : > { %p13190_p5 = scmp.lt.u32.totalorder %s13188_s7, %s13184_s13  ;;  %p13192_p11 = scmp.lt.u32.totalorder %s13184_s13, %s14957_s19 }
 0x4e4   : > { %p13186_p6 = pnand %p13185_p13, %p15101_p0 }
 0x4e5   : > { %p13191_p8 = por %p13190_p5, %p13189_p4 }
 0x4e6   : > { %p13187_p10 = pneg %p13186_p6 }
 0x4e7   : > { %p13193_p2 = por %p13192_p11, %p13191_p8 }
 0x4e9   : > { %p13194_p3 = pnand %p13193_p2, %p13187_p10 }
 0x4eb   : > { %13197 = shalt.err (!%p13194_p3)
}
 0x4ec   : > { %s13282_s16 = smov 128   ;;  %s13283_s17 = smov 8   ;;  %v10290_v25 = vrot.slane %v9994_v58, %v14688_v45  ;;  %v10376_v20 = vsel %vm10331_vm15, %v10282_v53, %v10375_v57  ;;  %v9666_v18 = vcombine.high %v9394_v54, %v9394_v54  ;;  %v9673_v8 = vrot.slane %v9394_v54, %v14677_v11 }
 0x4ed   : > { %12390 = dma.vmem_to_hbm [thread:$0]  (%p15101_p0), %s14959_s12, 4096, %s14957_s19, %s10403_s20, %s13282_s16, %s13282_s16, %s13283_s17   ;;  %v10377_v12 = vsel %vm10333_vm0, %v10286_v14, %v10376_v20  ;;  %v9665_v48 = vcombine.high %v9663_v56, %v9663_v56  ;;  %v11290_v0 = vrot.slane %v9664_v32, 9  ;;  %v11291_v60 = vrot.slane %v9663_v56, 9 }
 0x4ee   : > { %v10378_v55 = vsel %vm10335_vm1, %v10290_v25, %v10377_v12  ;;  %v9995_v47 = vmax.f32 %v9656_v3, %v11289_v34  ;;  %v9680_v40 = vrot.slane %v9666_v18, %v14677_v11  ;;  %v9681_v6 = vcombine.high %v9673_v8, %v9673_v8  ;;  %s11339_s12 = sshll.u32 %s13341_s25, 10  ;;  %s10437_s19 = sshll.u32 %s14723_s14, 4  ;;  %s15024_s19 = int_to_ptr.vmem [resolvable:$true] %s10437_s19 }
 0x4ef   : > { %10400 = vst [vmem:[%s14723_s14 + $0x30] sm:$0xff] %v10378_v55  ;;  %v11292_v22 = vrot.slane %v9665_v48, 9  ;;  %v9996_v21 = vmax.f32 %v9664_v32, %v11290_v0  ;;  %v9997_v10 = vmax.f32 %v9663_v56, %v11291_v60  ;;  %v11293_v2 = vrot.slane %v9673_v8, 9  ;;  %s15022_s26 = scalar_lea.hbm %s15079_s6, %s11339_s12  ;;  %s10408_s25 = scalar_lea.sflag [#allocation12], %s13501_s30 }
 0x4f0   : > { %v10294_v31 = vrot.slane %v9995_v47, %v14688_v45  ;;  %v9682_v38 = vcombine.high %v9680_v40, %v9680_v40  ;;  %v11294_v15 = vrot.slane %v9681_v6, 9  ;;  %v11295_v36 = vrot.slane %v9680_v40, 9  ;;  %s13198_s13 = scalar_lea.vmem %s15024_s19, 1024  ;;  %s13284_s10 = smov [#allocation11]  }
 0x4f1   : > { %v9998_v42 = vmax.f32 %v9665_v48, %v11292_v22  ;;  %v10298_v44 = vrot.slane %v9996_v21, %v14688_v45  ;;  %v10302_v35 = vrot.slane %v9997_v10, %v14688_v45  ;;  %v9999_v49 = vmax.f32 %v9673_v8, %v11293_v2  ;;  %p13199_p7 = scmp.ne.s32.totalorder %s15024_s19, %s13198_s13  ;;  %s13202_s15 = sshll.u32 %s13284_s10, 4  ;;  %s13203_s15 = int_to_ptr.vmem [resolvable:$false] %s13202_s15 }
 0x4f2   : > { %v11296_v11 = vrot.slane %v9682_v38, 9  ;;  %v10000_v43 = vmax.f32 %v9681_v6, %v11294_v15  ;;  %v10001_v1 = vmax.f32 %v9680_v40, %v11295_v36  ;;  %s13204_s7 = scalar_lea.vmem %s13203_s15, 2048  ;;  %p13205_p1 = scmp.lt.s32.totalorder %s15024_s19, %s13203_s15 }
 0x4f3   : > { %v10306_v51 = vrot.slane %v9998_v42, %v14688_v45  ;;  %v10379_v13 = vsel %vm10323_vm11, %v10298_v44, %v10294_v31  ;;  %v10310_v28 = vrot.slane %v9999_v49, %v14688_v45  ;;  %p13200_p9 = pnand %p13199_p7, %p15101_p0  ;;  %p13206_p13 = scmp.lt.s32.totalorder %s13204_s7, %s13198_s13 }
 0x4f4   : > { %v10380_v52 = vsel %vm10325_vm12, %v10302_v35, %v10379_v13  ;;  %v10002_v4 = vmax.f32 %v9682_v38, %v11296_v11  ;;  %v10314_v33 = vrot.slane %v10000_v43, %v14688_v45  ;;  %v10318_v19 = vrot.slane %v10001_v1, %v14688_v45 }
 0x4f5   : > { %v10381_v62 = vsel %vm10327_vm13, %v10306_v51, %v10380_v52  ;;  %p13201_p12 = pneg %p13200_p9  ;;  %p13207_p6 = por %p13206_p13, %p13205_p1 }
 0x4f6   : > { %v10382_v5 = vsel %vm10329_vm14, %v10310_v28, %v10381_v62  ;;  %v10322_v61 = vrot.slane %v10002_v4, %v14688_v45 }
 0x4f7   : > { %v10383_v23 = vsel %vm10331_vm15, %v10314_v33, %v10382_v5  ;;  %p13208_p10 = pnand %p13207_p6, %p13201_p12 }
 0x4f8   : > { %v10384_v50 = vsel %vm10333_vm0, %v10318_v19, %v10383_v23 }
 0x4f9   : > { %v10385_v39 = vsel %vm10335_vm1, %v10322_v61, %v10384_v50 }
 0x4fa   : > { %10401 = vst [vmem:[%s14723_s14 + $0x38] sm:$0xff] %v10385_v39 }
 0x4fb   : > { %13211 = shalt.err (!%p13208_p10)
}
 0x4fc   : > { %s13212_s14 = scalar_lea.hbm %s15022_s26, 1024  ;;  %s13216_s12 = scalar_lea.hbm %s15079_s6, 2048 }
 0x4fd   : > { %p13213_p4 = scmp.ne.s32.totalorder %s15022_s26, %s13212_s14  ;;  %p13217_p11 = scmp.lt.u32.totalorder %s15022_s26, %s15079_s6 }
 0x4fe   : > { %p13218_p2 = scmp.lt.u32.totalorder %s13216_s12, %s13212_s14  ;;  %p13220_p7 = scmp.lt.u32.totalorder %s13212_s14, %s15022_s26 }
 0x4ff   : > { %p13214_p5 = pnand %p13213_p4, %p15101_p0 }
 0x500   : > { %p13219_p3 = por %p13218_p2, %p13217_p11 }
 0x501   : > { %p13215_p8 = pneg %p13214_p5 }
 0x502   : > { %p13221_p9 = por %p13220_p7, %p13219_p3 }
 0x504   : > { %p13222_p12 = pnand %p13221_p9, %p13215_p8 }
 0x506   : > { %13225 = shalt.err (!%p13222_p12)
}
 0x507   : > { %12391 = dma.vmem_to_hbm [thread:$0]  (%p15101_p0), %s15024_s19, 1024, %s15022_s26, %s10408_s25, %s13282_s16, %s13282_s16, %s13283_s17  }
 0x508 PF: > { %s10452_s13 = sand.u32 1, %s13260_s21   ;;  %p15102_p1 = scmp.ne.s32.totalorder %s15084_s28, 0 }
 0x509   : > { %p15103_p13 = scmp.ge.s32.totalorder %s13272_s24, 2  ;;  %s10453_s10 = scalar_lea.sflag [#allocation6], %s10452_s13 }
 0x50b   : > { %p12406_p6 = pnand %p15103_p13, %p15102_p1 }
 0x50d   : > { %13251 = dma.done.wait (!%p12406_p6), %s10453_s10, 4096  }
 0x50e   : > { %13253 = vsyncadd (!%p12406_p6), %s10453_s10, 4294963200  ;;  %s10462_s9 = scalar_lea.sflag [#allocation12], %s10452_s13 }
 0x50f   : > { %13255 = dma.done.wait (!%p12406_p6), %s10462_s9, 1024  }
 0x510   : > { %13257 = vsyncadd (!%p12406_p6), %s10462_s9, 4294966272  ;;  %p24_p0 = scmp.ge.s32.totalorder %s13436_s8, 4   ;;  %s15104_s21 = smov %s13264_s22 }
 0x511   : > { %s15105_s22 = smov %s13268_s23  ;;  %s15106_s23 = smov %s13452_s11 }
 0x512   : > { %s15107_s24 = smov %s13436_s8  ;;  %26 = sbr.rel (!%p24_p0) target bundleno = 8 (0x8), region = 113 }
 0x519   :  { %10467 = vsyncpa [#allocation5], 1 }
 0x51a   :  { %10469 = vsyncpa [#allocation5 + $0x1], 1 }
 0x51b   :  { %10470 = vsyncpa [#allocation8], 1 }
 0x51c   :  { %10471 = vsyncpa [#allocation6], 1 }
 0x51d   :  { %10473 = vsyncpa [#allocation6 + $0x1], 1 }
 0x51e   :  { %10474 = vsyncpa [#allocation12], 1 }
 0x51f   :  { %10476 = vsyncpa [#allocation12 + $0x1], 1 }

</bundles_post_ra>
